<compile_context>
chip_gen: v7x
topology: tpu7x:2x2x1
jax: 0.10.0
libtpu: 0.0.40
codegen_flags: <defaults>
</compile_context>

<pallas_src>
import numpy as np
import jax
import jax.numpy as jnp
from jax import lax
from jax.experimental import pallas as pl
from jax.experimental.pallas import tpu as pltpu

LANE = 128

# LeNet geometry implied by the torch module (32x32 input -> 16*5*5 flatten).
PH1 = PW1 = 14            # conv1 output after 2x2/2 maxpool
C2IN, C2OUT = 6, 16
PH2 = PW2 = 5             # conv2 output after 2x2/2 maxpool
KIN = PH1 * PW1 * C2IN    # 1176 flattened conv1 features feeding conv2
KIN_PAD = 1184            # padded to a multiple of 32
NFEAT = C2OUT * PH2 * PW2  # 400 torch-order (c,h,w) features after conv2+pool
TAP_GROUP = 512           # per-pool-tap column group (400 padded to 512)


def _round_up(x, m):
    return (x + m - 1) // m * m


def _pad2d(a, rows, cols, dtype=None):
    out = jnp.pad(a, ((0, rows - a.shape[0]), (0, cols - a.shape[1])))
    return out if dtype is None else out.astype(dtype)


# ---------------------------------------------------------------------------
# Kernel 1: conv1 (single merged im2col matmul over all 4 pool taps and the whole
# image block) + bias + ReLU + 2x2 maxpool.
# ---------------------------------------------------------------------------
def _conv1_kernel(p_ref, w_ref, b_ref, o_ref):
    # p_ref: (NB, 4, MP, K) bf16 -- 4 pool-tap im2col slabs for NB images
    # w_ref: (K, 128) bf16 ; b_ref: (1, 128) f32 ; o_ref: (NB, MP, 8) bf16
    nb, nt, mp, k = p_ref.shape
    rows = p_ref[...].reshape(nb * nt * mp, k)                          # one MXU push
    z = jnp.dot(rows, w_ref[...], preferred_element_type=jnp.float32)  # (NB*4*MP, 128)
    z = z.reshape(nb, nt, mp, LANE).max(axis=1)                        # 2x2 maxpool (taps)
    z = jnp.maximum(z + b_ref[...], 0.0)                               # bias + ReLU
    o_ref[...] = z[:, :, : o_ref.shape[-1]].astype(o_ref.dtype)


def conv1_relu_pool(x_nhwc, w, b, *, out_ch_pad=8):
    # x: (N, H, W, Cin) f32 ; w: (KH, KW, Cin, Cout) ; b: (Cout,)
    # valid conv (stride 1) + ReLU + 2x2/2 maxpool.  Returns (N, PH, PW, Cout) bf16.
    n, h, wd, cin = x_nhwc.shape
    kh, kw, _, cout = w.shape
    ho, wo = h - kh + 1, wd - kw + 1
    assert ho % 2 == 0 and wo % 2 == 0, "2x2 maxpool needs even conv output dims"
    ph, pw = ho // 2, wo // 2
    m, k = ph * pw, kh * kw * cin
    mp = _round_up(m, 16)                     # sublane-align rows (bf16 tile = 16)

    xb = x_nhwc.astype(jnp.bfloat16)
    taps = []
    for ti in range(2):
        for tj in range(2):
            cols = [xb[:, ti + ki: ti + ki + 2 * ph: 2,
                        tj + kj: tj + kj + 2 * pw: 2, :]
                    for ki in range(kh) for kj in range(kw)]
            taps.append(jnp.stack(cols, axis=3).reshape(n, m, k))
    patches = jnp.stack(taps, axis=1)                     # (N, 4, M, K), batch-major

    nb = max(1, min(8, (n + 1) // 2))         # images per grid step (grid >= 2 if possible)
    n_pad = _round_up(n, nb)
    patches = jnp.pad(patches, ((0, n_pad - n), (0, 0), (0, mp - m), (0, 0)))

    wmat = _pad2d(w.reshape(k, cout), k, LANE, jnp.bfloat16)            # (K, 128)
    bvec = _pad2d(b.reshape(1, cout).astype(jnp.float32), 1, LANE)      # (1, 128)

    cost = pl.CostEstimate(
        flops=2 * n_pad * 4 * m * k * cout,   # real cout, not the 128 padded lanes
        transcendentals=0,
        bytes_accessed=(patches.size + wmat.size + n_pad * mp * out_ch_pad) * 2
        + bvec.size * 4,
    )
    out = pl.pallas_call(
        _conv1_kernel,
        out_shape=jax.ShapeDtypeStruct((n_pad, mp, out_ch_pad), jnp.bfloat16),
        grid_spec=pltpu.PrefetchScalarGridSpec(
            num_scalar_prefetch=0,
            grid=(n_pad // nb,),
            in_specs=[
                pl.BlockSpec((nb, 4, mp, k), lambda i: (i, 0, 0, 0)),
                pl.BlockSpec((k, LANE), lambda i: (0, 0)),
                pl.BlockSpec((1, LANE), lambda i: (0, 0)),
            ],
            out_specs=pl.BlockSpec((nb, mp, out_ch_pad), lambda i: (i, 0, 0)),
        ),
        compiler_params=pltpu.CompilerParams(dimension_semantics=("parallel",)),
        cost_estimate=cost,
    )(patches, wmat, bvec)
    return out[:n, :m, :cout].reshape(n, ph, pw, cout)


# ---------------------------------------------------------------------------
# Kernel 2: conv2 + bias + ReLU + 2x2 maxpool + torch-order flatten + fc1/fc2/fc3
# (each + ReLU), fused into a single call.  conv2(+pool taps) is expressed as a dense
# (KIN_PAD -> 4 * TAP_GROUP) linear map; the 2x2 pool is the elementwise max over the
# four 512-wide (vreg-aligned) column groups.
# ---------------------------------------------------------------------------
def _conv2_fc_kernel(x_ref, wc_ref, bc_ref, w1_ref, b1_ref, w2_ref, b2_ref,
                     w3_ref, b3_ref, o_ref):
    g = TAP_GROUP
    z = jnp.dot(x_ref[...], wc_ref[...], preferred_element_type=jnp.float32)  # (R, 4g)
    z = jnp.maximum(jnp.maximum(z[:, 0:g], z[:, g:2 * g]),
                    jnp.maximum(z[:, 2 * g:3 * g], z[:, 3 * g:4 * g]))        # maxpool
    h = jnp.maximum(z + bc_ref[...], 0.0)                                     # (R, 512)
    for w_ref, b_ref in ((w1_ref, b1_ref), (w2_ref, b2_ref), (w3_ref, b3_ref)):
        h = jnp.maximum(
            jnp.dot(h, w_ref[...], preferred_element_type=jnp.float32) + b_ref[...],
            0.0,
        )
    o_ref[...] = h.astype(o_ref.dtype)        # (R, 128); lanes 10.. are exactly 0


def conv2_fc_stack(x2, wc, bc, w1, b1, w2, b2, w3, b3):
    # x2: (N, KIN_PAD) bf16 flattened conv1 activations.  Returns (N, 10) f32.
    n = x2.shape[0]
    rb = min(128, _round_up(n, 16))           # batch rows per grid step
    n_pad = _round_up(n, rb)
    x2 = jnp.pad(x2, ((0, n_pad - n), (0, 0)))
    res = lambda i: (0, 0)                    # weights stay VMEM-resident across steps
    out = pl.pallas_call(
        _conv2_fc_kernel,
        out_shape=jax.ShapeDtypeStruct((n_pad, LANE), jnp.float32),
        grid_spec=pltpu.PrefetchScalarGridSpec(
            num_scalar_prefetch=0,
            grid=(n_pad // rb,),
            in_specs=[
                pl.BlockSpec((rb, KIN_PAD), lambda i: (i, 0)),
                pl.BlockSpec(wc.shape, res), pl.BlockSpec(bc.shape, res),
                pl.BlockSpec(w1.shape, res), pl.BlockSpec(b1.shape, res),
                pl.BlockSpec(w2.shape, res), pl.BlockSpec(b2.shape, res),
                pl.BlockSpec(w3.shape, res), pl.BlockSpec(b3.shape, res),
            ],
            out_specs=pl.BlockSpec((rb, LANE), lambda i: (i, 0)),
        ),
        compiler_params=pltpu.CompilerParams(
            dimension_semantics=("parallel",),
            vmem_limit_bytes=48 * 1024 * 1024,
        ),
    )(x2, wc, bc, w1, b1, w2, b2, w3, b3)
    return out[:n, :10]


def _conv2_as_dense(w2, b2):
    # Express conv2 + 2x2 maxpool + torch (C,H,W) flatten as a dense linear map.
    #   rows   : conv1 activations flattened (h, w, c), zero rows for the pad 1176..1183
    #   columns: 4 pool taps x TAP_GROUP; within a tap, column c2*25 + i*5 + j is the
    #            torch-order output feature (cols 400..511 of each tap are zero).
    kh, kw = w2.shape[0], w2.shape[1]
    t, i, j, ki, kj, c1, c2 = np.meshgrid(
        np.arange(4), np.arange(PH2), np.arange(PW2), np.arange(kh), np.arange(kw),
        np.arange(C2IN), np.arange(C2OUT), indexing="ij")
    ti, tj = t // 2, t % 2
    h1 = 2 * i + ti + ki                       # always < PH1
    w1 = 2 * j + tj + kj                       # always < PW1
    fin = (h1 * PW1 + w1) * C2IN + c1
    fout = t * TAP_GROUP + c2 * (PH2 * PW2) + i * PW2 + j
    vals = w2[ki.ravel(), kj.ravel(), c1.ravel(), c2.ravel()]
    wbig = jnp.zeros((KIN_PAD, 4 * TAP_GROUP), jnp.float32)
    wbig = wbig.at[fin.ravel(), fout.ravel()].set(vals)
    bcols = (np.arange(C2OUT)[:, None] * (PH2 * PW2)
             + np.arange(PH2 * PW2)[None, :]).ravel()
    bbig = jnp.zeros((1, TAP_GROUP), jnp.float32)
    bbig = bbig.at[0, bcols].set(jnp.repeat(b2, PH2 * PW2))
    return wbig.astype(jnp.bfloat16), bbig


# ---------------------------------------------------------------------------
# Model (parameters initialized deterministically in-script)
# ---------------------------------------------------------------------------
def init_params(key):
    ks = jax.random.split(key, 10)

    def rnd(k, shape, scale=0.1):
        return (scale * jax.random.normal(k, shape)).astype(jnp.float32)

    return {
        "conv1_w": rnd(ks[0], (5, 5, 3, 6)),     # torch Conv2d(3, 6, 5) as (KH,KW,Cin,Cout)
        "conv1_b": rnd(ks[1], (6,)),
        "conv2_w": rnd(ks[2], (5, 5, 6, 16)),    # torch Conv2d(6, 16, 5)
        "conv2_b": rnd(ks[3], (16,)),
        "fc1_w": rnd(ks[4], (16 * 5 * 5, 120)),  # torch Linear(400, 120) (transposed)
        "fc1_b": rnd(ks[5], (120,)),
        "fc2_w": rnd(ks[6], (120, 80)),          # torch Linear(120, 80)
        "fc2_b": rnd(ks[7], (80,)),
        "fc3_w": rnd(ks[8], (80, 10)),           # torch Linear(80, 10)
        "fc3_b": rnd(ks[9], (10,)),
    }


def prepare_params(p):
    # One-time weight preprocessing (padding, bf16 cast, dense conv2 map).
    wc, bc = _conv2_as_dense(p["conv2_w"], p["conv2_b"])
    return {
        "conv1_w": p["conv1_w"],
        "conv1_b": p["conv1_b"],
        "conv2_wbig": wc,                                            # (1184, 2048) bf16
        "conv2_bbig": bc,                                            # (1, 512) f32
        "fc1_w": _pad2d(p["fc1_w"], TAP_GROUP, LANE, jnp.bfloat16),  # (512, 128)
        "fc1_b": _pad2d(p["fc1_b"].reshape(1, -1), 1, LANE),
        "fc2_w": _pad2d(p["fc2_w"], LANE, LANE, jnp.bfloat16),
        "fc2_b": _pad2d(p["fc2_b"].reshape(1, -1), 1, LANE),
        "fc3_w": _pad2d(p["fc3_w"], LANE, LANE, jnp.bfloat16),
        "fc3_b": _pad2d(p["fc3_b"].reshape(1, -1), 1, LANE),
    }


def forward(prepared, x_nchw):
    # x_nchw: (N, 3, 32, 32) f32 (PyTorch convention).  Returns (N, 10) f32, all >= 0.
    n = x_nchw.shape[0]
    x = jnp.transpose(x_nchw, (0, 2, 3, 1))                              # NCHW -> NHWC
    h1 = conv1_relu_pool(x, prepared["conv1_w"], prepared["conv1_b"])    # (N,14,14,6) bf16
    x2 = h1.reshape(n, -1)                                               # (h, w, c) flatten
    x2 = jnp.pad(x2, ((0, 0), (0, KIN_PAD - x2.shape[1])))               # -> (N, 1184)
    return conv2_fc_stack(
        x2,
        prepared["conv2_wbig"], prepared["conv2_bbig"],
        prepared["fc1_w"], prepared["fc1_b"],
        prepared["fc2_w"], prepared["fc2_b"],
        prepared["fc3_w"], prepared["fc3_b"],
    )


def forward_reference(params, x_nchw):
    # Pure-JAX f32 reference of the torch module (for a loose bf16 correctness check).
    def conv(a, w, b):
        y = lax.conv_general_dilated(a, w, (1, 1), "VALID",
                                     dimension_numbers=("NHWC", "HWIO", "NHWC"))
        return jax.nn.relu(y + b)

    def pool(a):
        return lax.reduce_window(a, -jnp.inf, lax.max, (1, 2, 2, 1), (1, 2, 2, 1), "VALID")

    x = jnp.transpose(x_nchw, (0, 2, 3, 1))
    x = pool(conv(x, params["conv1_w"], params["conv1_b"]))
    x = pool(conv(x, params["conv2_w"], params["conv2_b"]))
    x = jnp.transpose(x, (0, 3, 1, 2)).reshape(x.shape[0], -1)           # torch flatten order
    x = jax.nn.relu(x @ params["fc1_w"] + params["fc1_b"])
    x = jax.nn.relu(x @ params["fc2_w"] + params["fc2_b"])
    x = jax.nn.relu(x @ params["fc3_w"] + params["fc3_b"])
    return x


if __name__ == "__main__":
    key = jax.random.PRNGKey(0)
    pkey, xkey = jax.random.split(key)
    params = init_params(pkey)
    prepared = prepare_params(params)
    # 32x32 spatial so the 16*5*5 flatten matches the torch module.
    x = jax.random.normal(xkey, (2, 3, 32, 32), dtype=jnp.float32)

    out = jax.jit(forward)(prepared, x)
    out = jax.block_until_ready(out)
    assert out.shape == (2, 10), out.shape
    assert bool(jnp.all(out >= 0.0)), "final ReLU violated"

    ref = forward_reference(params, x)
    assert bool(jnp.allclose(out, ref, rtol=0.1, atol=0.1)), (
        f"mismatch vs f32 reference: max|diff|={float(jnp.max(jnp.abs(out - ref)))}")
    print("KERNEL_OK")
</pallas_src>

<mosaic_0001>
module attributes {stable_mosaic.version = 11 : i64} {
  func.func @_conv1_kernel(%arg0: i32, %arg1: memref<1x4x208x75xbf16, #tpu.memory_space<vmem>>, %arg2: memref<75x128xbf16, #tpu.memory_space<vmem>>, %arg3: memref<1x128xf32, #tpu.memory_space<vmem>>, %arg4: memref<1x208x8xbf16, #tpu.memory_space<vmem>>) attributes {dimension_semantics = [#tpu.dimension_semantics<parallel>], iteration_bounds = array<i64: 2>, scalar_prefetch = 0 : i64, scratch_operands = 0 : i64, tpu.core_type = #tpu.core_type<tc>, window_params = [{transform_indices = @transform_0, window_bounds = array<i64: 1, 4, 208, 75>}, {pipeline_mode = #tpu.pipeline_mode<synchronous>, transform_indices = @transform_1, window_bounds = array<i64: 75, 128>}, {pipeline_mode = #tpu.pipeline_mode<synchronous>, transform_indices = @transform_2, window_bounds = array<i64: 1, 128>}, {transform_indices = @transform_3, window_bounds = array<i64: 1, 208, 8>}]} {
    %c0 = arith.constant 0 : index
    %c0_0 = arith.constant 0 : index
    %c0_1 = arith.constant 0 : index
    %c0_2 = arith.constant 0 : index
    %0 = vector.load %arg1[%c0, %c0_0, %c0_1, %c0_2] : memref<1x4x208x75xbf16, #tpu.memory_space<vmem>>, vector<1x4x208x75xbf16>
    %1 = vector.shape_cast %0 : vector<1x4x208x75xbf16> to vector<832x75xbf16>
    %c0_3 = arith.constant 0 : index
    %c0_4 = arith.constant 0 : index
    %2 = vector.load %arg2[%c0_3, %c0_4] : memref<75x128xbf16, #tpu.memory_space<vmem>>, vector<75x128xbf16>
    %cst = arith.constant dense<0.000000e+00> : vector<832x128xf32>
    %3 = tpu.matmul %1, %2, %cst {dimension_numbers = #tpu.dot_dimension_numbers<[1], [0], [0], [1], [0, 0, 1, 1], [], []>} : vector<832x75xbf16>, vector<75x128xbf16>, vector<832x128xf32> -> vector<832x128xf32>
    %4 = vector.shape_cast %3 : vector<832x128xf32> to vector<1x4x208x128xf32>
    %cst_5 = arith.constant dense<0xFF800000> : vector<1x208x128xf32>
    %5 = vector.multi_reduction <maximumf>, %4, %cst_5 [1] : vector<1x4x208x128xf32> to vector<1x208x128xf32>
    %c0_6 = arith.constant 0 : index
    %c0_7 = arith.constant 0 : index
    %6 = vector.load %arg3[%c0_6, %c0_7] : memref<1x128xf32, #tpu.memory_space<vmem>>, vector<1x128xf32>
    %7 = vector.shape_cast %6 : vector<1x128xf32> to vector<1x1x128xf32>
    %8 = vector.broadcast %7 : vector<1x1x128xf32> to vector<1x208x128xf32>
    %9 = arith.addf %5, %8 : vector<1x208x128xf32>
    %cst_8 = arith.constant 0.000000e+00 : f32
    %10 = vector.broadcast %cst_8 : f32 to vector<1x208x128xf32>
    %11 = arith.maximumf %9, %10 : vector<1x208x128xf32>
    %12 = vector.extract_strided_slice %11 {offsets = [0, 0, 0], sizes = [1, 208, 8], strides = [1, 1, 1]} : vector<1x208x128xf32> to vector<1x208x8xf32>
    %13 = arith.truncf %12 : vector<1x208x8xf32> to vector<1x208x8xbf16>
    %c0_9 = arith.constant 0 : index
    %c0_10 = arith.constant 0 : index
    %c0_11 = arith.constant 0 : index
    %14 = vector.load %arg4[%c0_9, %c0_10, %c0_11] : memref<1x208x8xbf16, #tpu.memory_space<vmem>>, vector<1x208x8xbf16>
    tpu.vector_store %arg4[%c0_9, %c0_10, %c0_11], %13 {strides = array<i32>} : memref<1x208x8xbf16, #tpu.memory_space<vmem>>, vector<1x208x8xbf16>,
    return
  }
  func.func @transform_0(%arg0: i32) -> (i32, i32, i32, i32) {
    %c0_i32 = arith.constant 0 : i32
    %c0_i32_0 = arith.constant 0 : i32
    %c0_i32_1 = arith.constant 0 : i32
    %c0_i32_2 = arith.constant 0 : i32
    return %arg0, %c0_i32, %c0_i32_0, %c0_i32_1 : i32, i32, i32, i32
  }
  func.func @transform_1(%arg0: i32) -> (i32, i32) {
    %c0_i32 = arith.constant 0 : i32
    %c0_i32_0 = arith.constant 0 : i32
    %c0_i32_1 = arith.constant 0 : i32
    return %c0_i32, %c0_i32_0 : i32, i32
  }
  func.func @transform_2(%arg0: i32) -> (i32, i32) {
    %c0_i32 = arith.constant 0 : i32
    %c0_i32_0 = arith.constant 0 : i32
    %c0_i32_1 = arith.constant 0 : i32
    return %c0_i32, %c0_i32_0 : i32, i32
  }
  func.func @transform_3(%arg0: i32) -> (i32, i32, i32) {
    %c0_i32 = arith.constant 0 : i32
    %c0_i32_0 = arith.constant 0 : i32
    %c0_i32_1 = arith.constant 0 : i32
    return %arg0, %c0_i32, %c0_i32_0 : i32, i32, i32
  }
}

module attributes {stable_mosaic.version = 11 : i64} {
  func.func @_conv2_fc_kernel(%arg0: i32, %arg1: memref<16x1184xbf16, #tpu.memory_space<vmem>>, %arg2: memref<1184x2048xbf16, #tpu.memory_space<vmem>>, %arg3: memref<1x512xf32, #tpu.memory_space<vmem>>, %arg4: memref<512x128xbf16, #tpu.memory_space<vmem>>, %arg5: memref<1x128xf32, #tpu.memory_space<vmem>>, %arg6: memref<128x128xbf16, #tpu.memory_space<vmem>>, %arg7: memref<1x128xf32, #tpu.memory_space<vmem>>, %arg8: memref<128x128xbf16, #tpu.memory_space<vmem>>, %arg9: memref<1x128xf32, #tpu.memory_space<vmem>>, %arg10: memref<16x128xf32, #tpu.memory_space<vmem>>) attributes {dimension_semantics = [#tpu.dimension_semantics<parallel>], iteration_bounds = array<i64: 1>, scalar_prefetch = 0 : i64, scratch_operands = 0 : i64, tpu.core_type = #tpu.core_type<tc>, window_params = [{transform_indices = @transform_0, window_bounds = array<i64: 16, 1184>}, {pipeline_mode = #tpu.pipeline_mode<synchronous>, transform_indices = @transform_1, window_bounds = array<i64: 1184, 2048>}, {pipeline_mode = #tpu.pipeline_mode<synchronous>, transform_indices = @transform_2, window_bounds = array<i64: 1, 512>}, {pipeline_mode = #tpu.pipeline_mode<synchronous>, transform_indices = @transform_3, window_bounds = array<i64: 512, 128>}, {pipeline_mode = #tpu.pipeline_mode<synchronous>, transform_indices = @transform_4, window_bounds = array<i64: 1, 128>}, {pipeline_mode = #tpu.pipeline_mode<synchronous>, transform_indices = @transform_5, window_bounds = array<i64: 128, 128>}, {pipeline_mode = #tpu.pipeline_mode<synchronous>, transform_indices = @transform_6, window_bounds = array<i64: 1, 128>}, {pipeline_mode = #tpu.pipeline_mode<synchronous>, transform_indices = @transform_7, window_bounds = array<i64: 128, 128>}, {pipeline_mode = #tpu.pipeline_mode<synchronous>, transform_indices = @transform_8, window_bounds = array<i64: 1, 128>}, {transform_indices = @transform_9, window_bounds = array<i64: 16, 128>}]} {
    %c0 = arith.constant 0 : index
    %c0_0 = arith.constant 0 : index
    %0 = vector.load %arg1[%c0, %c0_0] : memref<16x1184xbf16, #tpu.memory_space<vmem>>, vector<16x1184xbf16>
    %c0_1 = arith.constant 0 : index
    %c0_2 = arith.constant 0 : index
    %1 = vector.load %arg2[%c0_1, %c0_2] : memref<1184x2048xbf16, #tpu.memory_space<vmem>>, vector<1184x2048xbf16>
    %cst = arith.constant dense<0.000000e+00> : vector<16x2048xf32>
    %2 = tpu.matmul %0, %1, %cst {dimension_numbers = #tpu.dot_dimension_numbers<[1], [0], [0], [1], [0, 0, 1, 1], [], []>} : vector<16x1184xbf16>, vector<1184x2048xbf16>, vector<16x2048xf32> -> vector<16x2048xf32>
    %3 = vector.extract_strided_slice %2 {offsets = [0, 0], sizes = [16, 512], strides = [1, 1]} : vector<16x2048xf32> to vector<16x512xf32>
    %4 = vector.extract_strided_slice %2 {offsets = [0, 512], sizes = [16, 512], strides = [1, 1]} : vector<16x2048xf32> to vector<16x512xf32>
    %5 = arith.maximumf %3, %4 : vector<16x512xf32>
    %6 = vector.extract_strided_slice %2 {offsets = [0, 1024], sizes = [16, 512], strides = [1, 1]} : vector<16x2048xf32> to vector<16x512xf32>
    %7 = vector.extract_strided_slice %2 {offsets = [0, 1536], sizes = [16, 512], strides = [1, 1]} : vector<16x2048xf32> to vector<16x512xf32>
    %8 = arith.maximumf %6, %7 : vector<16x512xf32>
    %9 = arith.maximumf %5, %8 : vector<16x512xf32>
    %c0_3 = arith.constant 0 : index
    %c0_4 = arith.constant 0 : index
    %10 = vector.load %arg3[%c0_3, %c0_4] : memref<1x512xf32, #tpu.memory_space<vmem>>, vector<1x512xf32>
    %11 = vector.broadcast %10 : vector<1x512xf32> to vector<16x512xf32>
    %12 = arith.addf %9, %11 : vector<16x512xf32>
    %cst_5 = arith.constant 0.000000e+00 : f32
    %13 = vector.broadcast %cst_5 : f32 to vector<16x512xf32>
    %14 = arith.maximumf %12, %13 : vector<16x512xf32>
    %c0_6 = arith.constant 0 : index
    %c0_7 = arith.constant 0 : index
    %15 = vector.load %arg4[%c0_6, %c0_7] : memref<512x128xbf16, #tpu.memory_space<vmem>>, vector<512x128xbf16>
    %cst_8 = arith.constant dense<0.000000e+00> : vector<16x128xf32>
    %16 = tpu.matmul %14, %15, %cst_8 {dimension_numbers = #tpu.dot_dimension_numbers<[1], [0], [0], [1], [0, 0, 1, 1], [], []>} : vector<16x512xf32>, vector<512x128xbf16>, vector<16x128xf32> -> vector<16x128xf32>
    %c0_9 = arith.constant 0 : index
    %c0_10 = arith.constant 0 : index
    %17 = vector.load %arg5[%c0_9, %c0_10] : memref<1x128xf32, #tpu.memory_space<vmem>>, vector<1x128xf32>
    %18 = vector.broadcast %17 : vector<1x128xf32> to vector<16x128xf32>
    %19 = arith.addf %16, %18 : vector<16x128xf32>
    %cst_11 = arith.constant 0.000000e+00 : f32
    %20 = vector.broadcast %cst_11 : f32 to vector<16x128xf32>
    %21 = arith.maximumf %19, %20 : vector<16x128xf32>
    %c0_12 = arith.constant 0 : index
    %c0_13 = arith.constant 0 : index
    %22 = vector.load %arg6[%c0_12, %c0_13] : memref<128x128xbf16, #tpu.memory_space<vmem>>, vector<128x128xbf16>
    %cst_14 = arith.constant dense<0.000000e+00> : vector<16x128xf32>
    %23 = tpu.matmul %21, %22, %cst_14 {dimension_numbers = #tpu.dot_dimension_numbers<[1], [0], [0], [1], [0, 0, 1, 1], [], []>} : vector<16x128xf32>, vector<128x128xbf16>, vector<16x128xf32> -> vector<16x128xf32>
    %c0_15 = arith.constant 0 : index
    %c0_16 = arith.constant 0 : index
    %24 = vector.load %arg7[%c0_15, %c0_16] : memref<1x128xf32, #tpu.memory_space<vmem>>, vector<1x128xf32>
    %25 = vector.broadcast %24 : vector<1x128xf32> to vector<16x128xf32>
    %26 = arith.addf %23, %25 : vector<16x128xf32>
    %cst_17 = arith.constant 0.000000e+00 : f32
    %27 = vector.broadcast %cst_17 : f32 to vector<16x128xf32>
    %28 = arith.maximumf %26, %27 : vector<16x128xf32>
    %c0_18 = arith.constant 0 : index
    %c0_19 = arith.constant 0 : index
    %29 = vector.load %arg8[%c0_18, %c0_19] : memref<128x128xbf16, #tpu.memory_space<vmem>>, vector<128x128xbf16>
    %cst_20 = arith.constant dense<0.000000e+00> : vector<16x128xf32>
    %30 = tpu.matmul %28, %29, %cst_20 {dimension_numbers = #tpu.dot_dimension_numbers<[1], [0], [0], [1], [0, 0, 1, 1], [], []>} : vector<16x128xf32>, vector<128x128xbf16>, vector<16x128xf32> -> vector<16x128xf32>
    %c0_21 = arith.constant 0 : index
    %c0_22 = arith.constant 0 : index
    %31 = vector.load %arg9[%c0_21, %c0_22] : memref<1x128xf32, #tpu.memory_space<vmem>>, vector<1x128xf32>
    %32 = vector.broadcast %31 : vector<1x128xf32> to vector<16x128xf32>
    %33 = arith.addf %30, %32 : vector<16x128xf32>
    %cst_23 = arith.constant 0.000000e+00 : f32
    %34 = vector.broadcast %cst_23 : f32 to vector<16x128xf32>
    %35 = arith.maximumf %33, %34 : vector<16x128xf32>
    %c0_24 = arith.constant 0 : index
    %c0_25 = arith.constant 0 : index
    %36 = vector.load %arg10[%c0_24, %c0_25] : memref<16x128xf32, #tpu.memory_space<vmem>>, vector<16x128xf32>
    tpu.vector_store %arg10[%c0_24, %c0_25], %35 {strides = array<i32>} : memref<16x128xf32, #tpu.memory_space<vmem>>, vector<16x128xf32>,
    return
  }
  func.func @transform_0(%arg0: i32) -> (i32, i32) {
    %c0_i32 = arith.constant 0 : i32
    %c0_i32_0 = arith.constant 0 : i32
    return %arg0, %c0_i32 : i32, i32
  }
  func.func @transform_1(%arg0: i32) -> (i32, i32) {
    %c0_i32 = arith.constant 0 : i32
    %c0_i32_0 = arith.constant 0 : i32
    %c0_i32_1 = arith.constant 0 : i32
    return %c0_i32, %c0_i32_0 : i32, i32
  }
  func.func @transform_2(%arg0: i32) -> (i32, i32) {
    %c0_i32 = arith.constant 0 : i32
    %c0_i32_0 = arith.constant 0 : i32
    %c0_i32_1 = arith.constant 0 : i32
    return %c0_i32, %c0_i32_0 : i32, i32
  }
  func.func @transform_3(%arg0: i32) -> (i32, i32) {
    %c0_i32 = arith.constant 0 : i32
    %c0_i32_0 = arith.constant 0 : i32
    %c0_i32_1 = arith.constant 0 : i32
    return %c0_i32, %c0_i32_0 : i32, i32
  }
  func.func @transform_4(%arg0: i32) -> (i32, i32) {
    %c0_i32 = arith.constant 0 : i32
    %c0_i32_0 = arith.constant 0 : i32
    %c0_i32_1 = arith.constant 0 : i32
    return %c0_i32, %c0_i32_0 : i32, i32
  }
  func.func @transform_5(%arg0: i32) -> (i32, i32) {
    %c0_i32 = arith.constant 0 : i32
    %c0_i32_0 = arith.constant 0 : i32
    %c0_i32_1 = arith.constant 0 : i32
    return %c0_i32, %c0_i32_0 : i32, i32
  }
  func.func @transform_6(%arg0: i32) -> (i32, i32) {
    %c0_i32 = arith.constant 0 : i32
    %c0_i32_0 = arith.constant 0 : i32
    %c0_i32_1 = arith.constant 0 : i32
    return %c0_i32, %c0_i32_0 : i32, i32
  }
  func.func @transform_7(%arg0: i32) -> (i32, i32) {
    %c0_i32 = arith.constant 0 : i32
    %c0_i32_0 = arith.constant 0 : i32
    %c0_i32_1 = arith.constant 0 : i32
    return %c0_i32, %c0_i32_0 : i32, i32
  }
  func.func @transform_8(%arg0: i32) -> (i32, i32) {
    %c0_i32 = arith.constant 0 : i32
    %c0_i32_0 = arith.constant 0 : i32
    %c0_i32_1 = arith.constant 0 : i32
    return %c0_i32, %c0_i32_0 : i32, i32
  }
  func.func @transform_9(%arg0: i32) -> (i32, i32) {
    %c0_i32 = arith.constant 0 : i32
    %c0_i32_0 = arith.constant 0 : i32
    return %arg0, %c0_i32 : i32, i32
  }
}

</mosaic_0001>

<bundles_post_ra>
// kernel: forward.2
= control target key start
LH: loop header
LB: loop body
LE: loop exit
PB: predicated region body
PF: predicated region fallthrough
CT: control target
= control target key end

     0   :  { %s1960_s12 = smov 0   ;;  %s2331_s0 = inlined_call_operand.vmem [shape: bf16[2,4,208,75], index: 0, kind: input, shape index: {}]   ;;  %s2332_s1 = inlined_call_operand.vmem [shape: bf16[75,128], index: 1, kind: input, shape index: {}]   ;;  %s2333_s2 = inlined_call_operand.vmem [shape: f32[1,128], index: 2, kind: input, shape index: {}]   ;;  %s2334_s3 = inlined_call_operand.vmem [shape: bf16[2,208,8], index: 3, kind: output, shape index: {}]  }
   0x1 LB: > { %s1511_s13 = sadd.s32 4294967295, %s1937_s12   ;;  %p1515_p0 = scmp.ge.s32.totalorder %s1937_s12, 1  ;;  %s1937_s12 = sphi %s1960_s12, %s13_s12  }
   0x2   : > { %p137_p1 = scmp.lt.s32.totalorder %s1937_s12, 3 }
   0x4   : > { %p138_p2 = pnand %p1515_p0, %p137_p1 }
   0x6   : > { %141 = sbr.rel (%p138_p2) target bundleno = 358 (0x166), region = 32 }
   0xd   : > { %v1874_v0 = vld [vmem:[%s2332_s1] sm:$0xff]   ;;  %v1875_v1 = vld [vmem:[%s2332_s1 + $0x8] sm:$0xff]   ;;  %vm732_vm0 = vcmask 1044480   ;;  %v1876_v2 = vld [vmem:[%s2332_s1 + $0x10] sm:$0xff]   ;;  %p161_p3 = scmp.lt.s32.totalorder %s1511_s13, 1  ;;  %vm733_vm1 = vcmask 1045504  }
   0xe   : > { %1739 = vmatprep.subr.bf16.mxu0 %v1874_v0  ;;  %1853 = vmatprep.subr.bf16.mxu1 %v1874_v0  ;;  %v1939_v3 = vmov 65535   ;;  %v1877_v5 = vld [vmem:[%s2332_s1 + $0x18] sm:$0xff]   ;;  %v1878_v6 = vld [vmem:[%s2332_s1 + $0x20] sm:$0x3f]   ;;  %vm575_vm2 = vcmask 613376   ;;  %vm1429_vm3 = vcmask 60416  }
   0xf   : > { %1740 = vmatpush3.bf16.msra.mxu0 %v1874_v0  ;;  %1858 = vmatpush3.bf16.msra.mxu1 %v1874_v0  ;;  %v734_v4 = vsel %vm732_vm0, 4294967295, %v1939_v3  ;;  %s2342_s13 = smov (!%p161_p3, %s1511_s13), 1 }
  0x10   : > { %1741 = vmatprep.subr.bf16.mxu0 %v1875_v1  ;;  %1854 = vmatprep.subr.bf16.mxu1 %v1875_v1  ;;  %v735_v7 = vsel %vm733_vm1, %v734_v4, 0  ;;  %s1863_s24 = smul.u32 416, %s2342_s13 }
  0x11   : > { %v737_v8 = vand.u32 %v1878_v6, %v735_v7  ;;  %s1864_s30 = smul.u32 104, %s2342_s13 }
  0x12   : > { %s1989_s27 = scalar_lea.vmem %s2331_s0, %s1863_s24 }
  0x13   : > { %1742 = vmatpush3.bf16.msra.mxu0 %v1875_v1  ;;  %1859 = vmatpush3.bf16.msra.mxu1 %v1875_v1  ;;  %v1879_v9 = vld [vmem:[%s1989_s27] sm:$0xff]   ;;  %v1881_v10 = vld [vmem:[%s1989_s27 + $0xd0] sm:$0xff]   ;;  %v1880_v11 = vld [vmem:[%s1989_s27 + $0x8] sm:$0xff]   ;;  %s2203_s6 = scalar_lea.vmem %s2334_s3, %s1864_s30 }
  0x14   : > { %1743 = vmatprep.subr.bf16.mxu0 %v1876_v2  ;;  %1855 = vmatprep.subr.bf16.mxu1 %v1876_v2  ;;  %v1882_v12 = vld [vmem:[%s1989_s27 + $0xd8] sm:$0xff]   ;;  %v1883_v13 = vld [vmem:[%s1989_s27 + $0x10] sm:$0xff]   ;;  %v1885_v14 = vld [vmem:[%s1989_s27 + $0xe0] sm:$0xff]  }
  0x15   : > { %1749 = vmatprep.mubr.msk.bf16.mxu0 %vm575_vm2, %v1879_v9  ;;  %1801 = vmatprep.mubr.msk.bf16.mxu1 %vm575_vm2, %v1881_v10  ;;  %v1884_v15 = vld [vmem:[%s1989_s27 + $0x18] sm:$0xff]   ;;  %v1886_v16 = vld [vmem:[%s1989_s27 + $0xe8] sm:$0xff]   ;;  %v1887_v17 = vld [vmem:[%s1989_s27 + $0x20] sm:$0xff]  }
  0x16   : > { %v1889_v18 = vld [vmem:[%s1989_s27 + $0xf0] sm:$0xff]   ;;  %v1888_v19 = vld [vmem:[%s1989_s27 + $0x28] sm:$0xff]   ;;  %v1890_v20 = vld [vmem:[%s1989_s27 + $0xf8] sm:$0xff]  }
  0x17   : > { %1744 = vmatpush3.bf16.msra.mxu0 %v1876_v2  ;;  %1860 = vmatpush3.bf16.msra.mxu1 %v1876_v2  ;;  %v1891_v21 = vld [vmem:[%s1989_s27 + $0x30] sm:$0xff]   ;;  %v1893_v22 = vld [vmem:[%s1989_s27 + $0x100] sm:$0xff]   ;;  %v1892_v23 = vld [vmem:[%s1989_s27 + $0x38] sm:$0xff]  }
  0x18   : > { %1745 = vmatprep.subr.bf16.mxu0 %v1877_v5  ;;  %1856 = vmatprep.subr.bf16.mxu1 %v1877_v5  ;;  %v1894_v24 = vld [vmem:[%s1989_s27 + $0x108] sm:$0xff]   ;;  %v1895_v25 = vld [vmem:[%s1989_s27 + $0x40] sm:$0xff]   ;;  %v1897_v26 = vld [vmem:[%s1989_s27 + $0x110] sm:$0xff]  }
  0x19   : > { %v1896_v27 = vld [vmem:[%s1989_s27 + $0x48] sm:$0xff]   ;;  %v1898_v28 = vld [vmem:[%s1989_s27 + $0x118] sm:$0xff]   ;;  %v1899_v29 = vld [vmem:[%s1989_s27 + $0x50] sm:$0xff]  }
  0x1a   : > { %v1901_v30 = vld [vmem:[%s1989_s27 + $0x120] sm:$0xff]   ;;  %v1900_v31 = vld [vmem:[%s1989_s27 + $0x58] sm:$0xff]   ;;  %v1902_v32 = vld [vmem:[%s1989_s27 + $0x128] sm:$0xff]  }
  0x1b   : > { %1746 = vmatpush3.bf16.msra.mxu0 %v1877_v5  ;;  %1861 = vmatpush3.bf16.msra.mxu1 %v1877_v5  ;;  %v1903_v33 = vld [vmem:[%s1989_s27 + $0x60] sm:$0xff]   ;;  %v1905_v34 = vld [vmem:[%s1989_s27 + $0x130] sm:$0xff]   ;;  %v1904_v35 = vld [vmem:[%s1989_s27 + $0x68] sm:$0xff]  }
  0x1c   : > { %1747 = vmatprep.subr.bf16.mxu0 %v737_v8  ;;  %1857 = vmatprep.subr.bf16.mxu1 %v737_v8  ;;  %v1906_v36 = vld [vmem:[%s1989_s27 + $0x138] sm:$0xff]   ;;  %v1907_v37 = vld [vmem:[%s1989_s27 + $0x70] sm:$0xff]   ;;  %v1909_v38 = vld [vmem:[%s1989_s27 + $0x140] sm:$0xff]  }
  0x1d   : > { %v1908_v39 = vld [vmem:[%s1989_s27 + $0x78] sm:$0xff]   ;;  %v1910_v40 = vld [vmem:[%s1989_s27 + $0x148] sm:$0xff]   ;;  %v1911_v41 = vld [vmem:[%s1989_s27 + $0x80] sm:$0xff]  }
  0x1e   : > { %v1913_v42 = vld [vmem:[%s1989_s27 + $0x150] sm:$0xff]   ;;  %v1912_v43 = vld [vmem:[%s1989_s27 + $0x88] sm:$0xff]   ;;  %v1914_v44 = vld [vmem:[%s1989_s27 + $0x158] sm:$0xff]  }
  0x1f   : > { %1748 = vmatpush3.bf16.msra.mxu0 %v737_v8  ;;  %1862 = vmatpush3.bf16.msra.mxu1 %v737_v8  ;;  %v1915_v45 = vld [vmem:[%s1989_s27 + $0x90] sm:$0xff]   ;;  %v1917_v46 = vld [vmem:[%s1989_s27 + $0x160] sm:$0xff]   ;;  %v1916_v47 = vld [vmem:[%s1989_s27 + $0x98] sm:$0xff]  }
  0x20   : > { %v1918_v48 = vld [vmem:[%s1989_s27 + $0x168] sm:$0xff]   ;;  %v1919_v49 = vld [vmem:[%s1989_s27 + $0xa0] sm:$0xff]   ;;  %v1921_v50 = vld [vmem:[%s1989_s27 + $0x170] sm:$0xff]  }
  0x21   : > { %v1920_v51 = vld [vmem:[%s1989_s27 + $0xa8] sm:$0xff]   ;;  %v1922_v52 = vld [vmem:[%s1989_s27 + $0x178] sm:$0xff]   ;;  %v1923_v53 = vld [vmem:[%s1989_s27 + $0xb0] sm:$0xff]  }
  0x22   : > { %1750 = vmatmul.mubr.msk.bf16.vlgmr.msra.gmra.mrb[0].mxu0 %vm575_vm2, %v1880_v11  ;;  %1802 = vmatmul.mubr.msk.bf16.vlgmr.msra.gmra.mrb[0].mxu1 %vm575_vm2, %v1882_v12  ;;  %v1925_v54 = vld [vmem:[%s1989_s27 + $0x180] sm:$0xff]   ;;  %v1924_v55 = vld [vmem:[%s1989_s27 + $0xb8] sm:$0xff]   ;;  %v1926_v56 = vld [vmem:[%s1989_s27 + $0x188] sm:$0xff]  }
  0x23   : > { %1753 = vmatprep.mubr.msk.bf16.mxu0 %vm575_vm2, %v1883_v13  ;;  %1805 = vmatprep.mubr.msk.bf16.mxu1 %vm575_vm2, %v1885_v14  ;;  %v1927_v57 = vld [vmem:[%s1989_s27 + $0xc0] sm:$0xff]   ;;  %v1929_v58 = vld [vmem:[%s1989_s27 + $0x190] sm:$0xff]   ;;  %v1928_v59 = vld [vmem:[%s1989_s27 + $0xc8] sm:$0xff]  }
  0x24   : > { %v1930_v60 = vld [vmem:[%s1989_s27 + $0x198] sm:$0xff]  }
  0x2a   : > { %1754 = vmatmul.mubr.msk.bf16.gmra.mrb[4].mxu0 %vm575_vm2, %v1884_v15  ;;  %1806 = vmatmul.mubr.msk.bf16.gmra.mrb[4].mxu1 %vm575_vm2, %v1886_v16 }
  0x2b   : > { %1757 = vmatprep.mubr.msk.bf16.mxu0 %vm575_vm2, %v1887_v17  ;;  %1809 = vmatprep.mubr.msk.bf16.mxu1 %vm575_vm2, %v1889_v18 }
  0x32   : > { %1758 = vmatmul.mubr.msk.bf16.gmra.mrb[8].mxu0 %vm575_vm2, %v1888_v19  ;;  %1810 = vmatmul.mubr.msk.bf16.gmra.mrb[8].mxu1 %vm575_vm2, %v1890_v20 }
  0x33   : > { %1761 = vmatprep.mubr.msk.bf16.mxu0 %vm575_vm2, %v1891_v21  ;;  %1813 = vmatprep.mubr.msk.bf16.mxu1 %vm575_vm2, %v1893_v22 }
  0x3a   : > { %1762 = vmatmul.mubr.msk.bf16.gmra.mrb[12].mxu0 %vm575_vm2, %v1892_v23  ;;  %1814 = vmatmul.mubr.msk.bf16.gmra.mrb[12].mxu1 %vm575_vm2, %v1894_v24 }
  0x3b   : > { %1765 = vmatprep.mubr.msk.bf16.mxu0 %vm575_vm2, %v1895_v25  ;;  %1817 = vmatprep.mubr.msk.bf16.mxu1 %vm575_vm2, %v1897_v26 }
  0x42   : > { %1766 = vmatmul.mubr.msk.bf16.gmra.mrb[16].mxu0 %vm575_vm2, %v1896_v27  ;;  %1818 = vmatmul.mubr.msk.bf16.gmra.mrb[16].mxu1 %vm575_vm2, %v1898_v28 }
  0x43   : > { %1769 = vmatprep.mubr.msk.bf16.mxu0 %vm575_vm2, %v1899_v29  ;;  %1821 = vmatprep.mubr.msk.bf16.mxu1 %vm575_vm2, %v1901_v30 }
  0x4a   : > { %1770 = vmatmul.mubr.msk.bf16.gmra.mrb[20].mxu0 %vm575_vm2, %v1900_v31  ;;  %1822 = vmatmul.mubr.msk.bf16.gmra.mrb[20].mxu1 %vm575_vm2, %v1902_v32 }
  0x4b   : > { %1773 = vmatprep.mubr.msk.bf16.mxu0 %vm575_vm2, %v1903_v33  ;;  %1825 = vmatprep.mubr.msk.bf16.mxu1 %vm575_vm2, %v1905_v34 }
  0x52   : > { %1774 = vmatmul.mubr.msk.bf16.gmra.mrb[24].mxu0 %vm575_vm2, %v1904_v35  ;;  %1826 = vmatmul.mubr.msk.bf16.gmra.mrb[24].mxu1 %vm575_vm2, %v1906_v36 }
  0x53   : > { %1777 = vmatprep.mubr.msk.bf16.mxu0 %vm575_vm2, %v1907_v37  ;;  %1829 = vmatprep.mubr.msk.bf16.mxu1 %vm575_vm2, %v1909_v38 }
  0x5a   : > { %1778 = vmatmul.mubr.msk.bf16.gmra.mrb[28].mxu0 %vm575_vm2, %v1908_v39  ;;  %1830 = vmatmul.mubr.msk.bf16.gmra.mrb[28].mxu1 %vm575_vm2, %v1910_v40 }
  0x5b   : > { %1781 = vmatprep.mubr.msk.bf16.mxu0 %vm575_vm2, %v1911_v41  ;;  %1833 = vmatprep.mubr.msk.bf16.mxu1 %vm575_vm2, %v1913_v42 }
  0x62   : > { %1782 = vmatmul.mubr.msk.bf16.gmra.mrb[32].mxu0 %vm575_vm2, %v1912_v43  ;;  %1834 = vmatmul.mubr.msk.bf16.gmra.mrb[32].mxu1 %vm575_vm2, %v1914_v44 }
  0x63   : > { %1785 = vmatprep.mubr.msk.bf16.mxu0 %vm575_vm2, %v1915_v45  ;;  %1837 = vmatprep.mubr.msk.bf16.mxu1 %vm575_vm2, %v1917_v46 }
  0x6a   : > { %1786 = vmatmul.mubr.msk.bf16.gmra.mrb[36].mxu0 %vm575_vm2, %v1916_v47  ;;  %1838 = vmatmul.mubr.msk.bf16.gmra.mrb[36].mxu1 %vm575_vm2, %v1918_v48 }
  0x6b   : > { %1789 = vmatprep.mubr.msk.bf16.mxu0 %vm575_vm2, %v1919_v49  ;;  %1841 = vmatprep.mubr.msk.bf16.mxu1 %vm575_vm2, %v1921_v50 }
  0x72   : > { %1790 = vmatmul.mubr.msk.bf16.gmra.mrb[40].mxu0 %vm575_vm2, %v1920_v51  ;;  %1842 = vmatmul.mubr.msk.bf16.gmra.mrb[40].mxu1 %vm575_vm2, %v1922_v52 }
  0x73   : > { %1793 = vmatprep.mubr.msk.bf16.mxu0 %vm575_vm2, %v1923_v53  ;;  %1845 = vmatprep.mubr.msk.bf16.mxu1 %vm575_vm2, %v1925_v54 }
  0x7a   : > { %1794 = vmatmul.mubr.msk.bf16.gmra.mrb[44].mxu0 %vm575_vm2, %v1924_v55  ;;  %1846 = vmatmul.mubr.msk.bf16.gmra.mrb[44].mxu1 %vm575_vm2, %v1926_v56  ;;  %v2194_v56 = vld [vmem:[%s2333_s2] ss:$0 sm:$0xff] }
  0x7b   : > { %1797 = vmatprep.mubr.msk.bf16.mxu0 %vm575_vm2, %v1927_v57  ;;  %1849 = vmatprep.mubr.msk.bf16.mxu1 %vm575_vm2, %v1929_v58 }
  0x82   : > { %1798 = vmatmul.mubr.msk.bf16.gmra.mrb[48].mxu0 %vm575_vm2, %v1928_v59  ;;  %1850 = vmatmul.mubr.msk.bf16.gmra.mrb[48].mxu1 %vm575_vm2, %v1930_v60 }
  0xf5   : > { %v2095_v61 = vpop.f32.mrb[0].mxu0  ;;  %v2097_v62 = vpop.f32.mrb[0].mxu1 }
  0xf6   : > { %v773_v63 = vpop.f32.mrb[1].mxu0  ;;  %v981_v0 = vpop.f32.mrb[1].mxu1 }
  0xf7   : > { %v2099_v1 = vpop.f32.mrb[2].mxu0  ;;  %v2101_v2 = vpop.f32.mrb[2].mxu1 }
  0xf8   : > { %v776_v3 = vpop.f32.mrb[3].mxu0  ;;  %v984_v4 = vpop.f32.mrb[3].mxu1 }
  0xfd   : > { %v2103_v5 = vpop.f32.mrb[4].mxu0  ;;  %v2105_v6 = vpop.f32.mrb[4].mxu1 }
  0xfe   : > { %v2107_v7 = vpop.f32.mrb[5].mxu0  ;;  %v2109_v8 = vpop.f32.mrb[5].mxu1 }
  0xff   : > { %v2111_v9 = vpop.f32.mrb[6].mxu0  ;;  %v2113_v10 = vpop.f32.mrb[6].mxu1 }
 0x100   : > { %v2115_v11 = vpop.f32.mrb[7].mxu0  ;;  %v2117_v12 = vpop.f32.mrb[7].mxu1 }
 0x105   : > { %v2119_v13 = vpop.f32.mrb[8].mxu0  ;;  %v2121_v14 = vpop.f32.mrb[8].mxu1 }
 0x106   : > { %v2123_v15 = vpop.f32.mrb[9].mxu0  ;;  %v2125_v16 = vpop.f32.mrb[9].mxu1 }
 0x107   : > { %v2127_v17 = vpop.f32.mrb[10].mxu0  ;;  %v2129_v18 = vpop.f32.mrb[10].mxu1 }
 0x108   : > { %v2131_v19 = vpop.f32.mrb[11].mxu0  ;;  %v2133_v20 = vpop.f32.mrb[11].mxu1 }
 0x10d   : > { %v2135_v21 = vpop.f32.mrb[12].mxu0  ;;  %v2137_v22 = vpop.f32.mrb[12].mxu1 }
 0x10e   : > { %v2139_v23 = vpop.f32.mrb[13].mxu0  ;;  %v2141_v24 = vpop.f32.mrb[13].mxu1 }
 0x10f   : > { %v2143_v25 = vpop.f32.mrb[14].mxu0  ;;  %v2145_v26 = vpop.f32.mrb[14].mxu1 }
 0x110   : > { %v2147_v27 = vpop.f32.mrb[15].mxu0  ;;  %v2149_v28 = vpop.f32.mrb[15].mxu1 }
 0x115   : > { %v2151_v29 = vpop.f32.mrb[16].mxu0  ;;  %v2153_v30 = vpop.f32.mrb[16].mxu1 }
 0x116   : > { %v2155_v31 = vpop.f32.mrb[17].mxu0  ;;  %v2157_v32 = vpop.f32.mrb[17].mxu1 }
 0x117   : > { %v2159_v33 = vpop.f32.mrb[18].mxu0  ;;  %v2161_v34 = vpop.f32.mrb[18].mxu1 }
 0x118   : > { %v2163_v35 = vpop.f32.mrb[19].mxu0  ;;  %v2165_v36 = vpop.f32.mrb[19].mxu1 }
 0x11d   : > { %v2167_v37 = vpop.f32.mrb[20].mxu0  ;;  %v2169_v38 = vpop.f32.mrb[20].mxu1 }
 0x11e   : > { %v2171_v39 = vpop.f32.mrb[21].mxu0  ;;  %v2173_v40 = vpop.f32.mrb[21].mxu1 }
 0x11f   : > { %v2175_v41 = vpop.f32.mrb[22].mxu0  ;;  %v2177_v42 = vpop.f32.mrb[22].mxu1 }
 0x120   : > { %2335 = vst [vmem:[#allocation2_spill] sm:$0xff] %v2175_v41  ;;  %2336 = vst [vmem:[#allocation3_spill] sm:$0xff] %v2177_v42  ;;  %v2179_v43 = vpop.f32.mrb[23].mxu0  ;;  %v2181_v44 = vpop.f32.mrb[23].mxu1 }
 0x125   : > { %v1775_v45 = vpop.f32.mrb[24].mxu0  ;;  %v1827_v46 = vpop.f32.mrb[24].mxu1 }
 0x126   : > { %v1188_v47 = vmax.f32 %v773_v63, %v1775_v45  ;;  %v2183_v48 = vpop.f32.mrb[25].mxu0  ;;  %v2185_v49 = vpop.f32.mrb[25].mxu1 }
 0x127   : > { %v1776_v50 = vpop.f32.mrb[26].mxu0  ;;  %v1828_v51 = vpop.f32.mrb[26].mxu1 }
 0x128   : > { %v1189_v52 = vmax.f32 %v1188_v47, %v981_v0  ;;  %v1191_v53 = vmax.f32 %v776_v3, %v1776_v50  ;;  %v2187_v54 = vpop.f32.mrb[27].mxu0  ;;  %v2189_v55 = vpop.f32.mrb[27].mxu1 }
 0x129   : > { %2337 = vst [vmem:[#allocation4_spill] sm:$0xff] %v2189_v55 }
 0x12a   : > { %v1190_v57 = vmax.f32 %v1189_v52, %v1827_v46  ;;  %v1192_v58 = vmax.f32 %v1191_v53, %v984_v4 }
 0x12c   : > { %v1273_v59 = vadd.f32 %v2194_v56, %v1190_v57  ;;  %v1193_v60 = vmax.f32 %v1192_v58, %v1828_v51 }
 0x12d   : > { %v1779_v63 = vpop.f32.mrb[28].mxu0  ;;  %v1831_v45 = vpop.f32.mrb[28].mxu1 }
 0x12e   : > { %v1299_v42 = vmax.f32 %v1273_v59, 0.0  ;;  %v1274_v0 = vadd.f32 %v2194_v56, %v1193_v60  ;;  %v1200_v3 = vmax.f32 %v2107_v7, %v1779_v63  ;;  %v885_v47 = vpop.f32.mrb[29].mxu0  ;;  %v1093_v50 = vpop.f32.mrb[29].mxu1 }
 0x12f   : > { %v1194_v4 = vmax.f32 %v2095_v61, %v885_v47  ;;  %v1780_v46 = vpop.f32.mrb[30].mxu0  ;;  %v1832_v51 = vpop.f32.mrb[30].mxu1 }
 0x130   : > { %v1656_v52 = vpack.c.bf16 %v1299_v42, %v1299_v42  ;;  %v1300_v53 = vmax.f32 %v1274_v0, 0.0  ;;  %v1201_v57 = vmax.f32 %v1200_v3, %v2109_v8  ;;  %v1203_v7 = vmax.f32 %v2115_v11, %v1780_v46  ;;  %v888_v58 = vpop.f32.mrb[31].mxu0  ;;  %v1096_v59 = vpop.f32.mrb[31].mxu1 }
 0x131   : > { %v1195_v60 = vmax.f32 %v1194_v4, %v2097_v62  ;;  %v1197_v63 = vmax.f32 %v2099_v1, %v888_v58 }
 0x132   : > { %1430 = vst.msk [vmem:[%s2203_s6] sm:$0xf] %vm1429_vm3, %v1656_v52  ;;  %v1657_v55 = vpack.c.bf16 %v1300_v53, %v1300_v53  ;;  %v1202_v41 = vmax.f32 %v1201_v57, %v1831_v45  ;;  %v1204_v61 = vmax.f32 %v1203_v7, %v2117_v12 }
 0x133   : > { %v1196_v47 = vmax.f32 %v1195_v60, %v1093_v50  ;;  %v1198_v42 = vmax.f32 %v1197_v63, %v2101_v2 }
 0x134   : > { %1431 = vst.msk [vmem:[%s2203_s6 + $0x4] sm:$0xf] %vm1429_vm3, %v1657_v55  ;;  %v1277_v8 = vadd.f32 %v2194_v56, %v1202_v41  ;;  %v1205_v11 = vmax.f32 %v1204_v61, %v1832_v51 }
 0x135   : > { %v1275_v0 = vadd.f32 %v2194_v56, %v1196_v47  ;;  %v1199_v3 = vmax.f32 %v1198_v42, %v1096_v59  ;;  %v1783_v62 = vpop.f32.mrb[32].mxu0  ;;  %v1835_v4 = vpop.f32.mrb[32].mxu1 }
 0x136   : > { %v1303_v1 = vmax.f32 %v1277_v8, 0.0  ;;  %v1278_v46 = vadd.f32 %v2194_v56, %v1205_v11  ;;  %v1212_v45 = vmax.f32 %v2123_v15, %v1783_v62  ;;  %v901_v52 = vpop.f32.mrb[33].mxu0  ;;  %v1109_v12 = vpop.f32.mrb[33].mxu1 }
 0x137   : > { %v1301_v50 = vmax.f32 %v1275_v0, 0.0  ;;  %v1276_v2 = vadd.f32 %v2194_v56, %v1199_v3  ;;  %v1206_v55 = vmax.f32 %v2103_v5, %v901_v52  ;;  %v1784_v41 = vpop.f32.mrb[34].mxu0  ;;  %v1836_v51 = vpop.f32.mrb[34].mxu1 }
 0x138   : > { %v1660_v53 = vpack.c.bf16 %v1303_v1, %v1303_v1  ;;  %v1304_v57 = vmax.f32 %v1278_v46, 0.0  ;;  %v1213_v7 = vmax.f32 %v1212_v45, %v2125_v16  ;;  %v1215_v58 = vmax.f32 %v2131_v19, %v1784_v41  ;;  %v904_v59 = vpop.f32.mrb[35].mxu0  ;;  %v1112_v15 = vpop.f32.mrb[35].mxu1 }
 0x139   : > { %v1658_v60 = vpack.c.bf16 %v1301_v50, %v1301_v50  ;;  %v1302_v63 = vmax.f32 %v1276_v2, 0.0  ;;  %v1207_v61 = vmax.f32 %v1206_v55, %v2105_v6  ;;  %v1209_v47 = vmax.f32 %v2111_v9, %v904_v59 }
 0x13a   : > { %1434 = vst.msk [vmem:[%s2203_s6 + $0x10] sm:$0xf] %vm1429_vm3, %v1660_v53  ;;  %v1661_v5 = vpack.c.bf16 %v1304_v57, %v1304_v57  ;;  %v1214_v42 = vmax.f32 %v1213_v7, %v1835_v4  ;;  %v1216_v8 = vmax.f32 %v1215_v58, %v2133_v20 }
 0x13b   : > { %1432 = vst.msk [vmem:[%s2203_s6 + $0x8] sm:$0xf] %vm1429_vm3, %v1658_v60  ;;  %v1659_v16 = vpack.c.bf16 %v1302_v63, %v1302_v63  ;;  %v1208_v11 = vmax.f32 %v1207_v61, %v1109_v12  ;;  %v1210_v19 = vmax.f32 %v1209_v47, %v2113_v10 }
 0x13c   : > { %1435 = vst.msk [vmem:[%s2203_s6 + $0x14] sm:$0xf] %vm1429_vm3, %v1661_v5  ;;  %v1281_v0 = vadd.f32 %v2194_v56, %v1214_v42  ;;  %v1217_v3 = vmax.f32 %v1216_v8, %v1836_v51 }
 0x13d   : > { %1433 = vst.msk [vmem:[%s2203_s6 + $0xc] sm:$0xf] %vm1429_vm3, %v1659_v16  ;;  %v1279_v6 = vadd.f32 %v2194_v56, %v1208_v11  ;;  %v1211_v9 = vmax.f32 %v1210_v19, %v1112_v15  ;;  %v1787_v62 = vpop.f32.mrb[36].mxu0  ;;  %v1839_v4 = vpop.f32.mrb[36].mxu1 }
 0x13e   : > { %v1307_v1 = vmax.f32 %v1281_v0, 0.0  ;;  %v1282_v20 = vadd.f32 %v2194_v56, %v1217_v3  ;;  %v1224_v46 = vmax.f32 %v2139_v23, %v1787_v62  ;;  %v917_v45 = vpop.f32.mrb[37].mxu0  ;;  %v1125_v52 = vpop.f32.mrb[37].mxu1 }
 0x13f   : > { %v1305_v10 = vmax.f32 %v1279_v6, 0.0  ;;  %v1280_v12 = vadd.f32 %v2194_v56, %v1211_v9  ;;  %v1218_v50 = vmax.f32 %v2119_v13, %v917_v45  ;;  %v1788_v2 = vpop.f32.mrb[38].mxu0  ;;  %v1840_v55 = vpop.f32.mrb[38].mxu1 }
 0x140   : > { %v1664_v41 = vpack.c.bf16 %v1307_v1, %v1307_v1  ;;  %v1308_v51 = vmax.f32 %v1282_v20, 0.0  ;;  %v1225_v53 = vmax.f32 %v1224_v46, %v2141_v24  ;;  %v1227_v57 = vmax.f32 %v2147_v27, %v1788_v2  ;;  %v920_v7 = vpop.f32.mrb[39].mxu0  ;;  %v1128_v23 = vpop.f32.mrb[39].mxu1 }
 0x141   : > { %v1662_v58 = vpack.c.bf16 %v1305_v10, %v1305_v10  ;;  %v1306_v59 = vmax.f32 %v1280_v12, 0.0  ;;  %v1219_v15 = vmax.f32 %v1218_v50, %v2121_v14  ;;  %v1221_v60 = vmax.f32 %v2127_v17, %v920_v7 }
 0x142   : > { %1438 = vst.msk [vmem:[%s2203_s6 + $0x20] sm:$0xf] %vm1429_vm3, %v1664_v41  ;;  %v1665_v13 = vpack.c.bf16 %v1308_v51, %v1308_v51  ;;  %v1226_v63 = vmax.f32 %v1225_v53, %v1839_v4  ;;  %v1228_v61 = vmax.f32 %v1227_v57, %v2149_v28 }
 0x143   : > { %1436 = vst.msk [vmem:[%s2203_s6 + $0x18] sm:$0xf] %vm1429_vm3, %v1662_v58  ;;  %v1663_v24 = vpack.c.bf16 %v1306_v59, %v1306_v59  ;;  %v1220_v47 = vmax.f32 %v1219_v15, %v1125_v52  ;;  %v1222_v27 = vmax.f32 %v1221_v60, %v2129_v18 }
 0x144   : > { %1439 = vst.msk [vmem:[%s2203_s6 + $0x24] sm:$0xf] %vm1429_vm3, %v1665_v13  ;;  %v1285_v5 = vadd.f32 %v2194_v56, %v1226_v63  ;;  %v1229_v42 = vmax.f32 %v1228_v61, %v1840_v55 }
 0x145   : > { %1437 = vst.msk [vmem:[%s2203_s6 + $0x1c] sm:$0xf] %vm1429_vm3, %v1663_v24  ;;  %v1283_v14 = vadd.f32 %v2194_v56, %v1220_v47  ;;  %v1223_v17 = vmax.f32 %v1222_v27, %v1128_v23  ;;  %v1791_v8 = vpop.f32.mrb[40].mxu0  ;;  %v1843_v16 = vpop.f32.mrb[40].mxu1 }
 0x146   : > { %v1311_v11 = vmax.f32 %v1285_v5, 0.0  ;;  %v1286_v28 = vadd.f32 %v2194_v56, %v1229_v42  ;;  %v1236_v19 = vmax.f32 %v2155_v31, %v1791_v8  ;;  %v933_v0 = vpop.f32.mrb[41].mxu0  ;;  %v1141_v3 = vpop.f32.mrb[41].mxu1 }
 0x147   : > { %v1309_v18 = vmax.f32 %v1283_v14, 0.0  ;;  %v1284_v6 = vadd.f32 %v2194_v56, %v1223_v17  ;;  %v1230_v9 = vmax.f32 %v2135_v21, %v933_v0  ;;  %v1792_v62 = vpop.f32.mrb[42].mxu0  ;;  %v1844_v4 = vpop.f32.mrb[42].mxu1 }
 0x148   : > { %v1668_v1 = vpack.c.bf16 %v1311_v11, %v1311_v11  ;;  %v1312_v20 = vmax.f32 %v1286_v28, 0.0  ;;  %v1237_v46 = vmax.f32 %v1236_v19, %v2157_v32  ;;  %v1239_v45 = vmax.f32 %v2163_v35, %v1792_v62  ;;  %v936_v52 = vpop.f32.mrb[43].mxu0  ;;  %v1144_v31 = vpop.f32.mrb[43].mxu1 }
 0x149   : > { %v1666_v10 = vpack.c.bf16 %v1309_v18, %v1309_v18  ;;  %v1310_v12 = vmax.f32 %v1284_v6, 0.0  ;;  %v1231_v50 = vmax.f32 %v1230_v9, %v2137_v22  ;;  %v1233_v2 = vmax.f32 %v2143_v25, %v936_v52 }
 0x14a   : > { %1442 = vst.msk [vmem:[%s2203_s6 + $0x30] sm:$0xf] %vm1429_vm3, %v1668_v1  ;;  %v1669_v21 = vpack.c.bf16 %v1312_v20, %v1312_v20  ;;  %v1238_v55 = vmax.f32 %v1237_v46, %v1843_v16  ;;  %v1240_v41 = vmax.f32 %v1239_v45, %v2165_v36 }
 0x14b   : > { %1440 = vst.msk [vmem:[%s2203_s6 + $0x28] sm:$0xf] %vm1429_vm3, %v1666_v10  ;;  %v1667_v32 = vpack.c.bf16 %v1310_v12, %v1310_v12  ;;  %v1232_v51 = vmax.f32 %v1231_v50, %v1141_v3  ;;  %v1234_v35 = vmax.f32 %v1233_v2, %v2145_v26 }
 0x14c   : > { %1443 = vst.msk [vmem:[%s2203_s6 + $0x34] sm:$0xf] %vm1429_vm3, %v1669_v21  ;;  %v1289_v53 = vadd.f32 %v2194_v56, %v1238_v55  ;;  %v1241_v57 = vmax.f32 %v1240_v41, %v1844_v4 }
 0x14d   : > { %1441 = vst.msk [vmem:[%s2203_s6 + $0x2c] sm:$0xf] %vm1429_vm3, %v1667_v32  ;;  %v1287_v22 = vadd.f32 %v2194_v56, %v1232_v51  ;;  %v1235_v25 = vmax.f32 %v1234_v35, %v1144_v31  ;;  %v1795_v7 = vpop.f32.mrb[44].mxu0  ;;  %v1847_v23 = vpop.f32.mrb[44].mxu1  ;;  %v2338_v51 = vld [vmem:[#allocation2_spill] sm:$0xff] }
 0x14e   : > { %v1315_v58 = vmax.f32 %v1289_v53, 0.0  ;;  %v1290_v36 = vadd.f32 %v2194_v56, %v1241_v57  ;;  %v1248_v59 = vmax.f32 %v2171_v39, %v1795_v7  ;;  %v949_v15 = vpop.f32.mrb[45].mxu0  ;;  %v1157_v60 = vpop.f32.mrb[45].mxu1  ;;  %v2339_v57 = vld [vmem:[#allocation4_spill] sm:$0xff] }
 0x14f   : > { %v1313_v26 = vmax.f32 %v1287_v22, 0.0  ;;  %v1288_v13 = vadd.f32 %v2194_v56, %v1235_v25  ;;  %v1242_v63 = vmax.f32 %v2151_v29, %v949_v15  ;;  %v1796_v61 = vpop.f32.mrb[46].mxu0  ;;  %v1848_v24 = vpop.f32.mrb[46].mxu1 }
 0x150   : > { %v1672_v47 = vpack.c.bf16 %v1315_v58, %v1315_v58  ;;  %v1316_v27 = vmax.f32 %v1290_v36, 0.0  ;;  %v1249_v5 = vmax.f32 %v1248_v59, %v2173_v40  ;;  %v1251_v42 = vmax.f32 %v2179_v43, %v1796_v61  ;;  %v952_v14 = vpop.f32.mrb[47].mxu0  ;;  %v1160_v39 = vpop.f32.mrb[47].mxu1 }
 0x151   : > { %v1670_v17 = vpack.c.bf16 %v1313_v26, %v1313_v26  ;;  %v1314_v8 = vmax.f32 %v1288_v13, 0.0  ;;  %v1243_v16 = vmax.f32 %v1242_v63, %v2153_v30  ;;  %v1245_v11 = vmax.f32 %v2159_v33, %v952_v14 }
 0x152   : > { %1446 = vst.msk [vmem:[%s2203_s6 + $0x40] sm:$0xf] %vm1429_vm3, %v1672_v47  ;;  %v1673_v29 = vpack.c.bf16 %v1316_v27, %v1316_v27  ;;  %v1250_v28 = vmax.f32 %v1249_v5, %v1847_v23  ;;  %v1252_v19 = vmax.f32 %v1251_v42, %v2181_v44 }
 0x153   : > { %1444 = vst.msk [vmem:[%s2203_s6 + $0x38] sm:$0xf] %vm1429_vm3, %v1670_v17  ;;  %v1671_v40 = vpack.c.bf16 %v1314_v8, %v1314_v8  ;;  %v1244_v0 = vmax.f32 %v1243_v16, %v1157_v60  ;;  %v1246_v43 = vmax.f32 %v1245_v11, %v2161_v34 }
 0x154   : > { %1447 = vst.msk [vmem:[%s2203_s6 + $0x44] sm:$0xf] %vm1429_vm3, %v1673_v29  ;;  %v1293_v3 = vadd.f32 %v2194_v56, %v1250_v28  ;;  %v1253_v18 = vmax.f32 %v1252_v19, %v1848_v24 }
 0x155   : > { %1445 = vst.msk [vmem:[%s2203_s6 + $0x3c] sm:$0xf] %vm1429_vm3, %v1671_v40  ;;  %v1291_v30 = vadd.f32 %v2194_v56, %v1244_v0  ;;  %v1247_v33 = vmax.f32 %v1246_v43, %v1160_v39  ;;  %v1799_v6 = vpop.f32.mrb[48].mxu0  ;;  %v1851_v9 = vpop.f32.mrb[48].mxu1 }
 0x156   : > { %v1319_v62 = vmax.f32 %v1293_v3, 0.0  ;;  %v1294_v44 = vadd.f32 %v2194_v56, %v1253_v18  ;;  %v1260_v4 = vmax.f32 %v2183_v48, %v1799_v6  ;;  %v965_v1 = vpop.f32.mrb[49].mxu0  ;;  %v1173_v20 = vpop.f32.mrb[49].mxu1 }
 0x157   : > { %v1317_v34 = vmax.f32 %v1291_v30, 0.0  ;;  %v1292_v46 = vadd.f32 %v2194_v56, %v1247_v33  ;;  %v1254_v45 = vmax.f32 %v2167_v37, %v965_v1  ;;  %v1800_v52 = vpop.f32.mrb[50].mxu0  ;;  %v1852_v31 = vpop.f32.mrb[50].mxu1 }
 0x158   : > { %v1676_v10 = vpack.c.bf16 %v1319_v62, %v1319_v62  ;;  %v1320_v12 = vmax.f32 %v1294_v44, 0.0  ;;  %v1261_v50 = vmax.f32 %v1260_v4, %v2185_v49  ;;  %v1263_v2 = vmax.f32 %v2187_v54, %v1800_v52  ;;  %v968_v21 = vpop.f32.mrb[51].mxu0  ;;  %v1176_v48 = vpop.f32.mrb[51].mxu1  ;;  %v2340_v54 = vld [vmem:[#allocation3_spill] sm:$0xff] }
 0x159   : > { %v1674_v55 = vpack.c.bf16 %v1317_v34, %v1317_v34  ;;  %v1318_v41 = vmax.f32 %v1292_v46, 0.0  ;;  %v1255_v32 = vmax.f32 %v1254_v45, %v2169_v38  ;;  %v1257_v35 = vmax.f32 %v2338_v51, %v968_v21 }
 0x15a   : > { %1450 = vst.msk [vmem:[%s2203_s6 + $0x50] sm:$0xf] %vm1429_vm3, %v1676_v10  ;;  %v1677_v37 = vpack.c.bf16 %v1320_v12, %v1320_v12  ;;  %v1262_v53 = vmax.f32 %v1261_v50, %v1851_v9  ;;  %v1264_v22 = vmax.f32 %v1263_v2, %v2339_v57 }
 0x15b   : > { %1448 = vst.msk [vmem:[%s2203_s6 + $0x48] sm:$0xf] %vm1429_vm3, %v1674_v55  ;;  %v1675_v49 = vpack.c.bf16 %v1318_v41, %v1318_v41  ;;  %v1256_v25 = vmax.f32 %v1255_v32, %v1173_v20  ;;  %v1258_v7 = vmax.f32 %v1257_v35, %v2340_v54 }
 0x15c   : > { %1451 = vst.msk [vmem:[%s2203_s6 + $0x54] sm:$0xf] %vm1429_vm3, %v1677_v37  ;;  %v1297_v38 = vadd.f32 %v2194_v56, %v1262_v53  ;;  %v1265_v23 = vmax.f32 %v1264_v22, %v1852_v31 }
 0x15d   : > { %1449 = vst.msk [vmem:[%s2203_s6 + $0x4c] sm:$0xf] %vm1429_vm3, %v1675_v49  ;;  %v1295_v58 = vadd.f32 %v2194_v56, %v1256_v25  ;;  %v1259_v36 = vmax.f32 %v1258_v7, %v1176_v48 }
 0x15e   : > { %v1323_v59 = vmax.f32 %v1297_v38, 0.0  ;;  %v1298_v15 = vadd.f32 %v2194_v56, %v1265_v23 }
 0x15f   : > { %v1321_v60 = vmax.f32 %v1295_v58, 0.0  ;;  %v1296_v26 = vadd.f32 %v2194_v56, %v1259_v36 }
 0x160   : > { %v1680_v13 = vpack.c.bf16 %v1323_v59, %v1323_v59  ;;  %v1324_v63 = vmax.f32 %v1298_v15, 0.0 }
 0x161   : > { %v1678_v61 = vpack.c.bf16 %v1321_v60, %v1321_v60  ;;  %v1322_v24 = vmax.f32 %v1296_v26, 0.0 }
 0x162   : > { %1454 = vst.msk [vmem:[%s2203_s6 + $0x60] sm:$0xf] %vm1429_vm3, %v1680_v13  ;;  %v1681_v47 = vpack.c.bf16 %v1324_v63, %v1324_v63 }
 0x163   : > { %1452 = vst.msk [vmem:[%s2203_s6 + $0x58] sm:$0xf] %vm1429_vm3, %v1678_v61  ;;  %v1679_v27 = vpack.c.bf16 %v1322_v24, %v1322_v24 }
 0x164   : > { %1455 = vst.msk [vmem:[%s2203_s6 + $0x64] sm:$0xf] %vm1429_vm3, %v1681_v47 }
 0x165   : > { %1453 = vst.msk [vmem:[%s2203_s6 + $0x5c] sm:$0xf] %vm1429_vm3, %v1679_v27 }
 0x166 PF: > { %s13_s12 = sadd.s32 1, %s1937_s12  }
 0x167   : > { %p10_p4 = scmp.ge.s32.totalorder %s13_s12, 4  }
 0x169   :  { %12 = sbr.rel (!%p10_p4) target bundleno = 1 (0x1), region = 62 }

// kernel: forward.3
= control target key start
LH: loop header
LB: loop body
LE: loop exit
PB: predicated region body
PF: predicated region fallthrough
CT: control target
= control target key end

     0   :  { %vm7196_vm0 = vcmask 261120   ;;  %s15135_s1 = inlined_call_operand.vmem [shape: bf16[1184,2048], index: 1, kind: input, shape index: {}]   ;;  %s15136_s0 = inlined_call_operand.vmem [shape: bf16[16,1184], index: 0, kind: input, shape index: {}]   ;;  %s15137_s3 = inlined_call_operand.vmem [shape: bf16[512,128], index: 3, kind: input, shape index: {}]   ;;  %s15138_s5 = inlined_call_operand.vmem [shape: bf16[128,128], index: 5, kind: input, shape index: {}]   ;;  %s15139_s2 = inlined_call_operand.vmem [shape: f32[1,512], index: 2, kind: input, shape index: {}]   ;;  %s15140_s7 = inlined_call_operand.vmem [shape: bf16[128,128], index: 7, kind: input, shape index: {}]   ;;  %s15141_s4 = inlined_call_operand.vmem [shape: f32[1,128], index: 4, kind: input, shape index: {}]   ;;  %s15142_s6 = inlined_call_operand.vmem [shape: f32[1,128], index: 6, kind: input, shape index: {}]   ;;  %s15143_s8 = inlined_call_operand.vmem [shape: f32[1,128], index: 8, kind: input, shape index: {}]   ;;  %s15144_s9 = inlined_call_operand.vmem [shape: f32[16,128], index: 9, kind: output, shape index: {}]  }
   0x1   :  { %v43_v0 = vld [vmem:[%s15135_s1] sm:$0xff]  ;;  %v44_v2 = vld [vmem:[%s15135_s1 + $0x8] sm:$0xff] }
   0x2   :  { %v51_v1 = vld [vmem:[%s15135_s1 + $0x40] sm:$0xff]  ;;  %v52_v4 = vld [vmem:[%s15135_s1 + $0x48] sm:$0xff] }
   0x3   :  { %v9582_v3 = vcombine.high %v43_v0, %v51_v1  ;;  %v9581_v5 = vcombine.low %v43_v0, %v51_v1  ;;  %v59_v6 = vld [vmem:[%s15135_s1 + $0x80] sm:$0xff]  ;;  %v9584_v8 = vcombine.high %v44_v2, %v52_v4  ;;  %v9583_v9 = vcombine.low %v44_v2, %v52_v4  ;;  %v60_v11 = vld [vmem:[%s15135_s1 + $0x88] sm:$0xff] }
   0x4   :  { %v67_v7 = vld [vmem:[%s15135_s1 + $0xc0] sm:$0xff]  ;;  %v68_v12 = vld [vmem:[%s15135_s1 + $0xc8] sm:$0xff] }
   0x5   :  { %v9598_v10 = vcombine.high %v59_v6, %v67_v7  ;;  %v75_v13 = vld [vmem:[%s15135_s1 + $0x100] sm:$0xff]  ;;  %7200 = vmatprep.subr.bf16.mxu0 %v9582_v3  ;;  %v9600_v14 = vcombine.high %v60_v11, %v68_v12  ;;  %v76_v16 = vld [vmem:[%s15135_s1 + $0x108] sm:$0xff]  ;;  %7415 = vmatprep.subr.bf16.mxu1 %v9584_v8  ;;  %v9597_v18 = vcombine.low %v59_v6, %v67_v7 }
   0x6   :  { %v83_v15 = vld [vmem:[%s15135_s1 + $0x140] sm:$0xff]  ;;  %v84_v17 = vld [vmem:[%s15135_s1 + $0x148] sm:$0xff]  ;;  %7201 = vmatpush1.bf16.msra.mxu0 %v9581_v5  ;;  %7416 = vmatpush1.bf16.msra.mxu1 %v9583_v9  ;;  %v9599_v19 = vcombine.low %v60_v11, %v68_v12 }
   0x7   :  { %7202 = vmatprep.subr.bf16.mxu0 %v9598_v10  ;;  %v9614_v20 = vcombine.high %v75_v13, %v83_v15  ;;  %7417 = vmatprep.subr.bf16.mxu1 %v9600_v14  ;;  %v9616_v21 = vcombine.high %v76_v16, %v84_v17  ;;  %v91_v22 = vld [vmem:[%s15135_s1 + $0x180] sm:$0xff]  ;;  %v92_v24 = vld [vmem:[%s15135_s1 + $0x188] sm:$0xff]  ;;  %v9613_v26 = vcombine.low %v75_v13, %v83_v15 }
   0x8   :  { %v99_v23 = vld [vmem:[%s15135_s1 + $0x1c0] sm:$0xff]  ;;  %v100_v25 = vld [vmem:[%s15135_s1 + $0x1c8] sm:$0xff]  ;;  %v9615_v27 = vcombine.low %v76_v16, %v84_v17 }
   0x9   :  { %v9630_v28 = vcombine.high %v91_v22, %v99_v23  ;;  %v9632_v29 = vcombine.high %v92_v24, %v100_v25  ;;  %v107_v30 = vld [vmem:[%s15135_s1 + $0x200] sm:$0xff]  ;;  %v108_v32 = vld [vmem:[%s15135_s1 + $0x208] sm:$0xff]  ;;  %v9629_v34 = vcombine.low %v91_v22, %v99_v23  ;;  %v9631_v35 = vcombine.low %v92_v24, %v100_v25 }
   0xa   :  { %7203 = vmatpush1.bf16.msra.mxu0 %v9597_v18  ;;  %7418 = vmatpush1.bf16.msra.mxu1 %v9599_v19  ;;  %v115_v31 = vld [vmem:[%s15135_s1 + $0x240] sm:$0xff]  ;;  %v116_v33 = vld [vmem:[%s15135_s1 + $0x248] sm:$0xff] }
   0xb   :  { %7204 = vmatprep.subr.bf16.mxu0 %v9614_v20  ;;  %7419 = vmatprep.subr.bf16.mxu1 %v9616_v21  ;;  %v9646_v36 = vcombine.high %v107_v30, %v115_v31  ;;  %v9648_v37 = vcombine.high %v108_v32, %v116_v33  ;;  %v123_v38 = vld [vmem:[%s15135_s1 + $0x280] sm:$0xff]  ;;  %v124_v40 = vld [vmem:[%s15135_s1 + $0x288] sm:$0xff]  ;;  %v9645_v42 = vcombine.low %v107_v30, %v115_v31 }
   0xc   :  { %v131_v39 = vld [vmem:[%s15135_s1 + $0x2c0] sm:$0xff]  ;;  %v132_v41 = vld [vmem:[%s15135_s1 + $0x2c8] sm:$0xff]  ;;  %v9647_v43 = vcombine.low %v108_v32, %v116_v33 }
   0xd   :  { %v9662_v44 = vcombine.high %v123_v38, %v131_v39  ;;  %v9664_v45 = vcombine.high %v124_v40, %v132_v41  ;;  %v139_v46 = vld [vmem:[%s15135_s1 + $0x300] sm:$0xff]  ;;  %v140_v48 = vld [vmem:[%s15135_s1 + $0x308] sm:$0xff]  ;;  %v9661_v50 = vcombine.low %v123_v38, %v131_v39  ;;  %v9663_v51 = vcombine.low %v124_v40, %v132_v41 }
   0xe   :  { %7205 = vmatpush1.bf16.msra.mxu0 %v9613_v26  ;;  %7420 = vmatpush1.bf16.msra.mxu1 %v9615_v27  ;;  %v147_v47 = vld [vmem:[%s15135_s1 + $0x340] sm:$0xff]  ;;  %v148_v49 = vld [vmem:[%s15135_s1 + $0x348] sm:$0xff] }
   0xf   :  { %7206 = vmatprep.subr.bf16.mxu0 %v9630_v28  ;;  %7421 = vmatprep.subr.bf16.mxu1 %v9632_v29  ;;  %v9678_v52 = vcombine.high %v139_v46, %v147_v47  ;;  %v9680_v53 = vcombine.high %v140_v48, %v148_v49  ;;  %v155_v54 = vld [vmem:[%s15135_s1 + $0x380] sm:$0xff]  ;;  %v156_v57 = vld [vmem:[%s15135_s1 + $0x388] sm:$0xff]  ;;  %v9677_v59 = vcombine.low %v139_v46, %v147_v47 }
  0x10   :  { %v163_v55 = vld [vmem:[%s15135_s1 + $0x3c0] sm:$0xff]  ;;  %v164_v58 = vld [vmem:[%s15135_s1 + $0x3c8] sm:$0xff]  ;;  %v9679_v60 = vcombine.low %v140_v48, %v148_v49 }
  0x11   :  { %v11054_v56 = vld [vmem:[%s15136_s0 + $0x4] ss:$40 sps:$4 sm:$0xff]   ;;  %v9694_v61 = vcombine.high %v155_v54, %v163_v55  ;;  %v9696_v62 = vcombine.high %v156_v57, %v164_v58  ;;  %v9693_v3 = vcombine.low %v155_v54, %v163_v55  ;;  %v9695_v4 = vcombine.low %v156_v57, %v164_v58 }
  0x12   :  { %7207 = vmatpush1.bf16.msra.mxu0 %v9629_v34  ;;  %7422 = vmatpush1.bf16.msra.mxu1 %v9631_v35  ;;  %v171_v63 = vld [vmem:[%s15135_s1 + $0x400] sm:$0xff]  ;;  %v172_v1 = vld [vmem:[%s15135_s1 + $0x408] sm:$0xff] }
  0x13   :  { %7208 = vmatprep.subr.bf16.mxu0 %v9646_v36  ;;  %7423 = vmatprep.subr.bf16.mxu1 %v9648_v37  ;;  %v179_v0 = vld [vmem:[%s15135_s1 + $0x440] sm:$0xff]  ;;  %v180_v2 = vld [vmem:[%s15135_s1 + $0x448] sm:$0xff] }
  0x14   :  { %7232 = vmatprep.mubr.bf16.mxu0 %v11054_v56  ;;  %7447 = vmatprep.mubr.bf16.mxu1 %v11054_v56  ;;  %v9710_v5 = vcombine.high %v171_v63, %v179_v0  ;;  %v9712_v6 = vcombine.high %v172_v1, %v180_v2  ;;  %v187_v7 = vld [vmem:[%s15135_s1 + $0x480] sm:$0xff]  ;;  %v188_v9 = vld [vmem:[%s15135_s1 + $0x488] sm:$0xff]  ;;  %v9709_v11 = vcombine.low %v171_v63, %v179_v0 }
  0x15   :  { %v195_v8 = vld [vmem:[%s15135_s1 + $0x4c0] sm:$0xff]  ;;  %v196_v10 = vld [vmem:[%s15135_s1 + $0x4c8] sm:$0xff]  ;;  %v9711_v12 = vcombine.low %v172_v1, %v180_v2 }
  0x16   :  { %7209 = vmatpush1.bf16.msra.mxu0 %v9645_v42  ;;  %7424 = vmatpush1.bf16.msra.mxu1 %v9647_v43  ;;  %v9726_v13 = vcombine.high %v187_v7, %v195_v8  ;;  %v9728_v14 = vcombine.high %v188_v9, %v196_v10  ;;  %v203_v15 = vld [vmem:[%s15135_s1 + $0x500] sm:$0xff]  ;;  %v204_v17 = vld [vmem:[%s15135_s1 + $0x508] sm:$0xff]  ;;  %v9725_v19 = vcombine.low %v187_v7, %v195_v8 }
  0x17   :  { %7210 = vmatprep.subr.bf16.mxu0 %v9662_v44  ;;  %7425 = vmatprep.subr.bf16.mxu1 %v9664_v45  ;;  %v211_v16 = vld [vmem:[%s15135_s1 + $0x540] sm:$0xff]  ;;  %v212_v18 = vld [vmem:[%s15135_s1 + $0x548] sm:$0xff]  ;;  %v9727_v20 = vcombine.low %v188_v9, %v196_v10 }
  0x18   :  { %v9742_v21 = vcombine.high %v203_v15, %v211_v16  ;;  %v9744_v22 = vcombine.high %v204_v17, %v212_v18  ;;  %v219_v23 = vld [vmem:[%s15135_s1 + $0x580] sm:$0xff]  ;;  %v220_v25 = vld [vmem:[%s15135_s1 + $0x588] sm:$0xff]  ;;  %v9741_v27 = vcombine.low %v203_v15, %v211_v16  ;;  %v9743_v28 = vcombine.low %v204_v17, %v212_v18 }
  0x19   :  { %v227_v24 = vld [vmem:[%s15135_s1 + $0x5c0] sm:$0xff]  ;;  %v228_v26 = vld [vmem:[%s15135_s1 + $0x5c8] sm:$0xff] }
  0x1a   :  { %7211 = vmatpush1.bf16.msra.mxu0 %v9661_v50  ;;  %7426 = vmatpush1.bf16.msra.mxu1 %v9663_v51  ;;  %v9758_v29 = vcombine.high %v219_v23, %v227_v24  ;;  %v9760_v30 = vcombine.high %v220_v25, %v228_v26  ;;  %v235_v31 = vld [vmem:[%s15135_s1 + $0x600] sm:$0xff]  ;;  %v236_v33 = vld [vmem:[%s15135_s1 + $0x608] sm:$0xff]  ;;  %v9757_v35 = vcombine.low %v219_v23, %v227_v24 }
  0x1b   :  { %7212 = vmatprep.subr.bf16.mxu0 %v9678_v52  ;;  %7427 = vmatprep.subr.bf16.mxu1 %v9680_v53  ;;  %v243_v32 = vld [vmem:[%s15135_s1 + $0x640] sm:$0xff]  ;;  %v244_v34 = vld [vmem:[%s15135_s1 + $0x648] sm:$0xff]  ;;  %v9759_v36 = vcombine.low %v220_v25, %v228_v26 }
  0x1c   :  { %v9774_v37 = vcombine.high %v235_v31, %v243_v32  ;;  %v9776_v38 = vcombine.high %v236_v33, %v244_v34  ;;  %v251_v39 = vld [vmem:[%s15135_s1 + $0x680] sm:$0xff]  ;;  %v252_v41 = vld [vmem:[%s15135_s1 + $0x688] sm:$0xff]  ;;  %v9773_v43 = vcombine.low %v235_v31, %v243_v32  ;;  %v9775_v44 = vcombine.low %v236_v33, %v244_v34 }
  0x1d   :  { %v259_v40 = vld [vmem:[%s15135_s1 + $0x6c0] sm:$0xff]  ;;  %v260_v42 = vld [vmem:[%s15135_s1 + $0x6c8] sm:$0xff] }
  0x1e   :  { %7213 = vmatpush1.bf16.msra.mxu0 %v9677_v59  ;;  %7428 = vmatpush1.bf16.msra.mxu1 %v9679_v60  ;;  %v9790_v45 = vcombine.high %v251_v39, %v259_v40  ;;  %v9792_v46 = vcombine.high %v252_v41, %v260_v42  ;;  %v267_v47 = vld [vmem:[%s15135_s1 + $0x700] sm:$0xff]  ;;  %v268_v49 = vld [vmem:[%s15135_s1 + $0x708] sm:$0xff]  ;;  %v9789_v51 = vcombine.low %v251_v39, %v259_v40 }
  0x1f   :  { %7214 = vmatprep.subr.bf16.mxu0 %v9694_v61  ;;  %7429 = vmatprep.subr.bf16.mxu1 %v9696_v62  ;;  %v275_v48 = vld [vmem:[%s15135_s1 + $0x740] sm:$0xff]  ;;  %v276_v50 = vld [vmem:[%s15135_s1 + $0x748] sm:$0xff]  ;;  %v9791_v52 = vcombine.low %v252_v41, %v260_v42 }
  0x20   :  { %v9806_v53 = vcombine.high %v267_v47, %v275_v48  ;;  %v9808_v54 = vcombine.high %v268_v49, %v276_v50  ;;  %v283_v55 = vld [vmem:[%s15135_s1 + $0x780] sm:$0xff]  ;;  %v284_v57 = vld [vmem:[%s15135_s1 + $0x788] sm:$0xff]  ;;  %v9805_v59 = vcombine.low %v267_v47, %v275_v48  ;;  %v9807_v60 = vcombine.low %v268_v49, %v276_v50 }
  0x21   :  { %v291_v56 = vld [vmem:[%s15135_s1 + $0x7c0] sm:$0xff]  ;;  %v292_v58 = vld [vmem:[%s15135_s1 + $0x7c8] sm:$0xff] }
  0x22   :  { %7215 = vmatpush1.bf16.msra.mxu0 %v9693_v3  ;;  %7430 = vmatpush1.bf16.msra.mxu1 %v9695_v4  ;;  %v9822_v61 = vcombine.high %v283_v55, %v291_v56  ;;  %v9824_v62 = vcombine.high %v284_v57, %v292_v58  ;;  %v299_v63 = vld [vmem:[%s15135_s1 + $0x800] sm:$0xff]  ;;  %v300_v1 = vld [vmem:[%s15135_s1 + $0x808] sm:$0xff]  ;;  %v9821_v3 = vcombine.low %v283_v55, %v291_v56 }
  0x23   :  { %7216 = vmatprep.subr.bf16.mxu0 %v9710_v5  ;;  %7431 = vmatprep.subr.bf16.mxu1 %v9712_v6  ;;  %v307_v0 = vld [vmem:[%s15135_s1 + $0x840] sm:$0xff]  ;;  %v308_v2 = vld [vmem:[%s15135_s1 + $0x848] sm:$0xff]  ;;  %v9823_v4 = vcombine.low %v284_v57, %v292_v58 }
  0x24   :  { %v9838_v5 = vcombine.high %v299_v63, %v307_v0  ;;  %v9840_v6 = vcombine.high %v300_v1, %v308_v2  ;;  %v315_v7 = vld [vmem:[%s15135_s1 + $0x880] sm:$0xff]  ;;  %v316_v10 = vld [vmem:[%s15135_s1 + $0x888] sm:$0xff] }
  0x25   :  { %v323_v8 = vld [vmem:[%s15135_s1 + $0x8c0] sm:$0xff]  ;;  %v11057_v18 = vld [vmem:[%s15136_s0 + $0xc] ss:$40 sps:$4 sm:$0xff]  }
  0x26   :  { %7217 = vmatpush1.bf16.msra.mxu0 %v9709_v11  ;;  %7432 = vmatpush1.bf16.msra.mxu1 %v9711_v12  ;;  %v11056_v9 = vld [vmem:[%s15136_s0] ss:$40 sps:$4 sm:$0xff]   ;;  %v9837_v12 = vcombine.low %v299_v63, %v307_v0 }
  0x27   :  { %7218 = vmatprep.subr.bf16.mxu0 %v9726_v13  ;;  %7433 = vmatprep.subr.bf16.mxu1 %v9728_v14  ;;  %v324_v11 = vld [vmem:[%s15135_s1 + $0x8c8] sm:$0xff]  ;;  %v9839_v13 = vcombine.low %v300_v1, %v308_v2  ;;  %v9854_v14 = vcombine.high %v315_v7, %v323_v8  ;;  %v331_v15 = vld [vmem:[%s15135_s1 + $0x900] sm:$0xff] }
  0x28   :  { %v9856_v16 = vcombine.high %v316_v10, %v324_v11  ;;  %v339_v17 = vld [vmem:[%s15135_s1 + $0x940] sm:$0xff] }
  0x29   :  { %v9870_v23 = vcombine.high %v331_v15, %v339_v17  ;;  %v347_v24 = vld [vmem:[%s15135_s1 + $0x980] sm:$0xff] }
  0x2a   :  { %7219 = vmatpush1.bf16.msra.mxu0 %v9725_v19  ;;  %7434 = vmatpush1.bf16.msra.mxu1 %v9727_v20  ;;  %v332_v19 = vld [vmem:[%s15135_s1 + $0x908] sm:$0xff]  ;;  %v355_v25 = vld [vmem:[%s15135_s1 + $0x9c0] sm:$0xff] }
  0x2b   :  { %7220 = vmatprep.subr.bf16.mxu0 %v9742_v21  ;;  %7435 = vmatprep.subr.bf16.mxu1 %v9744_v22  ;;  %v340_v20 = vld [vmem:[%s15135_s1 + $0x948] sm:$0xff]  ;;  %v9853_v21 = vcombine.low %v315_v7, %v323_v8  ;;  %v9855_v22 = vcombine.low %v316_v10, %v324_v11  ;;  %v9886_v31 = vcombine.high %v347_v24, %v355_v25  ;;  %v363_v33 = vld [vmem:[%s15135_s1 + $0xa00] sm:$0xff] }
  0x2c   :  { %v9872_v26 = vcombine.high %v332_v19, %v340_v20  ;;  %v371_v34 = vld [vmem:[%s15135_s1 + $0xa40] sm:$0xff]  ;;  %v444_v11 = vld [vmem:[%s15135_s1 + $0xc88] sm:$0xff] }
  0x2d   :  { %v9902_v39 = vcombine.high %v363_v33, %v371_v34  ;;  %v379_v41 = vld [vmem:[%s15135_s1 + $0xa80] sm:$0xff] }
  0x2e   :  { %7221 = vmatpush1.bf16.msra.mxu0 %v9741_v27  ;;  %7436 = vmatpush1.bf16.msra.mxu1 %v9743_v28  ;;  %v348_v27 = vld [vmem:[%s15135_s1 + $0x988] sm:$0xff]  ;;  %v387_v42 = vld [vmem:[%s15135_s1 + $0xac0] sm:$0xff] }
  0x2f   :  { %7222 = vmatprep.subr.bf16.mxu0 %v9758_v29  ;;  %7437 = vmatprep.subr.bf16.mxu1 %v9760_v30  ;;  %v356_v28 = vld [vmem:[%s15135_s1 + $0x9c8] sm:$0xff]  ;;  %v9869_v29 = vcombine.low %v331_v15, %v339_v17  ;;  %v9871_v30 = vcombine.low %v332_v19, %v340_v20  ;;  %v9918_v47 = vcombine.high %v379_v41, %v387_v42  ;;  %v395_v49 = vld [vmem:[%s15135_s1 + $0xb00] sm:$0xff] }
  0x30   :  { %v9888_v32 = vcombine.high %v348_v27, %v356_v28  ;;  %v403_v50 = vld [vmem:[%s15135_s1 + $0xb40] sm:$0xff]  ;;  %v460_v19 = vld [vmem:[%s15135_s1 + $0xd08] sm:$0xff] }
  0x31   :  { %v9934_v55 = vcombine.high %v395_v49, %v403_v50  ;;  %v411_v57 = vld [vmem:[%s15135_s1 + $0xb80] sm:$0xff]  ;;  %v468_v20 = vld [vmem:[%s15135_s1 + $0xd48] sm:$0xff] }
  0x32   :  { %7223 = vmatpush1.bf16.msra.mxu0 %v9757_v35  ;;  %7438 = vmatpush1.bf16.msra.mxu1 %v9759_v36  ;;  %v364_v35 = vld [vmem:[%s15135_s1 + $0xa08] sm:$0xff]  ;;  %v419_v58 = vld [vmem:[%s15135_s1 + $0xbc0] sm:$0xff] }
  0x33   :  { %7224 = vmatprep.subr.bf16.mxu0 %v9774_v37  ;;  %7439 = vmatprep.subr.bf16.mxu1 %v9776_v38  ;;  %v372_v36 = vld [vmem:[%s15135_s1 + $0xa48] sm:$0xff]  ;;  %v9885_v37 = vcombine.low %v347_v24, %v355_v25  ;;  %v9887_v38 = vcombine.low %v348_v27, %v356_v28  ;;  %v9950_v63 = vcombine.high %v411_v57, %v419_v58  ;;  %v427_v1 = vld [vmem:[%s15135_s1 + $0xc00] sm:$0xff] }
  0x34   :  { %v9904_v40 = vcombine.high %v364_v35, %v372_v36  ;;  %v435_v2 = vld [vmem:[%s15135_s1 + $0xc40] sm:$0xff]  ;;  %v10000_v24 = vcombine.high %v460_v19, %v468_v20  ;;  %v476_v27 = vld [vmem:[%s15135_s1 + $0xd88] sm:$0xff] }
  0x35   :  { %v9966_v7 = vcombine.high %v427_v1, %v435_v2  ;;  %v451_v10 = vld [vmem:[%s15135_s1 + $0xcc0] sm:$0xff]  ;;  %v484_v28 = vld [vmem:[%s15135_s1 + $0xdc8] sm:$0xff] }
  0x36   :  { %7225 = vmatpush1.bf16.msra.mxu0 %v9773_v43  ;;  %7440 = vmatpush1.bf16.msra.mxu1 %v9775_v44  ;;  %v380_v43 = vld [vmem:[%s15135_s1 + $0xa88] sm:$0xff]  ;;  %v459_v17 = vld [vmem:[%s15135_s1 + $0xd00] sm:$0xff] }
  0x37   :  { %7226 = vmatprep.subr.bf16.mxu0 %v9790_v45  ;;  %7441 = vmatprep.subr.bf16.mxu1 %v9792_v46  ;;  %v388_v44 = vld [vmem:[%s15135_s1 + $0xac8] sm:$0xff]  ;;  %v9901_v45 = vcombine.low %v363_v33, %v371_v34  ;;  %v9903_v46 = vcombine.low %v364_v35, %v372_v36  ;;  %v475_v25 = vld [vmem:[%s15135_s1 + $0xd80] sm:$0xff] }
  0x38   :  { %v9920_v48 = vcombine.high %v380_v43, %v388_v44  ;;  %v491_v33 = vld [vmem:[%s15135_s1 + $0xe00] sm:$0xff]  ;;  %v492_v35 = vld [vmem:[%s15135_s1 + $0xe08] sm:$0xff] }
  0x39   :  { %v499_v34 = vld [vmem:[%s15135_s1 + $0xe40] sm:$0xff]  ;;  %v500_v36 = vld [vmem:[%s15135_s1 + $0xe48] sm:$0xff] }
  0x3a   :  { %7227 = vmatpush1.bf16.msra.mxu0 %v9789_v51  ;;  %7442 = vmatpush1.bf16.msra.mxu1 %v9791_v52  ;;  %v396_v51 = vld [vmem:[%s15135_s1 + $0xb08] sm:$0xff] }
  0x3b   :  { %7228 = vmatprep.subr.bf16.mxu0 %v9806_v53  ;;  %7443 = vmatprep.subr.bf16.mxu1 %v9808_v54  ;;  %v404_v52 = vld [vmem:[%s15135_s1 + $0xb48] sm:$0xff]  ;;  %v9917_v53 = vcombine.low %v379_v41, %v387_v42  ;;  %v9919_v54 = vcombine.low %v380_v43, %v388_v44  ;;  %v507_v41 = vld [vmem:[%s15135_s1 + $0xe80] sm:$0xff] }
  0x3c   :  { %v9936_v56 = vcombine.high %v396_v51, %v404_v52  ;;  %v515_v42 = vld [vmem:[%s15135_s1 + $0xec0] sm:$0xff]  ;;  %v508_v43 = vld [vmem:[%s15135_s1 + $0xe88] sm:$0xff] }
  0x3d   :  { %v516_v44 = vld [vmem:[%s15135_s1 + $0xec8] sm:$0xff] }
  0x3e   :  { %7229 = vmatpush1.bf16.msra.mxu0 %v9805_v59  ;;  %7444 = vmatpush1.bf16.msra.mxu1 %v9807_v60  ;;  %v412_v59 = vld [vmem:[%s15135_s1 + $0xb88] sm:$0xff] }
  0x3f   :  { %7230 = vmatprep.subr.bf16.mxu0 %v9822_v61  ;;  %7445 = vmatprep.subr.bf16.mxu1 %v9824_v62  ;;  %v420_v60 = vld [vmem:[%s15135_s1 + $0xbc8] sm:$0xff]  ;;  %v9933_v61 = vcombine.low %v395_v49, %v403_v50  ;;  %v9935_v62 = vcombine.low %v396_v51, %v404_v52  ;;  %v523_v49 = vld [vmem:[%s15135_s1 + $0xf00] sm:$0xff] }
  0x40   :  { %v9952_v0 = vcombine.high %v412_v59, %v420_v60  ;;  %v531_v50 = vld [vmem:[%s15135_s1 + $0xf40] sm:$0xff]  ;;  %v524_v51 = vld [vmem:[%s15135_s1 + $0xf08] sm:$0xff] }
  0x41   :  { %v532_v52 = vld [vmem:[%s15135_s1 + $0xf48] sm:$0xff] }
  0x42   :  { %7231 = vmatpush1.bf16.msra.mxu0 %v9821_v3  ;;  %7446 = vmatpush1.bf16.msra.mxu1 %v9823_v4  ;;  %v428_v3 = vld [vmem:[%s15135_s1 + $0xc08] sm:$0xff] }
  0x43   :  { %7243 = vmatprep.subr.bf16.mxu0 %v9838_v5  ;;  %7458 = vmatprep.subr.bf16.mxu1 %v9840_v6  ;;  %v436_v4 = vld [vmem:[%s15135_s1 + $0xc48] sm:$0xff]  ;;  %v9949_v5 = vcombine.low %v411_v57, %v419_v58  ;;  %v9951_v6 = vcombine.low %v412_v59, %v420_v60  ;;  %v539_v57 = vld [vmem:[%s15135_s1 + $0xf80] sm:$0xff] }
  0x44   :  { %v9968_v8 = vcombine.high %v428_v3, %v436_v4  ;;  %v547_v58 = vld [vmem:[%s15135_s1 + $0xfc0] sm:$0xff]  ;;  %v540_v59 = vld [vmem:[%s15135_s1 + $0xf88] sm:$0xff] }
  0x45   :  { %7233 = vmatmul.mubr.bf16.vlgmr.msra.gmra.mrb[0].mxu0 %v11056_v9  ;;  %7448 = vmatmul.mubr.bf16.vlgmr.msra.gmra.mrb[0].mxu1 %v11056_v9  ;;  %v443_v9 = vld [vmem:[%s15135_s1 + $0xc80] sm:$0xff]  ;;  %v548_v60 = vld [vmem:[%s15135_s1 + $0xfc8] sm:$0xff] }
  0x46   :  { %7244 = vmatpush1.bf16.msra.mxu0 %v9837_v12  ;;  %7459 = vmatpush1.bf16.msra.mxu1 %v9839_v13  ;;  %v452_v12 = vld [vmem:[%s15135_s1 + $0xcc8] sm:$0xff]  ;;  %v9965_v13 = vcombine.low %v427_v1, %v435_v2  ;;  %v9982_v15 = vcombine.high %v443_v9, %v451_v10  ;;  %v555_v1 = vld [vmem:[%s15135_s1 + $0x1000] sm:$0xff] }
  0x47   :  { %7245 = vmatprep.subr.bf16.mxu0 %v9854_v14  ;;  %7460 = vmatprep.subr.bf16.mxu1 %v9856_v16  ;;  %v9967_v14 = vcombine.low %v428_v3, %v436_v4  ;;  %v9984_v16 = vcombine.high %v444_v11, %v452_v12  ;;  %v563_v2 = vld [vmem:[%s15135_s1 + $0x1040] sm:$0xff]  ;;  %v556_v3 = vld [vmem:[%s15135_s1 + $0x1008] sm:$0xff] }
  0x48   :  { %7275 = vmatprep.mubr.bf16.mxu0 %v11057_v18  ;;  %7490 = vmatprep.mubr.bf16.mxu1 %v11057_v18  ;;  %v467_v18 = vld [vmem:[%s15135_s1 + $0xd40] sm:$0xff]  ;;  %v564_v4 = vld [vmem:[%s15135_s1 + $0x1048] sm:$0xff] }
  0x4a   :  { %7246 = vmatpush1.bf16.msra.mxu0 %v9853_v21  ;;  %7461 = vmatpush1.bf16.msra.mxu1 %v9855_v22  ;;  %v9981_v21 = vcombine.low %v443_v9, %v451_v10  ;;  %v9983_v22 = vcombine.low %v444_v11, %v452_v12  ;;  %v571_v9 = vld [vmem:[%s15135_s1 + $0x1080] sm:$0xff]  ;;  %v11059_v11 = vld [vmem:[%s15136_s0 + $0x8] ss:$40 sps:$4 sm:$0xff]  }
  0x4b   :  { %7247 = vmatprep.subr.bf16.mxu0 %v9870_v23  ;;  %7462 = vmatprep.subr.bf16.mxu1 %v9872_v26  ;;  %v9998_v23 = vcombine.high %v459_v17, %v467_v18  ;;  %v483_v26 = vld [vmem:[%s15135_s1 + $0xdc0] sm:$0xff]  ;;  %v572_v12 = vld [vmem:[%s15135_s1 + $0x1088] sm:$0xff] }
  0x4c   :  { %v579_v10 = vld [vmem:[%s15135_s1 + $0x10c0] sm:$0xff] }
  0x4e   :  { %7248 = vmatpush1.bf16.msra.mxu0 %v9869_v29  ;;  %7463 = vmatpush1.bf16.msra.mxu1 %v9871_v30  ;;  %v9997_v29 = vcombine.low %v459_v17, %v467_v18  ;;  %v9999_v30 = vcombine.low %v460_v19, %v468_v20  ;;  %v587_v18 = vld [vmem:[%s15135_s1 + $0x1100] sm:$0xff]  ;;  %v11060_v20 = vld [vmem:[%s15136_s0 + $0x14] ss:$40 sps:$4 sm:$0xff]  }
  0x4f   :  { %7249 = vmatprep.subr.bf16.mxu0 %v9886_v31  ;;  %7464 = vmatprep.subr.bf16.mxu1 %v9888_v32  ;;  %v10014_v31 = vcombine.high %v475_v25, %v483_v26  ;;  %v10016_v32 = vcombine.high %v476_v27, %v484_v28  ;;  %v595_v19 = vld [vmem:[%s15135_s1 + $0x1140] sm:$0xff] }
  0x52   :  { %7250 = vmatpush1.bf16.msra.mxu0 %v9885_v37  ;;  %7465 = vmatpush1.bf16.msra.mxu1 %v9887_v38  ;;  %v10013_v37 = vcombine.low %v475_v25, %v483_v26  ;;  %v10015_v38 = vcombine.low %v476_v27, %v484_v28  ;;  %v10126_v25 = vcombine.high %v587_v18, %v595_v19  ;;  %v603_v27 = vld [vmem:[%s15135_s1 + $0x1180] sm:$0xff] }
  0x53   :  { %7251 = vmatprep.subr.bf16.mxu0 %v9902_v39  ;;  %7466 = vmatprep.subr.bf16.mxu1 %v9904_v40  ;;  %v10030_v39 = vcombine.high %v491_v33, %v499_v34  ;;  %v10032_v40 = vcombine.high %v492_v35, %v500_v36  ;;  %v611_v28 = vld [vmem:[%s15135_s1 + $0x11c0] sm:$0xff] }
  0x56   :  { %7252 = vmatpush1.bf16.msra.mxu0 %v9901_v45  ;;  %7467 = vmatpush1.bf16.msra.mxu1 %v9903_v46  ;;  %v10029_v45 = vcombine.low %v491_v33, %v499_v34  ;;  %v10031_v46 = vcombine.low %v492_v35, %v500_v36  ;;  %v10142_v33 = vcombine.high %v603_v27, %v611_v28  ;;  %v619_v35 = vld [vmem:[%s15135_s1 + $0x1200] sm:$0xff] }
  0x57   :  { %7253 = vmatprep.subr.bf16.mxu0 %v9918_v47  ;;  %7468 = vmatprep.subr.bf16.mxu1 %v9920_v48  ;;  %v10046_v47 = vcombine.high %v507_v41, %v515_v42  ;;  %v10048_v48 = vcombine.high %v508_v43, %v516_v44  ;;  %v627_v36 = vld [vmem:[%s15135_s1 + $0x1240] sm:$0xff] }
  0x5a   :  { %7254 = vmatpush1.bf16.msra.mxu0 %v9917_v53  ;;  %7469 = vmatpush1.bf16.msra.mxu1 %v9919_v54  ;;  %v10045_v53 = vcombine.low %v507_v41, %v515_v42  ;;  %v10047_v54 = vcombine.low %v508_v43, %v516_v44  ;;  %v10158_v41 = vcombine.high %v619_v35, %v627_v36  ;;  %v635_v43 = vld [vmem:[%s15135_s1 + $0x1280] sm:$0xff] }
  0x5b   :  { %7255 = vmatprep.subr.bf16.mxu0 %v9934_v55  ;;  %7470 = vmatprep.subr.bf16.mxu1 %v9936_v56  ;;  %v10062_v55 = vcombine.high %v523_v49, %v531_v50  ;;  %v10064_v56 = vcombine.high %v524_v51, %v532_v52  ;;  %v643_v44 = vld [vmem:[%s15135_s1 + $0x12c0] sm:$0xff] }
  0x5e   :  { %7256 = vmatpush1.bf16.msra.mxu0 %v9933_v61  ;;  %7471 = vmatpush1.bf16.msra.mxu1 %v9935_v62  ;;  %v10061_v61 = vcombine.low %v523_v49, %v531_v50  ;;  %v10063_v62 = vcombine.low %v524_v51, %v532_v52  ;;  %v10174_v49 = vcombine.high %v635_v43, %v643_v44  ;;  %v651_v51 = vld [vmem:[%s15135_s1 + $0x1300] sm:$0xff] }
  0x5f   :  { %7257 = vmatprep.subr.bf16.mxu0 %v9950_v63  ;;  %7472 = vmatprep.subr.bf16.mxu1 %v9952_v0  ;;  %v10078_v63 = vcombine.high %v539_v57, %v547_v58  ;;  %v10080_v0 = vcombine.high %v540_v59, %v548_v60  ;;  %v659_v52 = vld [vmem:[%s15135_s1 + $0x1340] sm:$0xff] }
  0x62   :  { %7258 = vmatpush1.bf16.msra.mxu0 %v9949_v5  ;;  %7473 = vmatpush1.bf16.msra.mxu1 %v9951_v6  ;;  %v10077_v5 = vcombine.low %v539_v57, %v547_v58  ;;  %v10079_v6 = vcombine.low %v540_v59, %v548_v60  ;;  %v10190_v57 = vcombine.high %v651_v51, %v659_v52  ;;  %v667_v59 = vld [vmem:[%s15135_s1 + $0x1380] sm:$0xff] }
  0x63   :  { %7259 = vmatprep.subr.bf16.mxu0 %v9966_v7  ;;  %7474 = vmatprep.subr.bf16.mxu1 %v9968_v8  ;;  %v10094_v7 = vcombine.high %v555_v1, %v563_v2  ;;  %v10096_v8 = vcombine.high %v556_v3, %v564_v4  ;;  %v675_v60 = vld [vmem:[%s15135_s1 + $0x13c0] sm:$0xff] }
  0x66   :  { %7260 = vmatpush1.bf16.msra.mxu0 %v9965_v13  ;;  %7475 = vmatpush1.bf16.msra.mxu1 %v9967_v14  ;;  %v580_v13 = vld [vmem:[%s15135_s1 + $0x10c8] sm:$0xff]  ;;  %v10093_v14 = vcombine.low %v555_v1, %v563_v2  ;;  %v10206_v1 = vcombine.high %v667_v59, %v675_v60 }
  0x67   :  { %7261 = vmatprep.subr.bf16.mxu0 %v9982_v15  ;;  %7476 = vmatprep.subr.bf16.mxu1 %v9984_v16  ;;  %v10095_v15 = vcombine.low %v556_v3, %v564_v4  ;;  %v10110_v16 = vcombine.high %v571_v9, %v579_v10  ;;  %v10112_v17 = vcombine.high %v572_v12, %v580_v13  ;;  %v683_v3 = vld [vmem:[%s15135_s1 + $0x1400] sm:$0xff] }
  0x68   :  { %v691_v4 = vld [vmem:[%s15135_s1 + $0x1440] sm:$0xff] }
  0x6a   :  { %7262 = vmatpush1.bf16.msra.mxu0 %v9981_v21  ;;  %7477 = vmatpush1.bf16.msra.mxu1 %v9983_v22  ;;  %v588_v21 = vld [vmem:[%s15135_s1 + $0x1108] sm:$0xff] }
  0x6b   :  { %7263 = vmatprep.subr.bf16.mxu0 %v9998_v23  ;;  %7478 = vmatprep.subr.bf16.mxu1 %v10000_v24  ;;  %v596_v22 = vld [vmem:[%s15135_s1 + $0x1148] sm:$0xff]  ;;  %v10109_v23 = vcombine.low %v571_v9, %v579_v10  ;;  %v10111_v24 = vcombine.low %v572_v12, %v580_v13  ;;  %v10222_v9 = vcombine.high %v683_v3, %v691_v4  ;;  %v707_v12 = vld [vmem:[%s15135_s1 + $0x14c0] sm:$0xff] }
  0x6c   :  { %v10128_v26 = vcombine.high %v588_v21, %v596_v22  ;;  %v700_v13 = vld [vmem:[%s15135_s1 + $0x1488] sm:$0xff] }
  0x6e   :  { %7264 = vmatpush1.bf16.msra.mxu0 %v9997_v29  ;;  %7479 = vmatpush1.bf16.msra.mxu1 %v9999_v30  ;;  %v604_v29 = vld [vmem:[%s15135_s1 + $0x1188] sm:$0xff] }
  0x6f   :  { %7265 = vmatprep.subr.bf16.mxu0 %v10014_v31  ;;  %7480 = vmatprep.subr.bf16.mxu1 %v10016_v32  ;;  %v612_v30 = vld [vmem:[%s15135_s1 + $0x11c8] sm:$0xff]  ;;  %v10125_v31 = vcombine.low %v587_v18, %v595_v19  ;;  %v10127_v32 = vcombine.low %v588_v21, %v596_v22  ;;  %v715_v19 = vld [vmem:[%s15135_s1 + $0x1500] sm:$0xff] }
  0x70   :  { %v10144_v34 = vcombine.high %v604_v29, %v612_v30  ;;  %v716_v21 = vld [vmem:[%s15135_s1 + $0x1508] sm:$0xff] }
  0x71   :  { %v724_v22 = vld [vmem:[%s15135_s1 + $0x1548] sm:$0xff] }
  0x72   :  { %7266 = vmatpush1.bf16.msra.mxu0 %v10013_v37  ;;  %7481 = vmatpush1.bf16.msra.mxu1 %v10015_v38  ;;  %v620_v37 = vld [vmem:[%s15135_s1 + $0x1208] sm:$0xff] }
  0x73   :  { %7267 = vmatprep.subr.bf16.mxu0 %v10030_v39  ;;  %7482 = vmatprep.subr.bf16.mxu1 %v10032_v40  ;;  %v628_v38 = vld [vmem:[%s15135_s1 + $0x1248] sm:$0xff]  ;;  %v10141_v39 = vcombine.low %v603_v27, %v611_v28  ;;  %v10143_v40 = vcombine.low %v604_v29, %v612_v30  ;;  %v731_v27 = vld [vmem:[%s15135_s1 + $0x1580] sm:$0xff] }
  0x74   :  { %v10160_v42 = vcombine.high %v620_v37, %v628_v38  ;;  %v739_v28 = vld [vmem:[%s15135_s1 + $0x15c0] sm:$0xff]  ;;  %v732_v29 = vld [vmem:[%s15135_s1 + $0x1588] sm:$0xff] }
  0x75   :  { %v740_v30 = vld [vmem:[%s15135_s1 + $0x15c8] sm:$0xff] }
  0x76   :  { %7268 = vmatpush1.bf16.msra.mxu0 %v10029_v45  ;;  %7483 = vmatpush1.bf16.msra.mxu1 %v10031_v46  ;;  %v636_v45 = vld [vmem:[%s15135_s1 + $0x1288] sm:$0xff] }
  0x77   :  { %7269 = vmatprep.subr.bf16.mxu0 %v10046_v47  ;;  %7484 = vmatprep.subr.bf16.mxu1 %v10048_v48  ;;  %v644_v46 = vld [vmem:[%s15135_s1 + $0x12c8] sm:$0xff]  ;;  %v10157_v47 = vcombine.low %v619_v35, %v627_v36  ;;  %v10159_v48 = vcombine.low %v620_v37, %v628_v38  ;;  %v747_v35 = vld [vmem:[%s15135_s1 + $0x1600] sm:$0xff] }
  0x78   :  { %v10176_v50 = vcombine.high %v636_v45, %v644_v46  ;;  %v755_v36 = vld [vmem:[%s15135_s1 + $0x1640] sm:$0xff]  ;;  %v748_v37 = vld [vmem:[%s15135_s1 + $0x1608] sm:$0xff] }
  0x79   :  { %v756_v38 = vld [vmem:[%s15135_s1 + $0x1648] sm:$0xff] }
  0x7a   :  { %7270 = vmatpush1.bf16.msra.mxu0 %v10045_v53  ;;  %7485 = vmatpush1.bf16.msra.mxu1 %v10047_v54  ;;  %v652_v53 = vld [vmem:[%s15135_s1 + $0x1308] sm:$0xff] }
  0x7b   :  { %7271 = vmatprep.subr.bf16.mxu0 %v10062_v55  ;;  %7486 = vmatprep.subr.bf16.mxu1 %v10064_v56  ;;  %v660_v54 = vld [vmem:[%s15135_s1 + $0x1348] sm:$0xff]  ;;  %v10173_v55 = vcombine.low %v635_v43, %v643_v44  ;;  %v10175_v56 = vcombine.low %v636_v45, %v644_v46  ;;  %v763_v43 = vld [vmem:[%s15135_s1 + $0x1680] sm:$0xff] }
  0x7c   :  { %v10192_v58 = vcombine.high %v652_v53, %v660_v54  ;;  %v771_v44 = vld [vmem:[%s15135_s1 + $0x16c0] sm:$0xff]  ;;  %v764_v45 = vld [vmem:[%s15135_s1 + $0x1688] sm:$0xff] }
  0x7d   :  { %v772_v46 = vld [vmem:[%s15135_s1 + $0x16c8] sm:$0xff] }
  0x7e   :  { %7272 = vmatpush1.bf16.msra.mxu0 %v10061_v61  ;;  %7487 = vmatpush1.bf16.msra.mxu1 %v10063_v62  ;;  %v668_v61 = vld [vmem:[%s15135_s1 + $0x1388] sm:$0xff] }
  0x7f   :  { %7273 = vmatprep.subr.bf16.mxu0 %v10078_v63  ;;  %7488 = vmatprep.subr.bf16.mxu1 %v10080_v0  ;;  %v676_v62 = vld [vmem:[%s15135_s1 + $0x13c8] sm:$0xff]  ;;  %v10189_v63 = vcombine.low %v651_v51, %v659_v52  ;;  %v10191_v0 = vcombine.low %v652_v53, %v660_v54  ;;  %v779_v51 = vld [vmem:[%s15135_s1 + $0x1700] sm:$0xff] }
  0x80   :  { %v10208_v2 = vcombine.high %v668_v61, %v676_v62  ;;  %v787_v52 = vld [vmem:[%s15135_s1 + $0x1740] sm:$0xff]  ;;  %v780_v53 = vld [vmem:[%s15135_s1 + $0x1708] sm:$0xff] }
  0x81   :  { %v788_v54 = vld [vmem:[%s15135_s1 + $0x1748] sm:$0xff] }
  0x82   :  { %7274 = vmatpush1.bf16.msra.mxu0 %v10077_v5  ;;  %7489 = vmatpush1.bf16.msra.mxu1 %v10079_v6  ;;  %v684_v5 = vld [vmem:[%s15135_s1 + $0x1408] sm:$0xff] }
  0x83   :  { %7286 = vmatprep.subr.bf16.mxu0 %v10094_v7  ;;  %7501 = vmatprep.subr.bf16.mxu1 %v10096_v8  ;;  %v692_v6 = vld [vmem:[%s15135_s1 + $0x1448] sm:$0xff]  ;;  %v10205_v7 = vcombine.low %v667_v59, %v675_v60  ;;  %v10207_v8 = vcombine.low %v668_v61, %v676_v62  ;;  %v795_v59 = vld [vmem:[%s15135_s1 + $0x1780] sm:$0xff] }
  0x84   :  { %v10224_v10 = vcombine.high %v684_v5, %v692_v6  ;;  %v803_v60 = vld [vmem:[%s15135_s1 + $0x17c0] sm:$0xff]  ;;  %v796_v61 = vld [vmem:[%s15135_s1 + $0x1788] sm:$0xff] }
  0x85   :  { %7276 = vmatmul.mubr.bf16.vlgmr.msra.gmra.mrb[0].mxu0 %v11059_v11  ;;  %7491 = vmatmul.mubr.bf16.vlgmr.msra.gmra.mrb[0].mxu1 %v11059_v11  ;;  %v699_v11 = vld [vmem:[%s15135_s1 + $0x1480] sm:$0xff]  ;;  %v804_v62 = vld [vmem:[%s15135_s1 + $0x17c8] sm:$0xff] }
  0x86   :  { %7287 = vmatpush1.bf16.msra.mxu0 %v10093_v14  ;;  %7502 = vmatpush1.bf16.msra.mxu1 %v10095_v15  ;;  %v708_v14 = vld [vmem:[%s15135_s1 + $0x14c8] sm:$0xff]  ;;  %v10221_v15 = vcombine.low %v683_v3, %v691_v4  ;;  %v811_v3 = vld [vmem:[%s15135_s1 + $0x1800] sm:$0xff] }
  0x87   :  { %7288 = vmatprep.subr.bf16.mxu0 %v10110_v16  ;;  %7503 = vmatprep.subr.bf16.mxu1 %v10112_v17  ;;  %v10223_v16 = vcombine.low %v684_v5, %v692_v6  ;;  %v10238_v17 = vcombine.high %v699_v11, %v707_v12  ;;  %v10240_v18 = vcombine.high %v700_v13, %v708_v14  ;;  %v819_v4 = vld [vmem:[%s15135_s1 + $0x1840] sm:$0xff]  ;;  %v812_v5 = vld [vmem:[%s15135_s1 + $0x1808] sm:$0xff] }
  0x88   :  { %7318 = vmatprep.mubr.bf16.mxu0 %v11060_v20  ;;  %7533 = vmatprep.mubr.bf16.mxu1 %v11060_v20  ;;  %v723_v20 = vld [vmem:[%s15135_s1 + $0x1540] sm:$0xff]  ;;  %v820_v6 = vld [vmem:[%s15135_s1 + $0x1848] sm:$0xff] }
  0x8a   :  { %7289 = vmatpush1.bf16.msra.mxu0 %v10109_v23  ;;  %7504 = vmatpush1.bf16.msra.mxu1 %v10111_v24  ;;  %v10237_v23 = vcombine.low %v699_v11, %v707_v12  ;;  %v10239_v24 = vcombine.low %v700_v13, %v708_v14  ;;  %v827_v11 = vld [vmem:[%s15135_s1 + $0x1880] sm:$0xff]  ;;  %v11062_v13 = vld [vmem:[%s15136_s0 + $0x10] ss:$40 sps:$4 sm:$0xff]   ;;  %v828_v14 = vld [vmem:[%s15135_s1 + $0x1888] sm:$0xff] }
  0x8b   :  { %7290 = vmatprep.subr.bf16.mxu0 %v10126_v25  ;;  %7505 = vmatprep.subr.bf16.mxu1 %v10128_v26  ;;  %v10254_v25 = vcombine.high %v715_v19, %v723_v20  ;;  %v10256_v26 = vcombine.high %v716_v21, %v724_v22  ;;  %v835_v12 = vld [vmem:[%s15135_s1 + $0x18c0] sm:$0xff] }
  0x8e   :  { %7291 = vmatpush1.bf16.msra.mxu0 %v10125_v31  ;;  %7506 = vmatpush1.bf16.msra.mxu1 %v10127_v32  ;;  %v10253_v31 = vcombine.low %v715_v19, %v723_v20  ;;  %v10255_v32 = vcombine.low %v716_v21, %v724_v22  ;;  %v843_v20 = vld [vmem:[%s15135_s1 + $0x1900] sm:$0xff] }
  0x8f   :  { %7292 = vmatprep.subr.bf16.mxu0 %v10142_v33  ;;  %7507 = vmatprep.subr.bf16.mxu1 %v10144_v34  ;;  %v10270_v33 = vcombine.high %v731_v27, %v739_v28  ;;  %v10272_v34 = vcombine.high %v732_v29, %v740_v30  ;;  %v851_v21 = vld [vmem:[%s15135_s1 + $0x1940] sm:$0xff] }
  0x90   :  { %v11063_v22 = vld [vmem:[%s15136_s0 + $0x1c] ss:$40 sps:$4 sm:$0xff]  }
  0x92   :  { %7293 = vmatpush1.bf16.msra.mxu0 %v10141_v39  ;;  %7508 = vmatpush1.bf16.msra.mxu1 %v10143_v40  ;;  %v10269_v39 = vcombine.low %v731_v27, %v739_v28  ;;  %v10271_v40 = vcombine.low %v732_v29, %v740_v30  ;;  %v10382_v27 = vcombine.high %v843_v20, %v851_v21  ;;  %v859_v29 = vld [vmem:[%s15135_s1 + $0x1980] sm:$0xff] }
  0x93   :  { %7294 = vmatprep.subr.bf16.mxu0 %v10158_v41  ;;  %7509 = vmatprep.subr.bf16.mxu1 %v10160_v42  ;;  %v10286_v41 = vcombine.high %v747_v35, %v755_v36  ;;  %v10288_v42 = vcombine.high %v748_v37, %v756_v38  ;;  %v867_v30 = vld [vmem:[%s15135_s1 + $0x19c0] sm:$0xff] }
  0x96   :  { %7295 = vmatpush1.bf16.msra.mxu0 %v10157_v47  ;;  %7510 = vmatpush1.bf16.msra.mxu1 %v10159_v48  ;;  %v10285_v47 = vcombine.low %v747_v35, %v755_v36  ;;  %v10287_v48 = vcombine.low %v748_v37, %v756_v38  ;;  %v10398_v35 = vcombine.high %v859_v29, %v867_v30  ;;  %v875_v37 = vld [vmem:[%s15135_s1 + $0x1a00] sm:$0xff] }
  0x97   :  { %7296 = vmatprep.subr.bf16.mxu0 %v10174_v49  ;;  %7511 = vmatprep.subr.bf16.mxu1 %v10176_v50  ;;  %v10302_v49 = vcombine.high %v763_v43, %v771_v44  ;;  %v10304_v50 = vcombine.high %v764_v45, %v772_v46  ;;  %v883_v38 = vld [vmem:[%s15135_s1 + $0x1a40] sm:$0xff] }
  0x9a   :  { %7297 = vmatpush1.bf16.msra.mxu0 %v10173_v55  ;;  %7512 = vmatpush1.bf16.msra.mxu1 %v10175_v56  ;;  %v10301_v55 = vcombine.low %v763_v43, %v771_v44  ;;  %v10303_v56 = vcombine.low %v764_v45, %v772_v46  ;;  %v10414_v43 = vcombine.high %v875_v37, %v883_v38  ;;  %v891_v45 = vld [vmem:[%s15135_s1 + $0x1a80] sm:$0xff] }
  0x9b   :  { %7298 = vmatprep.subr.bf16.mxu0 %v10190_v57  ;;  %7513 = vmatprep.subr.bf16.mxu1 %v10192_v58  ;;  %v10318_v57 = vcombine.high %v779_v51, %v787_v52  ;;  %v10320_v58 = vcombine.high %v780_v53, %v788_v54  ;;  %v899_v46 = vld [vmem:[%s15135_s1 + $0x1ac0] sm:$0xff] }
  0x9e   :  { %7299 = vmatpush1.bf16.msra.mxu0 %v10189_v63  ;;  %7514 = vmatpush1.bf16.msra.mxu1 %v10191_v0  ;;  %v10317_v63 = vcombine.low %v779_v51, %v787_v52  ;;  %v10319_v0 = vcombine.low %v780_v53, %v788_v54  ;;  %v10430_v51 = vcombine.high %v891_v45, %v899_v46  ;;  %v907_v53 = vld [vmem:[%s15135_s1 + $0x1b00] sm:$0xff] }
  0x9f   :  { %7300 = vmatprep.subr.bf16.mxu0 %v10206_v1  ;;  %7515 = vmatprep.subr.bf16.mxu1 %v10208_v2  ;;  %v10334_v1 = vcombine.high %v795_v59, %v803_v60  ;;  %v10336_v2 = vcombine.high %v796_v61, %v804_v62  ;;  %v915_v54 = vld [vmem:[%s15135_s1 + $0x1b40] sm:$0xff] }
  0xa2   :  { %7301 = vmatpush1.bf16.msra.mxu0 %v10205_v7  ;;  %7516 = vmatpush1.bf16.msra.mxu1 %v10207_v8  ;;  %v10333_v7 = vcombine.low %v795_v59, %v803_v60  ;;  %v10335_v8 = vcombine.low %v796_v61, %v804_v62  ;;  %v10446_v59 = vcombine.high %v907_v53, %v915_v54  ;;  %v923_v61 = vld [vmem:[%s15135_s1 + $0x1b80] sm:$0xff] }
  0xa3   :  { %7302 = vmatprep.subr.bf16.mxu0 %v10222_v9  ;;  %7517 = vmatprep.subr.bf16.mxu1 %v10224_v10  ;;  %v10350_v9 = vcombine.high %v811_v3, %v819_v4  ;;  %v10352_v10 = vcombine.high %v812_v5, %v820_v6  ;;  %v931_v62 = vld [vmem:[%s15135_s1 + $0x1bc0] sm:$0xff] }
  0xa6   :  { %7303 = vmatpush1.bf16.msra.mxu0 %v10221_v15  ;;  %7518 = vmatpush1.bf16.msra.mxu1 %v10223_v16  ;;  %v836_v15 = vld [vmem:[%s15135_s1 + $0x18c8] sm:$0xff]  ;;  %v10349_v16 = vcombine.low %v811_v3, %v819_v4  ;;  %v10462_v3 = vcombine.high %v923_v61, %v931_v62 }
  0xa7   :  { %7304 = vmatprep.subr.bf16.mxu0 %v10238_v17  ;;  %7519 = vmatprep.subr.bf16.mxu1 %v10240_v18  ;;  %v10351_v17 = vcombine.low %v812_v5, %v820_v6  ;;  %v10366_v18 = vcombine.high %v827_v11, %v835_v12  ;;  %v10368_v19 = vcombine.high %v828_v14, %v836_v15  ;;  %v939_v5 = vld [vmem:[%s15135_s1 + $0x1c00] sm:$0xff] }
  0xa8   :  { %v947_v6 = vld [vmem:[%s15135_s1 + $0x1c40] sm:$0xff] }
  0xaa   :  { %7305 = vmatpush1.bf16.msra.mxu0 %v10237_v23  ;;  %7520 = vmatpush1.bf16.msra.mxu1 %v10239_v24  ;;  %v844_v23 = vld [vmem:[%s15135_s1 + $0x1908] sm:$0xff] }
  0xab   :  { %7306 = vmatprep.subr.bf16.mxu0 %v10254_v25  ;;  %7521 = vmatprep.subr.bf16.mxu1 %v10256_v26  ;;  %v852_v24 = vld [vmem:[%s15135_s1 + $0x1948] sm:$0xff]  ;;  %v10365_v25 = vcombine.low %v827_v11, %v835_v12  ;;  %v10367_v26 = vcombine.low %v828_v14, %v836_v15  ;;  %v10478_v11 = vcombine.high %v939_v5, %v947_v6  ;;  %v963_v14 = vld [vmem:[%s15135_s1 + $0x1cc0] sm:$0xff] }
  0xac   :  { %v10384_v28 = vcombine.high %v844_v23, %v852_v24  ;;  %v956_v15 = vld [vmem:[%s15135_s1 + $0x1c88] sm:$0xff] }
  0xae   :  { %7307 = vmatpush1.bf16.msra.mxu0 %v10253_v31  ;;  %7522 = vmatpush1.bf16.msra.mxu1 %v10255_v32  ;;  %v860_v31 = vld [vmem:[%s15135_s1 + $0x1988] sm:$0xff] }
  0xaf   :  { %7308 = vmatprep.subr.bf16.mxu0 %v10270_v33  ;;  %7523 = vmatprep.subr.bf16.mxu1 %v10272_v34  ;;  %v868_v32 = vld [vmem:[%s15135_s1 + $0x19c8] sm:$0xff]  ;;  %v10381_v33 = vcombine.low %v843_v20, %v851_v21  ;;  %v10383_v34 = vcombine.low %v844_v23, %v852_v24  ;;  %v971_v21 = vld [vmem:[%s15135_s1 + $0x1d00] sm:$0xff] }
  0xb0   :  { %v10400_v36 = vcombine.high %v860_v31, %v868_v32  ;;  %v972_v23 = vld [vmem:[%s15135_s1 + $0x1d08] sm:$0xff] }
  0xb1   :  { %v980_v24 = vld [vmem:[%s15135_s1 + $0x1d48] sm:$0xff] }
  0xb2   :  { %7309 = vmatpush1.bf16.msra.mxu0 %v10269_v39  ;;  %7524 = vmatpush1.bf16.msra.mxu1 %v10271_v40  ;;  %v876_v39 = vld [vmem:[%s15135_s1 + $0x1a08] sm:$0xff] }
  0xb3   :  { %7310 = vmatprep.subr.bf16.mxu0 %v10286_v41  ;;  %7525 = vmatprep.subr.bf16.mxu1 %v10288_v42  ;;  %v884_v40 = vld [vmem:[%s15135_s1 + $0x1a48] sm:$0xff]  ;;  %v10397_v41 = vcombine.low %v859_v29, %v867_v30  ;;  %v10399_v42 = vcombine.low %v860_v31, %v868_v32  ;;  %v987_v29 = vld [vmem:[%s15135_s1 + $0x1d80] sm:$0xff] }
  0xb4   :  { %v10416_v44 = vcombine.high %v876_v39, %v884_v40  ;;  %v995_v30 = vld [vmem:[%s15135_s1 + $0x1dc0] sm:$0xff]  ;;  %v988_v31 = vld [vmem:[%s15135_s1 + $0x1d88] sm:$0xff] }
  0xb5   :  { %v996_v32 = vld [vmem:[%s15135_s1 + $0x1dc8] sm:$0xff] }
  0xb6   :  { %7311 = vmatpush1.bf16.msra.mxu0 %v10285_v47  ;;  %7526 = vmatpush1.bf16.msra.mxu1 %v10287_v48  ;;  %v892_v47 = vld [vmem:[%s15135_s1 + $0x1a88] sm:$0xff] }
  0xb7   :  { %7312 = vmatprep.subr.bf16.mxu0 %v10302_v49  ;;  %7527 = vmatprep.subr.bf16.mxu1 %v10304_v50  ;;  %v900_v48 = vld [vmem:[%s15135_s1 + $0x1ac8] sm:$0xff]  ;;  %v10413_v49 = vcombine.low %v875_v37, %v883_v38  ;;  %v10415_v50 = vcombine.low %v876_v39, %v884_v40  ;;  %v1003_v37 = vld [vmem:[%s15135_s1 + $0x1e00] sm:$0xff] }
  0xb8   :  { %v10432_v52 = vcombine.high %v892_v47, %v900_v48  ;;  %v1011_v38 = vld [vmem:[%s15135_s1 + $0x1e40] sm:$0xff]  ;;  %v1004_v39 = vld [vmem:[%s15135_s1 + $0x1e08] sm:$0xff] }
  0xb9   :  { %v1012_v40 = vld [vmem:[%s15135_s1 + $0x1e48] sm:$0xff] }
  0xba   :  { %7313 = vmatpush1.bf16.msra.mxu0 %v10301_v55  ;;  %7528 = vmatpush1.bf16.msra.mxu1 %v10303_v56  ;;  %v908_v55 = vld [vmem:[%s15135_s1 + $0x1b08] sm:$0xff] }
  0xbb   :  { %7314 = vmatprep.subr.bf16.mxu0 %v10318_v57  ;;  %7529 = vmatprep.subr.bf16.mxu1 %v10320_v58  ;;  %v916_v56 = vld [vmem:[%s15135_s1 + $0x1b48] sm:$0xff]  ;;  %v10429_v57 = vcombine.low %v891_v45, %v899_v46  ;;  %v10431_v58 = vcombine.low %v892_v47, %v900_v48  ;;  %v1019_v45 = vld [vmem:[%s15135_s1 + $0x1e80] sm:$0xff] }
  0xbc   :  { %v10448_v60 = vcombine.high %v908_v55, %v916_v56  ;;  %v1027_v46 = vld [vmem:[%s15135_s1 + $0x1ec0] sm:$0xff]  ;;  %v1020_v47 = vld [vmem:[%s15135_s1 + $0x1e88] sm:$0xff] }
  0xbd   :  { %v1028_v48 = vld [vmem:[%s15135_s1 + $0x1ec8] sm:$0xff] }
  0xbe   :  { %7315 = vmatpush1.bf16.msra.mxu0 %v10317_v63  ;;  %7530 = vmatpush1.bf16.msra.mxu1 %v10319_v0  ;;  %v924_v63 = vld [vmem:[%s15135_s1 + $0x1b88] sm:$0xff] }
  0xbf   :  { %7316 = vmatprep.subr.bf16.mxu0 %v10334_v1  ;;  %7531 = vmatprep.subr.bf16.mxu1 %v10336_v2  ;;  %v932_v0 = vld [vmem:[%s15135_s1 + $0x1bc8] sm:$0xff]  ;;  %v10445_v1 = vcombine.low %v907_v53, %v915_v54  ;;  %v10447_v2 = vcombine.low %v908_v55, %v916_v56  ;;  %v1035_v53 = vld [vmem:[%s15135_s1 + $0x1f00] sm:$0xff] }
  0xc0   :  { %v10464_v4 = vcombine.high %v924_v63, %v932_v0  ;;  %v1043_v54 = vld [vmem:[%s15135_s1 + $0x1f40] sm:$0xff]  ;;  %v1036_v55 = vld [vmem:[%s15135_s1 + $0x1f08] sm:$0xff] }
  0xc1   :  { %v1044_v56 = vld [vmem:[%s15135_s1 + $0x1f48] sm:$0xff] }
  0xc2   :  { %7317 = vmatpush1.bf16.msra.mxu0 %v10333_v7  ;;  %7532 = vmatpush1.bf16.msra.mxu1 %v10335_v8  ;;  %v940_v7 = vld [vmem:[%s15135_s1 + $0x1c08] sm:$0xff] }
  0xc3   :  { %7329 = vmatprep.subr.bf16.mxu0 %v10350_v9  ;;  %7544 = vmatprep.subr.bf16.mxu1 %v10352_v10  ;;  %v948_v8 = vld [vmem:[%s15135_s1 + $0x1c48] sm:$0xff]  ;;  %v10461_v9 = vcombine.low %v923_v61, %v931_v62  ;;  %v10463_v10 = vcombine.low %v924_v63, %v932_v0  ;;  %v1051_v61 = vld [vmem:[%s15135_s1 + $0x1f80] sm:$0xff] }
  0xc4   :  { %v10480_v12 = vcombine.high %v940_v7, %v948_v8  ;;  %v1059_v62 = vld [vmem:[%s15135_s1 + $0x1fc0] sm:$0xff]  ;;  %v1052_v63 = vld [vmem:[%s15135_s1 + $0x1f88] sm:$0xff] }
  0xc5   :  { %7319 = vmatmul.mubr.bf16.vlgmr.msra.gmra.mrb[0].mxu0 %v11062_v13  ;;  %7534 = vmatmul.mubr.bf16.vlgmr.msra.gmra.mrb[0].mxu1 %v11062_v13  ;;  %v955_v13 = vld [vmem:[%s15135_s1 + $0x1c80] sm:$0xff]  ;;  %v1060_v0 = vld [vmem:[%s15135_s1 + $0x1fc8] sm:$0xff] }
  0xc6   :  { %7330 = vmatpush1.bf16.msra.mxu0 %v10349_v16  ;;  %7545 = vmatpush1.bf16.msra.mxu1 %v10351_v17  ;;  %v964_v16 = vld [vmem:[%s15135_s1 + $0x1cc8] sm:$0xff]  ;;  %v10477_v17 = vcombine.low %v939_v5, %v947_v6  ;;  %v1067_v5 = vld [vmem:[%s15135_s1 + $0x2000] sm:$0xff] }
  0xc7   :  { %7331 = vmatprep.subr.bf16.mxu0 %v10366_v18  ;;  %7546 = vmatprep.subr.bf16.mxu1 %v10368_v19  ;;  %v10479_v18 = vcombine.low %v940_v7, %v948_v8  ;;  %v10494_v19 = vcombine.high %v955_v13, %v963_v14  ;;  %v10496_v20 = vcombine.high %v956_v15, %v964_v16  ;;  %v1075_v6 = vld [vmem:[%s15135_s1 + $0x2040] sm:$0xff]  ;;  %v1068_v7 = vld [vmem:[%s15135_s1 + $0x2008] sm:$0xff] }
  0xc8   :  { %7361 = vmatprep.mubr.bf16.mxu0 %v11063_v22  ;;  %7576 = vmatprep.mubr.bf16.mxu1 %v11063_v22  ;;  %v979_v22 = vld [vmem:[%s15135_s1 + $0x1d40] sm:$0xff]  ;;  %v1076_v8 = vld [vmem:[%s15135_s1 + $0x2048] sm:$0xff] }
  0xca   :  { %7332 = vmatpush1.bf16.msra.mxu0 %v10365_v25  ;;  %7547 = vmatpush1.bf16.msra.mxu1 %v10367_v26  ;;  %v10493_v25 = vcombine.low %v955_v13, %v963_v14  ;;  %v10495_v26 = vcombine.low %v956_v15, %v964_v16  ;;  %v1083_v13 = vld [vmem:[%s15135_s1 + $0x2080] sm:$0xff]  ;;  %v1084_v16 = vld [vmem:[%s15135_s1 + $0x2088] sm:$0xff] }
  0xcb   :  { %7333 = vmatprep.subr.bf16.mxu0 %v10382_v27  ;;  %7548 = vmatprep.subr.bf16.mxu1 %v10384_v28  ;;  %v10510_v27 = vcombine.high %v971_v21, %v979_v22  ;;  %v10512_v28 = vcombine.high %v972_v23, %v980_v24  ;;  %v1091_v14 = vld [vmem:[%s15135_s1 + $0x20c0] sm:$0xff] }
  0xcc   :  { %v11065_v15 = vld [vmem:[%s15136_s0 + $0x18] ss:$40 sps:$4 sm:$0xff]  }
  0xce   :  { %7334 = vmatpush1.bf16.msra.mxu0 %v10381_v33  ;;  %7549 = vmatpush1.bf16.msra.mxu1 %v10383_v34  ;;  %v10509_v33 = vcombine.low %v971_v21, %v979_v22  ;;  %v10511_v34 = vcombine.low %v972_v23, %v980_v24  ;;  %v1099_v22 = vld [vmem:[%s15135_s1 + $0x2100] sm:$0xff] }
  0xcf   :  { %7335 = vmatprep.subr.bf16.mxu0 %v10398_v35  ;;  %7550 = vmatprep.subr.bf16.mxu1 %v10400_v36  ;;  %v10526_v35 = vcombine.high %v987_v29, %v995_v30  ;;  %v10528_v36 = vcombine.high %v988_v31, %v996_v32  ;;  %v1107_v23 = vld [vmem:[%s15135_s1 + $0x2140] sm:$0xff] }
  0xd0   :  { %v11066_v24 = vld [vmem:[%s15136_s0 + $0x24] ss:$40 sps:$4 sm:$0xff]  }
  0xd2   :  { %7336 = vmatpush1.bf16.msra.mxu0 %v10397_v41  ;;  %7551 = vmatpush1.bf16.msra.mxu1 %v10399_v42  ;;  %v10525_v41 = vcombine.low %v987_v29, %v995_v30  ;;  %v10527_v42 = vcombine.low %v988_v31, %v996_v32  ;;  %v10638_v29 = vcombine.high %v1099_v22, %v1107_v23  ;;  %v1115_v31 = vld [vmem:[%s15135_s1 + $0x2180] sm:$0xff] }
  0xd3   :  { %7337 = vmatprep.subr.bf16.mxu0 %v10414_v43  ;;  %7552 = vmatprep.subr.bf16.mxu1 %v10416_v44  ;;  %v10542_v43 = vcombine.high %v1003_v37, %v1011_v38  ;;  %v10544_v44 = vcombine.high %v1004_v39, %v1012_v40  ;;  %v1123_v32 = vld [vmem:[%s15135_s1 + $0x21c0] sm:$0xff] }
  0xd6   :  { %7338 = vmatpush1.bf16.msra.mxu0 %v10413_v49  ;;  %7553 = vmatpush1.bf16.msra.mxu1 %v10415_v50  ;;  %v10541_v49 = vcombine.low %v1003_v37, %v1011_v38  ;;  %v10543_v50 = vcombine.low %v1004_v39, %v1012_v40  ;;  %v10654_v37 = vcombine.high %v1115_v31, %v1123_v32  ;;  %v1131_v39 = vld [vmem:[%s15135_s1 + $0x2200] sm:$0xff] }
  0xd7   :  { %7339 = vmatprep.subr.bf16.mxu0 %v10430_v51  ;;  %7554 = vmatprep.subr.bf16.mxu1 %v10432_v52  ;;  %v10558_v51 = vcombine.high %v1019_v45, %v1027_v46  ;;  %v10560_v52 = vcombine.high %v1020_v47, %v1028_v48  ;;  %v1139_v40 = vld [vmem:[%s15135_s1 + $0x2240] sm:$0xff] }
  0xda   :  { %7340 = vmatpush1.bf16.msra.mxu0 %v10429_v57  ;;  %7555 = vmatpush1.bf16.msra.mxu1 %v10431_v58  ;;  %v10557_v57 = vcombine.low %v1019_v45, %v1027_v46  ;;  %v10559_v58 = vcombine.low %v1020_v47, %v1028_v48  ;;  %v10670_v45 = vcombine.high %v1131_v39, %v1139_v40  ;;  %v1147_v47 = vld [vmem:[%s15135_s1 + $0x2280] sm:$0xff] }
  0xdb   :  { %7341 = vmatprep.subr.bf16.mxu0 %v10446_v59  ;;  %7556 = vmatprep.subr.bf16.mxu1 %v10448_v60  ;;  %v10574_v59 = vcombine.high %v1035_v53, %v1043_v54  ;;  %v10576_v60 = vcombine.high %v1036_v55, %v1044_v56  ;;  %v1155_v48 = vld [vmem:[%s15135_s1 + $0x22c0] sm:$0xff] }
  0xde   :  { %7342 = vmatpush1.bf16.msra.mxu0 %v10445_v1  ;;  %7557 = vmatpush1.bf16.msra.mxu1 %v10447_v2  ;;  %v10573_v1 = vcombine.low %v1035_v53, %v1043_v54  ;;  %v10575_v2 = vcombine.low %v1036_v55, %v1044_v56  ;;  %v10686_v53 = vcombine.high %v1147_v47, %v1155_v48  ;;  %v1163_v55 = vld [vmem:[%s15135_s1 + $0x2300] sm:$0xff] }
  0xdf   :  { %7343 = vmatprep.subr.bf16.mxu0 %v10462_v3  ;;  %7558 = vmatprep.subr.bf16.mxu1 %v10464_v4  ;;  %v10590_v3 = vcombine.high %v1051_v61, %v1059_v62  ;;  %v10592_v4 = vcombine.high %v1052_v63, %v1060_v0  ;;  %v1171_v56 = vld [vmem:[%s15135_s1 + $0x2340] sm:$0xff] }
  0xe2   :  { %7344 = vmatpush1.bf16.msra.mxu0 %v10461_v9  ;;  %7559 = vmatpush1.bf16.msra.mxu1 %v10463_v10  ;;  %v10589_v9 = vcombine.low %v1051_v61, %v1059_v62  ;;  %v10591_v10 = vcombine.low %v1052_v63, %v1060_v0  ;;  %v10702_v61 = vcombine.high %v1163_v55, %v1171_v56  ;;  %v1179_v63 = vld [vmem:[%s15135_s1 + $0x2380] sm:$0xff] }
  0xe3   :  { %7345 = vmatprep.subr.bf16.mxu0 %v10478_v11  ;;  %7560 = vmatprep.subr.bf16.mxu1 %v10480_v12  ;;  %v10606_v11 = vcombine.high %v1067_v5, %v1075_v6  ;;  %v10608_v12 = vcombine.high %v1068_v7, %v1076_v8  ;;  %v1187_v0 = vld [vmem:[%s15135_s1 + $0x23c0] sm:$0xff] }
  0xe6   :  { %7346 = vmatpush1.bf16.msra.mxu0 %v10477_v17  ;;  %7561 = vmatpush1.bf16.msra.mxu1 %v10479_v18  ;;  %v1092_v17 = vld [vmem:[%s15135_s1 + $0x20c8] sm:$0xff]  ;;  %v10605_v18 = vcombine.low %v1067_v5, %v1075_v6  ;;  %v10718_v5 = vcombine.high %v1179_v63, %v1187_v0 }
  0xe7   :  { %7347 = vmatprep.subr.bf16.mxu0 %v10494_v19  ;;  %7562 = vmatprep.subr.bf16.mxu1 %v10496_v20  ;;  %v10607_v19 = vcombine.low %v1068_v7, %v1076_v8  ;;  %v10622_v20 = vcombine.high %v1083_v13, %v1091_v14  ;;  %v10624_v21 = vcombine.high %v1084_v16, %v1092_v17  ;;  %v1195_v7 = vld [vmem:[%s15135_s1 + $0x2400] sm:$0xff] }
  0xe8   :  { %v1203_v8 = vld [vmem:[%s15135_s1 + $0x2440] sm:$0xff] }
  0xea   :  { %7348 = vmatpush1.bf16.msra.mxu0 %v10493_v25  ;;  %7563 = vmatpush1.bf16.msra.mxu1 %v10495_v26  ;;  %v1100_v25 = vld [vmem:[%s15135_s1 + $0x2108] sm:$0xff] }
  0xeb   :  { %7349 = vmatprep.subr.bf16.mxu0 %v10510_v27  ;;  %7564 = vmatprep.subr.bf16.mxu1 %v10512_v28  ;;  %v1108_v26 = vld [vmem:[%s15135_s1 + $0x2148] sm:$0xff]  ;;  %v10621_v27 = vcombine.low %v1083_v13, %v1091_v14  ;;  %v10623_v28 = vcombine.low %v1084_v16, %v1092_v17  ;;  %v10734_v13 = vcombine.high %v1195_v7, %v1203_v8  ;;  %v1219_v16 = vld [vmem:[%s15135_s1 + $0x24c0] sm:$0xff] }
  0xec   :  { %v10640_v30 = vcombine.high %v1100_v25, %v1108_v26  ;;  %v1212_v17 = vld [vmem:[%s15135_s1 + $0x2488] sm:$0xff] }
  0xee   :  { %7350 = vmatpush1.bf16.msra.mxu0 %v10509_v33  ;;  %7565 = vmatpush1.bf16.msra.mxu1 %v10511_v34  ;;  %v1116_v33 = vld [vmem:[%s15135_s1 + $0x2188] sm:$0xff] }
  0xef   :  { %7351 = vmatprep.subr.bf16.mxu0 %v10526_v35  ;;  %7566 = vmatprep.subr.bf16.mxu1 %v10528_v36  ;;  %v1124_v34 = vld [vmem:[%s15135_s1 + $0x21c8] sm:$0xff]  ;;  %v10637_v35 = vcombine.low %v1099_v22, %v1107_v23  ;;  %v10639_v36 = vcombine.low %v1100_v25, %v1108_v26  ;;  %v45_v23 = vld [vmem:[%s15135_s1 + $0x10] sm:$0xff]  ;;  %v46_v25 = vld [vmem:[%s15135_s1 + $0x18] sm:$0xff] }
  0xf0   :  { %v10656_v38 = vcombine.high %v1116_v33, %v1124_v34  ;;  %v54_v26 = vld [vmem:[%s15135_s1 + $0x58] sm:$0xff] }
  0xf2   :  { %7352 = vmatpush1.bf16.msra.mxu0 %v10525_v41  ;;  %7567 = vmatpush1.bf16.msra.mxu1 %v10527_v42  ;;  %v1132_v41 = vld [vmem:[%s15135_s1 + $0x2208] sm:$0xff] }
  0xf3   :  { %7353 = vmatprep.subr.bf16.mxu0 %v10542_v43  ;;  %7568 = vmatprep.subr.bf16.mxu1 %v10544_v44  ;;  %v1140_v42 = vld [vmem:[%s15135_s1 + $0x2248] sm:$0xff]  ;;  %v10653_v43 = vcombine.low %v1115_v31, %v1123_v32  ;;  %v10655_v44 = vcombine.low %v1116_v33, %v1124_v34  ;;  %v61_v31 = vld [vmem:[%s15135_s1 + $0x90] sm:$0xff]  ;;  %v62_v34 = vld [vmem:[%s15135_s1 + $0x98] sm:$0xff] }
  0xf4   :  { %v10672_v46 = vcombine.high %v1132_v41, %v1140_v42  ;;  %v69_v32 = vld [vmem:[%s15135_s1 + $0xd0] sm:$0xff]  ;;  %v11068_v33 = vld [vmem:[%s15136_s0 + $0x20] ss:$40 sps:$4 sm:$0xff]  }
  0xf6   :  { %7354 = vmatpush1.bf16.msra.mxu0 %v10541_v49  ;;  %7569 = vmatpush1.bf16.msra.mxu1 %v10543_v50  ;;  %v1148_v49 = vld [vmem:[%s15135_s1 + $0x2288] sm:$0xff] }
  0xf7   :  { %7355 = vmatprep.subr.bf16.mxu0 %v10558_v51  ;;  %7570 = vmatprep.subr.bf16.mxu1 %v10560_v52  ;;  %v1156_v50 = vld [vmem:[%s15135_s1 + $0x22c8] sm:$0xff]  ;;  %v10669_v51 = vcombine.low %v1131_v39, %v1139_v40  ;;  %v10671_v52 = vcombine.low %v1132_v41, %v1140_v42  ;;  %v77_v40 = vld [vmem:[%s15135_s1 + $0x110] sm:$0xff]  ;;  %v78_v42 = vld [vmem:[%s15135_s1 + $0x118] sm:$0xff] }
  0xf8   :  { %v10688_v54 = vcombine.high %v1148_v49, %v1156_v50  ;;  %v85_v41 = vld [vmem:[%s15135_s1 + $0x150] sm:$0xff] }
  0xfa   :  { %7356 = vmatpush1.bf16.msra.mxu0 %v10557_v57  ;;  %7571 = vmatpush1.bf16.msra.mxu1 %v10559_v58  ;;  %v1164_v57 = vld [vmem:[%s15135_s1 + $0x2308] sm:$0xff] }
  0xfb   :  { %7357 = vmatprep.subr.bf16.mxu0 %v10574_v59  ;;  %7572 = vmatprep.subr.bf16.mxu1 %v10576_v60  ;;  %v1172_v58 = vld [vmem:[%s15135_s1 + $0x2348] sm:$0xff]  ;;  %v10685_v59 = vcombine.low %v1147_v47, %v1155_v48  ;;  %v10687_v60 = vcombine.low %v1148_v49, %v1156_v50  ;;  %v93_v48 = vld [vmem:[%s15135_s1 + $0x190] sm:$0xff] }
  0xfc   :  { %v10704_v62 = vcombine.high %v1164_v57, %v1172_v58  ;;  %v101_v49 = vld [vmem:[%s15135_s1 + $0x1d0] sm:$0xff]  ;;  %v11117_v50 = vld [vmem:[%s15136_s0 + $0x4] ss:$40 sps:$4 sm:$0xff]  }
  0xfe   :  { %7358 = vmatpush1.bf16.msra.mxu0 %v10573_v1  ;;  %7573 = vmatpush1.bf16.msra.mxu1 %v10575_v2  ;;  %v1180_v1 = vld [vmem:[%s15135_s1 + $0x2388] sm:$0xff] }
  0xff   :  { %7359 = vmatprep.subr.bf16.mxu0 %v10590_v3  ;;  %7574 = vmatprep.subr.bf16.mxu1 %v10592_v4  ;;  %v1188_v2 = vld [vmem:[%s15135_s1 + $0x23c8] sm:$0xff]  ;;  %v10701_v3 = vcombine.low %v1163_v55, %v1171_v56  ;;  %v10703_v4 = vcombine.low %v1164_v57, %v1172_v58  ;;  %v9634_v55 = vcombine.high %v93_v48, %v101_v49  ;;  %v109_v57 = vld [vmem:[%s15135_s1 + $0x210] sm:$0xff] }
 0x100   :  { %v10720_v6 = vcombine.high %v1180_v1, %v1188_v2  ;;  %v117_v58 = vld [vmem:[%s15135_s1 + $0x250] sm:$0xff] }
 0x102   :  { %7360 = vmatpush1.bf16.msra.mxu0 %v10589_v9  ;;  %7575 = vmatpush1.bf16.msra.mxu1 %v10591_v10  ;;  %v1196_v9 = vld [vmem:[%s15135_s1 + $0x2408] sm:$0xff] }
 0x103   :  { %7372 = vmatprep.subr.bf16.mxu0 %v10606_v11  ;;  %7587 = vmatprep.subr.bf16.mxu1 %v10608_v12  ;;  %v1204_v10 = vld [vmem:[%s15135_s1 + $0x2448] sm:$0xff]  ;;  %v10717_v11 = vcombine.low %v1179_v63, %v1187_v0  ;;  %v10719_v12 = vcombine.low %v1180_v1, %v1188_v2  ;;  %v9650_v63 = vcombine.high %v109_v57, %v117_v58  ;;  %v125_v1 = vld [vmem:[%s15135_s1 + $0x290] sm:$0xff] }
 0x104   :  { %v10736_v14 = vcombine.high %v1196_v9, %v1204_v10  ;;  %v133_v2 = vld [vmem:[%s15135_s1 + $0x2d0] sm:$0xff] }
 0x105   :  { %7362 = vmatmul.mubr.bf16.vlgmr.msra.gmra.mrb[0].mxu0 %v11065_v15  ;;  %7577 = vmatmul.mubr.bf16.vlgmr.msra.gmra.mrb[0].mxu1 %v11065_v15  ;;  %v1211_v15 = vld [vmem:[%s15135_s1 + $0x2480] sm:$0xff] }
 0x106   :  { %7373 = vmatpush1.bf16.msra.mxu0 %v10605_v18  ;;  %7588 = vmatpush1.bf16.msra.mxu1 %v10607_v19  ;;  %v1220_v18 = vld [vmem:[%s15135_s1 + $0x24c8] sm:$0xff]  ;;  %v10733_v19 = vcombine.low %v1195_v7, %v1203_v8  ;;  %v9666_v7 = vcombine.high %v125_v1, %v133_v2 }
 0x107   :  { %7374 = vmatprep.subr.bf16.mxu0 %v10622_v20  ;;  %7589 = vmatprep.subr.bf16.mxu1 %v10624_v21  ;;  %v10735_v20 = vcombine.low %v1196_v9, %v1204_v10  ;;  %v10750_v21 = vcombine.high %v1211_v15, %v1219_v16  ;;  %v10752_v22 = vcombine.high %v1212_v17, %v1220_v18  ;;  %v141_v9 = vld [vmem:[%s15135_s1 + $0x310] sm:$0xff] }
 0x108   :  { %10765 = vmatprep.mubr.msk.bf16.mxu0 %vm7196_vm0, %v11066_v24  ;;  %10766 = vmatprep.mubr.msk.bf16.mxu1 %vm7196_vm0, %v11066_v24  ;;  %v53_v24 = vld [vmem:[%s15135_s1 + $0x50] sm:$0xff] }
 0x109   :  { %v149_v10 = vld [vmem:[%s15135_s1 + $0x350] sm:$0xff] }
 0x10a   :  { %7375 = vmatpush1.bf16.msra.mxu0 %v10621_v27  ;;  %7590 = vmatpush1.bf16.msra.mxu1 %v10623_v28  ;;  %v10749_v27 = vcombine.low %v1211_v15, %v1219_v16  ;;  %v10751_v28 = vcombine.low %v1212_v17, %v1220_v18  ;;  %v9682_v15 = vcombine.high %v141_v9, %v149_v10  ;;  %v157_v17 = vld [vmem:[%s15135_s1 + $0x390] sm:$0xff] }
 0x10b   :  { %7376 = vmatprep.subr.bf16.mxu0 %v10638_v29  ;;  %7591 = vmatprep.subr.bf16.mxu1 %v10640_v30  ;;  %v9586_v29 = vcombine.high %v45_v23, %v53_v24  ;;  %v9588_v30 = vcombine.high %v46_v25, %v54_v26  ;;  %v165_v18 = vld [vmem:[%s15135_s1 + $0x3d0] sm:$0xff] }
 0x10e   :  { %7377 = vmatpush1.bf16.msra.mxu0 %v10637_v35  ;;  %7592 = vmatpush1.bf16.msra.mxu1 %v10639_v36  ;;  %v70_v35 = vld [vmem:[%s15135_s1 + $0xd8] sm:$0xff]  ;;  %v9585_v36 = vcombine.low %v45_v23, %v53_v24  ;;  %v9698_v23 = vcombine.high %v157_v17, %v165_v18 }
 0x10f   :  { %7378 = vmatprep.subr.bf16.mxu0 %v10654_v37  ;;  %7593 = vmatprep.subr.bf16.mxu1 %v10656_v38  ;;  %v9587_v37 = vcombine.low %v46_v25, %v54_v26  ;;  %v9602_v38 = vcombine.high %v61_v31, %v69_v32  ;;  %v9604_v39 = vcombine.high %v62_v34, %v70_v35  ;;  %v173_v25 = vld [vmem:[%s15135_s1 + $0x410] sm:$0xff] }
 0x110   :  { %v181_v26 = vld [vmem:[%s15135_s1 + $0x450] sm:$0xff] }
 0x112   :  { %7379 = vmatpush1.bf16.msra.mxu0 %v10653_v43  ;;  %7594 = vmatpush1.bf16.msra.mxu1 %v10655_v44  ;;  %v86_v43 = vld [vmem:[%s15135_s1 + $0x158] sm:$0xff]  ;;  %v9601_v44 = vcombine.low %v61_v31, %v69_v32  ;;  %v9714_v31 = vcombine.high %v173_v25, %v181_v26 }
 0x113   :  { %7380 = vmatprep.subr.bf16.mxu0 %v10670_v45  ;;  %7595 = vmatprep.subr.bf16.mxu1 %v10672_v46  ;;  %v9603_v45 = vcombine.low %v62_v34, %v70_v35  ;;  %v9618_v46 = vcombine.high %v77_v40, %v85_v41  ;;  %v9620_v47 = vcombine.high %v78_v42, %v86_v43  ;;  %v197_v34 = vld [vmem:[%s15135_s1 + $0x4d0] sm:$0xff]  ;;  %v190_v35 = vld [vmem:[%s15135_s1 + $0x498] sm:$0xff] }
 0x116   :  { %7381 = vmatpush1.bf16.msra.mxu0 %v10669_v51  ;;  %7596 = vmatpush1.bf16.msra.mxu1 %v10671_v52  ;;  %v94_v51 = vld [vmem:[%s15135_s1 + $0x198] sm:$0xff] }
 0x117   :  { %7382 = vmatprep.subr.bf16.mxu0 %v10686_v53  ;;  %7597 = vmatprep.subr.bf16.mxu1 %v10688_v54  ;;  %v102_v52 = vld [vmem:[%s15135_s1 + $0x1d8] sm:$0xff]  ;;  %v9617_v53 = vcombine.low %v77_v40, %v85_v41  ;;  %v9619_v54 = vcombine.low %v78_v42, %v86_v43  ;;  %v205_v41 = vld [vmem:[%s15135_s1 + $0x510] sm:$0xff] }
 0x118   :  { %v9636_v56 = vcombine.high %v94_v51, %v102_v52  ;;  %v213_v42 = vld [vmem:[%s15135_s1 + $0x550] sm:$0xff]  ;;  %v206_v43 = vld [vmem:[%s15135_s1 + $0x518] sm:$0xff] }
 0x11a   :  { %7383 = vmatpush1.bf16.msra.mxu0 %v10685_v59  ;;  %7598 = vmatpush1.bf16.msra.mxu1 %v10687_v60  ;;  %v110_v59 = vld [vmem:[%s15135_s1 + $0x218] sm:$0xff] }
 0x11b   :  { %7384 = vmatprep.subr.bf16.mxu0 %v10702_v61  ;;  %7599 = vmatprep.subr.bf16.mxu1 %v10704_v62  ;;  %v118_v60 = vld [vmem:[%s15135_s1 + $0x258] sm:$0xff]  ;;  %v9633_v61 = vcombine.low %v93_v48, %v101_v49  ;;  %v9635_v62 = vcombine.low %v94_v51, %v102_v52  ;;  %v221_v49 = vld [vmem:[%s15135_s1 + $0x590] sm:$0xff] }
 0x11c   :  { %v9652_v0 = vcombine.high %v110_v59, %v118_v60  ;;  %v222_v51 = vld [vmem:[%s15135_s1 + $0x598] sm:$0xff] }
 0x11d   :  { %v230_v52 = vld [vmem:[%s15135_s1 + $0x5d8] sm:$0xff] }
 0x11e   :  { %7385 = vmatpush1.bf16.msra.mxu0 %v10701_v3  ;;  %7600 = vmatpush1.bf16.msra.mxu1 %v10703_v4  ;;  %v126_v3 = vld [vmem:[%s15135_s1 + $0x298] sm:$0xff] }
 0x11f   :  { %7386 = vmatprep.subr.bf16.mxu0 %v10718_v5  ;;  %7601 = vmatprep.subr.bf16.mxu1 %v10720_v6  ;;  %v134_v4 = vld [vmem:[%s15135_s1 + $0x2d8] sm:$0xff]  ;;  %v9649_v5 = vcombine.low %v109_v57, %v117_v58  ;;  %v9651_v6 = vcombine.low %v110_v59, %v118_v60  ;;  %v237_v57 = vld [vmem:[%s15135_s1 + $0x610] sm:$0xff] }
 0x120   :  { %v9668_v8 = vcombine.high %v126_v3, %v134_v4  ;;  %v245_v58 = vld [vmem:[%s15135_s1 + $0x650] sm:$0xff]  ;;  %v238_v59 = vld [vmem:[%s15135_s1 + $0x618] sm:$0xff] }
 0x121   :  { %v246_v60 = vld [vmem:[%s15135_s1 + $0x658] sm:$0xff] }
 0x122   :  { %7387 = vmatpush1.bf16.msra.mxu0 %v10717_v11  ;;  %7602 = vmatpush1.bf16.msra.mxu1 %v10719_v12  ;;  %v142_v11 = vld [vmem:[%s15135_s1 + $0x318] sm:$0xff] }
 0x123   :  { %7388 = vmatprep.subr.bf16.mxu0 %v10734_v13  ;;  %7603 = vmatprep.subr.bf16.mxu1 %v10736_v14  ;;  %v150_v12 = vld [vmem:[%s15135_s1 + $0x358] sm:$0xff]  ;;  %v9665_v13 = vcombine.low %v125_v1, %v133_v2  ;;  %v9667_v14 = vcombine.low %v126_v3, %v134_v4  ;;  %v253_v1 = vld [vmem:[%s15135_s1 + $0x690] sm:$0xff] }
 0x124   :  { %v9684_v16 = vcombine.high %v142_v11, %v150_v12  ;;  %v261_v2 = vld [vmem:[%s15135_s1 + $0x6d0] sm:$0xff]  ;;  %v254_v3 = vld [vmem:[%s15135_s1 + $0x698] sm:$0xff] }
 0x125   :  { %v262_v4 = vld [vmem:[%s15135_s1 + $0x6d8] sm:$0xff] }
 0x126   :  { %7389 = vmatpush1.bf16.msra.mxu0 %v10733_v19  ;;  %7604 = vmatpush1.bf16.msra.mxu1 %v10735_v20  ;;  %v158_v19 = vld [vmem:[%s15135_s1 + $0x398] sm:$0xff] }
 0x127   :  { %7390 = vmatprep.subr.bf16.mxu0 %v10750_v21  ;;  %7605 = vmatprep.subr.bf16.mxu1 %v10752_v22  ;;  %v166_v20 = vld [vmem:[%s15135_s1 + $0x3d8] sm:$0xff]  ;;  %v9681_v21 = vcombine.low %v141_v9, %v149_v10  ;;  %v9683_v22 = vcombine.low %v142_v11, %v150_v12  ;;  %v269_v9 = vld [vmem:[%s15135_s1 + $0x710] sm:$0xff] }
 0x128   :  { %v9700_v24 = vcombine.high %v158_v19, %v166_v20  ;;  %v277_v10 = vld [vmem:[%s15135_s1 + $0x750] sm:$0xff]  ;;  %v270_v11 = vld [vmem:[%s15135_s1 + $0x718] sm:$0xff] }
 0x129   :  { %v278_v12 = vld [vmem:[%s15135_s1 + $0x758] sm:$0xff] }
 0x12a   :  { %7391 = vmatpush1.bf16.msra.mxu0 %v10749_v27  ;;  %7606 = vmatpush1.bf16.msra.mxu1 %v10751_v28  ;;  %v174_v27 = vld [vmem:[%s15135_s1 + $0x418] sm:$0xff] }
 0x12b   :  { %7630 = vmatprep.subr.bf16.mxu0 %v9586_v29  ;;  %7845 = vmatprep.subr.bf16.mxu1 %v9588_v30  ;;  %v182_v28 = vld [vmem:[%s15135_s1 + $0x458] sm:$0xff]  ;;  %v9697_v29 = vcombine.low %v157_v17, %v165_v18  ;;  %v9699_v30 = vcombine.low %v158_v19, %v166_v20  ;;  %v285_v17 = vld [vmem:[%s15135_s1 + $0x790] sm:$0xff] }
 0x12c   :  { %v9716_v32 = vcombine.high %v174_v27, %v182_v28  ;;  %v293_v18 = vld [vmem:[%s15135_s1 + $0x7d0] sm:$0xff]  ;;  %v286_v19 = vld [vmem:[%s15135_s1 + $0x798] sm:$0xff] }
 0x12d   :  { %7405 = vmatmul.mubr.bf16.vlgmr.msra.gmra.mrb[0].mxu0 %v11068_v33  ;;  %7620 = vmatmul.mubr.bf16.vlgmr.msra.gmra.mrb[0].mxu1 %v11068_v33  ;;  %v189_v33 = vld [vmem:[%s15135_s1 + $0x490] sm:$0xff]  ;;  %v294_v20 = vld [vmem:[%s15135_s1 + $0x7d8] sm:$0xff] }
 0x12e   :  { %7631 = vmatpush1.bf16.msra.mxu0 %v9585_v36  ;;  %7846 = vmatpush1.bf16.msra.mxu1 %v9587_v37  ;;  %v198_v36 = vld [vmem:[%s15135_s1 + $0x4d8] sm:$0xff]  ;;  %v9713_v37 = vcombine.low %v173_v25, %v181_v26  ;;  %v301_v25 = vld [vmem:[%s15135_s1 + $0x810] sm:$0xff] }
 0x12f   :  { %7632 = vmatprep.subr.bf16.mxu0 %v9602_v38  ;;  %7847 = vmatprep.subr.bf16.mxu1 %v9604_v39  ;;  %v9715_v38 = vcombine.low %v174_v27, %v182_v28  ;;  %v9730_v39 = vcombine.high %v189_v33, %v197_v34  ;;  %v9732_v40 = vcombine.high %v190_v35, %v198_v36  ;;  %v309_v26 = vld [vmem:[%s15135_s1 + $0x850] sm:$0xff]  ;;  %v302_v27 = vld [vmem:[%s15135_s1 + $0x818] sm:$0xff] }
 0x130   :  { %7662 = vmatprep.mubr.bf16.mxu0 %v11117_v50  ;;  %7877 = vmatprep.mubr.bf16.mxu1 %v11117_v50  ;;  %v229_v50 = vld [vmem:[%s15135_s1 + $0x5d0] sm:$0xff]  ;;  %v310_v28 = vld [vmem:[%s15135_s1 + $0x858] sm:$0xff] }
 0x132   :  { %7633 = vmatpush1.bf16.msra.mxu0 %v9601_v44  ;;  %7848 = vmatpush1.bf16.msra.mxu1 %v9603_v45  ;;  %v214_v44 = vld [vmem:[%s15135_s1 + $0x558] sm:$0xff]  ;;  %v9729_v45 = vcombine.low %v189_v33, %v197_v34  ;;  %v317_v33 = vld [vmem:[%s15135_s1 + $0x890] sm:$0xff] }
 0x133   :  { %7634 = vmatprep.subr.bf16.mxu0 %v9618_v46  ;;  %7849 = vmatprep.subr.bf16.mxu1 %v9620_v47  ;;  %v9731_v46 = vcombine.low %v190_v35, %v198_v36  ;;  %v9746_v47 = vcombine.high %v205_v41, %v213_v42  ;;  %v9748_v48 = vcombine.high %v206_v43, %v214_v44  ;;  %v325_v34 = vld [vmem:[%s15135_s1 + $0x8d0] sm:$0xff]  ;;  %v318_v35 = vld [vmem:[%s15135_s1 + $0x898] sm:$0xff] }
 0x134   :  { %v326_v36 = vld [vmem:[%s15135_s1 + $0x8d8] sm:$0xff] }
 0x136   :  { %7635 = vmatpush1.bf16.msra.mxu0 %v9617_v53  ;;  %7850 = vmatpush1.bf16.msra.mxu1 %v9619_v54  ;;  %v9745_v53 = vcombine.low %v205_v41, %v213_v42  ;;  %v9747_v54 = vcombine.low %v206_v43, %v214_v44  ;;  %v333_v41 = vld [vmem:[%s15135_s1 + $0x910] sm:$0xff]  ;;  %v11118_v43 = vld [vmem:[%s15136_s0] ss:$40 sps:$4 sm:$0xff]   ;;  %v334_v44 = vld [vmem:[%s15135_s1 + $0x918] sm:$0xff] }
 0x137   :  { %7636 = vmatprep.subr.bf16.mxu0 %v9634_v55  ;;  %7851 = vmatprep.subr.bf16.mxu1 %v9636_v56  ;;  %v9762_v55 = vcombine.high %v221_v49, %v229_v50  ;;  %v9764_v56 = vcombine.high %v222_v51, %v230_v52  ;;  %v341_v42 = vld [vmem:[%s15135_s1 + $0x950] sm:$0xff] }
 0x13a   :  { %7637 = vmatpush1.bf16.msra.mxu0 %v9633_v61  ;;  %7852 = vmatpush1.bf16.msra.mxu1 %v9635_v62  ;;  %v9761_v61 = vcombine.low %v221_v49, %v229_v50  ;;  %v9763_v62 = vcombine.low %v222_v51, %v230_v52  ;;  %v349_v50 = vld [vmem:[%s15135_s1 + $0x990] sm:$0xff] }
 0x13b   :  { %7638 = vmatprep.subr.bf16.mxu0 %v9650_v63  ;;  %7853 = vmatprep.subr.bf16.mxu1 %v9652_v0  ;;  %v9778_v63 = vcombine.high %v237_v57, %v245_v58  ;;  %v9780_v0 = vcombine.high %v238_v59, %v246_v60  ;;  %v357_v51 = vld [vmem:[%s15135_s1 + $0x9d0] sm:$0xff] }
 0x13c   :  { %v11119_v52 = vld [vmem:[%s15136_s0 + $0xc] ss:$40 sps:$4 sm:$0xff]  }
 0x13e   :  { %7639 = vmatpush1.bf16.msra.mxu0 %v9649_v5  ;;  %7854 = vmatpush1.bf16.msra.mxu1 %v9651_v6  ;;  %v9777_v5 = vcombine.low %v237_v57, %v245_v58  ;;  %v9779_v6 = vcombine.low %v238_v59, %v246_v60  ;;  %v9890_v57 = vcombine.high %v349_v50, %v357_v51  ;;  %v365_v59 = vld [vmem:[%s15135_s1 + $0xa10] sm:$0xff] }
 0x13f   :  { %7640 = vmatprep.subr.bf16.mxu0 %v9666_v7  ;;  %7855 = vmatprep.subr.bf16.mxu1 %v9668_v8  ;;  %v9794_v7 = vcombine.high %v253_v1, %v261_v2  ;;  %v9796_v8 = vcombine.high %v254_v3, %v262_v4  ;;  %v373_v60 = vld [vmem:[%s15135_s1 + $0xa50] sm:$0xff] }
 0x142   :  { %7641 = vmatpush1.bf16.msra.mxu0 %v9665_v13  ;;  %7856 = vmatpush1.bf16.msra.mxu1 %v9667_v14  ;;  %v9793_v13 = vcombine.low %v253_v1, %v261_v2  ;;  %v9795_v14 = vcombine.low %v254_v3, %v262_v4  ;;  %v9906_v1 = vcombine.high %v365_v59, %v373_v60  ;;  %v381_v3 = vld [vmem:[%s15135_s1 + $0xa90] sm:$0xff] }
 0x143   :  { %7642 = vmatprep.subr.bf16.mxu0 %v9682_v15  ;;  %7857 = vmatprep.subr.bf16.mxu1 %v9684_v16  ;;  %v9810_v15 = vcombine.high %v269_v9, %v277_v10  ;;  %v9812_v16 = vcombine.high %v270_v11, %v278_v12  ;;  %v389_v4 = vld [vmem:[%s15135_s1 + $0xad0] sm:$0xff] }
 0x146   :  { %7643 = vmatpush1.bf16.msra.mxu0 %v9681_v21  ;;  %7858 = vmatpush1.bf16.msra.mxu1 %v9683_v22  ;;  %v9809_v21 = vcombine.low %v269_v9, %v277_v10  ;;  %v9811_v22 = vcombine.low %v270_v11, %v278_v12  ;;  %v9922_v9 = vcombine.high %v381_v3, %v389_v4  ;;  %v397_v11 = vld [vmem:[%s15135_s1 + $0xb10] sm:$0xff] }
 0x147   :  { %7644 = vmatprep.subr.bf16.mxu0 %v9698_v23  ;;  %7859 = vmatprep.subr.bf16.mxu1 %v9700_v24  ;;  %v9826_v23 = vcombine.high %v285_v17, %v293_v18  ;;  %v9828_v24 = vcombine.high %v286_v19, %v294_v20  ;;  %v405_v12 = vld [vmem:[%s15135_s1 + $0xb50] sm:$0xff] }
 0x14a   :  { %7645 = vmatpush1.bf16.msra.mxu0 %v9697_v29  ;;  %7860 = vmatpush1.bf16.msra.mxu1 %v9699_v30  ;;  %v9825_v29 = vcombine.low %v285_v17, %v293_v18  ;;  %v9827_v30 = vcombine.low %v286_v19, %v294_v20  ;;  %v9938_v17 = vcombine.high %v397_v11, %v405_v12  ;;  %v413_v19 = vld [vmem:[%s15135_s1 + $0xb90] sm:$0xff] }
 0x14b   :  { %7646 = vmatprep.subr.bf16.mxu0 %v9714_v31  ;;  %7861 = vmatprep.subr.bf16.mxu1 %v9716_v32  ;;  %v9842_v31 = vcombine.high %v301_v25, %v309_v26  ;;  %v9844_v32 = vcombine.high %v302_v27, %v310_v28  ;;  %v421_v20 = vld [vmem:[%s15135_s1 + $0xbd0] sm:$0xff] }
 0x14e   :  { %7647 = vmatpush1.bf16.msra.mxu0 %v9713_v37  ;;  %7862 = vmatpush1.bf16.msra.mxu1 %v9715_v38  ;;  %v9841_v37 = vcombine.low %v301_v25, %v309_v26  ;;  %v9843_v38 = vcombine.low %v302_v27, %v310_v28  ;;  %v9954_v25 = vcombine.high %v413_v19, %v421_v20  ;;  %v429_v27 = vld [vmem:[%s15135_s1 + $0xc10] sm:$0xff] }
 0x14f   :  { %7648 = vmatprep.subr.bf16.mxu0 %v9730_v39  ;;  %7863 = vmatprep.subr.bf16.mxu1 %v9732_v40  ;;  %v9858_v39 = vcombine.high %v317_v33, %v325_v34  ;;  %v9860_v40 = vcombine.high %v318_v35, %v326_v36  ;;  %v437_v28 = vld [vmem:[%s15135_s1 + $0xc50] sm:$0xff] }
 0x152   :  { %7649 = vmatpush1.bf16.msra.mxu0 %v9729_v45  ;;  %7864 = vmatpush1.bf16.msra.mxu1 %v9731_v46  ;;  %v342_v45 = vld [vmem:[%s15135_s1 + $0x958] sm:$0xff]  ;;  %v9857_v46 = vcombine.low %v317_v33, %v325_v34  ;;  %v9970_v33 = vcombine.high %v429_v27, %v437_v28 }
 0x153   :  { %7650 = vmatprep.subr.bf16.mxu0 %v9746_v47  ;;  %7865 = vmatprep.subr.bf16.mxu1 %v9748_v48  ;;  %v9859_v47 = vcombine.low %v318_v35, %v326_v36  ;;  %v9874_v48 = vcombine.high %v333_v41, %v341_v42  ;;  %v9876_v49 = vcombine.high %v334_v44, %v342_v45  ;;  %v445_v35 = vld [vmem:[%s15135_s1 + $0xc90] sm:$0xff] }
 0x154   :  { %v453_v36 = vld [vmem:[%s15135_s1 + $0xcd0] sm:$0xff] }
 0x156   :  { %7651 = vmatpush1.bf16.msra.mxu0 %v9745_v53  ;;  %7866 = vmatpush1.bf16.msra.mxu1 %v9747_v54  ;;  %v350_v53 = vld [vmem:[%s15135_s1 + $0x998] sm:$0xff] }
 0x157   :  { %7652 = vmatprep.subr.bf16.mxu0 %v9762_v55  ;;  %7867 = vmatprep.subr.bf16.mxu1 %v9764_v56  ;;  %v358_v54 = vld [vmem:[%s15135_s1 + $0x9d8] sm:$0xff]  ;;  %v9873_v55 = vcombine.low %v333_v41, %v341_v42  ;;  %v9875_v56 = vcombine.low %v334_v44, %v342_v45  ;;  %v9986_v41 = vcombine.high %v445_v35, %v453_v36  ;;  %v469_v44 = vld [vmem:[%s15135_s1 + $0xd50] sm:$0xff] }
 0x158   :  { %v9892_v58 = vcombine.high %v350_v53, %v358_v54  ;;  %v462_v45 = vld [vmem:[%s15135_s1 + $0xd18] sm:$0xff] }
 0x15a   :  { %7653 = vmatpush1.bf16.msra.mxu0 %v9761_v61  ;;  %7868 = vmatpush1.bf16.msra.mxu1 %v9763_v62  ;;  %v366_v61 = vld [vmem:[%s15135_s1 + $0xa18] sm:$0xff] }
 0x15b   :  { %7654 = vmatprep.subr.bf16.mxu0 %v9778_v63  ;;  %7869 = vmatprep.subr.bf16.mxu1 %v9780_v0  ;;  %v374_v62 = vld [vmem:[%s15135_s1 + $0xa58] sm:$0xff]  ;;  %v9889_v63 = vcombine.low %v349_v50, %v357_v51  ;;  %v9891_v0 = vcombine.low %v350_v53, %v358_v54  ;;  %v477_v51 = vld [vmem:[%s15135_s1 + $0xd90] sm:$0xff] }
 0x15c   :  { %v9908_v2 = vcombine.high %v366_v61, %v374_v62  ;;  %v478_v53 = vld [vmem:[%s15135_s1 + $0xd98] sm:$0xff] }
 0x15d   :  { %v486_v54 = vld [vmem:[%s15135_s1 + $0xdd8] sm:$0xff] }
 0x15e   :  { %7655 = vmatpush1.bf16.msra.mxu0 %v9777_v5  ;;  %7870 = vmatpush1.bf16.msra.mxu1 %v9779_v6  ;;  %v382_v5 = vld [vmem:[%s15135_s1 + $0xa98] sm:$0xff] }
 0x15f   :  { %7656 = vmatprep.subr.bf16.mxu0 %v9794_v7  ;;  %7871 = vmatprep.subr.bf16.mxu1 %v9796_v8  ;;  %v390_v6 = vld [vmem:[%s15135_s1 + $0xad8] sm:$0xff]  ;;  %v9905_v7 = vcombine.low %v365_v59, %v373_v60  ;;  %v9907_v8 = vcombine.low %v366_v61, %v374_v62  ;;  %v493_v59 = vld [vmem:[%s15135_s1 + $0xe10] sm:$0xff] }
 0x160   :  { %v9924_v10 = vcombine.high %v382_v5, %v390_v6  ;;  %v501_v60 = vld [vmem:[%s15135_s1 + $0xe50] sm:$0xff]  ;;  %v494_v61 = vld [vmem:[%s15135_s1 + $0xe18] sm:$0xff] }
 0x161   :  { %v502_v62 = vld [vmem:[%s15135_s1 + $0xe58] sm:$0xff] }
 0x162   :  { %7657 = vmatpush1.bf16.msra.mxu0 %v9793_v13  ;;  %7872 = vmatpush1.bf16.msra.mxu1 %v9795_v14  ;;  %v398_v13 = vld [vmem:[%s15135_s1 + $0xb18] sm:$0xff] }
 0x163   :  { %7658 = vmatprep.subr.bf16.mxu0 %v9810_v15  ;;  %7873 = vmatprep.subr.bf16.mxu1 %v9812_v16  ;;  %v406_v14 = vld [vmem:[%s15135_s1 + $0xb58] sm:$0xff]  ;;  %v9921_v15 = vcombine.low %v381_v3, %v389_v4  ;;  %v9923_v16 = vcombine.low %v382_v5, %v390_v6  ;;  %v509_v3 = vld [vmem:[%s15135_s1 + $0xe90] sm:$0xff] }
 0x164   :  { %v9940_v18 = vcombine.high %v398_v13, %v406_v14  ;;  %v517_v4 = vld [vmem:[%s15135_s1 + $0xed0] sm:$0xff]  ;;  %v510_v5 = vld [vmem:[%s15135_s1 + $0xe98] sm:$0xff] }
 0x165   :  { %v518_v6 = vld [vmem:[%s15135_s1 + $0xed8] sm:$0xff] }
 0x166   :  { %7659 = vmatpush1.bf16.msra.mxu0 %v9809_v21  ;;  %7874 = vmatpush1.bf16.msra.mxu1 %v9811_v22  ;;  %v414_v21 = vld [vmem:[%s15135_s1 + $0xb98] sm:$0xff] }
 0x167   :  { %7660 = vmatprep.subr.bf16.mxu0 %v9826_v23  ;;  %7875 = vmatprep.subr.bf16.mxu1 %v9828_v24  ;;  %v422_v22 = vld [vmem:[%s15135_s1 + $0xbd8] sm:$0xff]  ;;  %v9937_v23 = vcombine.low %v397_v11, %v405_v12  ;;  %v9939_v24 = vcombine.low %v398_v13, %v406_v14  ;;  %v525_v11 = vld [vmem:[%s15135_s1 + $0xf10] sm:$0xff] }
 0x168   :  { %v9956_v26 = vcombine.high %v414_v21, %v422_v22  ;;  %v533_v12 = vld [vmem:[%s15135_s1 + $0xf50] sm:$0xff]  ;;  %v526_v13 = vld [vmem:[%s15135_s1 + $0xf18] sm:$0xff] }
 0x169   :  { %v534_v14 = vld [vmem:[%s15135_s1 + $0xf58] sm:$0xff] }
 0x16a   :  { %7661 = vmatpush1.bf16.msra.mxu0 %v9825_v29  ;;  %7876 = vmatpush1.bf16.msra.mxu1 %v9827_v30  ;;  %v430_v29 = vld [vmem:[%s15135_s1 + $0xc18] sm:$0xff] }
 0x16b   :  { %7673 = vmatprep.subr.bf16.mxu0 %v9842_v31  ;;  %7888 = vmatprep.subr.bf16.mxu1 %v9844_v32  ;;  %v438_v30 = vld [vmem:[%s15135_s1 + $0xc58] sm:$0xff]  ;;  %v9953_v31 = vcombine.low %v413_v19, %v421_v20  ;;  %v9955_v32 = vcombine.low %v414_v21, %v422_v22  ;;  %v541_v19 = vld [vmem:[%s15135_s1 + $0xf90] sm:$0xff] }
 0x16c   :  { %v9972_v34 = vcombine.high %v430_v29, %v438_v30  ;;  %v549_v20 = vld [vmem:[%s15135_s1 + $0xfd0] sm:$0xff]  ;;  %v542_v21 = vld [vmem:[%s15135_s1 + $0xf98] sm:$0xff] }
 0x16d   :  { %7663 = vmatmul.mubr.bf16.vlgmr.msra.gmra.mrb[4].mxu0 %v11118_v43  ;;  %7878 = vmatmul.mubr.bf16.vlgmr.msra.gmra.mrb[4].mxu1 %v11118_v43  ;;  %v461_v43 = vld [vmem:[%s15135_s1 + $0xd10] sm:$0xff]  ;;  %v550_v22 = vld [vmem:[%s15135_s1 + $0xfd8] sm:$0xff] }
 0x16e   :  { %7674 = vmatpush1.bf16.msra.mxu0 %v9841_v37  ;;  %7889 = vmatpush1.bf16.msra.mxu1 %v9843_v38  ;;  %v446_v37 = vld [vmem:[%s15135_s1 + $0xc98] sm:$0xff] }
 0x16f   :  { %7675 = vmatprep.subr.bf16.mxu0 %v9858_v39  ;;  %7890 = vmatprep.subr.bf16.mxu1 %v9860_v40  ;;  %v454_v38 = vld [vmem:[%s15135_s1 + $0xcd8] sm:$0xff]  ;;  %v9969_v39 = vcombine.low %v429_v27, %v437_v28  ;;  %v9971_v40 = vcombine.low %v430_v29, %v438_v30  ;;  %v557_v27 = vld [vmem:[%s15135_s1 + $0x1010] sm:$0xff] }
 0x170   :  { %7705 = vmatprep.mubr.bf16.mxu0 %v11119_v52  ;;  %7920 = vmatprep.mubr.bf16.mxu1 %v11119_v52  ;;  %v9988_v42 = vcombine.high %v446_v37, %v454_v38  ;;  %v485_v52 = vld [vmem:[%s15135_s1 + $0xdd0] sm:$0xff]  ;;  %v558_v29 = vld [vmem:[%s15135_s1 + $0x1018] sm:$0xff] }
 0x171   :  { %v565_v28 = vld [vmem:[%s15135_s1 + $0x1050] sm:$0xff]  ;;  %v566_v30 = vld [vmem:[%s15135_s1 + $0x1058] sm:$0xff] }
 0x172   :  { %7676 = vmatpush1.bf16.msra.mxu0 %v9857_v46  ;;  %7891 = vmatpush1.bf16.msra.mxu1 %v9859_v47  ;;  %v470_v46 = vld [vmem:[%s15135_s1 + $0xd58] sm:$0xff]  ;;  %v9985_v47 = vcombine.low %v445_v35, %v453_v36  ;;  %v573_v35 = vld [vmem:[%s15135_s1 + $0x1090] sm:$0xff] }
 0x173   :  { %7677 = vmatprep.subr.bf16.mxu0 %v9874_v48  ;;  %7892 = vmatprep.subr.bf16.mxu1 %v9876_v49  ;;  %v9987_v48 = vcombine.low %v446_v37, %v454_v38  ;;  %v10002_v49 = vcombine.high %v461_v43, %v469_v44  ;;  %v10004_v50 = vcombine.high %v462_v45, %v470_v46  ;;  %v581_v36 = vld [vmem:[%s15135_s1 + $0x10d0] sm:$0xff]  ;;  %v574_v37 = vld [vmem:[%s15135_s1 + $0x1098] sm:$0xff] }
 0x174   :  { %v582_v38 = vld [vmem:[%s15135_s1 + $0x10d8] sm:$0xff] }
 0x176   :  { %7678 = vmatpush1.bf16.msra.mxu0 %v9873_v55  ;;  %7893 = vmatpush1.bf16.msra.mxu1 %v9875_v56  ;;  %v10001_v55 = vcombine.low %v461_v43, %v469_v44  ;;  %v10003_v56 = vcombine.low %v462_v45, %v470_v46  ;;  %v589_v43 = vld [vmem:[%s15135_s1 + $0x1110] sm:$0xff]  ;;  %v590_v46 = vld [vmem:[%s15135_s1 + $0x1118] sm:$0xff] }
 0x177   :  { %7679 = vmatprep.subr.bf16.mxu0 %v9890_v57  ;;  %7894 = vmatprep.subr.bf16.mxu1 %v9892_v58  ;;  %v10018_v57 = vcombine.high %v477_v51, %v485_v52  ;;  %v10020_v58 = vcombine.high %v478_v53, %v486_v54  ;;  %v597_v44 = vld [vmem:[%s15135_s1 + $0x1150] sm:$0xff] }
 0x178   :  { %v11120_v45 = vld [vmem:[%s15136_s0 + $0x8] ss:$40 sps:$4 sm:$0xff]  }
 0x17a   :  { %7680 = vmatpush1.bf16.msra.mxu0 %v9889_v63  ;;  %7895 = vmatpush1.bf16.msra.mxu1 %v9891_v0  ;;  %v10017_v63 = vcombine.low %v477_v51, %v485_v52  ;;  %v10019_v0 = vcombine.low %v478_v53, %v486_v54  ;;  %v605_v52 = vld [vmem:[%s15135_s1 + $0x1190] sm:$0xff] }
 0x17b   :  { %7681 = vmatprep.subr.bf16.mxu0 %v9906_v1  ;;  %7896 = vmatprep.subr.bf16.mxu1 %v9908_v2  ;;  %v10034_v1 = vcombine.high %v493_v59, %v501_v60  ;;  %v10036_v2 = vcombine.high %v494_v61, %v502_v62  ;;  %v613_v53 = vld [vmem:[%s15135_s1 + $0x11d0] sm:$0xff] }
 0x17c   :  { %v11121_v54 = vld [vmem:[%s15136_s0 + $0x14] ss:$40 sps:$4 sm:$0xff]  }
 0x17e   :  { %7682 = vmatpush1.bf16.msra.mxu0 %v9905_v7  ;;  %7897 = vmatpush1.bf16.msra.mxu1 %v9907_v8  ;;  %v10033_v7 = vcombine.low %v493_v59, %v501_v60  ;;  %v10035_v8 = vcombine.low %v494_v61, %v502_v62  ;;  %v10146_v59 = vcombine.high %v605_v52, %v613_v53  ;;  %v621_v61 = vld [vmem:[%s15135_s1 + $0x1210] sm:$0xff] }
 0x17f   :  { %7683 = vmatprep.subr.bf16.mxu0 %v9922_v9  ;;  %7898 = vmatprep.subr.bf16.mxu1 %v9924_v10  ;;  %v10050_v9 = vcombine.high %v509_v3, %v517_v4  ;;  %v10052_v10 = vcombine.high %v510_v5, %v518_v6  ;;  %v629_v62 = vld [vmem:[%s15135_s1 + $0x1250] sm:$0xff] }
 0x182   :  { %7684 = vmatpush1.bf16.msra.mxu0 %v9921_v15  ;;  %7899 = vmatpush1.bf16.msra.mxu1 %v9923_v16  ;;  %v10049_v15 = vcombine.low %v509_v3, %v517_v4  ;;  %v10051_v16 = vcombine.low %v510_v5, %v518_v6  ;;  %v10162_v3 = vcombine.high %v621_v61, %v629_v62  ;;  %v637_v5 = vld [vmem:[%s15135_s1 + $0x1290] sm:$0xff] }
 0x183   :  { %7685 = vmatprep.subr.bf16.mxu0 %v9938_v17  ;;  %7900 = vmatprep.subr.bf16.mxu1 %v9940_v18  ;;  %v10066_v17 = vcombine.high %v525_v11, %v533_v12  ;;  %v10068_v18 = vcombine.high %v526_v13, %v534_v14  ;;  %v645_v6 = vld [vmem:[%s15135_s1 + $0x12d0] sm:$0xff] }
 0x186   :  { %7686 = vmatpush1.bf16.msra.mxu0 %v9937_v23  ;;  %7901 = vmatpush1.bf16.msra.mxu1 %v9939_v24  ;;  %v10065_v23 = vcombine.low %v525_v11, %v533_v12  ;;  %v10067_v24 = vcombine.low %v526_v13, %v534_v14  ;;  %v10178_v11 = vcombine.high %v637_v5, %v645_v6  ;;  %v653_v13 = vld [vmem:[%s15135_s1 + $0x1310] sm:$0xff] }
 0x187   :  { %7687 = vmatprep.subr.bf16.mxu0 %v9954_v25  ;;  %7902 = vmatprep.subr.bf16.mxu1 %v9956_v26  ;;  %v10082_v25 = vcombine.high %v541_v19, %v549_v20  ;;  %v10084_v26 = vcombine.high %v542_v21, %v550_v22  ;;  %v661_v14 = vld [vmem:[%s15135_s1 + $0x1350] sm:$0xff] }
 0x18a   :  { %7688 = vmatpush1.bf16.msra.mxu0 %v9953_v31  ;;  %7903 = vmatpush1.bf16.msra.mxu1 %v9955_v32  ;;  %v10081_v31 = vcombine.low %v541_v19, %v549_v20  ;;  %v10083_v32 = vcombine.low %v542_v21, %v550_v22  ;;  %v10194_v19 = vcombine.high %v653_v13, %v661_v14  ;;  %v669_v21 = vld [vmem:[%s15135_s1 + $0x1390] sm:$0xff] }
 0x18b   :  { %7689 = vmatprep.subr.bf16.mxu0 %v9970_v33  ;;  %7904 = vmatprep.subr.bf16.mxu1 %v9972_v34  ;;  %v10098_v33 = vcombine.high %v557_v27, %v565_v28  ;;  %v10100_v34 = vcombine.high %v558_v29, %v566_v30  ;;  %v677_v22 = vld [vmem:[%s15135_s1 + $0x13d0] sm:$0xff] }
 0x18e   :  { %7690 = vmatpush1.bf16.msra.mxu0 %v9969_v39  ;;  %7905 = vmatpush1.bf16.msra.mxu1 %v9971_v40  ;;  %v10097_v39 = vcombine.low %v557_v27, %v565_v28  ;;  %v10099_v40 = vcombine.low %v558_v29, %v566_v30  ;;  %v10210_v27 = vcombine.high %v669_v21, %v677_v22  ;;  %v685_v29 = vld [vmem:[%s15135_s1 + $0x1410] sm:$0xff] }
 0x18f   :  { %7691 = vmatprep.subr.bf16.mxu0 %v9986_v41  ;;  %7906 = vmatprep.subr.bf16.mxu1 %v9988_v42  ;;  %v10114_v41 = vcombine.high %v573_v35, %v581_v36  ;;  %v10116_v42 = vcombine.high %v574_v37, %v582_v38  ;;  %v693_v30 = vld [vmem:[%s15135_s1 + $0x1450] sm:$0xff] }
 0x192   :  { %7692 = vmatpush1.bf16.msra.mxu0 %v9985_v47  ;;  %7907 = vmatpush1.bf16.msra.mxu1 %v9987_v48  ;;  %v598_v47 = vld [vmem:[%s15135_s1 + $0x1158] sm:$0xff]  ;;  %v10113_v48 = vcombine.low %v573_v35, %v581_v36  ;;  %v10226_v35 = vcombine.high %v685_v29, %v693_v30 }
 0x193   :  { %7693 = vmatprep.subr.bf16.mxu0 %v10002_v49  ;;  %7908 = vmatprep.subr.bf16.mxu1 %v10004_v50  ;;  %v10115_v49 = vcombine.low %v574_v37, %v582_v38  ;;  %v10130_v50 = vcombine.high %v589_v43, %v597_v44  ;;  %v10132_v51 = vcombine.high %v590_v46, %v598_v47  ;;  %v701_v37 = vld [vmem:[%s15135_s1 + $0x1490] sm:$0xff] }
 0x194   :  { %v709_v38 = vld [vmem:[%s15135_s1 + $0x14d0] sm:$0xff] }
 0x196   :  { %7694 = vmatpush1.bf16.msra.mxu0 %v10001_v55  ;;  %7909 = vmatpush1.bf16.msra.mxu1 %v10003_v56  ;;  %v606_v55 = vld [vmem:[%s15135_s1 + $0x1198] sm:$0xff] }
 0x197   :  { %7695 = vmatprep.subr.bf16.mxu0 %v10018_v57  ;;  %7910 = vmatprep.subr.bf16.mxu1 %v10020_v58  ;;  %v614_v56 = vld [vmem:[%s15135_s1 + $0x11d8] sm:$0xff]  ;;  %v10129_v57 = vcombine.low %v589_v43, %v597_v44  ;;  %v10131_v58 = vcombine.low %v590_v46, %v598_v47  ;;  %v10242_v43 = vcombine.high %v701_v37, %v709_v38  ;;  %v725_v46 = vld [vmem:[%s15135_s1 + $0x1550] sm:$0xff] }
 0x198   :  { %v10148_v60 = vcombine.high %v606_v55, %v614_v56  ;;  %v718_v47 = vld [vmem:[%s15135_s1 + $0x1518] sm:$0xff] }
 0x19a   :  { %7696 = vmatpush1.bf16.msra.mxu0 %v10017_v63  ;;  %7911 = vmatpush1.bf16.msra.mxu1 %v10019_v0  ;;  %v622_v63 = vld [vmem:[%s15135_s1 + $0x1218] sm:$0xff] }
 0x19b   :  { %7697 = vmatprep.subr.bf16.mxu0 %v10034_v1  ;;  %7912 = vmatprep.subr.bf16.mxu1 %v10036_v2  ;;  %v630_v0 = vld [vmem:[%s15135_s1 + $0x1258] sm:$0xff]  ;;  %v10145_v1 = vcombine.low %v605_v52, %v613_v53  ;;  %v10147_v2 = vcombine.low %v606_v55, %v614_v56  ;;  %v733_v53 = vld [vmem:[%s15135_s1 + $0x1590] sm:$0xff] }
 0x19c   :  { %v10164_v4 = vcombine.high %v622_v63, %v630_v0  ;;  %v734_v55 = vld [vmem:[%s15135_s1 + $0x1598] sm:$0xff] }
 0x19d   :  { %v742_v56 = vld [vmem:[%s15135_s1 + $0x15d8] sm:$0xff] }
 0x19e   :  { %7698 = vmatpush1.bf16.msra.mxu0 %v10033_v7  ;;  %7913 = vmatpush1.bf16.msra.mxu1 %v10035_v8  ;;  %v638_v7 = vld [vmem:[%s15135_s1 + $0x1298] sm:$0xff] }
 0x19f   :  { %7699 = vmatprep.subr.bf16.mxu0 %v10050_v9  ;;  %7914 = vmatprep.subr.bf16.mxu1 %v10052_v10  ;;  %v646_v8 = vld [vmem:[%s15135_s1 + $0x12d8] sm:$0xff]  ;;  %v10161_v9 = vcombine.low %v621_v61, %v629_v62  ;;  %v10163_v10 = vcombine.low %v622_v63, %v630_v0  ;;  %v749_v61 = vld [vmem:[%s15135_s1 + $0x1610] sm:$0xff] }
 0x1a0   :  { %v10180_v12 = vcombine.high %v638_v7, %v646_v8  ;;  %v757_v62 = vld [vmem:[%s15135_s1 + $0x1650] sm:$0xff]  ;;  %v750_v63 = vld [vmem:[%s15135_s1 + $0x1618] sm:$0xff] }
 0x1a1   :  { %v758_v0 = vld [vmem:[%s15135_s1 + $0x1658] sm:$0xff] }
 0x1a2   :  { %7700 = vmatpush1.bf16.msra.mxu0 %v10049_v15  ;;  %7915 = vmatpush1.bf16.msra.mxu1 %v10051_v16  ;;  %v654_v15 = vld [vmem:[%s15135_s1 + $0x1318] sm:$0xff] }
 0x1a3   :  { %7701 = vmatprep.subr.bf16.mxu0 %v10066_v17  ;;  %7916 = vmatprep.subr.bf16.mxu1 %v10068_v18  ;;  %v662_v16 = vld [vmem:[%s15135_s1 + $0x1358] sm:$0xff]  ;;  %v10177_v17 = vcombine.low %v637_v5, %v645_v6  ;;  %v10179_v18 = vcombine.low %v638_v7, %v646_v8  ;;  %v765_v5 = vld [vmem:[%s15135_s1 + $0x1690] sm:$0xff] }
 0x1a4   :  { %v10196_v20 = vcombine.high %v654_v15, %v662_v16  ;;  %v773_v6 = vld [vmem:[%s15135_s1 + $0x16d0] sm:$0xff]  ;;  %v766_v7 = vld [vmem:[%s15135_s1 + $0x1698] sm:$0xff] }
 0x1a5   :  { %v774_v8 = vld [vmem:[%s15135_s1 + $0x16d8] sm:$0xff] }
 0x1a6   :  { %7702 = vmatpush1.bf16.msra.mxu0 %v10065_v23  ;;  %7917 = vmatpush1.bf16.msra.mxu1 %v10067_v24  ;;  %v670_v23 = vld [vmem:[%s15135_s1 + $0x1398] sm:$0xff] }
 0x1a7   :  { %7703 = vmatprep.subr.bf16.mxu0 %v10082_v25  ;;  %7918 = vmatprep.subr.bf16.mxu1 %v10084_v26  ;;  %v678_v24 = vld [vmem:[%s15135_s1 + $0x13d8] sm:$0xff]  ;;  %v10193_v25 = vcombine.low %v653_v13, %v661_v14  ;;  %v10195_v26 = vcombine.low %v654_v15, %v662_v16  ;;  %v781_v13 = vld [vmem:[%s15135_s1 + $0x1710] sm:$0xff] }
 0x1a8   :  { %v10212_v28 = vcombine.high %v670_v23, %v678_v24  ;;  %v789_v14 = vld [vmem:[%s15135_s1 + $0x1750] sm:$0xff]  ;;  %v782_v15 = vld [vmem:[%s15135_s1 + $0x1718] sm:$0xff] }
 0x1a9   :  { %v790_v16 = vld [vmem:[%s15135_s1 + $0x1758] sm:$0xff] }
 0x1aa   :  { %7704 = vmatpush1.bf16.msra.mxu0 %v10081_v31  ;;  %7919 = vmatpush1.bf16.msra.mxu1 %v10083_v32  ;;  %v686_v31 = vld [vmem:[%s15135_s1 + $0x1418] sm:$0xff] }
 0x1ab   :  { %7716 = vmatprep.subr.bf16.mxu0 %v10098_v33  ;;  %7931 = vmatprep.subr.bf16.mxu1 %v10100_v34  ;;  %v694_v32 = vld [vmem:[%s15135_s1 + $0x1458] sm:$0xff]  ;;  %v10209_v33 = vcombine.low %v669_v21, %v677_v22  ;;  %v10211_v34 = vcombine.low %v670_v23, %v678_v24  ;;  %v797_v21 = vld [vmem:[%s15135_s1 + $0x1790] sm:$0xff] }
 0x1ac   :  { %v10228_v36 = vcombine.high %v686_v31, %v694_v32  ;;  %v805_v22 = vld [vmem:[%s15135_s1 + $0x17d0] sm:$0xff]  ;;  %v798_v23 = vld [vmem:[%s15135_s1 + $0x1798] sm:$0xff] }
 0x1ad   :  { %7706 = vmatmul.mubr.bf16.vlgmr.msra.gmra.mrb[4].mxu0 %v11120_v45  ;;  %7921 = vmatmul.mubr.bf16.vlgmr.msra.gmra.mrb[4].mxu1 %v11120_v45  ;;  %v717_v45 = vld [vmem:[%s15135_s1 + $0x1510] sm:$0xff]  ;;  %v806_v24 = vld [vmem:[%s15135_s1 + $0x17d8] sm:$0xff] }
 0x1ae   :  { %7717 = vmatpush1.bf16.msra.mxu0 %v10097_v39  ;;  %7932 = vmatpush1.bf16.msra.mxu1 %v10099_v40  ;;  %v702_v39 = vld [vmem:[%s15135_s1 + $0x1498] sm:$0xff] }
 0x1af   :  { %7718 = vmatprep.subr.bf16.mxu0 %v10114_v41  ;;  %7933 = vmatprep.subr.bf16.mxu1 %v10116_v42  ;;  %v710_v40 = vld [vmem:[%s15135_s1 + $0x14d8] sm:$0xff]  ;;  %v10225_v41 = vcombine.low %v685_v29, %v693_v30  ;;  %v10227_v42 = vcombine.low %v686_v31, %v694_v32  ;;  %v813_v29 = vld [vmem:[%s15135_s1 + $0x1810] sm:$0xff] }
 0x1b0   :  { %7748 = vmatprep.mubr.bf16.mxu0 %v11121_v54  ;;  %7963 = vmatprep.mubr.bf16.mxu1 %v11121_v54  ;;  %v10244_v44 = vcombine.high %v702_v39, %v710_v40  ;;  %v741_v54 = vld [vmem:[%s15135_s1 + $0x15d0] sm:$0xff]  ;;  %v814_v31 = vld [vmem:[%s15135_s1 + $0x1818] sm:$0xff] }
 0x1b1   :  { %v821_v30 = vld [vmem:[%s15135_s1 + $0x1850] sm:$0xff]  ;;  %v822_v32 = vld [vmem:[%s15135_s1 + $0x1858] sm:$0xff] }
 0x1b2   :  { %7719 = vmatpush1.bf16.msra.mxu0 %v10113_v48  ;;  %7934 = vmatpush1.bf16.msra.mxu1 %v10115_v49  ;;  %v726_v48 = vld [vmem:[%s15135_s1 + $0x1558] sm:$0xff]  ;;  %v10241_v49 = vcombine.low %v701_v37, %v709_v38  ;;  %v829_v37 = vld [vmem:[%s15135_s1 + $0x1890] sm:$0xff] }
 0x1b3   :  { %7720 = vmatprep.subr.bf16.mxu0 %v10130_v50  ;;  %7935 = vmatprep.subr.bf16.mxu1 %v10132_v51  ;;  %v10243_v50 = vcombine.low %v702_v39, %v710_v40  ;;  %v10258_v51 = vcombine.high %v717_v45, %v725_v46  ;;  %v10260_v52 = vcombine.high %v718_v47, %v726_v48  ;;  %v837_v38 = vld [vmem:[%s15135_s1 + $0x18d0] sm:$0xff]  ;;  %v830_v39 = vld [vmem:[%s15135_s1 + $0x1898] sm:$0xff] }
 0x1b4   :  { %v838_v40 = vld [vmem:[%s15135_s1 + $0x18d8] sm:$0xff] }
 0x1b6   :  { %7721 = vmatpush1.bf16.msra.mxu0 %v10129_v57  ;;  %7936 = vmatpush1.bf16.msra.mxu1 %v10131_v58  ;;  %v10257_v57 = vcombine.low %v717_v45, %v725_v46  ;;  %v10259_v58 = vcombine.low %v718_v47, %v726_v48  ;;  %v845_v45 = vld [vmem:[%s15135_s1 + $0x1910] sm:$0xff]  ;;  %v846_v48 = vld [vmem:[%s15135_s1 + $0x1918] sm:$0xff] }
 0x1b7   :  { %7722 = vmatprep.subr.bf16.mxu0 %v10146_v59  ;;  %7937 = vmatprep.subr.bf16.mxu1 %v10148_v60  ;;  %v10274_v59 = vcombine.high %v733_v53, %v741_v54  ;;  %v10276_v60 = vcombine.high %v734_v55, %v742_v56  ;;  %v853_v46 = vld [vmem:[%s15135_s1 + $0x1950] sm:$0xff] }
 0x1b8   :  { %v11122_v47 = vld [vmem:[%s15136_s0 + $0x10] ss:$40 sps:$4 sm:$0xff]  }
 0x1ba   :  { %7723 = vmatpush1.bf16.msra.mxu0 %v10145_v1  ;;  %7938 = vmatpush1.bf16.msra.mxu1 %v10147_v2  ;;  %v10273_v1 = vcombine.low %v733_v53, %v741_v54  ;;  %v10275_v2 = vcombine.low %v734_v55, %v742_v56  ;;  %v861_v54 = vld [vmem:[%s15135_s1 + $0x1990] sm:$0xff]  ;;  %v11123_v56 = vld [vmem:[%s15136_s0 + $0x1c] ss:$40 sps:$4 sm:$0xff]  }
 0x1bb   :  { %7724 = vmatprep.subr.bf16.mxu0 %v10162_v3  ;;  %7939 = vmatprep.subr.bf16.mxu1 %v10164_v4  ;;  %v10290_v3 = vcombine.high %v749_v61, %v757_v62  ;;  %v10292_v4 = vcombine.high %v750_v63, %v758_v0  ;;  %v869_v55 = vld [vmem:[%s15135_s1 + $0x19d0] sm:$0xff] }
 0x1be   :  { %7725 = vmatpush1.bf16.msra.mxu0 %v10161_v9  ;;  %7940 = vmatpush1.bf16.msra.mxu1 %v10163_v10  ;;  %v10289_v9 = vcombine.low %v749_v61, %v757_v62  ;;  %v10291_v10 = vcombine.low %v750_v63, %v758_v0  ;;  %v10402_v61 = vcombine.high %v861_v54, %v869_v55  ;;  %v877_v63 = vld [vmem:[%s15135_s1 + $0x1a10] sm:$0xff] }
 0x1bf   :  { %7726 = vmatprep.subr.bf16.mxu0 %v10178_v11  ;;  %7941 = vmatprep.subr.bf16.mxu1 %v10180_v12  ;;  %v10306_v11 = vcombine.high %v765_v5, %v773_v6  ;;  %v10308_v12 = vcombine.high %v766_v7, %v774_v8  ;;  %v885_v0 = vld [vmem:[%s15135_s1 + $0x1a50] sm:$0xff] }
 0x1c2   :  { %7727 = vmatpush1.bf16.msra.mxu0 %v10177_v17  ;;  %7942 = vmatpush1.bf16.msra.mxu1 %v10179_v18  ;;  %v10305_v17 = vcombine.low %v765_v5, %v773_v6  ;;  %v10307_v18 = vcombine.low %v766_v7, %v774_v8  ;;  %v10418_v5 = vcombine.high %v877_v63, %v885_v0  ;;  %v893_v7 = vld [vmem:[%s15135_s1 + $0x1a90] sm:$0xff] }
 0x1c3   :  { %7728 = vmatprep.subr.bf16.mxu0 %v10194_v19  ;;  %7943 = vmatprep.subr.bf16.mxu1 %v10196_v20  ;;  %v10322_v19 = vcombine.high %v781_v13, %v789_v14  ;;  %v10324_v20 = vcombine.high %v782_v15, %v790_v16  ;;  %v901_v8 = vld [vmem:[%s15135_s1 + $0x1ad0] sm:$0xff] }
 0x1c6   :  { %7729 = vmatpush1.bf16.msra.mxu0 %v10193_v25  ;;  %7944 = vmatpush1.bf16.msra.mxu1 %v10195_v26  ;;  %v10321_v25 = vcombine.low %v781_v13, %v789_v14  ;;  %v10323_v26 = vcombine.low %v782_v15, %v790_v16  ;;  %v10434_v13 = vcombine.high %v893_v7, %v901_v8  ;;  %v909_v15 = vld [vmem:[%s15135_s1 + $0x1b10] sm:$0xff] }
 0x1c7   :  { %7730 = vmatprep.subr.bf16.mxu0 %v10210_v27  ;;  %7945 = vmatprep.subr.bf16.mxu1 %v10212_v28  ;;  %v10338_v27 = vcombine.high %v797_v21, %v805_v22  ;;  %v10340_v28 = vcombine.high %v798_v23, %v806_v24  ;;  %v917_v16 = vld [vmem:[%s15135_s1 + $0x1b50] sm:$0xff] }
 0x1ca   :  { %7731 = vmatpush1.bf16.msra.mxu0 %v10209_v33  ;;  %7946 = vmatpush1.bf16.msra.mxu1 %v10211_v34  ;;  %v10337_v33 = vcombine.low %v797_v21, %v805_v22  ;;  %v10339_v34 = vcombine.low %v798_v23, %v806_v24  ;;  %v10450_v21 = vcombine.high %v909_v15, %v917_v16  ;;  %v925_v24 = vld [vmem:[%s15135_s1 + $0x1b90] sm:$0xff] }
 0x1cb   :  { %7732 = vmatprep.subr.bf16.mxu0 %v10226_v35  ;;  %7947 = vmatprep.subr.bf16.mxu1 %v10228_v36  ;;  %v10354_v35 = vcombine.high %v813_v29, %v821_v30  ;;  %v10356_v36 = vcombine.high %v814_v31, %v822_v32 }
 0x1ce   :  { %7733 = vmatpush1.bf16.msra.mxu0 %v10225_v41  ;;  %7948 = vmatpush1.bf16.msra.mxu1 %v10227_v42  ;;  %v10353_v41 = vcombine.low %v813_v29, %v821_v30  ;;  %v10355_v42 = vcombine.low %v814_v31, %v822_v32  ;;  %v934_v29 = vld [vmem:[%s15135_s1 + $0x1bd8] sm:$0xff]  ;;  %v10449_v32 = vcombine.low %v909_v15, %v917_v16  ;;  %v1021_v15 = vld [vmem:[%s15135_s1 + $0x1e90] sm:$0xff] }
 0x1cf   :  { %7734 = vmatprep.subr.bf16.mxu0 %v10242_v43  ;;  %7949 = vmatprep.subr.bf16.mxu1 %v10244_v44  ;;  %v10370_v43 = vcombine.high %v829_v37, %v837_v38  ;;  %v10372_v44 = vcombine.high %v830_v39, %v838_v40  ;;  %v1029_v16 = vld [vmem:[%s15135_s1 + $0x1ed0] sm:$0xff] }
 0x1d2   :  { %7735 = vmatpush1.bf16.msra.mxu0 %v10241_v49  ;;  %7950 = vmatpush1.bf16.msra.mxu1 %v10243_v50  ;;  %v854_v49 = vld [vmem:[%s15135_s1 + $0x1958] sm:$0xff]  ;;  %v10369_v50 = vcombine.low %v829_v37, %v837_v38 }
 0x1d3   :  { %7736 = vmatprep.subr.bf16.mxu0 %v10258_v51  ;;  %7951 = vmatprep.subr.bf16.mxu1 %v10260_v52  ;;  %v10371_v51 = vcombine.low %v830_v39, %v838_v40  ;;  %v10386_v52 = vcombine.high %v845_v45, %v853_v46  ;;  %v10388_v53 = vcombine.high %v846_v48, %v854_v49  ;;  %v941_v39 = vld [vmem:[%s15135_s1 + $0x1c10] sm:$0xff] }
 0x1d4   :  { %v949_v40 = vld [vmem:[%s15135_s1 + $0x1c50] sm:$0xff] }
 0x1d6   :  { %7737 = vmatpush1.bf16.msra.mxu0 %v10257_v57  ;;  %7952 = vmatpush1.bf16.msra.mxu1 %v10259_v58  ;;  %v862_v57 = vld [vmem:[%s15135_s1 + $0x1998] sm:$0xff] }
 0x1d7   :  { %7738 = vmatprep.subr.bf16.mxu0 %v10274_v59  ;;  %7953 = vmatprep.subr.bf16.mxu1 %v10276_v60  ;;  %v870_v58 = vld [vmem:[%s15135_s1 + $0x19d8] sm:$0xff]  ;;  %v10385_v59 = vcombine.low %v845_v45, %v853_v46  ;;  %v10387_v60 = vcombine.low %v846_v48, %v854_v49  ;;  %v10482_v45 = vcombine.high %v941_v39, %v949_v40  ;;  %v965_v48 = vld [vmem:[%s15135_s1 + $0x1cd0] sm:$0xff] }
 0x1d8   :  { %v10404_v62 = vcombine.high %v862_v57, %v870_v58  ;;  %v958_v49 = vld [vmem:[%s15135_s1 + $0x1c98] sm:$0xff] }
 0x1da   :  { %7739 = vmatpush1.bf16.msra.mxu0 %v10273_v1  ;;  %7954 = vmatpush1.bf16.msra.mxu1 %v10275_v2  ;;  %v878_v1 = vld [vmem:[%s15135_s1 + $0x1a18] sm:$0xff] }
 0x1db   :  { %7740 = vmatprep.subr.bf16.mxu0 %v10290_v3  ;;  %7955 = vmatprep.subr.bf16.mxu1 %v10292_v4  ;;  %v886_v2 = vld [vmem:[%s15135_s1 + $0x1a58] sm:$0xff]  ;;  %v10401_v3 = vcombine.low %v861_v54, %v869_v55  ;;  %v10403_v4 = vcombine.low %v862_v57, %v870_v58  ;;  %v973_v55 = vld [vmem:[%s15135_s1 + $0x1d10] sm:$0xff] }
 0x1dc   :  { %v10420_v6 = vcombine.high %v878_v1, %v886_v2  ;;  %v974_v57 = vld [vmem:[%s15135_s1 + $0x1d18] sm:$0xff] }
 0x1dd   :  { %v982_v58 = vld [vmem:[%s15135_s1 + $0x1d58] sm:$0xff] }
 0x1de   :  { %7741 = vmatpush1.bf16.msra.mxu0 %v10289_v9  ;;  %7956 = vmatpush1.bf16.msra.mxu1 %v10291_v10  ;;  %v894_v9 = vld [vmem:[%s15135_s1 + $0x1a98] sm:$0xff] }
 0x1df   :  { %7742 = vmatprep.subr.bf16.mxu0 %v10306_v11  ;;  %7957 = vmatprep.subr.bf16.mxu1 %v10308_v12  ;;  %v902_v10 = vld [vmem:[%s15135_s1 + $0x1ad8] sm:$0xff]  ;;  %v10417_v11 = vcombine.low %v877_v63, %v885_v0  ;;  %v10419_v12 = vcombine.low %v878_v1, %v886_v2  ;;  %v989_v63 = vld [vmem:[%s15135_s1 + $0x1d90] sm:$0xff] }
 0x1e0   :  { %v10436_v14 = vcombine.high %v894_v9, %v902_v10  ;;  %v997_v0 = vld [vmem:[%s15135_s1 + $0x1dd0] sm:$0xff]  ;;  %v990_v1 = vld [vmem:[%s15135_s1 + $0x1d98] sm:$0xff] }
 0x1e1   :  { %v998_v2 = vld [vmem:[%s15135_s1 + $0x1dd8] sm:$0xff] }
 0x1e2   :  { %7743 = vmatpush1.bf16.msra.mxu0 %v10305_v17  ;;  %7958 = vmatpush1.bf16.msra.mxu1 %v10307_v18  ;;  %v910_v17 = vld [vmem:[%s15135_s1 + $0x1b18] sm:$0xff] }
 0x1e3   :  { %7744 = vmatprep.subr.bf16.mxu0 %v10322_v19  ;;  %7959 = vmatprep.subr.bf16.mxu1 %v10324_v20  ;;  %v918_v18 = vld [vmem:[%s15135_s1 + $0x1b58] sm:$0xff]  ;;  %v10433_v19 = vcombine.low %v893_v7, %v901_v8  ;;  %v10435_v20 = vcombine.low %v894_v9, %v902_v10  ;;  %v1005_v7 = vld [vmem:[%s15135_s1 + $0x1e10] sm:$0xff] }
 0x1e4   :  { %v10452_v23 = vcombine.high %v910_v17, %v918_v18  ;;  %v1013_v8 = vld [vmem:[%s15135_s1 + $0x1e50] sm:$0xff]  ;;  %v1006_v9 = vld [vmem:[%s15135_s1 + $0x1e18] sm:$0xff] }
 0x1e5   :  { %v1014_v10 = vld [vmem:[%s15135_s1 + $0x1e58] sm:$0xff] }
 0x1e6   :  { %7745 = vmatpush1.bf16.msra.mxu0 %v10321_v25  ;;  %7960 = vmatpush1.bf16.msra.mxu1 %v10323_v26  ;;  %v933_v25 = vld [vmem:[%s15135_s1 + $0x1bd0] sm:$0xff] }
 0x1e7   :  { %7746 = vmatprep.subr.bf16.mxu0 %v10338_v27  ;;  %7961 = vmatprep.subr.bf16.mxu1 %v10340_v28  ;;  %v926_v28 = vld [vmem:[%s15135_s1 + $0x1b98] sm:$0xff] }
 0x1e8   :  { %v10468_v38 = vcombine.high %v926_v28, %v934_v29 }
 0x1ea   :  { %7747 = vmatpush1.bf16.msra.mxu0 %v10337_v33  ;;  %7962 = vmatpush1.bf16.msra.mxu1 %v10339_v34 }
 0x1eb   :  { %7759 = vmatprep.subr.bf16.mxu0 %v10354_v35  ;;  %7974 = vmatprep.subr.bf16.mxu1 %v10356_v36  ;;  %v10451_v35 = vcombine.low %v910_v17, %v918_v18  ;;  %v10466_v36 = vcombine.high %v925_v24, %v933_v25  ;;  %v1022_v17 = vld [vmem:[%s15135_s1 + $0x1e98] sm:$0xff] }
 0x1ec   :  { %v1030_v18 = vld [vmem:[%s15135_s1 + $0x1ed8] sm:$0xff] }
 0x1ed   :  { %7749 = vmatmul.mubr.bf16.vlgmr.msra.gmra.mrb[4].mxu0 %v11122_v47  ;;  %7964 = vmatmul.mubr.bf16.vlgmr.msra.gmra.mrb[4].mxu1 %v11122_v47  ;;  %v957_v47 = vld [vmem:[%s15135_s1 + $0x1c90] sm:$0xff] }
 0x1ee   :  { %7760 = vmatpush1.bf16.msra.mxu0 %v10353_v41  ;;  %7975 = vmatpush1.bf16.msra.mxu1 %v10355_v42  ;;  %v942_v41 = vld [vmem:[%s15135_s1 + $0x1c18] sm:$0xff] }
 0x1ef   :  { %7761 = vmatprep.subr.bf16.mxu0 %v10370_v43  ;;  %7976 = vmatprep.subr.bf16.mxu1 %v10372_v44  ;;  %v950_v42 = vld [vmem:[%s15135_s1 + $0x1c58] sm:$0xff]  ;;  %v10465_v43 = vcombine.low %v925_v24, %v933_v25  ;;  %v10467_v44 = vcombine.low %v926_v28, %v934_v29  ;;  %v1037_v24 = vld [vmem:[%s15135_s1 + $0x1f10] sm:$0xff] }
 0x1f0   :  { %7791 = vmatprep.mubr.bf16.mxu0 %v11123_v56  ;;  %8006 = vmatprep.mubr.bf16.mxu1 %v11123_v56  ;;  %v10484_v46 = vcombine.high %v942_v41, %v950_v42  ;;  %v981_v56 = vld [vmem:[%s15135_s1 + $0x1d50] sm:$0xff]  ;;  %v1038_v28 = vld [vmem:[%s15135_s1 + $0x1f18] sm:$0xff] }
 0x1f1   :  { %v1045_v25 = vld [vmem:[%s15135_s1 + $0x1f50] sm:$0xff]  ;;  %v1046_v29 = vld [vmem:[%s15135_s1 + $0x1f58] sm:$0xff] }
 0x1f2   :  { %7762 = vmatpush1.bf16.msra.mxu0 %v10369_v50  ;;  %7977 = vmatpush1.bf16.msra.mxu1 %v10371_v51  ;;  %v966_v50 = vld [vmem:[%s15135_s1 + $0x1cd8] sm:$0xff]  ;;  %v10481_v51 = vcombine.low %v941_v39, %v949_v40  ;;  %v1053_v39 = vld [vmem:[%s15135_s1 + $0x1f90] sm:$0xff] }
 0x1f3   :  { %7763 = vmatprep.subr.bf16.mxu0 %v10386_v52  ;;  %7978 = vmatprep.subr.bf16.mxu1 %v10388_v53  ;;  %v10483_v52 = vcombine.low %v942_v41, %v950_v42  ;;  %v10498_v53 = vcombine.high %v957_v47, %v965_v48  ;;  %v10500_v54 = vcombine.high %v958_v49, %v966_v50  ;;  %v1061_v40 = vld [vmem:[%s15135_s1 + $0x1fd0] sm:$0xff]  ;;  %v1054_v41 = vld [vmem:[%s15135_s1 + $0x1f98] sm:$0xff] }
 0x1f4   :  { %v1062_v42 = vld [vmem:[%s15135_s1 + $0x1fd8] sm:$0xff] }
 0x1f6   :  { %7764 = vmatpush1.bf16.msra.mxu0 %v10385_v59  ;;  %7979 = vmatpush1.bf16.msra.mxu1 %v10387_v60  ;;  %v10497_v59 = vcombine.low %v957_v47, %v965_v48  ;;  %v10499_v60 = vcombine.low %v958_v49, %v966_v50  ;;  %v1069_v47 = vld [vmem:[%s15135_s1 + $0x2010] sm:$0xff]  ;;  %v1070_v49 = vld [vmem:[%s15135_s1 + $0x2018] sm:$0xff] }
 0x1f7   :  { %7765 = vmatprep.subr.bf16.mxu0 %v10402_v61  ;;  %7980 = vmatprep.subr.bf16.mxu1 %v10404_v62  ;;  %v10514_v61 = vcombine.high %v973_v55, %v981_v56  ;;  %v10516_v62 = vcombine.high %v974_v57, %v982_v58  ;;  %v1077_v48 = vld [vmem:[%s15135_s1 + $0x2050] sm:$0xff]  ;;  %v1078_v50 = vld [vmem:[%s15135_s1 + $0x2058] sm:$0xff] }
 0x1fa   :  { %7766 = vmatpush1.bf16.msra.mxu0 %v10401_v3  ;;  %7981 = vmatpush1.bf16.msra.mxu1 %v10403_v4  ;;  %v10513_v3 = vcombine.low %v973_v55, %v981_v56  ;;  %v10515_v4 = vcombine.low %v974_v57, %v982_v58  ;;  %v1085_v55 = vld [vmem:[%s15135_s1 + $0x2090] sm:$0xff]  ;;  %v1086_v57 = vld [vmem:[%s15135_s1 + $0x2098] sm:$0xff] }
 0x1fb   :  { %7767 = vmatprep.subr.bf16.mxu0 %v10418_v5  ;;  %7982 = vmatprep.subr.bf16.mxu1 %v10420_v6  ;;  %v10530_v5 = vcombine.high %v989_v63, %v997_v0  ;;  %v10532_v6 = vcombine.high %v990_v1, %v998_v2  ;;  %v1093_v56 = vld [vmem:[%s15135_s1 + $0x20d0] sm:$0xff]  ;;  %v1094_v58 = vld [vmem:[%s15135_s1 + $0x20d8] sm:$0xff] }
 0x1fe   :  { %7768 = vmatpush1.bf16.msra.mxu0 %v10417_v11  ;;  %7983 = vmatpush1.bf16.msra.mxu1 %v10419_v12  ;;  %v10529_v11 = vcombine.low %v989_v63, %v997_v0  ;;  %v10531_v12 = vcombine.low %v990_v1, %v998_v2  ;;  %v1101_v63 = vld [vmem:[%s15135_s1 + $0x2110] sm:$0xff]  ;;  %v11124_v1 = vld [vmem:[%s15136_s0 + $0x18] ss:$40 sps:$4 sm:$0xff]  }
 0x1ff   :  { %7769 = vmatprep.subr.bf16.mxu0 %v10434_v13  ;;  %7984 = vmatprep.subr.bf16.mxu1 %v10436_v14  ;;  %v10546_v13 = vcombine.high %v1005_v7, %v1013_v8  ;;  %v10548_v14 = vcombine.high %v1006_v9, %v1014_v10  ;;  %v1109_v0 = vld [vmem:[%s15135_s1 + $0x2150] sm:$0xff]  ;;  %v1102_v2 = vld [vmem:[%s15135_s1 + $0x2118] sm:$0xff] }
 0x200   :  { %v12798_v22 = vpop.f32.mrb[0].mxu0  ;;  %v12806_v26 = vpop.f32.mrb[0].mxu1 }
 0x201   :  { %v12808_v27 = vpop.f32.mrb[1].mxu0  ;;  %v12816_v30 = vpop.f32.mrb[1].mxu1 }
 0x202   :  { %v12818_v31 = vpop.f32.mrb[2].mxu0  ;;  %7770 = vmatpush1.bf16.msra.mxu0 %v10433_v19  ;;  %v12820_v33 = vpop.f32.mrb[2].mxu1  ;;  %7985 = vmatpush1.bf16.msra.mxu1 %v10435_v20  ;;  %v10545_v19 = vcombine.low %v1005_v7, %v1013_v8  ;;  %v10547_v20 = vcombine.low %v1006_v9, %v1014_v10  ;;  %v1117_v8 = vld [vmem:[%s15135_s1 + $0x2190] sm:$0xff]  ;;  %v11125_v10 = vld [vmem:[%s15136_s0 + $0x24] ss:$40 sps:$4 sm:$0xff]  }
 0x203   :  { %v12822_v34 = vpop.f32.mrb[3].mxu0  ;;  %7771 = vmatprep.subr.bf16.mxu0 %v10450_v21  ;;  %v12824_v37 = vpop.f32.mrb[3].mxu1  ;;  %7986 = vmatprep.subr.bf16.mxu1 %v10452_v23  ;;  %v10562_v21 = vcombine.high %v1021_v15, %v1029_v16  ;;  %v10564_v23 = vcombine.high %v1022_v17, %v1030_v18  ;;  %v1125_v9 = vld [vmem:[%s15135_s1 + $0x21d0] sm:$0xff] }
 0x206   :  { %7772 = vmatpush1.bf16.msra.mxu0 %v10449_v32  ;;  %7987 = vmatpush1.bf16.msra.mxu1 %v10451_v35  ;;  %v10561_v32 = vcombine.low %v1021_v15, %v1029_v16  ;;  %v10563_v35 = vcombine.low %v1022_v17, %v1030_v18  ;;  %v10658_v15 = vcombine.high %v1117_v8, %v1125_v9  ;;  %v1133_v17 = vld [vmem:[%s15135_s1 + $0x2210] sm:$0xff] }
 0x207   :  { %7773 = vmatprep.subr.bf16.mxu0 %v10466_v36  ;;  %7988 = vmatprep.subr.bf16.mxu1 %v10468_v38  ;;  %v10578_v36 = vcombine.high %v1037_v24, %v1045_v25  ;;  %v10580_v38 = vcombine.high %v1038_v28, %v1046_v29  ;;  %v1141_v18 = vld [vmem:[%s15135_s1 + $0x2250] sm:$0xff] }
 0x20a   :  { %7774 = vmatpush1.bf16.msra.mxu0 %v10465_v43  ;;  %7989 = vmatpush1.bf16.msra.mxu1 %v10467_v44  ;;  %v10577_v43 = vcombine.low %v1037_v24, %v1045_v25  ;;  %v10579_v44 = vcombine.low %v1038_v28, %v1046_v29  ;;  %v10674_v24 = vcombine.high %v1133_v17, %v1141_v18  ;;  %v1149_v28 = vld [vmem:[%s15135_s1 + $0x2290] sm:$0xff] }
 0x20b   :  { %7775 = vmatprep.subr.bf16.mxu0 %v10482_v45  ;;  %7990 = vmatprep.subr.bf16.mxu1 %v10484_v46  ;;  %v10594_v45 = vcombine.high %v1053_v39, %v1061_v40  ;;  %v10596_v46 = vcombine.high %v1054_v41, %v1062_v42  ;;  %v1157_v29 = vld [vmem:[%s15135_s1 + $0x22d0] sm:$0xff] }
 0x20e   :  { %7776 = vmatpush1.bf16.msra.mxu0 %v10481_v51  ;;  %7991 = vmatpush1.bf16.msra.mxu1 %v10483_v52  ;;  %v10593_v51 = vcombine.low %v1053_v39, %v1061_v40  ;;  %v10595_v52 = vcombine.low %v1054_v41, %v1062_v42  ;;  %v10690_v39 = vcombine.high %v1149_v28, %v1157_v29  ;;  %v1165_v41 = vld [vmem:[%s15135_s1 + $0x2310] sm:$0xff] }
 0x20f   :  { %7777 = vmatprep.subr.bf16.mxu0 %v10498_v53  ;;  %7992 = vmatprep.subr.bf16.mxu1 %v10500_v54  ;;  %v10610_v53 = vcombine.high %v1069_v47, %v1077_v48  ;;  %v10612_v54 = vcombine.high %v1070_v49, %v1078_v50  ;;  %v1173_v42 = vld [vmem:[%s15135_s1 + $0x2350] sm:$0xff] }
 0x212   :  { %7778 = vmatpush1.bf16.msra.mxu0 %v10497_v59  ;;  %7993 = vmatpush1.bf16.msra.mxu1 %v10499_v60  ;;  %v10609_v59 = vcombine.low %v1069_v47, %v1077_v48  ;;  %v10611_v60 = vcombine.low %v1070_v49, %v1078_v50  ;;  %v10706_v47 = vcombine.high %v1165_v41, %v1173_v42  ;;  %v1181_v49 = vld [vmem:[%s15135_s1 + $0x2390] sm:$0xff] }
 0x213   :  { %7779 = vmatprep.subr.bf16.mxu0 %v10514_v61  ;;  %7994 = vmatprep.subr.bf16.mxu1 %v10516_v62  ;;  %v10626_v61 = vcombine.high %v1085_v55, %v1093_v56  ;;  %v10628_v62 = vcombine.high %v1086_v57, %v1094_v58  ;;  %v1189_v50 = vld [vmem:[%s15135_s1 + $0x23d0] sm:$0xff] }
 0x216   :  { %7780 = vmatpush1.bf16.msra.mxu0 %v10513_v3  ;;  %7995 = vmatpush1.bf16.msra.mxu1 %v10515_v4  ;;  %v1110_v3 = vld [vmem:[%s15135_s1 + $0x2158] sm:$0xff]  ;;  %v10625_v4 = vcombine.low %v1085_v55, %v1093_v56  ;;  %v10722_v55 = vcombine.high %v1181_v49, %v1189_v50 }
 0x217   :  { %7781 = vmatprep.subr.bf16.mxu0 %v10530_v5  ;;  %7996 = vmatprep.subr.bf16.mxu1 %v10532_v6  ;;  %v10627_v5 = vcombine.low %v1086_v57, %v1094_v58  ;;  %v10642_v6 = vcombine.high %v1101_v63, %v1109_v0  ;;  %v10644_v7 = vcombine.high %v1102_v2, %v1110_v3  ;;  %v1197_v57 = vld [vmem:[%s15135_s1 + $0x2410] sm:$0xff] }
 0x218   :  { %v1205_v58 = vld [vmem:[%s15135_s1 + $0x2450] sm:$0xff] }
 0x21a   :  { %7782 = vmatpush1.bf16.msra.mxu0 %v10529_v11  ;;  %7997 = vmatpush1.bf16.msra.mxu1 %v10531_v12  ;;  %v1118_v11 = vld [vmem:[%s15135_s1 + $0x2198] sm:$0xff] }
 0x21b   :  { %7783 = vmatprep.subr.bf16.mxu0 %v10546_v13  ;;  %7998 = vmatprep.subr.bf16.mxu1 %v10548_v14  ;;  %v1126_v12 = vld [vmem:[%s15135_s1 + $0x21d8] sm:$0xff]  ;;  %v10641_v13 = vcombine.low %v1101_v63, %v1109_v0  ;;  %v10643_v14 = vcombine.low %v1102_v2, %v1110_v3  ;;  %v10738_v63 = vcombine.high %v1197_v57, %v1205_v58  ;;  %v1221_v2 = vld [vmem:[%s15135_s1 + $0x24d0] sm:$0xff] }
 0x21c   :  { %v10660_v16 = vcombine.high %v1118_v11, %v1126_v12  ;;  %v1214_v3 = vld [vmem:[%s15135_s1 + $0x2498] sm:$0xff] }
 0x21e   :  { %7784 = vmatpush1.bf16.msra.mxu0 %v10545_v19  ;;  %7999 = vmatpush1.bf16.msra.mxu1 %v10547_v20  ;;  %v1134_v19 = vld [vmem:[%s15135_s1 + $0x2218] sm:$0xff] }
 0x21f   :  { %7785 = vmatprep.subr.bf16.mxu0 %v10562_v21  ;;  %8000 = vmatprep.subr.bf16.mxu1 %v10564_v23  ;;  %v1142_v20 = vld [vmem:[%s15135_s1 + $0x2258] sm:$0xff]  ;;  %v10657_v21 = vcombine.low %v1117_v8, %v1125_v9  ;;  %v10659_v23 = vcombine.low %v1118_v11, %v1126_v12  ;;  %v47_v9 = vld [vmem:[%s15135_s1 + $0x20] sm:$0xff]  ;;  %v48_v11 = vld [vmem:[%s15135_s1 + $0x28] sm:$0xff] }
 0x220   :  { %v10676_v25 = vcombine.high %v1134_v19, %v1142_v20  ;;  %v56_v12 = vld [vmem:[%s15135_s1 + $0x68] sm:$0xff] }
 0x222   :  { %7786 = vmatpush1.bf16.msra.mxu0 %v10561_v32  ;;  %8001 = vmatpush1.bf16.msra.mxu1 %v10563_v35  ;;  %v1150_v32 = vld [vmem:[%s15135_s1 + $0x2298] sm:$0xff] }
 0x223   :  { %7787 = vmatprep.subr.bf16.mxu0 %v10578_v36  ;;  %8002 = vmatprep.subr.bf16.mxu1 %v10580_v38  ;;  %v1158_v35 = vld [vmem:[%s15135_s1 + $0x22d8] sm:$0xff]  ;;  %v10673_v36 = vcombine.low %v1133_v17, %v1141_v18  ;;  %v10675_v38 = vcombine.low %v1134_v19, %v1142_v20  ;;  %v63_v17 = vld [vmem:[%s15135_s1 + $0xa0] sm:$0xff]  ;;  %v64_v19 = vld [vmem:[%s15135_s1 + $0xa8] sm:$0xff] }
 0x224   :  { %v10692_v40 = vcombine.high %v1150_v32, %v1158_v35  ;;  %v71_v18 = vld [vmem:[%s15135_s1 + $0xe0] sm:$0xff]  ;;  %v72_v20 = vld [vmem:[%s15135_s1 + $0xe8] sm:$0xff] }
 0x226   :  { %7788 = vmatpush1.bf16.msra.mxu0 %v10577_v43  ;;  %8003 = vmatpush1.bf16.msra.mxu1 %v10579_v44  ;;  %v1166_v43 = vld [vmem:[%s15135_s1 + $0x2318] sm:$0xff] }
 0x227   :  { %7789 = vmatprep.subr.bf16.mxu0 %v10594_v45  ;;  %8004 = vmatprep.subr.bf16.mxu1 %v10596_v46  ;;  %v1174_v44 = vld [vmem:[%s15135_s1 + $0x2358] sm:$0xff]  ;;  %v10689_v45 = vcombine.low %v1149_v28, %v1157_v29  ;;  %v10691_v46 = vcombine.low %v1150_v32, %v1158_v35  ;;  %v79_v28 = vld [vmem:[%s15135_s1 + $0x120] sm:$0xff]  ;;  %v80_v35 = vld [vmem:[%s15135_s1 + $0x128] sm:$0xff] }
 0x228   :  { %v10708_v48 = vcombine.high %v1166_v43, %v1174_v44  ;;  %v87_v29 = vld [vmem:[%s15135_s1 + $0x160] sm:$0xff] }
 0x229   :  { %v11126_v32 = vld [vmem:[%s15136_s0 + $0x20] ss:$40 sps:$4 sm:$0xff]  }
 0x22a   :  { %7790 = vmatpush1.bf16.msra.mxu0 %v10593_v51  ;;  %8005 = vmatpush1.bf16.msra.mxu1 %v10595_v52  ;;  %v1182_v51 = vld [vmem:[%s15135_s1 + $0x2398] sm:$0xff] }
 0x22b   :  { %7802 = vmatprep.subr.bf16.mxu0 %v10610_v53  ;;  %8017 = vmatprep.subr.bf16.mxu1 %v10612_v54  ;;  %v1190_v52 = vld [vmem:[%s15135_s1 + $0x23d8] sm:$0xff]  ;;  %v10705_v53 = vcombine.low %v1165_v41, %v1173_v42  ;;  %v10707_v54 = vcombine.low %v1166_v43, %v1174_v44  ;;  %v95_v42 = vld [vmem:[%s15135_s1 + $0x1a0] sm:$0xff] }
 0x22c   :  { %v10724_v56 = vcombine.high %v1182_v51, %v1190_v52  ;;  %v103_v43 = vld [vmem:[%s15135_s1 + $0x1e0] sm:$0xff] }
 0x22d   :  { %7792 = vmatmul.mubr.bf16.vlgmr.msra.gmra.mrb[4].mxu0 %v11124_v1  ;;  %8007 = vmatmul.mubr.bf16.vlgmr.msra.gmra.mrb[4].mxu1 %v11124_v1  ;;  %v1213_v1 = vld [vmem:[%s15135_s1 + $0x2490] sm:$0xff]  ;;  %v11127_v44 = vld [vmem:[%s15136_s0 + $0x4] ss:$40 sps:$4 sm:$0xff]  }
 0x22e   :  { %7803 = vmatpush1.bf16.msra.mxu0 %v10609_v59  ;;  %8018 = vmatpush1.bf16.msra.mxu1 %v10611_v60  ;;  %v1198_v59 = vld [vmem:[%s15135_s1 + $0x2418] sm:$0xff] }
 0x22f   :  { %7804 = vmatprep.subr.bf16.mxu0 %v10626_v61  ;;  %8019 = vmatprep.subr.bf16.mxu1 %v10628_v62  ;;  %v1206_v60 = vld [vmem:[%s15135_s1 + $0x2458] sm:$0xff]  ;;  %v10721_v61 = vcombine.low %v1181_v49, %v1189_v50  ;;  %v10723_v62 = vcombine.low %v1182_v51, %v1190_v52  ;;  %v9638_v49 = vcombine.high %v95_v42, %v103_v43  ;;  %v111_v51 = vld [vmem:[%s15135_s1 + $0x220] sm:$0xff] }
 0x230   :  { %10767 = vmatprep.mubr.msk.bf16.mxu0 %vm7196_vm0, %v11125_v10  ;;  %10768 = vmatprep.mubr.msk.bf16.mxu1 %vm7196_vm0, %v11125_v10  ;;  %v10740_v0 = vcombine.high %v1198_v59, %v1206_v60  ;;  %v55_v10 = vld [vmem:[%s15135_s1 + $0x60] sm:$0xff] }
 0x231   :  { %v119_v52 = vld [vmem:[%s15135_s1 + $0x260] sm:$0xff] }
 0x232   :  { %7805 = vmatpush1.bf16.msra.mxu0 %v10625_v4  ;;  %8020 = vmatpush1.bf16.msra.mxu1 %v10627_v5  ;;  %v1222_v4 = vld [vmem:[%s15135_s1 + $0x24d8] sm:$0xff]  ;;  %v10737_v5 = vcombine.low %v1197_v57, %v1205_v58  ;;  %v9654_v57 = vcombine.high %v111_v51, %v119_v52 }
 0x233   :  { %7806 = vmatprep.subr.bf16.mxu0 %v10642_v6  ;;  %8021 = vmatprep.subr.bf16.mxu1 %v10644_v7  ;;  %v10739_v6 = vcombine.low %v1198_v59, %v1206_v60  ;;  %v10754_v7 = vcombine.high %v1213_v1, %v1221_v2  ;;  %v10756_v8 = vcombine.high %v1214_v3, %v1222_v4  ;;  %v127_v59 = vld [vmem:[%s15135_s1 + $0x2a0] sm:$0xff] }
 0x234   :  { %v135_v60 = vld [vmem:[%s15135_s1 + $0x2e0] sm:$0xff] }
 0x236   :  { %7807 = vmatpush1.bf16.msra.mxu0 %v10641_v13  ;;  %8022 = vmatpush1.bf16.msra.mxu1 %v10643_v14  ;;  %v10753_v13 = vcombine.low %v1213_v1, %v1221_v2  ;;  %v10755_v14 = vcombine.low %v1214_v3, %v1222_v4  ;;  %v9670_v1 = vcombine.high %v127_v59, %v135_v60  ;;  %v143_v3 = vld [vmem:[%s15135_s1 + $0x320] sm:$0xff] }
 0x237   :  { %7808 = vmatprep.subr.bf16.mxu0 %v10658_v15  ;;  %8023 = vmatprep.subr.bf16.mxu1 %v10660_v16  ;;  %v9590_v15 = vcombine.high %v47_v9, %v55_v10  ;;  %v9592_v16 = vcombine.high %v48_v11, %v56_v12  ;;  %v151_v4 = vld [vmem:[%s15135_s1 + $0x360] sm:$0xff] }
 0x23a   :  { %7809 = vmatpush1.bf16.msra.mxu0 %v10657_v21  ;;  %8024 = vmatpush1.bf16.msra.mxu1 %v10659_v23  ;;  %v9589_v21 = vcombine.low %v47_v9, %v55_v10  ;;  %v9591_v23 = vcombine.low %v48_v11, %v56_v12  ;;  %v9686_v9 = vcombine.high %v143_v3, %v151_v4  ;;  %v159_v11 = vld [vmem:[%s15135_s1 + $0x3a0] sm:$0xff] }
 0x23b   :  { %7810 = vmatprep.subr.bf16.mxu0 %v10674_v24  ;;  %8025 = vmatprep.subr.bf16.mxu1 %v10676_v25  ;;  %v9606_v24 = vcombine.high %v63_v17, %v71_v18  ;;  %v9608_v25 = vcombine.high %v64_v19, %v72_v20  ;;  %v167_v12 = vld [vmem:[%s15135_s1 + $0x3e0] sm:$0xff] }
 0x23e   :  { %7811 = vmatpush1.bf16.msra.mxu0 %v10673_v36  ;;  %8026 = vmatpush1.bf16.msra.mxu1 %v10675_v38  ;;  %v88_v36 = vld [vmem:[%s15135_s1 + $0x168] sm:$0xff]  ;;  %v9605_v38 = vcombine.low %v63_v17, %v71_v18  ;;  %v9702_v17 = vcombine.high %v159_v11, %v167_v12 }
 0x23f   :  { %7812 = vmatprep.subr.bf16.mxu0 %v10690_v39  ;;  %8027 = vmatprep.subr.bf16.mxu1 %v10692_v40  ;;  %v9607_v39 = vcombine.low %v64_v19, %v72_v20  ;;  %v9622_v40 = vcombine.high %v79_v28, %v87_v29  ;;  %v9624_v41 = vcombine.high %v80_v35, %v88_v36  ;;  %v175_v19 = vld [vmem:[%s15135_s1 + $0x420] sm:$0xff] }
 0x240   :  { %v183_v20 = vld [vmem:[%s15135_s1 + $0x460] sm:$0xff] }
 0x242   :  { %7813 = vmatpush1.bf16.msra.mxu0 %v10689_v45  ;;  %8028 = vmatpush1.bf16.msra.mxu1 %v10691_v46  ;;  %v96_v45 = vld [vmem:[%s15135_s1 + $0x1a8] sm:$0xff] }
 0x243   :  { %7814 = vmatprep.subr.bf16.mxu0 %v10706_v47  ;;  %8029 = vmatprep.subr.bf16.mxu1 %v10708_v48  ;;  %v104_v46 = vld [vmem:[%s15135_s1 + $0x1e8] sm:$0xff]  ;;  %v9621_v47 = vcombine.low %v79_v28, %v87_v29  ;;  %v9623_v48 = vcombine.low %v80_v35, %v88_v36  ;;  %v9718_v28 = vcombine.high %v175_v19, %v183_v20  ;;  %v199_v35 = vld [vmem:[%s15135_s1 + $0x4e0] sm:$0xff] }
 0x244   :  { %v9640_v50 = vcombine.high %v96_v45, %v104_v46  ;;  %v192_v36 = vld [vmem:[%s15135_s1 + $0x4a8] sm:$0xff] }
 0x246   :  { %7815 = vmatpush1.bf16.msra.mxu0 %v10705_v53  ;;  %8030 = vmatpush1.bf16.msra.mxu1 %v10707_v54  ;;  %v112_v53 = vld [vmem:[%s15135_s1 + $0x228] sm:$0xff] }
 0x247   :  { %7816 = vmatprep.subr.bf16.mxu0 %v10722_v55  ;;  %8031 = vmatprep.subr.bf16.mxu1 %v10724_v56  ;;  %v120_v54 = vld [vmem:[%s15135_s1 + $0x268] sm:$0xff]  ;;  %v9637_v55 = vcombine.low %v95_v42, %v103_v43  ;;  %v9639_v56 = vcombine.low %v96_v45, %v104_v46  ;;  %v207_v43 = vld [vmem:[%s15135_s1 + $0x520] sm:$0xff] }
 0x248   :  { %v9656_v58 = vcombine.high %v112_v53, %v120_v54  ;;  %v208_v45 = vld [vmem:[%s15135_s1 + $0x528] sm:$0xff] }
 0x249   :  { %v216_v46 = vld [vmem:[%s15135_s1 + $0x568] sm:$0xff] }
 0x24a   :  { %7817 = vmatpush1.bf16.msra.mxu0 %v10721_v61  ;;  %8032 = vmatpush1.bf16.msra.mxu1 %v10723_v62  ;;  %v128_v61 = vld [vmem:[%s15135_s1 + $0x2a8] sm:$0xff] }
 0x24b   :  { %7818 = vmatprep.subr.bf16.mxu0 %v10738_v63  ;;  %8033 = vmatprep.subr.bf16.mxu1 %v10740_v0  ;;  %v136_v62 = vld [vmem:[%s15135_s1 + $0x2e8] sm:$0xff]  ;;  %v9653_v63 = vcombine.low %v111_v51, %v119_v52  ;;  %v9655_v0 = vcombine.low %v112_v53, %v120_v54  ;;  %v223_v51 = vld [vmem:[%s15135_s1 + $0x5a0] sm:$0xff] }
 0x24c   :  { %v9672_v2 = vcombine.high %v128_v61, %v136_v62  ;;  %v231_v52 = vld [vmem:[%s15135_s1 + $0x5e0] sm:$0xff]  ;;  %v224_v53 = vld [vmem:[%s15135_s1 + $0x5a8] sm:$0xff] }
 0x24d   :  { %v232_v54 = vld [vmem:[%s15135_s1 + $0x5e8] sm:$0xff] }
 0x24e   :  { %7819 = vmatpush1.bf16.msra.mxu0 %v10737_v5  ;;  %8034 = vmatpush1.bf16.msra.mxu1 %v10739_v6  ;;  %v144_v5 = vld [vmem:[%s15135_s1 + $0x328] sm:$0xff] }
 0x24f   :  { %7820 = vmatprep.subr.bf16.mxu0 %v10754_v7  ;;  %8035 = vmatprep.subr.bf16.mxu1 %v10756_v8  ;;  %v152_v6 = vld [vmem:[%s15135_s1 + $0x368] sm:$0xff]  ;;  %v9669_v7 = vcombine.low %v127_v59, %v135_v60  ;;  %v9671_v8 = vcombine.low %v128_v61, %v136_v62  ;;  %v239_v59 = vld [vmem:[%s15135_s1 + $0x620] sm:$0xff] }
 0x250   :  { %v9688_v10 = vcombine.high %v144_v5, %v152_v6  ;;  %v247_v60 = vld [vmem:[%s15135_s1 + $0x660] sm:$0xff]  ;;  %v240_v61 = vld [vmem:[%s15135_s1 + $0x628] sm:$0xff] }
 0x251   :  { %v248_v62 = vld [vmem:[%s15135_s1 + $0x668] sm:$0xff] }
 0x252   :  { %7821 = vmatpush1.bf16.msra.mxu0 %v10753_v13  ;;  %8036 = vmatpush1.bf16.msra.mxu1 %v10755_v14  ;;  %v160_v13 = vld [vmem:[%s15135_s1 + $0x3a8] sm:$0xff] }
 0x253   :  { %8060 = vmatprep.subr.bf16.mxu0 %v9590_v15  ;;  %8275 = vmatprep.subr.bf16.mxu1 %v9592_v16  ;;  %v168_v14 = vld [vmem:[%s15135_s1 + $0x3e8] sm:$0xff]  ;;  %v9685_v15 = vcombine.low %v143_v3, %v151_v4  ;;  %v9687_v16 = vcombine.low %v144_v5, %v152_v6  ;;  %v255_v3 = vld [vmem:[%s15135_s1 + $0x6a0] sm:$0xff] }
 0x254   :  { %v9704_v18 = vcombine.high %v160_v13, %v168_v14  ;;  %v263_v4 = vld [vmem:[%s15135_s1 + $0x6e0] sm:$0xff]  ;;  %v256_v5 = vld [vmem:[%s15135_s1 + $0x6a8] sm:$0xff] }
 0x255   :  { %7835 = vmatmul.mubr.bf16.vlgmr.msra.gmra.mrb[4].mxu0 %v11126_v32  ;;  %8050 = vmatmul.mubr.bf16.vlgmr.msra.gmra.mrb[4].mxu1 %v11126_v32  ;;  %v191_v32 = vld [vmem:[%s15135_s1 + $0x4a0] sm:$0xff]  ;;  %v264_v6 = vld [vmem:[%s15135_s1 + $0x6e8] sm:$0xff] }
 0x256   :  { %8061 = vmatpush1.bf16.msra.mxu0 %v9589_v21  ;;  %8276 = vmatpush1.bf16.msra.mxu1 %v9591_v23  ;;  %v176_v21 = vld [vmem:[%s15135_s1 + $0x428] sm:$0xff] }
 0x257   :  { %8062 = vmatprep.subr.bf16.mxu0 %v9606_v24  ;;  %8277 = vmatprep.subr.bf16.mxu1 %v9608_v25  ;;  %v184_v23 = vld [vmem:[%s15135_s1 + $0x468] sm:$0xff]  ;;  %v9701_v24 = vcombine.low %v159_v11, %v167_v12  ;;  %v9703_v25 = vcombine.low %v160_v13, %v168_v14  ;;  %v271_v11 = vld [vmem:[%s15135_s1 + $0x720] sm:$0xff] }
 0x258   :  { %8092 = vmatprep.mubr.bf16.mxu0 %v11127_v44  ;;  %8307 = vmatprep.mubr.bf16.mxu1 %v11127_v44  ;;  %v9720_v29 = vcombine.high %v176_v21, %v184_v23  ;;  %v215_v44 = vld [vmem:[%s15135_s1 + $0x560] sm:$0xff]  ;;  %v272_v13 = vld [vmem:[%s15135_s1 + $0x728] sm:$0xff] }
 0x259   :  { %v279_v12 = vld [vmem:[%s15135_s1 + $0x760] sm:$0xff]  ;;  %v280_v14 = vld [vmem:[%s15135_s1 + $0x768] sm:$0xff] }
 0x25a   :  { %8063 = vmatpush1.bf16.msra.mxu0 %v9605_v38  ;;  %8278 = vmatpush1.bf16.msra.mxu1 %v9607_v39  ;;  %v200_v38 = vld [vmem:[%s15135_s1 + $0x4e8] sm:$0xff]  ;;  %v9717_v39 = vcombine.low %v175_v19, %v183_v20  ;;  %v287_v19 = vld [vmem:[%s15135_s1 + $0x7a0] sm:$0xff] }
 0x25b   :  { %8064 = vmatprep.subr.bf16.mxu0 %v9622_v40  ;;  %8279 = vmatprep.subr.bf16.mxu1 %v9624_v41  ;;  %v9719_v40 = vcombine.low %v176_v21, %v184_v23  ;;  %v9734_v41 = vcombine.high %v191_v32, %v199_v35  ;;  %v9736_v42 = vcombine.high %v192_v36, %v200_v38  ;;  %v295_v20 = vld [vmem:[%s15135_s1 + $0x7e0] sm:$0xff]  ;;  %v288_v21 = vld [vmem:[%s15135_s1 + $0x7a8] sm:$0xff] }
 0x25c   :  { %v296_v23 = vld [vmem:[%s15135_s1 + $0x7e8] sm:$0xff] }
 0x25e   :  { %8065 = vmatpush1.bf16.msra.mxu0 %v9621_v47  ;;  %8280 = vmatpush1.bf16.msra.mxu1 %v9623_v48  ;;  %v9733_v47 = vcombine.low %v191_v32, %v199_v35  ;;  %v9735_v48 = vcombine.low %v192_v36, %v200_v38  ;;  %v303_v32 = vld [vmem:[%s15135_s1 + $0x820] sm:$0xff]  ;;  %v304_v36 = vld [vmem:[%s15135_s1 + $0x828] sm:$0xff] }
 0x25f   :  { %8066 = vmatprep.subr.bf16.mxu0 %v9638_v49  ;;  %8281 = vmatprep.subr.bf16.mxu1 %v9640_v50  ;;  %v9750_v49 = vcombine.high %v207_v43, %v215_v44  ;;  %v9752_v50 = vcombine.high %v208_v45, %v216_v46  ;;  %v311_v35 = vld [vmem:[%s15135_s1 + $0x860] sm:$0xff]  ;;  %v312_v38 = vld [vmem:[%s15135_s1 + $0x868] sm:$0xff] }
 0x262   :  { %8067 = vmatpush1.bf16.msra.mxu0 %v9637_v55  ;;  %8282 = vmatpush1.bf16.msra.mxu1 %v9639_v56  ;;  %v9749_v55 = vcombine.low %v207_v43, %v215_v44  ;;  %v9751_v56 = vcombine.low %v208_v45, %v216_v46  ;;  %v319_v43 = vld [vmem:[%s15135_s1 + $0x8a0] sm:$0xff]  ;;  %v320_v45 = vld [vmem:[%s15135_s1 + $0x8a8] sm:$0xff] }
 0x263   :  { %8068 = vmatprep.subr.bf16.mxu0 %v9654_v57  ;;  %8283 = vmatprep.subr.bf16.mxu1 %v9656_v58  ;;  %v9766_v57 = vcombine.high %v223_v51, %v231_v52  ;;  %v9768_v58 = vcombine.high %v224_v53, %v232_v54  ;;  %v327_v44 = vld [vmem:[%s15135_s1 + $0x8e0] sm:$0xff]  ;;  %v328_v46 = vld [vmem:[%s15135_s1 + $0x8e8] sm:$0xff] }
 0x266   :  { %8069 = vmatpush1.bf16.msra.mxu0 %v9653_v63  ;;  %8284 = vmatpush1.bf16.msra.mxu1 %v9655_v0  ;;  %v9765_v63 = vcombine.low %v223_v51, %v231_v52  ;;  %v9767_v0 = vcombine.low %v224_v53, %v232_v54  ;;  %v335_v51 = vld [vmem:[%s15135_s1 + $0x920] sm:$0xff]  ;;  %v336_v54 = vld [vmem:[%s15135_s1 + $0x928] sm:$0xff] }
 0x267   :  { %8070 = vmatprep.subr.bf16.mxu0 %v9670_v1  ;;  %8285 = vmatprep.subr.bf16.mxu1 %v9672_v2  ;;  %v9782_v1 = vcombine.high %v239_v59, %v247_v60  ;;  %v9784_v2 = vcombine.high %v240_v61, %v248_v62  ;;  %v343_v52 = vld [vmem:[%s15135_s1 + $0x960] sm:$0xff] }
 0x268   :  { %v11128_v53 = vld [vmem:[%s15136_s0] ss:$40 sps:$4 sm:$0xff]  }
 0x26a   :  { %8071 = vmatpush1.bf16.msra.mxu0 %v9669_v7  ;;  %8286 = vmatpush1.bf16.msra.mxu1 %v9671_v8  ;;  %v9781_v7 = vcombine.low %v239_v59, %v247_v60  ;;  %v9783_v8 = vcombine.low %v240_v61, %v248_v62  ;;  %v351_v60 = vld [vmem:[%s15135_s1 + $0x9a0] sm:$0xff]  ;;  %v11129_v62 = vld [vmem:[%s15136_s0 + $0xc] ss:$40 sps:$4 sm:$0xff]  }
 0x26b   :  { %8072 = vmatprep.subr.bf16.mxu0 %v9686_v9  ;;  %8287 = vmatprep.subr.bf16.mxu1 %v9688_v10  ;;  %v9798_v9 = vcombine.high %v255_v3, %v263_v4  ;;  %v9800_v10 = vcombine.high %v256_v5, %v264_v6  ;;  %v359_v61 = vld [vmem:[%s15135_s1 + $0x9e0] sm:$0xff] }
 0x26e   :  { %8073 = vmatpush1.bf16.msra.mxu0 %v9685_v15  ;;  %8288 = vmatpush1.bf16.msra.mxu1 %v9687_v16  ;;  %v9797_v15 = vcombine.low %v255_v3, %v263_v4  ;;  %v9799_v16 = vcombine.low %v256_v5, %v264_v6  ;;  %v9894_v3 = vcombine.high %v351_v60, %v359_v61  ;;  %v367_v5 = vld [vmem:[%s15135_s1 + $0xa20] sm:$0xff] }
 0x26f   :  { %8074 = vmatprep.subr.bf16.mxu0 %v9702_v17  ;;  %8289 = vmatprep.subr.bf16.mxu1 %v9704_v18  ;;  %v9814_v17 = vcombine.high %v271_v11, %v279_v12  ;;  %v9816_v18 = vcombine.high %v272_v13, %v280_v14  ;;  %v375_v6 = vld [vmem:[%s15135_s1 + $0xa60] sm:$0xff] }
 0x272   :  { %8075 = vmatpush1.bf16.msra.mxu0 %v9701_v24  ;;  %8290 = vmatpush1.bf16.msra.mxu1 %v9703_v25  ;;  %v9813_v24 = vcombine.low %v271_v11, %v279_v12  ;;  %v9815_v25 = vcombine.low %v272_v13, %v280_v14  ;;  %v9910_v11 = vcombine.high %v367_v5, %v375_v6  ;;  %v383_v13 = vld [vmem:[%s15135_s1 + $0xaa0] sm:$0xff] }
 0x273   :  { %8076 = vmatprep.subr.bf16.mxu0 %v9718_v28  ;;  %8291 = vmatprep.subr.bf16.mxu1 %v9720_v29  ;;  %v9830_v28 = vcombine.high %v287_v19, %v295_v20  ;;  %v9832_v29 = vcombine.high %v288_v21, %v296_v23  ;;  %v391_v14 = vld [vmem:[%s15135_s1 + $0xae0] sm:$0xff] }
 0x276   :  { %8077 = vmatpush1.bf16.msra.mxu0 %v9717_v39  ;;  %8292 = vmatpush1.bf16.msra.mxu1 %v9719_v40  ;;  %v9829_v39 = vcombine.low %v287_v19, %v295_v20  ;;  %v9831_v40 = vcombine.low %v288_v21, %v296_v23  ;;  %v9926_v19 = vcombine.high %v383_v13, %v391_v14  ;;  %v399_v21 = vld [vmem:[%s15135_s1 + $0xb20] sm:$0xff] }
 0x277   :  { %8078 = vmatprep.subr.bf16.mxu0 %v9734_v41  ;;  %8293 = vmatprep.subr.bf16.mxu1 %v9736_v42  ;;  %v9846_v41 = vcombine.high %v303_v32, %v311_v35  ;;  %v9848_v42 = vcombine.high %v304_v36, %v312_v38  ;;  %v407_v23 = vld [vmem:[%s15135_s1 + $0xb60] sm:$0xff] }
 0x27a   :  { %8079 = vmatpush1.bf16.msra.mxu0 %v9733_v47  ;;  %8294 = vmatpush1.bf16.msra.mxu1 %v9735_v48  ;;  %v9845_v47 = vcombine.low %v303_v32, %v311_v35  ;;  %v9847_v48 = vcombine.low %v304_v36, %v312_v38  ;;  %v9942_v32 = vcombine.high %v399_v21, %v407_v23  ;;  %v415_v36 = vld [vmem:[%s15135_s1 + $0xba0] sm:$0xff] }
 0x27b   :  { %8080 = vmatprep.subr.bf16.mxu0 %v9750_v49  ;;  %8295 = vmatprep.subr.bf16.mxu1 %v9752_v50  ;;  %v9862_v49 = vcombine.high %v319_v43, %v327_v44  ;;  %v9864_v50 = vcombine.high %v320_v45, %v328_v46  ;;  %v423_v38 = vld [vmem:[%s15135_s1 + $0xbe0] sm:$0xff] }
 0x27e   :  { %8081 = vmatpush1.bf16.msra.mxu0 %v9749_v55  ;;  %8296 = vmatpush1.bf16.msra.mxu1 %v9751_v56  ;;  %v344_v55 = vld [vmem:[%s15135_s1 + $0x968] sm:$0xff]  ;;  %v9861_v56 = vcombine.low %v319_v43, %v327_v44  ;;  %v9958_v43 = vcombine.high %v415_v36, %v423_v38 }
 0x27f   :  { %8082 = vmatprep.subr.bf16.mxu0 %v9766_v57  ;;  %8297 = vmatprep.subr.bf16.mxu1 %v9768_v58  ;;  %v9863_v57 = vcombine.low %v320_v45, %v328_v46  ;;  %v9878_v58 = vcombine.high %v335_v51, %v343_v52  ;;  %v9880_v59 = vcombine.high %v336_v54, %v344_v55  ;;  %v431_v45 = vld [vmem:[%s15135_s1 + $0xc20] sm:$0xff] }
 0x280   :  { %v439_v46 = vld [vmem:[%s15135_s1 + $0xc60] sm:$0xff] }
 0x282   :  { %8083 = vmatpush1.bf16.msra.mxu0 %v9765_v63  ;;  %8298 = vmatpush1.bf16.msra.mxu1 %v9767_v0  ;;  %v352_v63 = vld [vmem:[%s15135_s1 + $0x9a8] sm:$0xff] }
 0x283   :  { %8084 = vmatprep.subr.bf16.mxu0 %v9782_v1  ;;  %8299 = vmatprep.subr.bf16.mxu1 %v9784_v2  ;;  %v360_v0 = vld [vmem:[%s15135_s1 + $0x9e8] sm:$0xff]  ;;  %v9877_v1 = vcombine.low %v335_v51, %v343_v52  ;;  %v9879_v2 = vcombine.low %v336_v54, %v344_v55  ;;  %v9974_v51 = vcombine.high %v431_v45, %v439_v46  ;;  %v455_v54 = vld [vmem:[%s15135_s1 + $0xce0] sm:$0xff] }
 0x284   :  { %v9896_v4 = vcombine.high %v352_v63, %v360_v0  ;;  %v448_v55 = vld [vmem:[%s15135_s1 + $0xca8] sm:$0xff] }
 0x286   :  { %8085 = vmatpush1.bf16.msra.mxu0 %v9781_v7  ;;  %8300 = vmatpush1.bf16.msra.mxu1 %v9783_v8  ;;  %v368_v7 = vld [vmem:[%s15135_s1 + $0xa28] sm:$0xff] }
 0x287   :  { %8086 = vmatprep.subr.bf16.mxu0 %v9798_v9  ;;  %8301 = vmatprep.subr.bf16.mxu1 %v9800_v10  ;;  %v376_v8 = vld [vmem:[%s15135_s1 + $0xa68] sm:$0xff]  ;;  %v9893_v9 = vcombine.low %v351_v60, %v359_v61  ;;  %v9895_v10 = vcombine.low %v352_v63, %v360_v0  ;;  %v463_v61 = vld [vmem:[%s15135_s1 + $0xd20] sm:$0xff] }
 0x288   :  { %v9912_v12 = vcombine.high %v368_v7, %v376_v8  ;;  %v464_v63 = vld [vmem:[%s15135_s1 + $0xd28] sm:$0xff] }
 0x289   :  { %v472_v0 = vld [vmem:[%s15135_s1 + $0xd68] sm:$0xff] }
 0x28a   :  { %8087 = vmatpush1.bf16.msra.mxu0 %v9797_v15  ;;  %8302 = vmatpush1.bf16.msra.mxu1 %v9799_v16  ;;  %v384_v15 = vld [vmem:[%s15135_s1 + $0xaa8] sm:$0xff] }
 0x28b   :  { %8088 = vmatprep.subr.bf16.mxu0 %v9814_v17  ;;  %8303 = vmatprep.subr.bf16.mxu1 %v9816_v18  ;;  %v392_v16 = vld [vmem:[%s15135_s1 + $0xae8] sm:$0xff]  ;;  %v9909_v17 = vcombine.low %v367_v5, %v375_v6  ;;  %v9911_v18 = vcombine.low %v368_v7, %v376_v8  ;;  %v479_v5 = vld [vmem:[%s15135_s1 + $0xda0] sm:$0xff] }
 0x28c   :  { %v9928_v20 = vcombine.high %v384_v15, %v392_v16  ;;  %v487_v6 = vld [vmem:[%s15135_s1 + $0xde0] sm:$0xff]  ;;  %v480_v7 = vld [vmem:[%s15135_s1 + $0xda8] sm:$0xff] }
 0x28d   :  { %v488_v8 = vld [vmem:[%s15135_s1 + $0xde8] sm:$0xff] }
 0x28e   :  { %8089 = vmatpush1.bf16.msra.mxu0 %v9813_v24  ;;  %8304 = vmatpush1.bf16.msra.mxu1 %v9815_v25  ;;  %v400_v24 = vld [vmem:[%s15135_s1 + $0xb28] sm:$0xff] }
 0x28f   :  { %8090 = vmatprep.subr.bf16.mxu0 %v9830_v28  ;;  %8305 = vmatprep.subr.bf16.mxu1 %v9832_v29  ;;  %v408_v25 = vld [vmem:[%s15135_s1 + $0xb68] sm:$0xff]  ;;  %v9925_v28 = vcombine.low %v383_v13, %v391_v14  ;;  %v9927_v29 = vcombine.low %v384_v15, %v392_v16  ;;  %v495_v13 = vld [vmem:[%s15135_s1 + $0xe20] sm:$0xff] }
 0x290   :  { %v9944_v35 = vcombine.high %v400_v24, %v408_v25  ;;  %v503_v14 = vld [vmem:[%s15135_s1 + $0xe60] sm:$0xff]  ;;  %v496_v15 = vld [vmem:[%s15135_s1 + $0xe28] sm:$0xff] }
 0x291   :  { %v504_v16 = vld [vmem:[%s15135_s1 + $0xe68] sm:$0xff] }
 0x292   :  { %8091 = vmatpush1.bf16.msra.mxu0 %v9829_v39  ;;  %8306 = vmatpush1.bf16.msra.mxu1 %v9831_v40  ;;  %v416_v39 = vld [vmem:[%s15135_s1 + $0xba8] sm:$0xff] }
 0x293   :  { %8103 = vmatprep.subr.bf16.mxu0 %v9846_v41  ;;  %8318 = vmatprep.subr.bf16.mxu1 %v9848_v42  ;;  %v424_v40 = vld [vmem:[%s15135_s1 + $0xbe8] sm:$0xff]  ;;  %v9941_v41 = vcombine.low %v399_v21, %v407_v23  ;;  %v9943_v42 = vcombine.low %v400_v24, %v408_v25  ;;  %v511_v21 = vld [vmem:[%s15135_s1 + $0xea0] sm:$0xff] }
 0x294   :  { %v9960_v44 = vcombine.high %v416_v39, %v424_v40  ;;  %v519_v23 = vld [vmem:[%s15135_s1 + $0xee0] sm:$0xff]  ;;  %v512_v24 = vld [vmem:[%s15135_s1 + $0xea8] sm:$0xff] }
 0x295   :  { %8093 = vmatmul.mubr.bf16.vlgmr.msra.gmra.mrb[8].mxu0 %v11128_v53  ;;  %8308 = vmatmul.mubr.bf16.vlgmr.msra.gmra.mrb[8].mxu1 %v11128_v53  ;;  %v447_v53 = vld [vmem:[%s15135_s1 + $0xca0] sm:$0xff]  ;;  %v520_v25 = vld [vmem:[%s15135_s1 + $0xee8] sm:$0xff] }
 0x296   :  { %8104 = vmatpush1.bf16.msra.mxu0 %v9845_v47  ;;  %8319 = vmatpush1.bf16.msra.mxu1 %v9847_v48  ;;  %v432_v47 = vld [vmem:[%s15135_s1 + $0xc28] sm:$0xff] }
 0x297   :  { %8105 = vmatprep.subr.bf16.mxu0 %v9862_v49  ;;  %8320 = vmatprep.subr.bf16.mxu1 %v9864_v50  ;;  %v440_v48 = vld [vmem:[%s15135_s1 + $0xc68] sm:$0xff]  ;;  %v9957_v49 = vcombine.low %v415_v36, %v423_v38  ;;  %v9959_v50 = vcombine.low %v416_v39, %v424_v40  ;;  %v527_v36 = vld [vmem:[%s15135_s1 + $0xf20] sm:$0xff] }
 0x298   :  { %8135 = vmatprep.mubr.bf16.mxu0 %v11129_v62  ;;  %8350 = vmatprep.mubr.bf16.mxu1 %v11129_v62  ;;  %v9976_v52 = vcombine.high %v432_v47, %v440_v48  ;;  %v471_v62 = vld [vmem:[%s15135_s1 + $0xd60] sm:$0xff]  ;;  %v528_v39 = vld [vmem:[%s15135_s1 + $0xf28] sm:$0xff] }
 0x299   :  { %v535_v38 = vld [vmem:[%s15135_s1 + $0xf60] sm:$0xff]  ;;  %v536_v40 = vld [vmem:[%s15135_s1 + $0xf68] sm:$0xff] }
 0x29a   :  { %8106 = vmatpush1.bf16.msra.mxu0 %v9861_v56  ;;  %8321 = vmatpush1.bf16.msra.mxu1 %v9863_v57  ;;  %v456_v56 = vld [vmem:[%s15135_s1 + $0xce8] sm:$0xff]  ;;  %v9973_v57 = vcombine.low %v431_v45, %v439_v46  ;;  %v543_v45 = vld [vmem:[%s15135_s1 + $0xfa0] sm:$0xff] }
 0x29b   :  { %8107 = vmatprep.subr.bf16.mxu0 %v9878_v58  ;;  %8322 = vmatprep.subr.bf16.mxu1 %v9880_v59  ;;  %v9975_v58 = vcombine.low %v432_v47, %v440_v48  ;;  %v9990_v59 = vcombine.high %v447_v53, %v455_v54  ;;  %v9992_v60 = vcombine.high %v448_v55, %v456_v56  ;;  %v551_v46 = vld [vmem:[%s15135_s1 + $0xfe0] sm:$0xff]  ;;  %v544_v47 = vld [vmem:[%s15135_s1 + $0xfa8] sm:$0xff] }
 0x29c   :  { %v552_v48 = vld [vmem:[%s15135_s1 + $0xfe8] sm:$0xff] }
 0x29e   :  { %8108 = vmatpush1.bf16.msra.mxu0 %v9877_v1  ;;  %8323 = vmatpush1.bf16.msra.mxu1 %v9879_v2  ;;  %v9989_v1 = vcombine.low %v447_v53, %v455_v54  ;;  %v9991_v2 = vcombine.low %v448_v55, %v456_v56  ;;  %v559_v53 = vld [vmem:[%s15135_s1 + $0x1020] sm:$0xff]  ;;  %v560_v55 = vld [vmem:[%s15135_s1 + $0x1028] sm:$0xff] }
 0x29f   :  { %8109 = vmatprep.subr.bf16.mxu0 %v9894_v3  ;;  %8324 = vmatprep.subr.bf16.mxu1 %v9896_v4  ;;  %v10006_v3 = vcombine.high %v463_v61, %v471_v62  ;;  %v10008_v4 = vcombine.high %v464_v63, %v472_v0  ;;  %v567_v54 = vld [vmem:[%s15135_s1 + $0x1060] sm:$0xff]  ;;  %v568_v56 = vld [vmem:[%s15135_s1 + $0x1068] sm:$0xff] }
 0x2a2   :  { %8110 = vmatpush1.bf16.msra.mxu0 %v9893_v9  ;;  %8325 = vmatpush1.bf16.msra.mxu1 %v9895_v10  ;;  %v10005_v9 = vcombine.low %v463_v61, %v471_v62  ;;  %v10007_v10 = vcombine.low %v464_v63, %v472_v0  ;;  %v575_v61 = vld [vmem:[%s15135_s1 + $0x10a0] sm:$0xff]  ;;  %v576_v63 = vld [vmem:[%s15135_s1 + $0x10a8] sm:$0xff] }
 0x2a3   :  { %8111 = vmatprep.subr.bf16.mxu0 %v9910_v11  ;;  %8326 = vmatprep.subr.bf16.mxu1 %v9912_v12  ;;  %v10022_v11 = vcombine.high %v479_v5, %v487_v6  ;;  %v10024_v12 = vcombine.high %v480_v7, %v488_v8  ;;  %v583_v62 = vld [vmem:[%s15135_s1 + $0x10e0] sm:$0xff]  ;;  %v584_v0 = vld [vmem:[%s15135_s1 + $0x10e8] sm:$0xff] }
 0x2a6   :  { %8112 = vmatpush1.bf16.msra.mxu0 %v9909_v17  ;;  %8327 = vmatpush1.bf16.msra.mxu1 %v9911_v18  ;;  %v10021_v17 = vcombine.low %v479_v5, %v487_v6  ;;  %v10023_v18 = vcombine.low %v480_v7, %v488_v8  ;;  %v591_v5 = vld [vmem:[%s15135_s1 + $0x1120] sm:$0xff]  ;;  %v11130_v7 = vld [vmem:[%s15136_s0 + $0x8] ss:$40 sps:$4 sm:$0xff]  }
 0x2a7   :  { %8113 = vmatprep.subr.bf16.mxu0 %v9926_v19  ;;  %8328 = vmatprep.subr.bf16.mxu1 %v9928_v20  ;;  %v10038_v19 = vcombine.high %v495_v13, %v503_v14  ;;  %v10040_v20 = vcombine.high %v496_v15, %v504_v16  ;;  %v599_v6 = vld [vmem:[%s15135_s1 + $0x1160] sm:$0xff]  ;;  %v592_v8 = vld [vmem:[%s15135_s1 + $0x1128] sm:$0xff] }
 0x2aa   :  { %8114 = vmatpush1.bf16.msra.mxu0 %v9925_v28  ;;  %8329 = vmatpush1.bf16.msra.mxu1 %v9927_v29  ;;  %v10037_v28 = vcombine.low %v495_v13, %v503_v14  ;;  %v10039_v29 = vcombine.low %v496_v15, %v504_v16  ;;  %v607_v14 = vld [vmem:[%s15135_s1 + $0x11a0] sm:$0xff]  ;;  %v11131_v16 = vld [vmem:[%s15136_s0 + $0x14] ss:$40 sps:$4 sm:$0xff]  }
 0x2ab   :  { %8115 = vmatprep.subr.bf16.mxu0 %v9942_v32  ;;  %8330 = vmatprep.subr.bf16.mxu1 %v9944_v35  ;;  %v10054_v32 = vcombine.high %v511_v21, %v519_v23  ;;  %v10056_v35 = vcombine.high %v512_v24, %v520_v25  ;;  %v615_v15 = vld [vmem:[%s15135_s1 + $0x11e0] sm:$0xff] }
 0x2ae   :  { %8116 = vmatpush1.bf16.msra.mxu0 %v9941_v41  ;;  %8331 = vmatpush1.bf16.msra.mxu1 %v9943_v42  ;;  %v10053_v41 = vcombine.low %v511_v21, %v519_v23  ;;  %v10055_v42 = vcombine.low %v512_v24, %v520_v25  ;;  %v10150_v21 = vcombine.high %v607_v14, %v615_v15  ;;  %v623_v24 = vld [vmem:[%s15135_s1 + $0x1220] sm:$0xff] }
 0x2af   :  { %8117 = vmatprep.subr.bf16.mxu0 %v9958_v43  ;;  %8332 = vmatprep.subr.bf16.mxu1 %v9960_v44  ;;  %v10070_v43 = vcombine.high %v527_v36, %v535_v38  ;;  %v10072_v44 = vcombine.high %v528_v39, %v536_v40  ;;  %v631_v25 = vld [vmem:[%s15135_s1 + $0x1260] sm:$0xff] }
 0x2b2   :  { %8118 = vmatpush1.bf16.msra.mxu0 %v9957_v49  ;;  %8333 = vmatpush1.bf16.msra.mxu1 %v9959_v50  ;;  %v10069_v49 = vcombine.low %v527_v36, %v535_v38  ;;  %v10071_v50 = vcombine.low %v528_v39, %v536_v40  ;;  %v10166_v36 = vcombine.high %v623_v24, %v631_v25  ;;  %v639_v39 = vld [vmem:[%s15135_s1 + $0x12a0] sm:$0xff] }
 0x2b3   :  { %8119 = vmatprep.subr.bf16.mxu0 %v9974_v51  ;;  %8334 = vmatprep.subr.bf16.mxu1 %v9976_v52  ;;  %v10086_v51 = vcombine.high %v543_v45, %v551_v46  ;;  %v10088_v52 = vcombine.high %v544_v47, %v552_v48  ;;  %v647_v40 = vld [vmem:[%s15135_s1 + $0x12e0] sm:$0xff] }
 0x2b6   :  { %8120 = vmatpush1.bf16.msra.mxu0 %v9973_v57  ;;  %8335 = vmatpush1.bf16.msra.mxu1 %v9975_v58  ;;  %v10085_v57 = vcombine.low %v543_v45, %v551_v46  ;;  %v10087_v58 = vcombine.low %v544_v47, %v552_v48  ;;  %v10182_v45 = vcombine.high %v639_v39, %v647_v40  ;;  %v655_v47 = vld [vmem:[%s15135_s1 + $0x1320] sm:$0xff] }
 0x2b7   :  { %8121 = vmatprep.subr.bf16.mxu0 %v9990_v59  ;;  %8336 = vmatprep.subr.bf16.mxu1 %v9992_v60  ;;  %v10102_v59 = vcombine.high %v559_v53, %v567_v54  ;;  %v10104_v60 = vcombine.high %v560_v55, %v568_v56  ;;  %v663_v48 = vld [vmem:[%s15135_s1 + $0x1360] sm:$0xff] }
 0x2ba   :  { %8122 = vmatpush1.bf16.msra.mxu0 %v9989_v1  ;;  %8337 = vmatpush1.bf16.msra.mxu1 %v9991_v2  ;;  %v10101_v1 = vcombine.low %v559_v53, %v567_v54  ;;  %v10103_v2 = vcombine.low %v560_v55, %v568_v56  ;;  %v10198_v53 = vcombine.high %v655_v47, %v663_v48  ;;  %v671_v55 = vld [vmem:[%s15135_s1 + $0x13a0] sm:$0xff] }
 0x2bb   :  { %8123 = vmatprep.subr.bf16.mxu0 %v10006_v3  ;;  %8338 = vmatprep.subr.bf16.mxu1 %v10008_v4  ;;  %v10118_v3 = vcombine.high %v575_v61, %v583_v62  ;;  %v10120_v4 = vcombine.high %v576_v63, %v584_v0  ;;  %v679_v56 = vld [vmem:[%s15135_s1 + $0x13e0] sm:$0xff] }
 0x2be   :  { %8124 = vmatpush1.bf16.msra.mxu0 %v10005_v9  ;;  %8339 = vmatpush1.bf16.msra.mxu1 %v10007_v10  ;;  %v600_v9 = vld [vmem:[%s15135_s1 + $0x1168] sm:$0xff]  ;;  %v10117_v10 = vcombine.low %v575_v61, %v583_v62  ;;  %v10214_v61 = vcombine.high %v671_v55, %v679_v56 }
 0x2bf   :  { %8125 = vmatprep.subr.bf16.mxu0 %v10022_v11  ;;  %8340 = vmatprep.subr.bf16.mxu1 %v10024_v12  ;;  %v10119_v11 = vcombine.low %v576_v63, %v584_v0  ;;  %v10134_v12 = vcombine.high %v591_v5, %v599_v6  ;;  %v10136_v13 = vcombine.high %v592_v8, %v600_v9  ;;  %v687_v63 = vld [vmem:[%s15135_s1 + $0x1420] sm:$0xff] }
 0x2c0   :  { %v695_v0 = vld [vmem:[%s15135_s1 + $0x1460] sm:$0xff] }
 0x2c2   :  { %8126 = vmatpush1.bf16.msra.mxu0 %v10021_v17  ;;  %8341 = vmatpush1.bf16.msra.mxu1 %v10023_v18  ;;  %v608_v17 = vld [vmem:[%s15135_s1 + $0x11a8] sm:$0xff] }
 0x2c3   :  { %8127 = vmatprep.subr.bf16.mxu0 %v10038_v19  ;;  %8342 = vmatprep.subr.bf16.mxu1 %v10040_v20  ;;  %v616_v18 = vld [vmem:[%s15135_s1 + $0x11e8] sm:$0xff]  ;;  %v10133_v19 = vcombine.low %v591_v5, %v599_v6  ;;  %v10135_v20 = vcombine.low %v592_v8, %v600_v9  ;;  %v10230_v5 = vcombine.high %v687_v63, %v695_v0  ;;  %v711_v8 = vld [vmem:[%s15135_s1 + $0x14e0] sm:$0xff] }
 0x2c4   :  { %v10152_v23 = vcombine.high %v608_v17, %v616_v18  ;;  %v704_v9 = vld [vmem:[%s15135_s1 + $0x14a8] sm:$0xff] }
 0x2c6   :  { %8128 = vmatpush1.bf16.msra.mxu0 %v10037_v28  ;;  %8343 = vmatpush1.bf16.msra.mxu1 %v10039_v29  ;;  %v624_v28 = vld [vmem:[%s15135_s1 + $0x1228] sm:$0xff] }
 0x2c7   :  { %8129 = vmatprep.subr.bf16.mxu0 %v10054_v32  ;;  %8344 = vmatprep.subr.bf16.mxu1 %v10056_v35  ;;  %v632_v29 = vld [vmem:[%s15135_s1 + $0x1268] sm:$0xff]  ;;  %v10149_v32 = vcombine.low %v607_v14, %v615_v15  ;;  %v10151_v35 = vcombine.low %v608_v17, %v616_v18  ;;  %v719_v15 = vld [vmem:[%s15135_s1 + $0x1520] sm:$0xff] }
 0x2c8   :  { %v10168_v38 = vcombine.high %v624_v28, %v632_v29  ;;  %v720_v17 = vld [vmem:[%s15135_s1 + $0x1528] sm:$0xff] }
 0x2c9   :  { %v728_v18 = vld [vmem:[%s15135_s1 + $0x1568] sm:$0xff] }
 0x2ca   :  { %8130 = vmatpush1.bf16.msra.mxu0 %v10053_v41  ;;  %8345 = vmatpush1.bf16.msra.mxu1 %v10055_v42  ;;  %v640_v41 = vld [vmem:[%s15135_s1 + $0x12a8] sm:$0xff] }
 0x2cb   :  { %8131 = vmatprep.subr.bf16.mxu0 %v10070_v43  ;;  %8346 = vmatprep.subr.bf16.mxu1 %v10072_v44  ;;  %v648_v42 = vld [vmem:[%s15135_s1 + $0x12e8] sm:$0xff]  ;;  %v10165_v43 = vcombine.low %v623_v24, %v631_v25  ;;  %v10167_v44 = vcombine.low %v624_v28, %v632_v29  ;;  %v735_v24 = vld [vmem:[%s15135_s1 + $0x15a0] sm:$0xff] }
 0x2cc   :  { %v10184_v46 = vcombine.high %v640_v41, %v648_v42  ;;  %v743_v25 = vld [vmem:[%s15135_s1 + $0x15e0] sm:$0xff]  ;;  %v736_v28 = vld [vmem:[%s15135_s1 + $0x15a8] sm:$0xff] }
 0x2cd   :  { %v744_v29 = vld [vmem:[%s15135_s1 + $0x15e8] sm:$0xff] }
 0x2ce   :  { %8132 = vmatpush1.bf16.msra.mxu0 %v10069_v49  ;;  %8347 = vmatpush1.bf16.msra.mxu1 %v10071_v50  ;;  %v656_v49 = vld [vmem:[%s15135_s1 + $0x1328] sm:$0xff] }
 0x2cf   :  { %8133 = vmatprep.subr.bf16.mxu0 %v10086_v51  ;;  %8348 = vmatprep.subr.bf16.mxu1 %v10088_v52  ;;  %v664_v50 = vld [vmem:[%s15135_s1 + $0x1368] sm:$0xff]  ;;  %v10181_v51 = vcombine.low %v639_v39, %v647_v40  ;;  %v10183_v52 = vcombine.low %v640_v41, %v648_v42  ;;  %v751_v39 = vld [vmem:[%s15135_s1 + $0x1620] sm:$0xff] }
 0x2d0   :  { %v10200_v54 = vcombine.high %v656_v49, %v664_v50  ;;  %v759_v40 = vld [vmem:[%s15135_s1 + $0x1660] sm:$0xff]  ;;  %v752_v41 = vld [vmem:[%s15135_s1 + $0x1628] sm:$0xff] }
 0x2d1   :  { %v760_v42 = vld [vmem:[%s15135_s1 + $0x1668] sm:$0xff] }
 0x2d2   :  { %8134 = vmatpush1.bf16.msra.mxu0 %v10085_v57  ;;  %8349 = vmatpush1.bf16.msra.mxu1 %v10087_v58  ;;  %v672_v57 = vld [vmem:[%s15135_s1 + $0x13a8] sm:$0xff] }
 0x2d3   :  { %8146 = vmatprep.subr.bf16.mxu0 %v10102_v59  ;;  %8361 = vmatprep.subr.bf16.mxu1 %v10104_v60  ;;  %v680_v58 = vld [vmem:[%s15135_s1 + $0x13e8] sm:$0xff]  ;;  %v10197_v59 = vcombine.low %v655_v47, %v663_v48  ;;  %v10199_v60 = vcombine.low %v656_v49, %v664_v50  ;;  %v767_v47 = vld [vmem:[%s15135_s1 + $0x16a0] sm:$0xff] }
 0x2d4   :  { %v10216_v62 = vcombine.high %v672_v57, %v680_v58  ;;  %v775_v48 = vld [vmem:[%s15135_s1 + $0x16e0] sm:$0xff]  ;;  %v768_v49 = vld [vmem:[%s15135_s1 + $0x16a8] sm:$0xff] }
 0x2d5   :  { %8136 = vmatmul.mubr.bf16.vlgmr.msra.gmra.mrb[8].mxu0 %v11130_v7  ;;  %8351 = vmatmul.mubr.bf16.vlgmr.msra.gmra.mrb[8].mxu1 %v11130_v7  ;;  %v703_v7 = vld [vmem:[%s15135_s1 + $0x14a0] sm:$0xff]  ;;  %v776_v50 = vld [vmem:[%s15135_s1 + $0x16e8] sm:$0xff] }
 0x2d6   :  { %8147 = vmatpush1.bf16.msra.mxu0 %v10101_v1  ;;  %8362 = vmatpush1.bf16.msra.mxu1 %v10103_v2  ;;  %v688_v1 = vld [vmem:[%s15135_s1 + $0x1428] sm:$0xff] }
 0x2d7   :  { %8148 = vmatprep.subr.bf16.mxu0 %v10118_v3  ;;  %8363 = vmatprep.subr.bf16.mxu1 %v10120_v4  ;;  %v696_v2 = vld [vmem:[%s15135_s1 + $0x1468] sm:$0xff]  ;;  %v10213_v3 = vcombine.low %v671_v55, %v679_v56  ;;  %v10215_v4 = vcombine.low %v672_v57, %v680_v58  ;;  %v783_v55 = vld [vmem:[%s15135_s1 + $0x1720] sm:$0xff] }
 0x2d8   :  { %8178 = vmatprep.mubr.bf16.mxu0 %v11131_v16  ;;  %8393 = vmatprep.mubr.bf16.mxu1 %v11131_v16  ;;  %v10232_v6 = vcombine.high %v688_v1, %v696_v2  ;;  %v727_v16 = vld [vmem:[%s15135_s1 + $0x1560] sm:$0xff]  ;;  %v784_v57 = vld [vmem:[%s15135_s1 + $0x1728] sm:$0xff] }
 0x2d9   :  { %v791_v56 = vld [vmem:[%s15135_s1 + $0x1760] sm:$0xff]  ;;  %v792_v58 = vld [vmem:[%s15135_s1 + $0x1768] sm:$0xff] }
 0x2da   :  { %8149 = vmatpush1.bf16.msra.mxu0 %v10117_v10  ;;  %8364 = vmatpush1.bf16.msra.mxu1 %v10119_v11  ;;  %v712_v10 = vld [vmem:[%s15135_s1 + $0x14e8] sm:$0xff]  ;;  %v10229_v11 = vcombine.low %v687_v63, %v695_v0  ;;  %v799_v63 = vld [vmem:[%s15135_s1 + $0x17a0] sm:$0xff] }
 0x2db   :  { %8150 = vmatprep.subr.bf16.mxu0 %v10134_v12  ;;  %8365 = vmatprep.subr.bf16.mxu1 %v10136_v13  ;;  %v10231_v12 = vcombine.low %v688_v1, %v696_v2  ;;  %v10246_v13 = vcombine.high %v703_v7, %v711_v8  ;;  %v10248_v14 = vcombine.high %v704_v9, %v712_v10  ;;  %v807_v0 = vld [vmem:[%s15135_s1 + $0x17e0] sm:$0xff]  ;;  %v800_v1 = vld [vmem:[%s15135_s1 + $0x17a8] sm:$0xff] }
 0x2dc   :  { %v808_v2 = vld [vmem:[%s15135_s1 + $0x17e8] sm:$0xff] }
 0x2de   :  { %8151 = vmatpush1.bf16.msra.mxu0 %v10133_v19  ;;  %8366 = vmatpush1.bf16.msra.mxu1 %v10135_v20  ;;  %v10245_v19 = vcombine.low %v703_v7, %v711_v8  ;;  %v10247_v20 = vcombine.low %v704_v9, %v712_v10  ;;  %v815_v7 = vld [vmem:[%s15135_s1 + $0x1820] sm:$0xff]  ;;  %v816_v9 = vld [vmem:[%s15135_s1 + $0x1828] sm:$0xff] }
 0x2df   :  { %8152 = vmatprep.subr.bf16.mxu0 %v10150_v21  ;;  %8367 = vmatprep.subr.bf16.mxu1 %v10152_v23  ;;  %v10262_v21 = vcombine.high %v719_v15, %v727_v16  ;;  %v10264_v23 = vcombine.high %v720_v17, %v728_v18  ;;  %v823_v8 = vld [vmem:[%s15135_s1 + $0x1860] sm:$0xff]  ;;  %v824_v10 = vld [vmem:[%s15135_s1 + $0x1868] sm:$0xff] }
 0x2e2   :  { %8153 = vmatpush1.bf16.msra.mxu0 %v10149_v32  ;;  %8368 = vmatpush1.bf16.msra.mxu1 %v10151_v35  ;;  %v10261_v32 = vcombine.low %v719_v15, %v727_v16  ;;  %v10263_v35 = vcombine.low %v720_v17, %v728_v18  ;;  %v831_v15 = vld [vmem:[%s15135_s1 + $0x18a0] sm:$0xff]  ;;  %v832_v17 = vld [vmem:[%s15135_s1 + $0x18a8] sm:$0xff] }
 0x2e3   :  { %8154 = vmatprep.subr.bf16.mxu0 %v10166_v36  ;;  %8369 = vmatprep.subr.bf16.mxu1 %v10168_v38  ;;  %v10278_v36 = vcombine.high %v735_v24, %v743_v25  ;;  %v10280_v38 = vcombine.high %v736_v28, %v744_v29  ;;  %v839_v16 = vld [vmem:[%s15135_s1 + $0x18e0] sm:$0xff]  ;;  %v840_v18 = vld [vmem:[%s15135_s1 + $0x18e8] sm:$0xff] }
 0x2e6   :  { %8155 = vmatpush1.bf16.msra.mxu0 %v10165_v43  ;;  %8370 = vmatpush1.bf16.msra.mxu1 %v10167_v44  ;;  %v10277_v43 = vcombine.low %v735_v24, %v743_v25  ;;  %v10279_v44 = vcombine.low %v736_v28, %v744_v29  ;;  %v847_v24 = vld [vmem:[%s15135_s1 + $0x1920] sm:$0xff]  ;;  %v11132_v28 = vld [vmem:[%s15136_s0 + $0x10] ss:$40 sps:$4 sm:$0xff]   ;;  %v848_v29 = vld [vmem:[%s15135_s1 + $0x1928] sm:$0xff] }
 0x2e7   :  { %8156 = vmatprep.subr.bf16.mxu0 %v10182_v45  ;;  %8371 = vmatprep.subr.bf16.mxu1 %v10184_v46  ;;  %v10294_v45 = vcombine.high %v751_v39, %v759_v40  ;;  %v10296_v46 = vcombine.high %v752_v41, %v760_v42  ;;  %v855_v25 = vld [vmem:[%s15135_s1 + $0x1960] sm:$0xff] }
 0x2ea   :  { %8157 = vmatpush1.bf16.msra.mxu0 %v10181_v51  ;;  %8372 = vmatpush1.bf16.msra.mxu1 %v10183_v52  ;;  %v10293_v51 = vcombine.low %v751_v39, %v759_v40  ;;  %v10295_v52 = vcombine.low %v752_v41, %v760_v42  ;;  %v863_v40 = vld [vmem:[%s15135_s1 + $0x19a0] sm:$0xff] }
 0x2eb   :  { %8158 = vmatprep.subr.bf16.mxu0 %v10198_v53  ;;  %8373 = vmatprep.subr.bf16.mxu1 %v10200_v54  ;;  %v10310_v53 = vcombine.high %v767_v47, %v775_v48  ;;  %v10312_v54 = vcombine.high %v768_v49, %v776_v50  ;;  %v871_v41 = vld [vmem:[%s15135_s1 + $0x19e0] sm:$0xff] }
 0x2ec   :  { %v11133_v42 = vld [vmem:[%s15136_s0 + $0x1c] ss:$40 sps:$4 sm:$0xff]  }
 0x2ee   :  { %8159 = vmatpush1.bf16.msra.mxu0 %v10197_v59  ;;  %8374 = vmatpush1.bf16.msra.mxu1 %v10199_v60  ;;  %v10309_v59 = vcombine.low %v767_v47, %v775_v48  ;;  %v10311_v60 = vcombine.low %v768_v49, %v776_v50  ;;  %v10406_v47 = vcombine.high %v863_v40, %v871_v41  ;;  %v879_v49 = vld [vmem:[%s15135_s1 + $0x1a20] sm:$0xff] }
 0x2ef   :  { %8160 = vmatprep.subr.bf16.mxu0 %v10214_v61  ;;  %8375 = vmatprep.subr.bf16.mxu1 %v10216_v62  ;;  %v10326_v61 = vcombine.high %v783_v55, %v791_v56  ;;  %v10328_v62 = vcombine.high %v784_v57, %v792_v58  ;;  %v887_v50 = vld [vmem:[%s15135_s1 + $0x1a60] sm:$0xff] }
 0x2f2   :  { %8161 = vmatpush1.bf16.msra.mxu0 %v10213_v3  ;;  %8376 = vmatpush1.bf16.msra.mxu1 %v10215_v4  ;;  %v10325_v3 = vcombine.low %v783_v55, %v791_v56  ;;  %v10327_v4 = vcombine.low %v784_v57, %v792_v58  ;;  %v10422_v55 = vcombine.high %v879_v49, %v887_v50  ;;  %v895_v57 = vld [vmem:[%s15135_s1 + $0x1aa0] sm:$0xff] }
 0x2f3   :  { %8162 = vmatprep.subr.bf16.mxu0 %v10230_v5  ;;  %8377 = vmatprep.subr.bf16.mxu1 %v10232_v6  ;;  %v10342_v5 = vcombine.high %v799_v63, %v807_v0  ;;  %v10344_v6 = vcombine.high %v800_v1, %v808_v2  ;;  %v903_v58 = vld [vmem:[%s15135_s1 + $0x1ae0] sm:$0xff] }
 0x2f6   :  { %8163 = vmatpush1.bf16.msra.mxu0 %v10229_v11  ;;  %8378 = vmatpush1.bf16.msra.mxu1 %v10231_v12  ;;  %v10341_v11 = vcombine.low %v799_v63, %v807_v0  ;;  %v10343_v12 = vcombine.low %v800_v1, %v808_v2  ;;  %v10438_v63 = vcombine.high %v895_v57, %v903_v58  ;;  %v911_v1 = vld [vmem:[%s15135_s1 + $0x1b20] sm:$0xff] }
 0x2f7   :  { %8164 = vmatprep.subr.bf16.mxu0 %v10246_v13  ;;  %8379 = vmatprep.subr.bf16.mxu1 %v10248_v14  ;;  %v10358_v13 = vcombine.high %v815_v7, %v823_v8  ;;  %v10360_v14 = vcombine.high %v816_v9, %v824_v10  ;;  %v919_v2 = vld [vmem:[%s15135_s1 + $0x1b60] sm:$0xff] }
 0x2fa   :  { %8165 = vmatpush1.bf16.msra.mxu0 %v10245_v19  ;;  %8380 = vmatpush1.bf16.msra.mxu1 %v10247_v20  ;;  %v10357_v19 = vcombine.low %v815_v7, %v823_v8  ;;  %v10359_v20 = vcombine.low %v816_v9, %v824_v10  ;;  %v10454_v7 = vcombine.high %v911_v1, %v919_v2  ;;  %v927_v10 = vld [vmem:[%s15135_s1 + $0x1ba0] sm:$0xff] }
 0x2fb   :  { %8166 = vmatprep.subr.bf16.mxu0 %v10262_v21  ;;  %8381 = vmatprep.subr.bf16.mxu1 %v10264_v23  ;;  %v10374_v21 = vcombine.high %v831_v15, %v839_v16  ;;  %v10376_v23 = vcombine.high %v832_v17, %v840_v18 }
 0x2fe   :  { %8167 = vmatpush1.bf16.msra.mxu0 %v10261_v32  ;;  %8382 = vmatpush1.bf16.msra.mxu1 %v10263_v35  ;;  %v856_v32 = vld [vmem:[%s15135_s1 + $0x1968] sm:$0xff]  ;;  %v10373_v35 = vcombine.low %v831_v15, %v839_v16 }
 0x2ff   :  { %8168 = vmatprep.subr.bf16.mxu0 %v10278_v36  ;;  %8383 = vmatprep.subr.bf16.mxu1 %v10280_v38  ;;  %v10375_v36 = vcombine.low %v832_v17, %v840_v18  ;;  %v10390_v38 = vcombine.high %v847_v24, %v855_v25  ;;  %v10392_v39 = vcombine.high %v848_v29, %v856_v32  ;;  %v928_v15 = vld [vmem:[%s15135_s1 + $0x1ba8] sm:$0xff] }
 0x300   :  { %v936_v16 = vld [vmem:[%s15135_s1 + $0x1be8] sm:$0xff] }
 0x302   :  { %8169 = vmatpush1.bf16.msra.mxu0 %v10277_v43  ;;  %8384 = vmatpush1.bf16.msra.mxu1 %v10279_v44  ;;  %v864_v43 = vld [vmem:[%s15135_s1 + $0x19a8] sm:$0xff] }
 0x303   :  { %8170 = vmatprep.subr.bf16.mxu0 %v10294_v45  ;;  %8385 = vmatprep.subr.bf16.mxu1 %v10296_v46  ;;  %v872_v44 = vld [vmem:[%s15135_s1 + $0x19e8] sm:$0xff]  ;;  %v10389_v45 = vcombine.low %v847_v24, %v855_v25  ;;  %v10391_v46 = vcombine.low %v848_v29, %v856_v32 }
 0x304   :  { %v10408_v48 = vcombine.high %v864_v43, %v872_v44 }
 0x306   :  { %8171 = vmatpush1.bf16.msra.mxu0 %v10293_v51  ;;  %8386 = vmatpush1.bf16.msra.mxu1 %v10295_v52  ;;  %v880_v51 = vld [vmem:[%s15135_s1 + $0x1a28] sm:$0xff] }
 0x307   :  { %8172 = vmatprep.subr.bf16.mxu0 %v10310_v53  ;;  %8387 = vmatprep.subr.bf16.mxu1 %v10312_v54  ;;  %v888_v52 = vld [vmem:[%s15135_s1 + $0x1a68] sm:$0xff]  ;;  %v10405_v53 = vcombine.low %v863_v40, %v871_v41  ;;  %v10407_v54 = vcombine.low %v864_v43, %v872_v44  ;;  %v943_v40 = vld [vmem:[%s15135_s1 + $0x1c20] sm:$0xff] }
 0x308   :  { %v10424_v56 = vcombine.high %v880_v51, %v888_v52  ;;  %v951_v41 = vld [vmem:[%s15135_s1 + $0x1c60] sm:$0xff]  ;;  %v944_v43 = vld [vmem:[%s15135_s1 + $0x1c28] sm:$0xff] }
 0x309   :  { %v952_v44 = vld [vmem:[%s15135_s1 + $0x1c68] sm:$0xff] }
 0x30a   :  { %8173 = vmatpush1.bf16.msra.mxu0 %v10309_v59  ;;  %8388 = vmatpush1.bf16.msra.mxu1 %v10311_v60  ;;  %v896_v59 = vld [vmem:[%s15135_s1 + $0x1aa8] sm:$0xff] }
 0x30b   :  { %8174 = vmatprep.subr.bf16.mxu0 %v10326_v61  ;;  %8389 = vmatprep.subr.bf16.mxu1 %v10328_v62  ;;  %v904_v60 = vld [vmem:[%s15135_s1 + $0x1ae8] sm:$0xff]  ;;  %v10421_v61 = vcombine.low %v879_v49, %v887_v50  ;;  %v10423_v62 = vcombine.low %v880_v51, %v888_v52  ;;  %v959_v49 = vld [vmem:[%s15135_s1 + $0x1ca0] sm:$0xff] }
 0x30c   :  { %v10440_v0 = vcombine.high %v896_v59, %v904_v60  ;;  %v967_v50 = vld [vmem:[%s15135_s1 + $0x1ce0] sm:$0xff]  ;;  %v960_v51 = vld [vmem:[%s15135_s1 + $0x1ca8] sm:$0xff] }
 0x30d   :  { %v968_v52 = vld [vmem:[%s15135_s1 + $0x1ce8] sm:$0xff] }
 0x30e   :  { %8175 = vmatpush1.bf16.msra.mxu0 %v10325_v3  ;;  %8390 = vmatpush1.bf16.msra.mxu1 %v10327_v4  ;;  %v912_v3 = vld [vmem:[%s15135_s1 + $0x1b28] sm:$0xff] }
 0x30f   :  { %8176 = vmatprep.subr.bf16.mxu0 %v10342_v5  ;;  %8391 = vmatprep.subr.bf16.mxu1 %v10344_v6  ;;  %v920_v4 = vld [vmem:[%s15135_s1 + $0x1b68] sm:$0xff]  ;;  %v10437_v5 = vcombine.low %v895_v57, %v903_v58  ;;  %v10439_v6 = vcombine.low %v896_v59, %v904_v60  ;;  %v975_v57 = vld [vmem:[%s15135_s1 + $0x1d20] sm:$0xff] }
 0x310   :  { %v10456_v9 = vcombine.high %v912_v3, %v920_v4  ;;  %v983_v58 = vld [vmem:[%s15135_s1 + $0x1d60] sm:$0xff]  ;;  %v976_v59 = vld [vmem:[%s15135_s1 + $0x1d28] sm:$0xff] }
 0x311   :  { %v984_v60 = vld [vmem:[%s15135_s1 + $0x1d68] sm:$0xff] }
 0x312   :  { %8177 = vmatpush1.bf16.msra.mxu0 %v10341_v11  ;;  %8392 = vmatpush1.bf16.msra.mxu1 %v10343_v12  ;;  %v935_v11 = vld [vmem:[%s15135_s1 + $0x1be0] sm:$0xff] }
 0x313   :  { %8189 = vmatprep.subr.bf16.mxu0 %v10358_v13  ;;  %8404 = vmatprep.subr.bf16.mxu1 %v10360_v14  ;;  %v10470_v32 = vcombine.high %v927_v10, %v935_v11 }
 0x315   :  { %8179 = vmatmul.mubr.bf16.vlgmr.msra.gmra.mrb[8].mxu0 %v11132_v28  ;;  %8394 = vmatmul.mubr.bf16.vlgmr.msra.gmra.mrb[8].mxu1 %v11132_v28 }
 0x316   :  { %8190 = vmatpush1.bf16.msra.mxu0 %v10357_v19  ;;  %8405 = vmatpush1.bf16.msra.mxu1 %v10359_v20 }
 0x317   :  { %8191 = vmatprep.subr.bf16.mxu0 %v10374_v21  ;;  %8406 = vmatprep.subr.bf16.mxu1 %v10376_v23  ;;  %v10453_v21 = vcombine.low %v911_v1, %v919_v2  ;;  %v10455_v23 = vcombine.low %v912_v3, %v920_v4  ;;  %v991_v1 = vld [vmem:[%s15135_s1 + $0x1da0] sm:$0xff]  ;;  %v992_v3 = vld [vmem:[%s15135_s1 + $0x1da8] sm:$0xff] }
 0x318   :  { %8221 = vmatprep.mubr.bf16.mxu0 %v11133_v42  ;;  %8436 = vmatprep.mubr.bf16.mxu1 %v11133_v42  ;;  %v999_v2 = vld [vmem:[%s15135_s1 + $0x1de0] sm:$0xff]  ;;  %v1000_v4 = vld [vmem:[%s15135_s1 + $0x1de8] sm:$0xff] }
 0x31a   :  { %8192 = vmatpush1.bf16.msra.mxu0 %v10373_v35  ;;  %8407 = vmatpush1.bf16.msra.mxu1 %v10375_v36 }
 0x31b   :  { %8193 = vmatprep.subr.bf16.mxu0 %v10390_v38  ;;  %8408 = vmatprep.subr.bf16.mxu1 %v10392_v39  ;;  %v10472_v39 = vcombine.high %v928_v15, %v936_v16 }
 0x31e   :  { %8194 = vmatpush1.bf16.msra.mxu0 %v10389_v45  ;;  %8409 = vmatpush1.bf16.msra.mxu1 %v10391_v46  ;;  %v10469_v45 = vcombine.low %v927_v10, %v935_v11  ;;  %v10471_v46 = vcombine.low %v928_v15, %v936_v16  ;;  %v1007_v10 = vld [vmem:[%s15135_s1 + $0x1e20] sm:$0xff]  ;;  %v1008_v15 = vld [vmem:[%s15135_s1 + $0x1e28] sm:$0xff] }
 0x31f   :  { %8195 = vmatprep.subr.bf16.mxu0 %v10406_v47  ;;  %8410 = vmatprep.subr.bf16.mxu1 %v10408_v48  ;;  %v10486_v47 = vcombine.high %v943_v40, %v951_v41  ;;  %v10488_v48 = vcombine.high %v944_v43, %v952_v44  ;;  %v1015_v11 = vld [vmem:[%s15135_s1 + $0x1e60] sm:$0xff]  ;;  %v1016_v16 = vld [vmem:[%s15135_s1 + $0x1e68] sm:$0xff] }
 0x322   :  { %8196 = vmatpush1.bf16.msra.mxu0 %v10405_v53  ;;  %8411 = vmatpush1.bf16.msra.mxu1 %v10407_v54  ;;  %v10485_v53 = vcombine.low %v943_v40, %v951_v41  ;;  %v10487_v54 = vcombine.low %v944_v43, %v952_v44  ;;  %v1023_v40 = vld [vmem:[%s15135_s1 + $0x1ea0] sm:$0xff]  ;;  %v1024_v43 = vld [vmem:[%s15135_s1 + $0x1ea8] sm:$0xff] }
 0x323   :  { %8197 = vmatprep.subr.bf16.mxu0 %v10422_v55  ;;  %8412 = vmatprep.subr.bf16.mxu1 %v10424_v56  ;;  %v10502_v55 = vcombine.high %v959_v49, %v967_v50  ;;  %v10504_v56 = vcombine.high %v960_v51, %v968_v52  ;;  %v1031_v41 = vld [vmem:[%s15135_s1 + $0x1ee0] sm:$0xff]  ;;  %v1032_v44 = vld [vmem:[%s15135_s1 + $0x1ee8] sm:$0xff] }
 0x326   :  { %8198 = vmatpush1.bf16.msra.mxu0 %v10421_v61  ;;  %8413 = vmatpush1.bf16.msra.mxu1 %v10423_v62  ;;  %v10501_v61 = vcombine.low %v959_v49, %v967_v50  ;;  %v10503_v62 = vcombine.low %v960_v51, %v968_v52  ;;  %v1039_v49 = vld [vmem:[%s15135_s1 + $0x1f20] sm:$0xff]  ;;  %v1040_v51 = vld [vmem:[%s15135_s1 + $0x1f28] sm:$0xff] }
 0x327   :  { %8199 = vmatprep.subr.bf16.mxu0 %v10438_v63  ;;  %8414 = vmatprep.subr.bf16.mxu1 %v10440_v0  ;;  %v10518_v63 = vcombine.high %v975_v57, %v983_v58  ;;  %v10520_v0 = vcombine.high %v976_v59, %v984_v60  ;;  %v1047_v50 = vld [vmem:[%s15135_s1 + $0x1f60] sm:$0xff]  ;;  %v1048_v52 = vld [vmem:[%s15135_s1 + $0x1f68] sm:$0xff] }
 0x328   :  { %v13734_v8 = vpop.f32.mrb[4].mxu0  ;;  %v13744_v13 = vpop.f32.mrb[4].mxu1 }
 0x329   :  { %v8920_v12 = vmax.f32 %v12798_v22, %v13734_v8  ;;  %v13746_v14 = vpop.f32.mrb[5].mxu0  ;;  %v8922_v17 = vmax.f32 %v12806_v26, %v13744_v13  ;;  %v13758_v19 = vpop.f32.mrb[5].mxu1 }
 0x32a   :  { %v8921_v18 = vmax.f32 %v12808_v27, %v13746_v14  ;;  %v13760_v20 = vpop.f32.mrb[6].mxu0  ;;  %8200 = vmatpush1.bf16.msra.mxu0 %v10437_v5  ;;  %v8923_v24 = vmax.f32 %v12816_v30, %v13758_v19  ;;  %v13766_v28 = vpop.f32.mrb[6].mxu1  ;;  %8415 = vmatpush1.bf16.msra.mxu1 %v10439_v6  ;;  %v10517_v5 = vcombine.low %v975_v57, %v983_v58  ;;  %v1055_v57 = vld [vmem:[%s15135_s1 + $0x1fa0] sm:$0xff] }
 0x32b   :  { %v8924_v25 = vmax.f32 %v12818_v31, %v13760_v20  ;;  %v13768_v29 = vpop.f32.mrb[7].mxu0  ;;  %8201 = vmatprep.subr.bf16.mxu0 %v10454_v7  ;;  %v8926_v35 = vmax.f32 %v12820_v33, %v13766_v28  ;;  %v13774_v38 = vpop.f32.mrb[7].mxu1  ;;  %8416 = vmatprep.subr.bf16.mxu1 %v10456_v9  ;;  %v10519_v6 = vcombine.low %v976_v59, %v984_v60  ;;  %v1063_v58 = vld [vmem:[%s15135_s1 + $0x1fe0] sm:$0xff]  ;;  %v1056_v59 = vld [vmem:[%s15135_s1 + $0x1fa8] sm:$0xff] }
 0x32c   :  { %v8925_v36 = vmax.f32 %v12822_v34, %v13768_v29  ;;  %v8927_v42 = vmax.f32 %v12824_v37, %v13774_v38  ;;  %v10534_v7 = vcombine.high %v991_v1, %v999_v2  ;;  %v10536_v9 = vcombine.high %v992_v3, %v1000_v4  ;;  %v1064_v60 = vld [vmem:[%s15135_s1 + $0x1fe8] sm:$0xff]  ;;  %v11104_v38 = vld [vmem:[%s15138_s5 + $0x18] sm:$0xff]  }
 0x32d   :  { %v11102_v34 = vld [vmem:[%s15138_s5 + $0x8] sm:$0xff]  }
 0x32e   :  { %8202 = vmatpush1.bf16.msra.mxu0 %v10453_v21  ;;  %8417 = vmatpush1.bf16.msra.mxu1 %v10455_v23  ;;  %v10533_v21 = vcombine.low %v991_v1, %v999_v2  ;;  %v10535_v23 = vcombine.low %v992_v3, %v1000_v4  ;;  %v1071_v1 = vld [vmem:[%s15135_s1 + $0x2020] sm:$0xff]  ;;  %v1072_v3 = vld [vmem:[%s15135_s1 + $0x2028] sm:$0xff] }
 0x32f   :  { %8203 = vmatprep.subr.bf16.mxu0 %v10470_v32  ;;  %8418 = vmatprep.subr.bf16.mxu1 %v10472_v39  ;;  %v10550_v32 = vcombine.high %v1007_v10, %v1015_v11  ;;  %v10552_v39 = vcombine.high %v1008_v15, %v1016_v16  ;;  %v1079_v2 = vld [vmem:[%s15135_s1 + $0x2060] sm:$0xff]  ;;  %v1080_v4 = vld [vmem:[%s15135_s1 + $0x2068] sm:$0xff] }
 0x332   :  { %8204 = vmatpush1.bf16.msra.mxu0 %v10469_v45  ;;  %8419 = vmatpush1.bf16.msra.mxu1 %v10471_v46  ;;  %v10549_v45 = vcombine.low %v1007_v10, %v1015_v11  ;;  %v10551_v46 = vcombine.low %v1008_v15, %v1016_v16  ;;  %v1087_v10 = vld [vmem:[%s15135_s1 + $0x20a0] sm:$0xff]  ;;  %v1088_v15 = vld [vmem:[%s15135_s1 + $0x20a8] sm:$0xff] }
 0x333   :  { %8205 = vmatprep.subr.bf16.mxu0 %v10486_v47  ;;  %8420 = vmatprep.subr.bf16.mxu1 %v10488_v48  ;;  %v10566_v47 = vcombine.high %v1023_v40, %v1031_v41  ;;  %v10568_v48 = vcombine.high %v1024_v43, %v1032_v44  ;;  %v1095_v11 = vld [vmem:[%s15135_s1 + $0x20e0] sm:$0xff]  ;;  %v1096_v16 = vld [vmem:[%s15135_s1 + $0x20e8] sm:$0xff] }
 0x336   :  { %8206 = vmatpush1.bf16.msra.mxu0 %v10485_v53  ;;  %8421 = vmatpush1.bf16.msra.mxu1 %v10487_v54  ;;  %v10565_v53 = vcombine.low %v1023_v40, %v1031_v41  ;;  %v10567_v54 = vcombine.low %v1024_v43, %v1032_v44  ;;  %v1103_v40 = vld [vmem:[%s15135_s1 + $0x2120] sm:$0xff]  ;;  %v1104_v44 = vld [vmem:[%s15135_s1 + $0x2128] sm:$0xff] }
 0x337   :  { %8207 = vmatprep.subr.bf16.mxu0 %v10502_v55  ;;  %8422 = vmatprep.subr.bf16.mxu1 %v10504_v56  ;;  %v10582_v55 = vcombine.high %v1039_v49, %v1047_v50  ;;  %v10584_v56 = vcombine.high %v1040_v51, %v1048_v52  ;;  %v1111_v41 = vld [vmem:[%s15135_s1 + $0x2160] sm:$0xff] }
 0x338   :  { %v11134_v43 = vld [vmem:[%s15136_s0 + $0x18] ss:$40 sps:$4 sm:$0xff]  }
 0x33a   :  { %8208 = vmatpush1.bf16.msra.mxu0 %v10501_v61  ;;  %8423 = vmatpush1.bf16.msra.mxu1 %v10503_v62  ;;  %v10581_v61 = vcombine.low %v1039_v49, %v1047_v50  ;;  %v10583_v62 = vcombine.low %v1040_v51, %v1048_v52  ;;  %v1119_v50 = vld [vmem:[%s15135_s1 + $0x21a0] sm:$0xff] }
 0x33b   :  { %8209 = vmatprep.subr.bf16.mxu0 %v10518_v63  ;;  %8424 = vmatprep.subr.bf16.mxu1 %v10520_v0  ;;  %v10598_v63 = vcombine.high %v1055_v57, %v1063_v58  ;;  %v10600_v0 = vcombine.high %v1056_v59, %v1064_v60  ;;  %v1127_v51 = vld [vmem:[%s15135_s1 + $0x21e0] sm:$0xff] }
 0x33c   :  { %v11135_v52 = vld [vmem:[%s15136_s0 + $0x24] ss:$40 sps:$4 sm:$0xff]  }
 0x33e   :  { %8210 = vmatpush1.bf16.msra.mxu0 %v10517_v5  ;;  %8425 = vmatpush1.bf16.msra.mxu1 %v10519_v6  ;;  %v10597_v5 = vcombine.low %v1055_v57, %v1063_v58  ;;  %v10599_v6 = vcombine.low %v1056_v59, %v1064_v60  ;;  %v10662_v57 = vcombine.high %v1119_v50, %v1127_v51  ;;  %v1135_v59 = vld [vmem:[%s15135_s1 + $0x2220] sm:$0xff] }
 0x33f   :  { %8211 = vmatprep.subr.bf16.mxu0 %v10534_v7  ;;  %8426 = vmatprep.subr.bf16.mxu1 %v10536_v9  ;;  %v10614_v7 = vcombine.high %v1071_v1, %v1079_v2  ;;  %v10616_v9 = vcombine.high %v1072_v3, %v1080_v4  ;;  %v1143_v60 = vld [vmem:[%s15135_s1 + $0x2260] sm:$0xff] }
 0x342   :  { %8212 = vmatpush1.bf16.msra.mxu0 %v10533_v21  ;;  %8427 = vmatpush1.bf16.msra.mxu1 %v10535_v23  ;;  %v10613_v21 = vcombine.low %v1071_v1, %v1079_v2  ;;  %v10615_v23 = vcombine.low %v1072_v3, %v1080_v4  ;;  %v10678_v1 = vcombine.high %v1135_v59, %v1143_v60  ;;  %v1151_v3 = vld [vmem:[%s15135_s1 + $0x22a0] sm:$0xff] }
 0x343   :  { %8213 = vmatprep.subr.bf16.mxu0 %v10550_v32  ;;  %8428 = vmatprep.subr.bf16.mxu1 %v10552_v39  ;;  %v10630_v32 = vcombine.high %v1087_v10, %v1095_v11  ;;  %v10632_v39 = vcombine.high %v1088_v15, %v1096_v16  ;;  %v1159_v4 = vld [vmem:[%s15135_s1 + $0x22e0] sm:$0xff] }
 0x346   :  { %8214 = vmatpush1.bf16.msra.mxu0 %v10549_v45  ;;  %8429 = vmatpush1.bf16.msra.mxu1 %v10551_v46  ;;  %v1112_v45 = vld [vmem:[%s15135_s1 + $0x2168] sm:$0xff]  ;;  %v10629_v46 = vcombine.low %v1087_v10, %v1095_v11  ;;  %v10694_v10 = vcombine.high %v1151_v3, %v1159_v4 }
 0x347   :  { %8215 = vmatprep.subr.bf16.mxu0 %v10566_v47  ;;  %8430 = vmatprep.subr.bf16.mxu1 %v10568_v48  ;;  %v10631_v47 = vcombine.low %v1088_v15, %v1096_v16  ;;  %v10646_v48 = vcombine.high %v1103_v40, %v1111_v41  ;;  %v10648_v49 = vcombine.high %v1104_v44, %v1112_v45  ;;  %v1167_v15 = vld [vmem:[%s15135_s1 + $0x2320] sm:$0xff] }
 0x348   :  { %v1175_v16 = vld [vmem:[%s15135_s1 + $0x2360] sm:$0xff] }
 0x34a   :  { %8216 = vmatpush1.bf16.msra.mxu0 %v10565_v53  ;;  %8431 = vmatpush1.bf16.msra.mxu1 %v10567_v54  ;;  %v1120_v53 = vld [vmem:[%s15135_s1 + $0x21a8] sm:$0xff] }
 0x34b   :  { %8217 = vmatprep.subr.bf16.mxu0 %v10582_v55  ;;  %8432 = vmatprep.subr.bf16.mxu1 %v10584_v56  ;;  %v1128_v54 = vld [vmem:[%s15135_s1 + $0x21e8] sm:$0xff]  ;;  %v10645_v55 = vcombine.low %v1103_v40, %v1111_v41  ;;  %v10647_v56 = vcombine.low %v1104_v44, %v1112_v45  ;;  %v10710_v40 = vcombine.high %v1167_v15, %v1175_v16  ;;  %v1191_v44 = vld [vmem:[%s15135_s1 + $0x23e0] sm:$0xff] }
 0x34c   :  { %v10664_v58 = vcombine.high %v1120_v53, %v1128_v54  ;;  %v1184_v45 = vld [vmem:[%s15135_s1 + $0x23a8] sm:$0xff] }
 0x34e   :  { %8218 = vmatpush1.bf16.msra.mxu0 %v10581_v61  ;;  %8433 = vmatpush1.bf16.msra.mxu1 %v10583_v62  ;;  %v1136_v61 = vld [vmem:[%s15135_s1 + $0x2228] sm:$0xff] }
 0x34f   :  { %8219 = vmatprep.subr.bf16.mxu0 %v10598_v63  ;;  %8434 = vmatprep.subr.bf16.mxu1 %v10600_v0  ;;  %v1144_v62 = vld [vmem:[%s15135_s1 + $0x2268] sm:$0xff]  ;;  %v10661_v63 = vcombine.low %v1119_v50, %v1127_v51  ;;  %v10663_v0 = vcombine.low %v1120_v53, %v1128_v54  ;;  %v1199_v51 = vld [vmem:[%s15135_s1 + $0x2420] sm:$0xff] }
 0x350   :  { %v10680_v2 = vcombine.high %v1136_v61, %v1144_v62  ;;  %v1200_v53 = vld [vmem:[%s15135_s1 + $0x2428] sm:$0xff] }
 0x351   :  { %v1208_v54 = vld [vmem:[%s15135_s1 + $0x2468] sm:$0xff] }
 0x352   :  { %8220 = vmatpush1.bf16.msra.mxu0 %v10597_v5  ;;  %8435 = vmatpush1.bf16.msra.mxu1 %v10599_v6  ;;  %v1152_v5 = vld [vmem:[%s15135_s1 + $0x22a8] sm:$0xff] }
 0x353   :  { %8232 = vmatprep.subr.bf16.mxu0 %v10614_v7  ;;  %8447 = vmatprep.subr.bf16.mxu1 %v10616_v9  ;;  %v1160_v6 = vld [vmem:[%s15135_s1 + $0x22e8] sm:$0xff]  ;;  %v10677_v7 = vcombine.low %v1135_v59, %v1143_v60  ;;  %v10679_v9 = vcombine.low %v1136_v61, %v1144_v62  ;;  %v1215_v59 = vld [vmem:[%s15135_s1 + $0x24a0] sm:$0xff] }
 0x354   :  { %v10696_v11 = vcombine.high %v1152_v5, %v1160_v6  ;;  %v1223_v60 = vld [vmem:[%s15135_s1 + $0x24e0] sm:$0xff]  ;;  %v1216_v61 = vld [vmem:[%s15135_s1 + $0x24a8] sm:$0xff] }
 0x355   :  { %8222 = vmatmul.mubr.bf16.vlgmr.msra.gmra.mrb[8].mxu0 %v11134_v43  ;;  %8437 = vmatmul.mubr.bf16.vlgmr.msra.gmra.mrb[8].mxu1 %v11134_v43  ;;  %v1183_v43 = vld [vmem:[%s15135_s1 + $0x23a0] sm:$0xff]  ;;  %v1224_v62 = vld [vmem:[%s15135_s1 + $0x24e8] sm:$0xff] }
 0x356   :  { %8233 = vmatpush1.bf16.msra.mxu0 %v10613_v21  ;;  %8448 = vmatpush1.bf16.msra.mxu1 %v10615_v23  ;;  %v1168_v21 = vld [vmem:[%s15135_s1 + $0x2328] sm:$0xff] }
 0x357   :  { %8234 = vmatprep.subr.bf16.mxu0 %v10630_v32  ;;  %8449 = vmatprep.subr.bf16.mxu1 %v10632_v39  ;;  %v1176_v23 = vld [vmem:[%s15135_s1 + $0x2368] sm:$0xff]  ;;  %v10693_v32 = vcombine.low %v1151_v3, %v1159_v4  ;;  %v10695_v39 = vcombine.low %v1152_v5, %v1160_v6  ;;  %v49_v3 = vld [vmem:[%s15135_s1 + $0x30] sm:$0xff]  ;;  %v50_v5 = vld [vmem:[%s15135_s1 + $0x38] sm:$0xff] }
 0x358   :  { %10769 = vmatprep.mubr.msk.bf16.mxu0 %vm7196_vm0, %v11135_v52  ;;  %10770 = vmatprep.mubr.msk.bf16.mxu1 %vm7196_vm0, %v11135_v52  ;;  %v10712_v41 = vcombine.high %v1168_v21, %v1176_v23  ;;  %v1207_v52 = vld [vmem:[%s15135_s1 + $0x2460] sm:$0xff]  ;;  %v57_v4 = vld [vmem:[%s15135_s1 + $0x70] sm:$0xff]  ;;  %v58_v6 = vld [vmem:[%s15135_s1 + $0x78] sm:$0xff] }
 0x35a   :  { %8235 = vmatpush1.bf16.msra.mxu0 %v10629_v46  ;;  %8450 = vmatpush1.bf16.msra.mxu1 %v10631_v47  ;;  %v1192_v46 = vld [vmem:[%s15135_s1 + $0x23e8] sm:$0xff]  ;;  %v10709_v47 = vcombine.low %v1167_v15, %v1175_v16  ;;  %v65_v15 = vld [vmem:[%s15135_s1 + $0xb0] sm:$0xff] }
 0x35b   :  { %8236 = vmatprep.subr.bf16.mxu0 %v10646_v48  ;;  %8451 = vmatprep.subr.bf16.mxu1 %v10648_v49  ;;  %v10711_v48 = vcombine.low %v1168_v21, %v1176_v23  ;;  %v10726_v49 = vcombine.high %v1183_v43, %v1191_v44  ;;  %v10728_v50 = vcombine.high %v1184_v45, %v1192_v46  ;;  %v73_v16 = vld [vmem:[%s15135_s1 + $0xf0] sm:$0xff]  ;;  %v66_v21 = vld [vmem:[%s15135_s1 + $0xb8] sm:$0xff] }
 0x35c   :  { %v74_v23 = vld [vmem:[%s15135_s1 + $0xf8] sm:$0xff] }
 0x35e   :  { %8237 = vmatpush1.bf16.msra.mxu0 %v10645_v55  ;;  %8452 = vmatpush1.bf16.msra.mxu1 %v10647_v56  ;;  %v10725_v55 = vcombine.low %v1183_v43, %v1191_v44  ;;  %v10727_v56 = vcombine.low %v1184_v45, %v1192_v46  ;;  %v81_v43 = vld [vmem:[%s15135_s1 + $0x130] sm:$0xff]  ;;  %v11136_v45 = vld [vmem:[%s15136_s0 + $0x20] ss:$40 sps:$4 sm:$0xff]   ;;  %v82_v46 = vld [vmem:[%s15135_s1 + $0x138] sm:$0xff] }
 0x35f   :  { %8238 = vmatprep.subr.bf16.mxu0 %v10662_v57  ;;  %8453 = vmatprep.subr.bf16.mxu1 %v10664_v58  ;;  %v10742_v57 = vcombine.high %v1199_v51, %v1207_v52  ;;  %v10744_v58 = vcombine.high %v1200_v53, %v1208_v54  ;;  %v89_v44 = vld [vmem:[%s15135_s1 + $0x170] sm:$0xff] }
 0x362   :  { %8239 = vmatpush1.bf16.msra.mxu0 %v10661_v63  ;;  %8454 = vmatpush1.bf16.msra.mxu1 %v10663_v0  ;;  %v10741_v63 = vcombine.low %v1199_v51, %v1207_v52  ;;  %v10743_v0 = vcombine.low %v1200_v53, %v1208_v54  ;;  %v97_v52 = vld [vmem:[%s15135_s1 + $0x1b0] sm:$0xff]  ;;  %v11137_v54 = vld [vmem:[%s15136_s0 + $0x4] ss:$40 sps:$4 sm:$0xff]  }
 0x363   :  { %8240 = vmatprep.subr.bf16.mxu0 %v10678_v1  ;;  %8455 = vmatprep.subr.bf16.mxu1 %v10680_v2  ;;  %v10758_v1 = vcombine.high %v1215_v59, %v1223_v60  ;;  %v10760_v2 = vcombine.high %v1216_v61, %v1224_v62  ;;  %v105_v53 = vld [vmem:[%s15135_s1 + $0x1f0] sm:$0xff] }
 0x366   :  { %8241 = vmatpush1.bf16.msra.mxu0 %v10677_v7  ;;  %8456 = vmatpush1.bf16.msra.mxu1 %v10679_v9  ;;  %v10757_v7 = vcombine.low %v1215_v59, %v1223_v60  ;;  %v10759_v9 = vcombine.low %v1216_v61, %v1224_v62  ;;  %v9642_v59 = vcombine.high %v97_v52, %v105_v53  ;;  %v113_v61 = vld [vmem:[%s15135_s1 + $0x230] sm:$0xff] }
 0x367   :  { %8242 = vmatprep.subr.bf16.mxu0 %v10694_v10  ;;  %8457 = vmatprep.subr.bf16.mxu1 %v10696_v11  ;;  %v9594_v10 = vcombine.high %v49_v3, %v57_v4  ;;  %v9596_v11 = vcombine.high %v50_v5, %v58_v6  ;;  %v121_v62 = vld [vmem:[%s15135_s1 + $0x270] sm:$0xff] }
 0x36a   :  { %8243 = vmatpush1.bf16.msra.mxu0 %v10693_v32  ;;  %8458 = vmatpush1.bf16.msra.mxu1 %v10695_v39  ;;  %v9593_v32 = vcombine.low %v49_v3, %v57_v4  ;;  %v9595_v39 = vcombine.low %v50_v5, %v58_v6  ;;  %v9658_v3 = vcombine.high %v113_v61, %v121_v62  ;;  %v129_v5 = vld [vmem:[%s15135_s1 + $0x2b0] sm:$0xff] }
 0x36b   :  { %8244 = vmatprep.subr.bf16.mxu0 %v10710_v40  ;;  %8459 = vmatprep.subr.bf16.mxu1 %v10712_v41  ;;  %v9610_v40 = vcombine.high %v65_v15, %v73_v16  ;;  %v9612_v41 = vcombine.high %v66_v21, %v74_v23  ;;  %v137_v6 = vld [vmem:[%s15135_s1 + $0x2f0] sm:$0xff] }
 0x36e   :  { %8245 = vmatpush1.bf16.msra.mxu0 %v10709_v47  ;;  %8460 = vmatpush1.bf16.msra.mxu1 %v10711_v48  ;;  %v90_v47 = vld [vmem:[%s15135_s1 + $0x178] sm:$0xff]  ;;  %v9609_v48 = vcombine.low %v65_v15, %v73_v16  ;;  %v9674_v15 = vcombine.high %v129_v5, %v137_v6 }
 0x36f   :  { %8246 = vmatprep.subr.bf16.mxu0 %v10726_v49  ;;  %8461 = vmatprep.subr.bf16.mxu1 %v10728_v50  ;;  %v9611_v49 = vcombine.low %v66_v21, %v74_v23  ;;  %v9626_v50 = vcombine.high %v81_v43, %v89_v44  ;;  %v9628_v51 = vcombine.high %v82_v46, %v90_v47  ;;  %v145_v21 = vld [vmem:[%s15135_s1 + $0x330] sm:$0xff] }
 0x370   :  { %v153_v23 = vld [vmem:[%s15135_s1 + $0x370] sm:$0xff] }
 0x372   :  { %8247 = vmatpush1.bf16.msra.mxu0 %v10725_v55  ;;  %8462 = vmatpush1.bf16.msra.mxu1 %v10727_v56  ;;  %v98_v55 = vld [vmem:[%s15135_s1 + $0x1b8] sm:$0xff] }
 0x373   :  { %8248 = vmatprep.subr.bf16.mxu0 %v10742_v57  ;;  %8463 = vmatprep.subr.bf16.mxu1 %v10744_v58  ;;  %v106_v56 = vld [vmem:[%s15135_s1 + $0x1f8] sm:$0xff]  ;;  %v9625_v57 = vcombine.low %v81_v43, %v89_v44  ;;  %v9627_v58 = vcombine.low %v82_v46, %v90_v47  ;;  %v9690_v43 = vcombine.high %v145_v21, %v153_v23  ;;  %v169_v46 = vld [vmem:[%s15135_s1 + $0x3f0] sm:$0xff] }
 0x374   :  { %v9644_v60 = vcombine.high %v98_v55, %v106_v56  ;;  %v162_v47 = vld [vmem:[%s15135_s1 + $0x3b8] sm:$0xff] }
 0x376   :  { %8249 = vmatpush1.bf16.msra.mxu0 %v10741_v63  ;;  %8464 = vmatpush1.bf16.msra.mxu1 %v10743_v0  ;;  %v114_v63 = vld [vmem:[%s15135_s1 + $0x238] sm:$0xff] }
 0x377   :  { %8250 = vmatprep.subr.bf16.mxu0 %v10758_v1  ;;  %8465 = vmatprep.subr.bf16.mxu1 %v10760_v2  ;;  %v122_v0 = vld [vmem:[%s15135_s1 + $0x278] sm:$0xff]  ;;  %v9641_v1 = vcombine.low %v97_v52, %v105_v53  ;;  %v9643_v2 = vcombine.low %v98_v55, %v106_v56  ;;  %v177_v53 = vld [vmem:[%s15135_s1 + $0x430] sm:$0xff] }
 0x378   :  { %v9660_v4 = vcombine.high %v114_v63, %v122_v0  ;;  %v178_v55 = vld [vmem:[%s15135_s1 + $0x438] sm:$0xff] }
 0x379   :  { %v186_v56 = vld [vmem:[%s15135_s1 + $0x478] sm:$0xff] }
 0x37a   :  { %8251 = vmatpush1.bf16.msra.mxu0 %v10757_v7  ;;  %8466 = vmatpush1.bf16.msra.mxu1 %v10759_v9  ;;  %v130_v7 = vld [vmem:[%s15135_s1 + $0x2b8] sm:$0xff] }
 0x37b   :  { %8490 = vmatprep.subr.bf16.mxu0 %v9594_v10  ;;  %8705 = vmatprep.subr.bf16.mxu1 %v9596_v11  ;;  %v138_v9 = vld [vmem:[%s15135_s1 + $0x2f8] sm:$0xff]  ;;  %v9657_v10 = vcombine.low %v113_v61, %v121_v62  ;;  %v9659_v11 = vcombine.low %v114_v63, %v122_v0  ;;  %v193_v61 = vld [vmem:[%s15135_s1 + $0x4b0] sm:$0xff] }
 0x37c   :  { %v9676_v16 = vcombine.high %v130_v7, %v138_v9  ;;  %v201_v62 = vld [vmem:[%s15135_s1 + $0x4f0] sm:$0xff]  ;;  %v194_v63 = vld [vmem:[%s15135_s1 + $0x4b8] sm:$0xff] }
 0x37d   :  { %8265 = vmatmul.mubr.bf16.vlgmr.msra.gmra.mrb[8].mxu0 %v11136_v45  ;;  %8480 = vmatmul.mubr.bf16.vlgmr.msra.gmra.mrb[8].mxu1 %v11136_v45  ;;  %v161_v45 = vld [vmem:[%s15135_s1 + $0x3b0] sm:$0xff]  ;;  %v202_v0 = vld [vmem:[%s15135_s1 + $0x4f8] sm:$0xff] }
 0x37e   :  { %8491 = vmatpush1.bf16.msra.mxu0 %v9593_v32  ;;  %8706 = vmatpush1.bf16.msra.mxu1 %v9595_v39  ;;  %v146_v32 = vld [vmem:[%s15135_s1 + $0x338] sm:$0xff] }
 0x37f   :  { %8492 = vmatprep.subr.bf16.mxu0 %v9610_v40  ;;  %8707 = vmatprep.subr.bf16.mxu1 %v9612_v41  ;;  %v154_v39 = vld [vmem:[%s15135_s1 + $0x378] sm:$0xff]  ;;  %v9673_v40 = vcombine.low %v129_v5, %v137_v6  ;;  %v9675_v41 = vcombine.low %v130_v7, %v138_v9  ;;  %v209_v5 = vld [vmem:[%s15135_s1 + $0x530] sm:$0xff] }
 0x380   :  { %8522 = vmatprep.mubr.bf16.mxu0 %v11137_v54  ;;  %8737 = vmatprep.mubr.bf16.mxu1 %v11137_v54  ;;  %v9692_v44 = vcombine.high %v146_v32, %v154_v39  ;;  %v185_v54 = vld [vmem:[%s15135_s1 + $0x470] sm:$0xff]  ;;  %v210_v7 = vld [vmem:[%s15135_s1 + $0x538] sm:$0xff] }
 0x381   :  { %v217_v6 = vld [vmem:[%s15135_s1 + $0x570] sm:$0xff]  ;;  %v218_v9 = vld [vmem:[%s15135_s1 + $0x578] sm:$0xff] }
 0x382   :  { %8493 = vmatpush1.bf16.msra.mxu0 %v9609_v48  ;;  %8708 = vmatpush1.bf16.msra.mxu1 %v9611_v49  ;;  %v170_v48 = vld [vmem:[%s15135_s1 + $0x3f8] sm:$0xff]  ;;  %v9689_v49 = vcombine.low %v145_v21, %v153_v23  ;;  %v225_v21 = vld [vmem:[%s15135_s1 + $0x5b0] sm:$0xff] }
 0x383   :  { %8494 = vmatprep.subr.bf16.mxu0 %v9626_v50  ;;  %8709 = vmatprep.subr.bf16.mxu1 %v9628_v51  ;;  %v9691_v50 = vcombine.low %v146_v32, %v154_v39  ;;  %v9706_v51 = vcombine.high %v161_v45, %v169_v46  ;;  %v9708_v52 = vcombine.high %v162_v47, %v170_v48  ;;  %v233_v23 = vld [vmem:[%s15135_s1 + $0x5f0] sm:$0xff]  ;;  %v226_v32 = vld [vmem:[%s15135_s1 + $0x5b8] sm:$0xff] }
 0x384   :  { %v234_v39 = vld [vmem:[%s15135_s1 + $0x5f8] sm:$0xff] }
 0x386   :  { %8495 = vmatpush1.bf16.msra.mxu0 %v9625_v57  ;;  %8710 = vmatpush1.bf16.msra.mxu1 %v9627_v58  ;;  %v9705_v57 = vcombine.low %v161_v45, %v169_v46  ;;  %v9707_v58 = vcombine.low %v162_v47, %v170_v48  ;;  %v241_v45 = vld [vmem:[%s15135_s1 + $0x630] sm:$0xff]  ;;  %v242_v47 = vld [vmem:[%s15135_s1 + $0x638] sm:$0xff] }
 0x387   :  { %8496 = vmatprep.subr.bf16.mxu0 %v9642_v59  ;;  %8711 = vmatprep.subr.bf16.mxu1 %v9644_v60  ;;  %v9722_v59 = vcombine.high %v177_v53, %v185_v54  ;;  %v9724_v60 = vcombine.high %v178_v55, %v186_v56  ;;  %v249_v46 = vld [vmem:[%s15135_s1 + $0x670] sm:$0xff]  ;;  %v250_v48 = vld [vmem:[%s15135_s1 + $0x678] sm:$0xff] }
 0x38a   :  { %8497 = vmatpush1.bf16.msra.mxu0 %v9641_v1  ;;  %8712 = vmatpush1.bf16.msra.mxu1 %v9643_v2  ;;  %v9721_v1 = vcombine.low %v177_v53, %v185_v54  ;;  %v9723_v2 = vcombine.low %v178_v55, %v186_v56  ;;  %v257_v53 = vld [vmem:[%s15135_s1 + $0x6b0] sm:$0xff]  ;;  %v258_v55 = vld [vmem:[%s15135_s1 + $0x6b8] sm:$0xff] }
 0x38b   :  { %8498 = vmatprep.subr.bf16.mxu0 %v9658_v3  ;;  %8713 = vmatprep.subr.bf16.mxu1 %v9660_v4  ;;  %v9738_v3 = vcombine.high %v193_v61, %v201_v62  ;;  %v9740_v4 = vcombine.high %v194_v63, %v202_v0  ;;  %v265_v54 = vld [vmem:[%s15135_s1 + $0x6f0] sm:$0xff]  ;;  %v266_v56 = vld [vmem:[%s15135_s1 + $0x6f8] sm:$0xff] }
 0x38e   :  { %8499 = vmatpush1.bf16.msra.mxu0 %v9657_v10  ;;  %8714 = vmatpush1.bf16.msra.mxu1 %v9659_v11  ;;  %v9737_v10 = vcombine.low %v193_v61, %v201_v62  ;;  %v9739_v11 = vcombine.low %v194_v63, %v202_v0  ;;  %v273_v61 = vld [vmem:[%s15135_s1 + $0x730] sm:$0xff]  ;;  %v274_v63 = vld [vmem:[%s15135_s1 + $0x738] sm:$0xff] }
 0x38f   :  { %8500 = vmatprep.subr.bf16.mxu0 %v9674_v15  ;;  %8715 = vmatprep.subr.bf16.mxu1 %v9676_v16  ;;  %v9754_v15 = vcombine.high %v209_v5, %v217_v6  ;;  %v9756_v16 = vcombine.high %v210_v7, %v218_v9  ;;  %v281_v62 = vld [vmem:[%s15135_s1 + $0x770] sm:$0xff]  ;;  %v282_v0 = vld [vmem:[%s15135_s1 + $0x778] sm:$0xff] }
 0x392   :  { %8501 = vmatpush1.bf16.msra.mxu0 %v9673_v40  ;;  %8716 = vmatpush1.bf16.msra.mxu1 %v9675_v41  ;;  %v9753_v40 = vcombine.low %v209_v5, %v217_v6  ;;  %v9755_v41 = vcombine.low %v210_v7, %v218_v9  ;;  %v289_v5 = vld [vmem:[%s15135_s1 + $0x7b0] sm:$0xff]  ;;  %v290_v7 = vld [vmem:[%s15135_s1 + $0x7b8] sm:$0xff] }
 0x393   :  { %8502 = vmatprep.subr.bf16.mxu0 %v9690_v43  ;;  %8717 = vmatprep.subr.bf16.mxu1 %v9692_v44  ;;  %v9770_v43 = vcombine.high %v225_v21, %v233_v23  ;;  %v9772_v44 = vcombine.high %v226_v32, %v234_v39  ;;  %v297_v6 = vld [vmem:[%s15135_s1 + $0x7f0] sm:$0xff]  ;;  %v298_v9 = vld [vmem:[%s15135_s1 + $0x7f8] sm:$0xff] }
 0x396   :  { %8503 = vmatpush1.bf16.msra.mxu0 %v9689_v49  ;;  %8718 = vmatpush1.bf16.msra.mxu1 %v9691_v50  ;;  %v9769_v49 = vcombine.low %v225_v21, %v233_v23  ;;  %v9771_v50 = vcombine.low %v226_v32, %v234_v39  ;;  %v305_v21 = vld [vmem:[%s15135_s1 + $0x830] sm:$0xff]  ;;  %v306_v32 = vld [vmem:[%s15135_s1 + $0x838] sm:$0xff] }
 0x397   :  { %8504 = vmatprep.subr.bf16.mxu0 %v9706_v51  ;;  %8719 = vmatprep.subr.bf16.mxu1 %v9708_v52  ;;  %v9786_v51 = vcombine.high %v241_v45, %v249_v46  ;;  %v9788_v52 = vcombine.high %v242_v47, %v250_v48  ;;  %v313_v23 = vld [vmem:[%s15135_s1 + $0x870] sm:$0xff]  ;;  %v314_v39 = vld [vmem:[%s15135_s1 + $0x878] sm:$0xff] }
 0x39a   :  { %8505 = vmatpush1.bf16.msra.mxu0 %v9705_v57  ;;  %8720 = vmatpush1.bf16.msra.mxu1 %v9707_v58  ;;  %v9785_v57 = vcombine.low %v241_v45, %v249_v46  ;;  %v9787_v58 = vcombine.low %v242_v47, %v250_v48  ;;  %v321_v45 = vld [vmem:[%s15135_s1 + $0x8b0] sm:$0xff]  ;;  %v322_v47 = vld [vmem:[%s15135_s1 + $0x8b8] sm:$0xff] }
 0x39b   :  { %8506 = vmatprep.subr.bf16.mxu0 %v9722_v59  ;;  %8721 = vmatprep.subr.bf16.mxu1 %v9724_v60  ;;  %v9802_v59 = vcombine.high %v257_v53, %v265_v54  ;;  %v9804_v60 = vcombine.high %v258_v55, %v266_v56  ;;  %v329_v46 = vld [vmem:[%s15135_s1 + $0x8f0] sm:$0xff]  ;;  %v330_v48 = vld [vmem:[%s15135_s1 + $0x8f8] sm:$0xff] }
 0x39e   :  { %8507 = vmatpush1.bf16.msra.mxu0 %v9721_v1  ;;  %8722 = vmatpush1.bf16.msra.mxu1 %v9723_v2  ;;  %v9801_v1 = vcombine.low %v257_v53, %v265_v54  ;;  %v9803_v2 = vcombine.low %v258_v55, %v266_v56  ;;  %v337_v53 = vld [vmem:[%s15135_s1 + $0x930] sm:$0xff]  ;;  %v11138_v55 = vld [vmem:[%s15136_s0] ss:$40 sps:$4 sm:$0xff]   ;;  %v338_v56 = vld [vmem:[%s15135_s1 + $0x938] sm:$0xff] }
 0x39f   :  { %8508 = vmatprep.subr.bf16.mxu0 %v9738_v3  ;;  %8723 = vmatprep.subr.bf16.mxu1 %v9740_v4  ;;  %v9818_v3 = vcombine.high %v273_v61, %v281_v62  ;;  %v9820_v4 = vcombine.high %v274_v63, %v282_v0  ;;  %v345_v54 = vld [vmem:[%s15135_s1 + $0x970] sm:$0xff] }
 0x3a2   :  { %8509 = vmatpush1.bf16.msra.mxu0 %v9737_v10  ;;  %8724 = vmatpush1.bf16.msra.mxu1 %v9739_v11  ;;  %v9817_v10 = vcombine.low %v273_v61, %v281_v62  ;;  %v9819_v11 = vcombine.low %v274_v63, %v282_v0  ;;  %v353_v62 = vld [vmem:[%s15135_s1 + $0x9b0] sm:$0xff] }
 0x3a3   :  { %8510 = vmatprep.subr.bf16.mxu0 %v9754_v15  ;;  %8725 = vmatprep.subr.bf16.mxu1 %v9756_v16  ;;  %v9834_v15 = vcombine.high %v289_v5, %v297_v6  ;;  %v9836_v16 = vcombine.high %v290_v7, %v298_v9  ;;  %v361_v63 = vld [vmem:[%s15135_s1 + $0x9f0] sm:$0xff] }
 0x3a4   :  { %v11139_v0 = vld [vmem:[%s15136_s0 + $0xc] ss:$40 sps:$4 sm:$0xff]  }
 0x3a6   :  { %8511 = vmatpush1.bf16.msra.mxu0 %v9753_v40  ;;  %8726 = vmatpush1.bf16.msra.mxu1 %v9755_v41  ;;  %v9833_v40 = vcombine.low %v289_v5, %v297_v6  ;;  %v9835_v41 = vcombine.low %v290_v7, %v298_v9  ;;  %v9898_v5 = vcombine.high %v353_v62, %v361_v63  ;;  %v369_v7 = vld [vmem:[%s15135_s1 + $0xa30] sm:$0xff] }
 0x3a7   :  { %8512 = vmatprep.subr.bf16.mxu0 %v9770_v43  ;;  %8727 = vmatprep.subr.bf16.mxu1 %v9772_v44  ;;  %v9850_v43 = vcombine.high %v305_v21, %v313_v23  ;;  %v9852_v44 = vcombine.high %v306_v32, %v314_v39  ;;  %v377_v9 = vld [vmem:[%s15135_s1 + $0xa70] sm:$0xff] }
 0x3aa   :  { %8513 = vmatpush1.bf16.msra.mxu0 %v9769_v49  ;;  %8728 = vmatpush1.bf16.msra.mxu1 %v9771_v50  ;;  %v9849_v49 = vcombine.low %v305_v21, %v313_v23  ;;  %v9851_v50 = vcombine.low %v306_v32, %v314_v39  ;;  %v9914_v21 = vcombine.high %v369_v7, %v377_v9  ;;  %v385_v32 = vld [vmem:[%s15135_s1 + $0xab0] sm:$0xff] }
 0x3ab   :  { %8514 = vmatprep.subr.bf16.mxu0 %v9786_v51  ;;  %8729 = vmatprep.subr.bf16.mxu1 %v9788_v52  ;;  %v9866_v51 = vcombine.high %v321_v45, %v329_v46  ;;  %v9868_v52 = vcombine.high %v322_v47, %v330_v48  ;;  %v393_v39 = vld [vmem:[%s15135_s1 + $0xaf0] sm:$0xff] }
 0x3ae   :  { %8515 = vmatpush1.bf16.msra.mxu0 %v9785_v57  ;;  %8730 = vmatpush1.bf16.msra.mxu1 %v9787_v58  ;;  %v346_v57 = vld [vmem:[%s15135_s1 + $0x978] sm:$0xff]  ;;  %v9865_v58 = vcombine.low %v321_v45, %v329_v46  ;;  %v9930_v45 = vcombine.high %v385_v32, %v393_v39 }
 0x3af   :  { %8516 = vmatprep.subr.bf16.mxu0 %v9802_v59  ;;  %8731 = vmatprep.subr.bf16.mxu1 %v9804_v60  ;;  %v9867_v59 = vcombine.low %v322_v47, %v330_v48  ;;  %v9882_v60 = vcombine.high %v337_v53, %v345_v54  ;;  %v9884_v61 = vcombine.high %v338_v56, %v346_v57  ;;  %v401_v47 = vld [vmem:[%s15135_s1 + $0xb30] sm:$0xff] }
 0x3b0   :  { %v409_v48 = vld [vmem:[%s15135_s1 + $0xb70] sm:$0xff] }
 0x3b2   :  { %8517 = vmatpush1.bf16.msra.mxu0 %v9801_v1  ;;  %8732 = vmatpush1.bf16.msra.mxu1 %v9803_v2  ;;  %v354_v1 = vld [vmem:[%s15135_s1 + $0x9b8] sm:$0xff] }
 0x3b3   :  { %8518 = vmatprep.subr.bf16.mxu0 %v9818_v3  ;;  %8733 = vmatprep.subr.bf16.mxu1 %v9820_v4  ;;  %v362_v2 = vld [vmem:[%s15135_s1 + $0x9f8] sm:$0xff]  ;;  %v9881_v3 = vcombine.low %v337_v53, %v345_v54  ;;  %v9883_v4 = vcombine.low %v338_v56, %v346_v57  ;;  %v9946_v53 = vcombine.high %v401_v47, %v409_v48  ;;  %v425_v56 = vld [vmem:[%s15135_s1 + $0xbf0] sm:$0xff] }
 0x3b4   :  { %v9900_v6 = vcombine.high %v354_v1, %v362_v2  ;;  %v418_v57 = vld [vmem:[%s15135_s1 + $0xbb8] sm:$0xff] }
 0x3b6   :  { %8519 = vmatpush1.bf16.msra.mxu0 %v9817_v10  ;;  %8734 = vmatpush1.bf16.msra.mxu1 %v9819_v11  ;;  %v370_v10 = vld [vmem:[%s15135_s1 + $0xa38] sm:$0xff] }
 0x3b7   :  { %8520 = vmatprep.subr.bf16.mxu0 %v9834_v15  ;;  %8735 = vmatprep.subr.bf16.mxu1 %v9836_v16  ;;  %v378_v11 = vld [vmem:[%s15135_s1 + $0xa78] sm:$0xff]  ;;  %v9897_v15 = vcombine.low %v353_v62, %v361_v63  ;;  %v9899_v16 = vcombine.low %v354_v1, %v362_v2  ;;  %v433_v63 = vld [vmem:[%s15135_s1 + $0xc30] sm:$0xff] }
 0x3b8   :  { %v9916_v23 = vcombine.high %v370_v10, %v378_v11  ;;  %v434_v1 = vld [vmem:[%s15135_s1 + $0xc38] sm:$0xff] }
 0x3b9   :  { %v442_v2 = vld [vmem:[%s15135_s1 + $0xc78] sm:$0xff] }
 0x3ba   :  { %8521 = vmatpush1.bf16.msra.mxu0 %v9833_v40  ;;  %8736 = vmatpush1.bf16.msra.mxu1 %v9835_v41  ;;  %v386_v40 = vld [vmem:[%s15135_s1 + $0xab8] sm:$0xff] }
 0x3bb   :  { %8533 = vmatprep.subr.bf16.mxu0 %v9850_v43  ;;  %8748 = vmatprep.subr.bf16.mxu1 %v9852_v44  ;;  %v394_v41 = vld [vmem:[%s15135_s1 + $0xaf8] sm:$0xff]  ;;  %v9913_v43 = vcombine.low %v369_v7, %v377_v9  ;;  %v9915_v44 = vcombine.low %v370_v10, %v378_v11  ;;  %v449_v7 = vld [vmem:[%s15135_s1 + $0xcb0] sm:$0xff] }
 0x3bc   :  { %v9932_v46 = vcombine.high %v386_v40, %v394_v41  ;;  %v457_v9 = vld [vmem:[%s15135_s1 + $0xcf0] sm:$0xff]  ;;  %v450_v10 = vld [vmem:[%s15135_s1 + $0xcb8] sm:$0xff] }
 0x3bd   :  { %8523 = vmatmul.mubr.bf16.vlgmr.msra.gmra.mrb[12].mxu0 %v11138_v55  ;;  %8738 = vmatmul.mubr.bf16.vlgmr.msra.gmra.mrb[12].mxu1 %v11138_v55  ;;  %v417_v55 = vld [vmem:[%s15135_s1 + $0xbb0] sm:$0xff]  ;;  %v458_v11 = vld [vmem:[%s15135_s1 + $0xcf8] sm:$0xff] }
 0x3be   :  { %8534 = vmatpush1.bf16.msra.mxu0 %v9849_v49  ;;  %8749 = vmatpush1.bf16.msra.mxu1 %v9851_v50  ;;  %v402_v49 = vld [vmem:[%s15135_s1 + $0xb38] sm:$0xff] }
 0x3bf   :  { %8535 = vmatprep.subr.bf16.mxu0 %v9866_v51  ;;  %8750 = vmatprep.subr.bf16.mxu1 %v9868_v52  ;;  %v410_v50 = vld [vmem:[%s15135_s1 + $0xb78] sm:$0xff]  ;;  %v9929_v51 = vcombine.low %v385_v32, %v393_v39  ;;  %v9931_v52 = vcombine.low %v386_v40, %v394_v41  ;;  %v465_v32 = vld [vmem:[%s15135_s1 + $0xd30] sm:$0xff] }
 0x3c0   :  { %8565 = vmatprep.mubr.bf16.mxu0 %v11139_v0  ;;  %8780 = vmatprep.mubr.bf16.mxu1 %v11139_v0  ;;  %v9948_v54 = vcombine.high %v402_v49, %v410_v50  ;;  %v441_v0 = vld [vmem:[%s15135_s1 + $0xc70] sm:$0xff]  ;;  %v466_v40 = vld [vmem:[%s15135_s1 + $0xd38] sm:$0xff] }
 0x3c1   :  { %v473_v39 = vld [vmem:[%s15135_s1 + $0xd70] sm:$0xff]  ;;  %v474_v41 = vld [vmem:[%s15135_s1 + $0xd78] sm:$0xff] }
 0x3c2   :  { %8536 = vmatpush1.bf16.msra.mxu0 %v9865_v58  ;;  %8751 = vmatpush1.bf16.msra.mxu1 %v9867_v59  ;;  %v426_v58 = vld [vmem:[%s15135_s1 + $0xbf8] sm:$0xff]  ;;  %v9945_v59 = vcombine.low %v401_v47, %v409_v48  ;;  %v481_v47 = vld [vmem:[%s15135_s1 + $0xdb0] sm:$0xff] }
 0x3c3   :  { %8537 = vmatprep.subr.bf16.mxu0 %v9882_v60  ;;  %8752 = vmatprep.subr.bf16.mxu1 %v9884_v61  ;;  %v9947_v60 = vcombine.low %v402_v49, %v410_v50  ;;  %v9962_v61 = vcombine.high %v417_v55, %v425_v56  ;;  %v9964_v62 = vcombine.high %v418_v57, %v426_v58  ;;  %v489_v48 = vld [vmem:[%s15135_s1 + $0xdf0] sm:$0xff]  ;;  %v482_v49 = vld [vmem:[%s15135_s1 + $0xdb8] sm:$0xff] }
 0x3c4   :  { %v490_v50 = vld [vmem:[%s15135_s1 + $0xdf8] sm:$0xff] }
 0x3c6   :  { %8538 = vmatpush1.bf16.msra.mxu0 %v9881_v3  ;;  %8753 = vmatpush1.bf16.msra.mxu1 %v9883_v4  ;;  %v9961_v3 = vcombine.low %v417_v55, %v425_v56  ;;  %v9963_v4 = vcombine.low %v418_v57, %v426_v58  ;;  %v497_v55 = vld [vmem:[%s15135_s1 + $0xe30] sm:$0xff]  ;;  %v498_v57 = vld [vmem:[%s15135_s1 + $0xe38] sm:$0xff] }
 0x3c7   :  { %8539 = vmatprep.subr.bf16.mxu0 %v9898_v5  ;;  %8754 = vmatprep.subr.bf16.mxu1 %v9900_v6  ;;  %v9978_v5 = vcombine.high %v433_v63, %v441_v0  ;;  %v9980_v6 = vcombine.high %v434_v1, %v442_v2  ;;  %v505_v56 = vld [vmem:[%s15135_s1 + $0xe70] sm:$0xff]  ;;  %v506_v58 = vld [vmem:[%s15135_s1 + $0xe78] sm:$0xff] }
 0x3ca   :  { %8540 = vmatpush1.bf16.msra.mxu0 %v9897_v15  ;;  %8755 = vmatpush1.bf16.msra.mxu1 %v9899_v16  ;;  %v9977_v15 = vcombine.low %v433_v63, %v441_v0  ;;  %v9979_v16 = vcombine.low %v434_v1, %v442_v2  ;;  %v513_v63 = vld [vmem:[%s15135_s1 + $0xeb0] sm:$0xff]  ;;  %v514_v1 = vld [vmem:[%s15135_s1 + $0xeb8] sm:$0xff] }
 0x3cb   :  { %8541 = vmatprep.subr.bf16.mxu0 %v9914_v21  ;;  %8756 = vmatprep.subr.bf16.mxu1 %v9916_v23  ;;  %v9994_v21 = vcombine.high %v449_v7, %v457_v9  ;;  %v9996_v23 = vcombine.high %v450_v10, %v458_v11  ;;  %v521_v0 = vld [vmem:[%s15135_s1 + $0xef0] sm:$0xff]  ;;  %v522_v2 = vld [vmem:[%s15135_s1 + $0xef8] sm:$0xff] }
 0x3ce   :  { %8542 = vmatpush1.bf16.msra.mxu0 %v9913_v43  ;;  %8757 = vmatpush1.bf16.msra.mxu1 %v9915_v44  ;;  %v9993_v43 = vcombine.low %v449_v7, %v457_v9  ;;  %v9995_v44 = vcombine.low %v450_v10, %v458_v11  ;;  %v529_v7 = vld [vmem:[%s15135_s1 + $0xf30] sm:$0xff]  ;;  %v530_v10 = vld [vmem:[%s15135_s1 + $0xf38] sm:$0xff] }
 0x3cf   :  { %8543 = vmatprep.subr.bf16.mxu0 %v9930_v45  ;;  %8758 = vmatprep.subr.bf16.mxu1 %v9932_v46  ;;  %v10010_v45 = vcombine.high %v465_v32, %v473_v39  ;;  %v10012_v46 = vcombine.high %v466_v40, %v474_v41  ;;  %v537_v9 = vld [vmem:[%s15135_s1 + $0xf70] sm:$0xff]  ;;  %v538_v11 = vld [vmem:[%s15135_s1 + $0xf78] sm:$0xff] }
 0x3d2   :  { %8544 = vmatpush1.bf16.msra.mxu0 %v9929_v51  ;;  %8759 = vmatpush1.bf16.msra.mxu1 %v9931_v52  ;;  %v10009_v51 = vcombine.low %v465_v32, %v473_v39  ;;  %v10011_v52 = vcombine.low %v466_v40, %v474_v41  ;;  %v545_v32 = vld [vmem:[%s15135_s1 + $0xfb0] sm:$0xff]  ;;  %v546_v40 = vld [vmem:[%s15135_s1 + $0xfb8] sm:$0xff] }
 0x3d3   :  { %8545 = vmatprep.subr.bf16.mxu0 %v9946_v53  ;;  %8760 = vmatprep.subr.bf16.mxu1 %v9948_v54  ;;  %v10026_v53 = vcombine.high %v481_v47, %v489_v48  ;;  %v10028_v54 = vcombine.high %v482_v49, %v490_v50  ;;  %v553_v39 = vld [vmem:[%s15135_s1 + $0xff0] sm:$0xff]  ;;  %v554_v41 = vld [vmem:[%s15135_s1 + $0xff8] sm:$0xff] }
 0x3d6   :  { %8546 = vmatpush1.bf16.msra.mxu0 %v9945_v59  ;;  %8761 = vmatpush1.bf16.msra.mxu1 %v9947_v60  ;;  %v10025_v59 = vcombine.low %v481_v47, %v489_v48  ;;  %v10027_v60 = vcombine.low %v482_v49, %v490_v50  ;;  %v561_v47 = vld [vmem:[%s15135_s1 + $0x1030] sm:$0xff]  ;;  %v562_v49 = vld [vmem:[%s15135_s1 + $0x1038] sm:$0xff] }
 0x3d7   :  { %8547 = vmatprep.subr.bf16.mxu0 %v9962_v61  ;;  %8762 = vmatprep.subr.bf16.mxu1 %v9964_v62  ;;  %v10042_v61 = vcombine.high %v497_v55, %v505_v56  ;;  %v10044_v62 = vcombine.high %v498_v57, %v506_v58  ;;  %v569_v48 = vld [vmem:[%s15135_s1 + $0x1070] sm:$0xff]  ;;  %v570_v50 = vld [vmem:[%s15135_s1 + $0x1078] sm:$0xff] }
 0x3da   :  { %8548 = vmatpush1.bf16.msra.mxu0 %v9961_v3  ;;  %8763 = vmatpush1.bf16.msra.mxu1 %v9963_v4  ;;  %v10041_v3 = vcombine.low %v497_v55, %v505_v56  ;;  %v10043_v4 = vcombine.low %v498_v57, %v506_v58  ;;  %v577_v55 = vld [vmem:[%s15135_s1 + $0x10b0] sm:$0xff]  ;;  %v578_v57 = vld [vmem:[%s15135_s1 + $0x10b8] sm:$0xff] }
 0x3db   :  { %8549 = vmatprep.subr.bf16.mxu0 %v9978_v5  ;;  %8764 = vmatprep.subr.bf16.mxu1 %v9980_v6  ;;  %v10058_v5 = vcombine.high %v513_v63, %v521_v0  ;;  %v10060_v6 = vcombine.high %v514_v1, %v522_v2  ;;  %v585_v56 = vld [vmem:[%s15135_s1 + $0x10f0] sm:$0xff]  ;;  %v586_v58 = vld [vmem:[%s15135_s1 + $0x10f8] sm:$0xff] }
 0x3de   :  { %8550 = vmatpush1.bf16.msra.mxu0 %v9977_v15  ;;  %8765 = vmatpush1.bf16.msra.mxu1 %v9979_v16  ;;  %v10057_v15 = vcombine.low %v513_v63, %v521_v0  ;;  %v10059_v16 = vcombine.low %v514_v1, %v522_v2  ;;  %v593_v63 = vld [vmem:[%s15135_s1 + $0x1130] sm:$0xff]  ;;  %v594_v2 = vld [vmem:[%s15135_s1 + $0x1138] sm:$0xff] }
 0x3df   :  { %8551 = vmatprep.subr.bf16.mxu0 %v9994_v21  ;;  %8766 = vmatprep.subr.bf16.mxu1 %v9996_v23  ;;  %v10074_v21 = vcombine.high %v529_v7, %v537_v9  ;;  %v10076_v23 = vcombine.high %v530_v10, %v538_v11  ;;  %v601_v0 = vld [vmem:[%s15135_s1 + $0x1170] sm:$0xff] }
 0x3e0   :  { %v11140_v1 = vld [vmem:[%s15136_s0 + $0x8] ss:$40 sps:$4 sm:$0xff]  }
 0x3e2   :  { %8552 = vmatpush1.bf16.msra.mxu0 %v9993_v43  ;;  %8767 = vmatpush1.bf16.msra.mxu1 %v9995_v44  ;;  %v10073_v43 = vcombine.low %v529_v7, %v537_v9  ;;  %v10075_v44 = vcombine.low %v530_v10, %v538_v11  ;;  %v609_v9 = vld [vmem:[%s15135_s1 + $0x11b0] sm:$0xff] }
 0x3e3   :  { %8553 = vmatprep.subr.bf16.mxu0 %v10010_v45  ;;  %8768 = vmatprep.subr.bf16.mxu1 %v10012_v46  ;;  %v10090_v45 = vcombine.high %v545_v32, %v553_v39  ;;  %v10092_v46 = vcombine.high %v546_v40, %v554_v41  ;;  %v617_v10 = vld [vmem:[%s15135_s1 + $0x11f0] sm:$0xff] }
 0x3e4   :  { %v11141_v11 = vld [vmem:[%s15136_s0 + $0x14] ss:$40 sps:$4 sm:$0xff]  }
 0x3e6   :  { %8554 = vmatpush1.bf16.msra.mxu0 %v10009_v51  ;;  %8769 = vmatpush1.bf16.msra.mxu1 %v10011_v52  ;;  %v10089_v51 = vcombine.low %v545_v32, %v553_v39  ;;  %v10091_v52 = vcombine.low %v546_v40, %v554_v41  ;;  %v10154_v32 = vcombine.high %v609_v9, %v617_v10  ;;  %v625_v40 = vld [vmem:[%s15135_s1 + $0x1230] sm:$0xff] }
 0x3e7   :  { %8555 = vmatprep.subr.bf16.mxu0 %v10026_v53  ;;  %8770 = vmatprep.subr.bf16.mxu1 %v10028_v54  ;;  %v10106_v53 = vcombine.high %v561_v47, %v569_v48  ;;  %v10108_v54 = vcombine.high %v562_v49, %v570_v50  ;;  %v633_v41 = vld [vmem:[%s15135_s1 + $0x1270] sm:$0xff] }
 0x3ea   :  { %8556 = vmatpush1.bf16.msra.mxu0 %v10025_v59  ;;  %8771 = vmatpush1.bf16.msra.mxu1 %v10027_v60  ;;  %v10105_v59 = vcombine.low %v561_v47, %v569_v48  ;;  %v10107_v60 = vcombine.low %v562_v49, %v570_v50  ;;  %v10170_v47 = vcombine.high %v625_v40, %v633_v41  ;;  %v641_v49 = vld [vmem:[%s15135_s1 + $0x12b0] sm:$0xff] }
 0x3eb   :  { %8557 = vmatprep.subr.bf16.mxu0 %v10042_v61  ;;  %8772 = vmatprep.subr.bf16.mxu1 %v10044_v62  ;;  %v10122_v61 = vcombine.high %v577_v55, %v585_v56  ;;  %v10124_v62 = vcombine.high %v578_v57, %v586_v58  ;;  %v649_v50 = vld [vmem:[%s15135_s1 + $0x12f0] sm:$0xff] }
 0x3ee   :  { %8558 = vmatpush1.bf16.msra.mxu0 %v10041_v3  ;;  %8773 = vmatpush1.bf16.msra.mxu1 %v10043_v4  ;;  %v602_v3 = vld [vmem:[%s15135_s1 + $0x1178] sm:$0xff]  ;;  %v10121_v4 = vcombine.low %v577_v55, %v585_v56  ;;  %v10186_v55 = vcombine.high %v641_v49, %v649_v50 }
 0x3ef   :  { %8559 = vmatprep.subr.bf16.mxu0 %v10058_v5  ;;  %8774 = vmatprep.subr.bf16.mxu1 %v10060_v6  ;;  %v10123_v5 = vcombine.low %v578_v57, %v586_v58  ;;  %v10138_v6 = vcombine.high %v593_v63, %v601_v0  ;;  %v10140_v7 = vcombine.high %v594_v2, %v602_v3  ;;  %v657_v57 = vld [vmem:[%s15135_s1 + $0x1330] sm:$0xff] }
 0x3f0   :  { %v665_v58 = vld [vmem:[%s15135_s1 + $0x1370] sm:$0xff] }
 0x3f2   :  { %8560 = vmatpush1.bf16.msra.mxu0 %v10057_v15  ;;  %8775 = vmatpush1.bf16.msra.mxu1 %v10059_v16  ;;  %v610_v15 = vld [vmem:[%s15135_s1 + $0x11b8] sm:$0xff] }
 0x3f3   :  { %8561 = vmatprep.subr.bf16.mxu0 %v10074_v21  ;;  %8776 = vmatprep.subr.bf16.mxu1 %v10076_v23  ;;  %v618_v16 = vld [vmem:[%s15135_s1 + $0x11f8] sm:$0xff]  ;;  %v10137_v21 = vcombine.low %v593_v63, %v601_v0  ;;  %v10139_v23 = vcombine.low %v594_v2, %v602_v3  ;;  %v10202_v63 = vcombine.high %v657_v57, %v665_v58  ;;  %v681_v2 = vld [vmem:[%s15135_s1 + $0x13f0] sm:$0xff] }
 0x3f4   :  { %v10156_v39 = vcombine.high %v610_v15, %v618_v16  ;;  %v674_v3 = vld [vmem:[%s15135_s1 + $0x13b8] sm:$0xff] }
 0x3f6   :  { %8562 = vmatpush1.bf16.msra.mxu0 %v10073_v43  ;;  %8777 = vmatpush1.bf16.msra.mxu1 %v10075_v44  ;;  %v626_v43 = vld [vmem:[%s15135_s1 + $0x1238] sm:$0xff] }
 0x3f7   :  { %8563 = vmatprep.subr.bf16.mxu0 %v10090_v45  ;;  %8778 = vmatprep.subr.bf16.mxu1 %v10092_v46  ;;  %v634_v44 = vld [vmem:[%s15135_s1 + $0x1278] sm:$0xff]  ;;  %v10153_v45 = vcombine.low %v609_v9, %v617_v10  ;;  %v10155_v46 = vcombine.low %v610_v15, %v618_v16  ;;  %v689_v10 = vld [vmem:[%s15135_s1 + $0x1430] sm:$0xff] }
 0x3f8   :  { %v10172_v48 = vcombine.high %v626_v43, %v634_v44  ;;  %v690_v15 = vld [vmem:[%s15135_s1 + $0x1438] sm:$0xff] }
 0x3f9   :  { %v698_v16 = vld [vmem:[%s15135_s1 + $0x1478] sm:$0xff] }
 0x3fa   :  { %8564 = vmatpush1.bf16.msra.mxu0 %v10089_v51  ;;  %8779 = vmatpush1.bf16.msra.mxu1 %v10091_v52  ;;  %v642_v51 = vld [vmem:[%s15135_s1 + $0x12b8] sm:$0xff] }
 0x3fb   :  { %8576 = vmatprep.subr.bf16.mxu0 %v10106_v53  ;;  %8791 = vmatprep.subr.bf16.mxu1 %v10108_v54  ;;  %v650_v52 = vld [vmem:[%s15135_s1 + $0x12f8] sm:$0xff]  ;;  %v10169_v53 = vcombine.low %v625_v40, %v633_v41  ;;  %v10171_v54 = vcombine.low %v626_v43, %v634_v44  ;;  %v705_v40 = vld [vmem:[%s15135_s1 + $0x14b0] sm:$0xff] }
 0x3fc   :  { %v10188_v56 = vcombine.high %v642_v51, %v650_v52  ;;  %v713_v41 = vld [vmem:[%s15135_s1 + $0x14f0] sm:$0xff]  ;;  %v706_v43 = vld [vmem:[%s15135_s1 + $0x14b8] sm:$0xff] }
 0x3fd   :  { %8566 = vmatmul.mubr.bf16.vlgmr.msra.gmra.mrb[12].mxu0 %v11140_v1  ;;  %8781 = vmatmul.mubr.bf16.vlgmr.msra.gmra.mrb[12].mxu1 %v11140_v1  ;;  %v673_v1 = vld [vmem:[%s15135_s1 + $0x13b0] sm:$0xff]  ;;  %v714_v44 = vld [vmem:[%s15135_s1 + $0x14f8] sm:$0xff] }
 0x3fe   :  { %8577 = vmatpush1.bf16.msra.mxu0 %v10105_v59  ;;  %8792 = vmatpush1.bf16.msra.mxu1 %v10107_v60  ;;  %v658_v59 = vld [vmem:[%s15135_s1 + $0x1338] sm:$0xff] }
 0x3ff   :  { %8578 = vmatprep.subr.bf16.mxu0 %v10122_v61  ;;  %8793 = vmatprep.subr.bf16.mxu1 %v10124_v62  ;;  %v666_v60 = vld [vmem:[%s15135_s1 + $0x1378] sm:$0xff]  ;;  %v10185_v61 = vcombine.low %v641_v49, %v649_v50  ;;  %v10187_v62 = vcombine.low %v642_v51, %v650_v52  ;;  %v721_v49 = vld [vmem:[%s15135_s1 + $0x1530] sm:$0xff] }
 0x400   :  { %8608 = vmatprep.mubr.bf16.mxu0 %v11141_v11  ;;  %8823 = vmatprep.mubr.bf16.mxu1 %v11141_v11  ;;  %v10204_v0 = vcombine.high %v658_v59, %v666_v60  ;;  %v697_v11 = vld [vmem:[%s15135_s1 + $0x1470] sm:$0xff]  ;;  %v722_v51 = vld [vmem:[%s15135_s1 + $0x1538] sm:$0xff] }
 0x401   :  { %v729_v50 = vld [vmem:[%s15135_s1 + $0x1570] sm:$0xff]  ;;  %v730_v52 = vld [vmem:[%s15135_s1 + $0x1578] sm:$0xff] }
 0x402   :  { %8579 = vmatpush1.bf16.msra.mxu0 %v10121_v4  ;;  %8794 = vmatpush1.bf16.msra.mxu1 %v10123_v5  ;;  %v682_v4 = vld [vmem:[%s15135_s1 + $0x13f8] sm:$0xff]  ;;  %v10201_v5 = vcombine.low %v657_v57, %v665_v58  ;;  %v737_v57 = vld [vmem:[%s15135_s1 + $0x15b0] sm:$0xff] }
 0x403   :  { %8580 = vmatprep.subr.bf16.mxu0 %v10138_v6  ;;  %8795 = vmatprep.subr.bf16.mxu1 %v10140_v7  ;;  %v10203_v6 = vcombine.low %v658_v59, %v666_v60  ;;  %v10218_v7 = vcombine.high %v673_v1, %v681_v2  ;;  %v10220_v9 = vcombine.high %v674_v3, %v682_v4  ;;  %v745_v58 = vld [vmem:[%s15135_s1 + $0x15f0] sm:$0xff]  ;;  %v738_v59 = vld [vmem:[%s15135_s1 + $0x15b8] sm:$0xff] }
 0x404   :  { %v746_v60 = vld [vmem:[%s15135_s1 + $0x15f8] sm:$0xff] }
 0x406   :  { %8581 = vmatpush1.bf16.msra.mxu0 %v10137_v21  ;;  %8796 = vmatpush1.bf16.msra.mxu1 %v10139_v23  ;;  %v10217_v21 = vcombine.low %v673_v1, %v681_v2  ;;  %v10219_v23 = vcombine.low %v674_v3, %v682_v4  ;;  %v753_v1 = vld [vmem:[%s15135_s1 + $0x1630] sm:$0xff]  ;;  %v754_v3 = vld [vmem:[%s15135_s1 + $0x1638] sm:$0xff] }
 0x407   :  { %8582 = vmatprep.subr.bf16.mxu0 %v10154_v32  ;;  %8797 = vmatprep.subr.bf16.mxu1 %v10156_v39  ;;  %v10234_v32 = vcombine.high %v689_v10, %v697_v11  ;;  %v10236_v39 = vcombine.high %v690_v15, %v698_v16  ;;  %v761_v2 = vld [vmem:[%s15135_s1 + $0x1670] sm:$0xff]  ;;  %v762_v4 = vld [vmem:[%s15135_s1 + $0x1678] sm:$0xff] }
 0x40a   :  { %8583 = vmatpush1.bf16.msra.mxu0 %v10153_v45  ;;  %8798 = vmatpush1.bf16.msra.mxu1 %v10155_v46  ;;  %v10233_v45 = vcombine.low %v689_v10, %v697_v11  ;;  %v10235_v46 = vcombine.low %v690_v15, %v698_v16  ;;  %v777_v10 = vld [vmem:[%s15135_s1 + $0x16f0] sm:$0xff]  ;;  %v10300_v11 = vcombine.high %v754_v3, %v762_v4  ;;  %v770_v15 = vld [vmem:[%s15135_s1 + $0x16b8] sm:$0xff] }
 0x40b   :  { %8584 = vmatprep.subr.bf16.mxu0 %v10170_v47  ;;  %8799 = vmatprep.subr.bf16.mxu1 %v10172_v48  ;;  %v10250_v47 = vcombine.high %v705_v40, %v713_v41  ;;  %v10252_v48 = vcombine.high %v706_v43, %v714_v44  ;;  %v778_v16 = vld [vmem:[%s15135_s1 + $0x16f8] sm:$0xff] }
 0x40e   :  { %8585 = vmatpush1.bf16.msra.mxu0 %v10169_v53  ;;  %8800 = vmatpush1.bf16.msra.mxu1 %v10171_v54  ;;  %v10249_v53 = vcombine.low %v705_v40, %v713_v41  ;;  %v10251_v54 = vcombine.low %v706_v43, %v714_v44  ;;  %v793_v40 = vld [vmem:[%s15135_s1 + $0x1770] sm:$0xff]  ;;  %v10316_v41 = vcombine.high %v770_v15, %v778_v16  ;;  %v786_v43 = vld [vmem:[%s15135_s1 + $0x1738] sm:$0xff] }
 0x40f   :  { %8586 = vmatprep.subr.bf16.mxu0 %v10186_v55  ;;  %8801 = vmatprep.subr.bf16.mxu1 %v10188_v56  ;;  %v10266_v55 = vcombine.high %v721_v49, %v729_v50  ;;  %v10268_v56 = vcombine.high %v722_v51, %v730_v52  ;;  %v794_v44 = vld [vmem:[%s15135_s1 + $0x1778] sm:$0xff] }
 0x412   :  { %8587 = vmatpush1.bf16.msra.mxu0 %v10185_v61  ;;  %8802 = vmatpush1.bf16.msra.mxu1 %v10187_v62  ;;  %v10265_v61 = vcombine.low %v721_v49, %v729_v50  ;;  %v10267_v62 = vcombine.low %v722_v51, %v730_v52  ;;  %v809_v49 = vld [vmem:[%s15135_s1 + $0x17f0] sm:$0xff]  ;;  %v10332_v50 = vcombine.high %v786_v43, %v794_v44  ;;  %v802_v51 = vld [vmem:[%s15135_s1 + $0x17b8] sm:$0xff] }
 0x413   :  { %8588 = vmatprep.subr.bf16.mxu0 %v10202_v63  ;;  %8803 = vmatprep.subr.bf16.mxu1 %v10204_v0  ;;  %v10282_v63 = vcombine.high %v737_v57, %v745_v58  ;;  %v10284_v0 = vcombine.high %v738_v59, %v746_v60  ;;  %v810_v52 = vld [vmem:[%s15135_s1 + $0x17f8] sm:$0xff] }
 0x416   :  { %8589 = vmatpush1.bf16.msra.mxu0 %v10201_v5  ;;  %8804 = vmatpush1.bf16.msra.mxu1 %v10203_v6  ;;  %v10281_v5 = vcombine.low %v737_v57, %v745_v58  ;;  %v769_v6 = vld [vmem:[%s15135_s1 + $0x16b0] sm:$0xff]  ;;  %v10348_v58 = vcombine.high %v802_v51, %v810_v52 }
 0x417   :  { %8590 = vmatprep.subr.bf16.mxu0 %v10218_v7  ;;  %8805 = vmatprep.subr.bf16.mxu1 %v10220_v9  ;;  %v10283_v7 = vcombine.low %v738_v59, %v746_v60  ;;  %v10298_v9 = vcombine.high %v753_v1, %v761_v2  ;;  %v825_v57 = vld [vmem:[%s15135_s1 + $0x1870] sm:$0xff]  ;;  %v818_v59 = vld [vmem:[%s15135_s1 + $0x1838] sm:$0xff] }
 0x418   :  { %v826_v60 = vld [vmem:[%s15135_s1 + $0x1878] sm:$0xff] }
 0x41a   :  { %8591 = vmatpush1.bf16.msra.mxu0 %v10217_v21  ;;  %8806 = vmatpush1.bf16.msra.mxu1 %v10219_v23  ;;  %v10297_v21 = vcombine.low %v753_v1, %v761_v2  ;;  %v785_v23 = vld [vmem:[%s15135_s1 + $0x1730] sm:$0xff]  ;;  %v10364_v2 = vcombine.high %v818_v59, %v826_v60 }
 0x41b   :  { %8592 = vmatprep.subr.bf16.mxu0 %v10234_v32  ;;  %8807 = vmatprep.subr.bf16.mxu1 %v10236_v39  ;;  %v10299_v32 = vcombine.low %v754_v3, %v762_v4  ;;  %v10314_v39 = vcombine.high %v769_v6, %v777_v10  ;;  %v841_v1 = vld [vmem:[%s15135_s1 + $0x18f0] sm:$0xff]  ;;  %v834_v3 = vld [vmem:[%s15135_s1 + $0x18b8] sm:$0xff] }
 0x41c   :  { %v842_v4 = vld [vmem:[%s15135_s1 + $0x18f8] sm:$0xff] }
 0x41e   :  { %8593 = vmatpush1.bf16.msra.mxu0 %v10233_v45  ;;  %8808 = vmatpush1.bf16.msra.mxu1 %v10235_v46  ;;  %v10313_v45 = vcombine.low %v769_v6, %v777_v10  ;;  %v801_v46 = vld [vmem:[%s15135_s1 + $0x17b0] sm:$0xff] }
 0x41f   :  { %8594 = vmatprep.subr.bf16.mxu0 %v10250_v47  ;;  %8809 = vmatprep.subr.bf16.mxu1 %v10252_v48  ;;  %v10315_v47 = vcombine.low %v770_v15, %v778_v16  ;;  %v10330_v48 = vcombine.high %v785_v23, %v793_v40  ;;  %v849_v6 = vld [vmem:[%s15135_s1 + $0x1930] sm:$0xff]  ;;  %v10380_v15 = vcombine.high %v834_v3, %v842_v4  ;;  %v858_v16 = vld [vmem:[%s15135_s1 + $0x1978] sm:$0xff] }
 0x422   :  { %8595 = vmatpush1.bf16.msra.mxu0 %v10249_v53  ;;  %8810 = vmatpush1.bf16.msra.mxu1 %v10251_v54  ;;  %v10329_v53 = vcombine.low %v785_v23, %v793_v40  ;;  %v817_v54 = vld [vmem:[%s15135_s1 + $0x1830] sm:$0xff]  ;;  %v10379_v40 = vcombine.low %v834_v3, %v842_v4 }
 0x423   :  { %8596 = vmatprep.subr.bf16.mxu0 %v10266_v55  ;;  %8811 = vmatprep.subr.bf16.mxu1 %v10268_v56  ;;  %v10331_v55 = vcombine.low %v786_v43, %v794_v44  ;;  %v10346_v56 = vcombine.high %v801_v46, %v809_v49  ;;  %v866_v43 = vld [vmem:[%s15135_s1 + $0x19b8] sm:$0xff]  ;;  %v913_v3 = vld [vmem:[%s15135_s1 + $0x1b30] sm:$0xff] }
 0x424   :  { %v874_v44 = vld [vmem:[%s15135_s1 + $0x19f8] sm:$0xff]  ;;  %v921_v4 = vld [vmem:[%s15135_s1 + $0x1b70] sm:$0xff] }
 0x426   :  { %8597 = vmatpush1.bf16.msra.mxu0 %v10265_v61  ;;  %8812 = vmatpush1.bf16.msra.mxu1 %v10267_v62  ;;  %v10345_v61 = vcombine.low %v801_v46, %v809_v49  ;;  %v833_v62 = vld [vmem:[%s15135_s1 + $0x18b0] sm:$0xff]  ;;  %v11143_v46 = vld [vmem:[%s15136_s0 + $0x1c] ss:$40 sps:$4 sm:$0xff]  }
 0x427   :  { %8598 = vmatprep.subr.bf16.mxu0 %v10282_v63  ;;  %8813 = vmatprep.subr.bf16.mxu1 %v10284_v0  ;;  %v10347_v63 = vcombine.low %v802_v51, %v810_v52  ;;  %v10362_v0 = vcombine.high %v817_v54, %v825_v57  ;;  %v10378_v10 = vcombine.high %v833_v62, %v841_v1  ;;  %v881_v51 = vld [vmem:[%s15135_s1 + $0x1a30] sm:$0xff] }
 0x428   :  { %v10377_v23 = vcombine.low %v833_v62, %v841_v1  ;;  %v889_v52 = vld [vmem:[%s15135_s1 + $0x1a70] sm:$0xff]  ;;  %v906_v62 = vld [vmem:[%s15135_s1 + $0x1af8] sm:$0xff] }
 0x42a   :  { %8599 = vmatpush1.bf16.msra.mxu0 %v10281_v5  ;;  %8814 = vmatpush1.bf16.msra.mxu1 %v10283_v7  ;;  %v10361_v5 = vcombine.low %v817_v54, %v825_v57  ;;  %v857_v7 = vld [vmem:[%s15135_s1 + $0x1970] sm:$0xff]  ;;  %v890_v54 = vld [vmem:[%s15135_s1 + $0x1a78] sm:$0xff]  ;;  %v10426_v57 = vcombine.high %v881_v51, %v889_v52 }
 0x42b   :  { %8600 = vmatprep.subr.bf16.mxu0 %v10298_v9  ;;  %8815 = vmatprep.subr.bf16.mxu1 %v10300_v11  ;;  %v10363_v9 = vcombine.low %v818_v59, %v826_v60  ;;  %v850_v11 = vld [vmem:[%s15135_s1 + $0x1938] sm:$0xff]  ;;  %v897_v59 = vld [vmem:[%s15135_s1 + $0x1ab0] sm:$0xff] }
 0x42c   :  { %v905_v60 = vld [vmem:[%s15135_s1 + $0x1af0] sm:$0xff] }
 0x42d   :  { %v10442_v1 = vcombine.high %v897_v59, %v905_v60 }
 0x42e   :  { %8601 = vmatpush1.bf16.msra.mxu0 %v10297_v21  ;;  %8816 = vmatpush1.bf16.msra.mxu1 %v10299_v32  ;;  %v11142_v21 = vld [vmem:[%s15136_s0 + $0x10] ss:$40 sps:$4 sm:$0xff]  }
 0x42f   :  { %8602 = vmatprep.subr.bf16.mxu0 %v10314_v39  ;;  %8817 = vmatprep.subr.bf16.mxu1 %v10316_v41  ;;  %v865_v32 = vld [vmem:[%s15135_s1 + $0x19b0] sm:$0xff]  ;;  %v10394_v41 = vcombine.high %v849_v6, %v857_v7 }
 0x430   :  { %v873_v39 = vld [vmem:[%s15135_s1 + $0x19f0] sm:$0xff] }
 0x431   :  { %v10410_v49 = vcombine.high %v865_v32, %v873_v39 }
 0x432   :  { %8603 = vmatpush1.bf16.msra.mxu0 %v10313_v45  ;;  %8818 = vmatpush1.bf16.msra.mxu1 %v10315_v47  ;;  %v10396_v45 = vcombine.high %v850_v11, %v858_v16  ;;  %v10393_v47 = vcombine.low %v849_v6, %v857_v7  ;;  %v922_v6 = vld [vmem:[%s15135_s1 + $0x1b78] sm:$0xff]  ;;  %v10441_v7 = vcombine.low %v897_v59, %v905_v60  ;;  %v961_v59 = vld [vmem:[%s15135_s1 + $0x1cb0] sm:$0xff] }
 0x433   :  { %8604 = vmatprep.subr.bf16.mxu0 %v10330_v48  ;;  %8819 = vmatprep.subr.bf16.mxu1 %v10332_v50  ;;  %v10395_v48 = vcombine.low %v850_v11, %v858_v16  ;;  %v10412_v50 = vcombine.high %v866_v43, %v874_v44  ;;  %v929_v16 = vld [vmem:[%s15135_s1 + $0x1bb0] sm:$0xff] }
 0x434   :  { %v969_v60 = vld [vmem:[%s15135_s1 + $0x1cf0] sm:$0xff] }
 0x436   :  { %8605 = vmatpush1.bf16.msra.mxu0 %v10329_v53  ;;  %8820 = vmatpush1.bf16.msra.mxu1 %v10331_v55  ;;  %v882_v53 = vld [vmem:[%s15135_s1 + $0x1a38] sm:$0xff]  ;;  %v10409_v55 = vcombine.low %v865_v32, %v873_v39 }
 0x437   :  { %8606 = vmatprep.subr.bf16.mxu0 %v10346_v56  ;;  %8821 = vmatprep.subr.bf16.mxu1 %v10348_v58  ;;  %v10411_v56 = vcombine.low %v866_v43, %v874_v44  ;;  %v10428_v58 = vcombine.high %v882_v53, %v890_v54  ;;  %v930_v39 = vld [vmem:[%s15135_s1 + $0x1bb8] sm:$0xff]  ;;  %v10457_v44 = vcombine.low %v913_v3, %v921_v4 }
 0x43a   :  { %8607 = vmatpush1.bf16.msra.mxu0 %v10345_v61  ;;  %8822 = vmatpush1.bf16.msra.mxu1 %v10347_v63  ;;  %v898_v61 = vld [vmem:[%s15135_s1 + $0x1ab8] sm:$0xff]  ;;  %v10425_v63 = vcombine.low %v881_v51, %v889_v52  ;;  %v945_v51 = vld [vmem:[%s15135_s1 + $0x1c30] sm:$0xff] }
 0x43b   :  { %8619 = vmatprep.subr.bf16.mxu0 %v10362_v0  ;;  %8834 = vmatprep.subr.bf16.mxu1 %v10364_v2  ;;  %v10427_v0 = vcombine.low %v882_v53, %v890_v54  ;;  %v10444_v2 = vcombine.high %v898_v61, %v906_v62  ;;  %v953_v52 = vld [vmem:[%s15135_s1 + $0x1c70] sm:$0xff]  ;;  %v946_v53 = vld [vmem:[%s15135_s1 + $0x1c38] sm:$0xff] }
 0x43c   :  { %v954_v54 = vld [vmem:[%s15135_s1 + $0x1c78] sm:$0xff] }
 0x43d   :  { %8609 = vmatmul.mubr.bf16.vlgmr.msra.gmra.mrb[12].mxu0 %v11142_v21  ;;  %8824 = vmatmul.mubr.bf16.vlgmr.msra.gmra.mrb[12].mxu1 %v11142_v21  ;;  %v937_v21 = vld [vmem:[%s15135_s1 + $0x1bf0] sm:$0xff] }
 0x43e   :  { %8620 = vmatpush1.bf16.msra.mxu0 %v10361_v5  ;;  %8835 = vmatpush1.bf16.msra.mxu1 %v10363_v9  ;;  %v914_v5 = vld [vmem:[%s15135_s1 + $0x1b38] sm:$0xff]  ;;  %v10443_v9 = vcombine.low %v898_v61, %v906_v62 }
 0x43f   :  { %8621 = vmatprep.subr.bf16.mxu0 %v10378_v10  ;;  %8836 = vmatprep.subr.bf16.mxu1 %v10380_v15  ;;  %v10458_v10 = vcombine.high %v913_v3, %v921_v4  ;;  %v10460_v15 = vcombine.high %v914_v5, %v922_v6  ;;  %v962_v61 = vld [vmem:[%s15135_s1 + $0x1cb8] sm:$0xff]  ;;  %v977_v3 = vld [vmem:[%s15135_s1 + $0x1d30] sm:$0xff] }
 0x440   :  { %8651 = vmatprep.mubr.bf16.mxu0 %v11143_v46  ;;  %8866 = vmatprep.mubr.bf16.mxu1 %v11143_v46  ;;  %v970_v62 = vld [vmem:[%s15135_s1 + $0x1cf8] sm:$0xff]  ;;  %v985_v4 = vld [vmem:[%s15135_s1 + $0x1d70] sm:$0xff] }
 0x442   :  { %8622 = vmatpush1.bf16.msra.mxu0 %v10377_v23  ;;  %8837 = vmatpush1.bf16.msra.mxu1 %v10379_v40  ;;  %v938_v40 = vld [vmem:[%s15135_s1 + $0x1bf8] sm:$0xff] }
 0x443   :  { %8623 = vmatprep.subr.bf16.mxu0 %v10394_v41  ;;  %8838 = vmatprep.subr.bf16.mxu1 %v10396_v45 }
 0x446   :  { %8624 = vmatpush1.bf16.msra.mxu0 %v10393_v47  ;;  %8839 = vmatpush1.bf16.msra.mxu1 %v10395_v48  ;;  %v10459_v47 = vcombine.low %v914_v5, %v922_v6  ;;  %v10474_v48 = vcombine.high %v929_v16, %v937_v21  ;;  %v978_v5 = vld [vmem:[%s15135_s1 + $0x1d38] sm:$0xff] }
 0x447   :  { %8625 = vmatprep.subr.bf16.mxu0 %v10410_v49  ;;  %8840 = vmatprep.subr.bf16.mxu1 %v10412_v50  ;;  %v10476_v50 = vcombine.high %v930_v39, %v938_v40  ;;  %v986_v6 = vld [vmem:[%s15135_s1 + $0x1d78] sm:$0xff] }
 0x44a   :  { %8626 = vmatpush1.bf16.msra.mxu0 %v10409_v55  ;;  %8841 = vmatpush1.bf16.msra.mxu1 %v10411_v56  ;;  %v10473_v55 = vcombine.low %v929_v16, %v937_v21  ;;  %v10475_v56 = vcombine.low %v930_v39, %v938_v40  ;;  %v993_v16 = vld [vmem:[%s15135_s1 + $0x1db0] sm:$0xff]  ;;  %v994_v39 = vld [vmem:[%s15135_s1 + $0x1db8] sm:$0xff] }
 0x44b   :  { %8627 = vmatprep.subr.bf16.mxu0 %v10426_v57  ;;  %8842 = vmatprep.subr.bf16.mxu1 %v10428_v58  ;;  %v10490_v57 = vcombine.high %v945_v51, %v953_v52  ;;  %v10492_v58 = vcombine.high %v946_v53, %v954_v54  ;;  %v1001_v21 = vld [vmem:[%s15135_s1 + $0x1df0] sm:$0xff]  ;;  %v1002_v40 = vld [vmem:[%s15135_s1 + $0x1df8] sm:$0xff] }
 0x44e   :  { %8628 = vmatpush1.bf16.msra.mxu0 %v10425_v63  ;;  %8843 = vmatpush1.bf16.msra.mxu1 %v10427_v0  ;;  %v10489_v63 = vcombine.low %v945_v51, %v953_v52  ;;  %v10491_v0 = vcombine.low %v946_v53, %v954_v54  ;;  %v1009_v51 = vld [vmem:[%s15135_s1 + $0x1e30] sm:$0xff]  ;;  %v1010_v53 = vld [vmem:[%s15135_s1 + $0x1e38] sm:$0xff] }
 0x44f   :  { %8629 = vmatprep.subr.bf16.mxu0 %v10442_v1  ;;  %8844 = vmatprep.subr.bf16.mxu1 %v10444_v2  ;;  %v10506_v1 = vcombine.high %v961_v59, %v969_v60  ;;  %v10508_v2 = vcombine.high %v962_v61, %v970_v62  ;;  %v1017_v52 = vld [vmem:[%s15135_s1 + $0x1e70] sm:$0xff]  ;;  %v1018_v54 = vld [vmem:[%s15135_s1 + $0x1e78] sm:$0xff] }
 0x450   :  { %v14686_v11 = vpop.f32.mrb[8].mxu0  ;;  %v14694_v23 = vpop.f32.mrb[8].mxu1 }
 0x451   :  { %v14696_v32 = vpop.f32.mrb[9].mxu0  ;;  %v14704_v41 = vpop.f32.mrb[9].mxu1 }
 0x452   :  { %v14706_v43 = vpop.f32.mrb[10].mxu0  ;;  %8630 = vmatpush1.bf16.msra.mxu0 %v10441_v7  ;;  %v14708_v45 = vpop.f32.mrb[10].mxu1  ;;  %8845 = vmatpush1.bf16.msra.mxu1 %v10443_v9  ;;  %v10505_v7 = vcombine.low %v961_v59, %v969_v60  ;;  %v10507_v9 = vcombine.low %v962_v61, %v970_v62  ;;  %v1025_v59 = vld [vmem:[%s15135_s1 + $0x1eb0] sm:$0xff]  ;;  %v1026_v61 = vld [vmem:[%s15135_s1 + $0x1eb8] sm:$0xff] }
 0x453   :  { %v14710_v46 = vpop.f32.mrb[11].mxu0  ;;  %8631 = vmatprep.subr.bf16.mxu0 %v10458_v10  ;;  %v14712_v49 = vpop.f32.mrb[11].mxu1  ;;  %8846 = vmatprep.subr.bf16.mxu1 %v10460_v15  ;;  %v10522_v10 = vcombine.high %v977_v3, %v985_v4  ;;  %v10524_v15 = vcombine.high %v978_v5, %v986_v6  ;;  %v1033_v60 = vld [vmem:[%s15135_s1 + $0x1ef0] sm:$0xff]  ;;  %v1034_v62 = vld [vmem:[%s15135_s1 + $0x1ef8] sm:$0xff] }
 0x456   :  { %8632 = vmatpush1.bf16.msra.mxu0 %v10457_v44  ;;  %8847 = vmatpush1.bf16.msra.mxu1 %v10459_v47  ;;  %v10521_v44 = vcombine.low %v977_v3, %v985_v4  ;;  %v10523_v47 = vcombine.low %v978_v5, %v986_v6  ;;  %v1041_v3 = vld [vmem:[%s15135_s1 + $0x1f30] sm:$0xff]  ;;  %v1042_v5 = vld [vmem:[%s15135_s1 + $0x1f38] sm:$0xff] }
 0x457   :  { %8633 = vmatprep.subr.bf16.mxu0 %v10474_v48  ;;  %8848 = vmatprep.subr.bf16.mxu1 %v10476_v50  ;;  %v10538_v48 = vcombine.high %v993_v16, %v1001_v21  ;;  %v10540_v50 = vcombine.high %v994_v39, %v1002_v40  ;;  %v1049_v4 = vld [vmem:[%s15135_s1 + $0x1f70] sm:$0xff]  ;;  %v1050_v6 = vld [vmem:[%s15135_s1 + $0x1f78] sm:$0xff] }
 0x45a   :  { %8634 = vmatpush1.bf16.msra.mxu0 %v10473_v55  ;;  %8849 = vmatpush1.bf16.msra.mxu1 %v10475_v56  ;;  %v10537_v55 = vcombine.low %v993_v16, %v1001_v21  ;;  %v10539_v56 = vcombine.low %v994_v39, %v1002_v40  ;;  %v1057_v16 = vld [vmem:[%s15135_s1 + $0x1fb0] sm:$0xff]  ;;  %v1058_v39 = vld [vmem:[%s15135_s1 + $0x1fb8] sm:$0xff] }
 0x45b   :  { %8635 = vmatprep.subr.bf16.mxu0 %v10490_v57  ;;  %8850 = vmatprep.subr.bf16.mxu1 %v10492_v58  ;;  %v10554_v57 = vcombine.high %v1009_v51, %v1017_v52  ;;  %v10556_v58 = vcombine.high %v1010_v53, %v1018_v54  ;;  %v1065_v21 = vld [vmem:[%s15135_s1 + $0x1ff0] sm:$0xff]  ;;  %v1066_v40 = vld [vmem:[%s15135_s1 + $0x1ff8] sm:$0xff] }
 0x45e   :  { %8636 = vmatpush1.bf16.msra.mxu0 %v10489_v63  ;;  %8851 = vmatpush1.bf16.msra.mxu1 %v10491_v0  ;;  %v10553_v63 = vcombine.low %v1009_v51, %v1017_v52  ;;  %v10555_v0 = vcombine.low %v1010_v53, %v1018_v54  ;;  %v1073_v51 = vld [vmem:[%s15135_s1 + $0x2030] sm:$0xff]  ;;  %v1074_v53 = vld [vmem:[%s15135_s1 + $0x2038] sm:$0xff] }
 0x45f   :  { %8637 = vmatprep.subr.bf16.mxu0 %v10506_v1  ;;  %8852 = vmatprep.subr.bf16.mxu1 %v10508_v2  ;;  %v10570_v1 = vcombine.high %v1025_v59, %v1033_v60  ;;  %v10572_v2 = vcombine.high %v1026_v61, %v1034_v62  ;;  %v1081_v52 = vld [vmem:[%s15135_s1 + $0x2070] sm:$0xff]  ;;  %v1082_v54 = vld [vmem:[%s15135_s1 + $0x2078] sm:$0xff] }
 0x462   :  { %8638 = vmatpush1.bf16.msra.mxu0 %v10505_v7  ;;  %8853 = vmatpush1.bf16.msra.mxu1 %v10507_v9  ;;  %v10569_v7 = vcombine.low %v1025_v59, %v1033_v60  ;;  %v10571_v9 = vcombine.low %v1026_v61, %v1034_v62  ;;  %v1089_v59 = vld [vmem:[%s15135_s1 + $0x20b0] sm:$0xff]  ;;  %v1090_v61 = vld [vmem:[%s15135_s1 + $0x20b8] sm:$0xff] }
 0x463   :  { %8639 = vmatprep.subr.bf16.mxu0 %v10522_v10  ;;  %8854 = vmatprep.subr.bf16.mxu1 %v10524_v15  ;;  %v10586_v10 = vcombine.high %v1041_v3, %v1049_v4  ;;  %v10588_v15 = vcombine.high %v1042_v5, %v1050_v6  ;;  %v1097_v60 = vld [vmem:[%s15135_s1 + $0x20f0] sm:$0xff]  ;;  %v1098_v62 = vld [vmem:[%s15135_s1 + $0x20f8] sm:$0xff] }
 0x466   :  { %8640 = vmatpush1.bf16.msra.mxu0 %v10521_v44  ;;  %8855 = vmatpush1.bf16.msra.mxu1 %v10523_v47  ;;  %v10585_v44 = vcombine.low %v1041_v3, %v1049_v4  ;;  %v10587_v47 = vcombine.low %v1042_v5, %v1050_v6  ;;  %v1105_v3 = vld [vmem:[%s15135_s1 + $0x2130] sm:$0xff]  ;;  %v11144_v5 = vld [vmem:[%s15136_s0 + $0x18] ss:$40 sps:$4 sm:$0xff]  }
 0x467   :  { %8641 = vmatprep.subr.bf16.mxu0 %v10538_v48  ;;  %8856 = vmatprep.subr.bf16.mxu1 %v10540_v50  ;;  %v10602_v48 = vcombine.high %v1057_v16, %v1065_v21  ;;  %v10604_v50 = vcombine.high %v1058_v39, %v1066_v40  ;;  %v1113_v4 = vld [vmem:[%s15135_s1 + $0x2170] sm:$0xff]  ;;  %v1106_v6 = vld [vmem:[%s15135_s1 + $0x2138] sm:$0xff] }
 0x46a   :  { %8642 = vmatpush1.bf16.msra.mxu0 %v10537_v55  ;;  %8857 = vmatpush1.bf16.msra.mxu1 %v10539_v56  ;;  %v10601_v55 = vcombine.low %v1057_v16, %v1065_v21  ;;  %v10603_v56 = vcombine.low %v1058_v39, %v1066_v40  ;;  %v1121_v21 = vld [vmem:[%s15135_s1 + $0x21b0] sm:$0xff]  ;;  %v11145_v40 = vld [vmem:[%s15136_s0 + $0x24] ss:$40 sps:$4 sm:$0xff]  }
 0x46b   :  { %8643 = vmatprep.subr.bf16.mxu0 %v10554_v57  ;;  %8858 = vmatprep.subr.bf16.mxu1 %v10556_v58  ;;  %v10618_v57 = vcombine.high %v1073_v51, %v1081_v52  ;;  %v10620_v58 = vcombine.high %v1074_v53, %v1082_v54  ;;  %v1129_v39 = vld [vmem:[%s15135_s1 + $0x21f0] sm:$0xff] }
 0x46e   :  { %8644 = vmatpush1.bf16.msra.mxu0 %v10553_v63  ;;  %8859 = vmatpush1.bf16.msra.mxu1 %v10555_v0  ;;  %v10617_v63 = vcombine.low %v1073_v51, %v1081_v52  ;;  %v10619_v0 = vcombine.low %v1074_v53, %v1082_v54  ;;  %v10666_v51 = vcombine.high %v1121_v21, %v1129_v39  ;;  %v1137_v53 = vld [vmem:[%s15135_s1 + $0x2230] sm:$0xff] }
 0x46f   :  { %8645 = vmatprep.subr.bf16.mxu0 %v10570_v1  ;;  %8860 = vmatprep.subr.bf16.mxu1 %v10572_v2  ;;  %v10634_v1 = vcombine.high %v1089_v59, %v1097_v60  ;;  %v10636_v2 = vcombine.high %v1090_v61, %v1098_v62  ;;  %v1145_v54 = vld [vmem:[%s15135_s1 + $0x2270] sm:$0xff] }
 0x472   :  { %8646 = vmatpush1.bf16.msra.mxu0 %v10569_v7  ;;  %8861 = vmatpush1.bf16.msra.mxu1 %v10571_v9  ;;  %v1114_v7 = vld [vmem:[%s15135_s1 + $0x2178] sm:$0xff]  ;;  %v10633_v9 = vcombine.low %v1089_v59, %v1097_v60  ;;  %v10682_v59 = vcombine.high %v1137_v53, %v1145_v54 }
 0x473   :  { %8647 = vmatprep.subr.bf16.mxu0 %v10586_v10  ;;  %8862 = vmatprep.subr.bf16.mxu1 %v10588_v15  ;;  %v10635_v10 = vcombine.low %v1090_v61, %v1098_v62  ;;  %v10650_v15 = vcombine.high %v1105_v3, %v1113_v4  ;;  %v10652_v16 = vcombine.high %v1106_v6, %v1114_v7  ;;  %v1153_v61 = vld [vmem:[%s15135_s1 + $0x22b0] sm:$0xff] }
 0x474   :  { %v1161_v62 = vld [vmem:[%s15135_s1 + $0x22f0] sm:$0xff] }
 0x476   :  { %8648 = vmatpush1.bf16.msra.mxu0 %v10585_v44  ;;  %8863 = vmatpush1.bf16.msra.mxu1 %v10587_v47  ;;  %v1122_v44 = vld [vmem:[%s15135_s1 + $0x21b8] sm:$0xff] }
 0x477   :  { %8649 = vmatprep.subr.bf16.mxu0 %v10602_v48  ;;  %8864 = vmatprep.subr.bf16.mxu1 %v10604_v50  ;;  %v1130_v47 = vld [vmem:[%s15135_s1 + $0x21f8] sm:$0xff]  ;;  %v10649_v48 = vcombine.low %v1105_v3, %v1113_v4  ;;  %v10651_v50 = vcombine.low %v1106_v6, %v1114_v7  ;;  %v10698_v3 = vcombine.high %v1153_v61, %v1161_v62  ;;  %v1177_v6 = vld [vmem:[%s15135_s1 + $0x2370] sm:$0xff] }
 0x478   :  { %v10668_v52 = vcombine.high %v1122_v44, %v1130_v47  ;;  %v1170_v7 = vld [vmem:[%s15135_s1 + $0x2338] sm:$0xff] }
 0x47a   :  { %8650 = vmatpush1.bf16.msra.mxu0 %v10601_v55  ;;  %8865 = vmatpush1.bf16.msra.mxu1 %v10603_v56  ;;  %v1138_v55 = vld [vmem:[%s15135_s1 + $0x2238] sm:$0xff] }
 0x47b   :  { %8662 = vmatprep.subr.bf16.mxu0 %v10618_v57  ;;  %8877 = vmatprep.subr.bf16.mxu1 %v10620_v58  ;;  %v1146_v56 = vld [vmem:[%s15135_s1 + $0x2278] sm:$0xff]  ;;  %v10665_v57 = vcombine.low %v1121_v21, %v1129_v39  ;;  %v10667_v58 = vcombine.low %v1122_v44, %v1130_v47  ;;  %v1185_v39 = vld [vmem:[%s15135_s1 + $0x23b0] sm:$0xff] }
 0x47c   :  { %v10684_v60 = vcombine.high %v1138_v55, %v1146_v56  ;;  %v1186_v44 = vld [vmem:[%s15135_s1 + $0x23b8] sm:$0xff] }
 0x47d   :  { %8652 = vmatmul.mubr.bf16.vlgmr.msra.gmra.mrb[12].mxu0 %v11144_v5  ;;  %8867 = vmatmul.mubr.bf16.vlgmr.msra.gmra.mrb[12].mxu1 %v11144_v5  ;;  %v1169_v5 = vld [vmem:[%s15135_s1 + $0x2330] sm:$0xff]  ;;  %v1194_v47 = vld [vmem:[%s15135_s1 + $0x23f8] sm:$0xff] }
 0x47e   :  { %8663 = vmatpush1.bf16.msra.mxu0 %v10617_v63  ;;  %8878 = vmatpush1.bf16.msra.mxu1 %v10619_v0  ;;  %v1154_v63 = vld [vmem:[%s15135_s1 + $0x22b8] sm:$0xff] }
 0x47f   :  { %8664 = vmatprep.subr.bf16.mxu0 %v10634_v1  ;;  %8879 = vmatprep.subr.bf16.mxu1 %v10636_v2  ;;  %v1162_v0 = vld [vmem:[%s15135_s1 + $0x22f8] sm:$0xff]  ;;  %v10681_v1 = vcombine.low %v1137_v53, %v1145_v54  ;;  %v10683_v2 = vcombine.low %v1138_v55, %v1146_v56  ;;  %v1201_v53 = vld [vmem:[%s15135_s1 + $0x2430] sm:$0xff] }
 0x480   :  { %10771 = vmatprep.mubr.msk.bf16.mxu0 %vm7196_vm0, %v11145_v40  ;;  %10772 = vmatprep.mubr.msk.bf16.mxu1 %vm7196_vm0, %v11145_v40  ;;  %v10700_v4 = vcombine.high %v1154_v63, %v1162_v0  ;;  %v1193_v40 = vld [vmem:[%s15135_s1 + $0x23f0] sm:$0xff]  ;;  %v1202_v55 = vld [vmem:[%s15135_s1 + $0x2438] sm:$0xff] }
 0x481   :  { %v1209_v54 = vld [vmem:[%s15135_s1 + $0x2470] sm:$0xff]  ;;  %v1210_v56 = vld [vmem:[%s15135_s1 + $0x2478] sm:$0xff] }
 0x482   :  { %8665 = vmatpush1.bf16.msra.mxu0 %v10633_v9  ;;  %8880 = vmatpush1.bf16.msra.mxu1 %v10635_v10  ;;  %v1178_v9 = vld [vmem:[%s15135_s1 + $0x2378] sm:$0xff]  ;;  %v10697_v10 = vcombine.low %v1153_v61, %v1161_v62  ;;  %v1217_v61 = vld [vmem:[%s15135_s1 + $0x24b0] sm:$0xff] }
 0x483   :  { %8666 = vmatprep.subr.bf16.mxu0 %v10650_v15  ;;  %8881 = vmatprep.subr.bf16.mxu1 %v10652_v16  ;;  %v10699_v15 = vcombine.low %v1154_v63, %v1162_v0  ;;  %v10714_v16 = vcombine.high %v1169_v5, %v1177_v6  ;;  %v10716_v21 = vcombine.high %v1170_v7, %v1178_v9  ;;  %v1225_v62 = vld [vmem:[%s15135_s1 + $0x24f0] sm:$0xff]  ;;  %v1218_v63 = vld [vmem:[%s15135_s1 + $0x24b8] sm:$0xff] }
 0x484   :  { %v1226_v0 = vld [vmem:[%s15135_s1 + $0x24f8] sm:$0xff] }
 0x486   :  { %8667 = vmatpush1.bf16.msra.mxu0 %v10649_v48  ;;  %8882 = vmatpush1.bf16.msra.mxu1 %v10651_v50  ;;  %v10713_v48 = vcombine.low %v1169_v5, %v1177_v6  ;;  %v10715_v50 = vcombine.low %v1170_v7, %v1178_v9  ;;  %v10761_v5 = vcombine.low %v1217_v61, %v1225_v62  ;;  %v11069_v7 = vld [vmem:[%s15137_s3 + $0x40] sm:$0xff]  }
 0x487   :  { %8668 = vmatprep.subr.bf16.mxu0 %v10666_v51  ;;  %8883 = vmatprep.subr.bf16.mxu1 %v10668_v52  ;;  %v10730_v51 = vcombine.high %v1185_v39, %v1193_v40  ;;  %v10732_v52 = vcombine.high %v1186_v44, %v1194_v47  ;;  %v10763_v6 = vcombine.low %v1218_v63, %v1226_v0  ;;  %v11070_v9 = vld [vmem:[%s15137_s3 + $0xc0] sm:$0xff]  }
 0x48a   :  { %8669 = vmatpush1.bf16.msra.mxu0 %v10665_v57  ;;  %8884 = vmatpush1.bf16.msra.mxu1 %v10667_v58  ;;  %v10729_v57 = vcombine.low %v1185_v39, %v1193_v40  ;;  %v10731_v58 = vcombine.low %v1186_v44, %v1194_v47  ;;  %v11146_v39 = vld [vmem:[%s15136_s0 + $0x20] ss:$40 sps:$4 sm:$0xff]   ;;  %v11077_v47 = vld [vmem:[%s15137_s3 + $0x50] sm:$0xff]  }
 0x48b   :  { %8670 = vmatprep.subr.bf16.mxu0 %v10682_v59  ;;  %8885 = vmatprep.subr.bf16.mxu1 %v10684_v60  ;;  %v10746_v59 = vcombine.high %v1201_v53, %v1209_v54  ;;  %v10748_v60 = vcombine.high %v1202_v55, %v1210_v56  ;;  %v11075_v40 = vld [vmem:[%s15137_s3 + $0x8] sm:$0xff]  }
 0x48c   :  { %v11076_v44 = vld [vmem:[%s15137_s3 + $0x88] sm:$0xff]  }
 0x48e   :  { %8671 = vmatpush1.bf16.msra.mxu0 %v10681_v1  ;;  %8886 = vmatpush1.bf16.msra.mxu1 %v10683_v2  ;;  %v10745_v1 = vcombine.low %v1201_v53, %v1209_v54  ;;  %v10747_v2 = vcombine.low %v1202_v55, %v1210_v56  ;;  %v11082_v53 = vld [vmem:[%s15137_s3 + $0xd8] sm:$0xff]   ;;  %v11085_v56 = vld [vmem:[%s15137_s3 + $0x60] sm:$0xff]  }
 0x48f   :  { %8672 = vmatprep.subr.bf16.mxu0 %v10698_v3  ;;  %8887 = vmatprep.subr.bf16.mxu1 %v10700_v4  ;;  %v10762_v3 = vcombine.high %v1217_v61, %v1225_v62  ;;  %v10764_v4 = vcombine.high %v1218_v63, %v1226_v0  ;;  %v11083_v54 = vld [vmem:[%s15137_s3 + $0x18] sm:$0xff]   ;;  %v11090_v61 = vld [vmem:[%s15137_s3 + $0xe8] sm:$0xff]   ;;  %v11093_v0 = vld [vmem:[%s15137_s3 + $0x70] sm:$0xff]  }
 0x490   :  { %v11084_v55 = vld [vmem:[%s15137_s3 + $0x98] sm:$0xff]   ;;  %v11091_v62 = vld [vmem:[%s15137_s3 + $0x28] sm:$0xff]  }
 0x491   :  { %v11092_v63 = vld [vmem:[%s15137_s3 + $0xa8] sm:$0xff]  }
 0x492   :  { %8673 = vmatpush1.bf16.msra.mxu0 %v10697_v10  ;;  %8888 = vmatpush1.bf16.msra.mxu1 %v10699_v15  ;;  %v11071_v10 = vld [vmem:[%s15137_s3] sm:$0xff]  }
 0x493   :  { %8674 = vmatprep.subr.bf16.mxu0 %v10714_v16  ;;  %8889 = vmatprep.subr.bf16.mxu1 %v10716_v21  ;;  %v11072_v15 = vld [vmem:[%s15137_s3 + $0x80] sm:$0xff]   ;;  %v11073_v16 = vld [vmem:[%s15137_s3 + $0x48] sm:$0xff]  }
 0x494   :  { %v11074_v21 = vld [vmem:[%s15137_s3 + $0xc8] sm:$0xff]  }
 0x496   :  { %8675 = vmatpush1.bf16.msra.mxu0 %v10713_v48  ;;  %8890 = vmatpush1.bf16.msra.mxu1 %v10715_v50  ;;  %v11078_v48 = vld [vmem:[%s15137_s3 + $0xd0] sm:$0xff]  }
 0x497   :  { %8676 = vmatprep.subr.bf16.mxu0 %v10730_v51  ;;  %8891 = vmatprep.subr.bf16.mxu1 %v10732_v52  ;;  %v11079_v50 = vld [vmem:[%s15137_s3 + $0x10] sm:$0xff]   ;;  %v11081_v52 = vld [vmem:[%s15137_s3 + $0x58] sm:$0xff]  }
 0x498   :  { %v11080_v51 = vld [vmem:[%s15137_s3 + $0x90] sm:$0xff]  }
 0x49a   :  { %8677 = vmatpush1.bf16.msra.mxu0 %v10729_v57  ;;  %8892 = vmatpush1.bf16.msra.mxu1 %v10731_v58  ;;  %v11086_v57 = vld [vmem:[%s15137_s3 + $0xe0] sm:$0xff]  }
 0x49b   :  { %8678 = vmatprep.subr.bf16.mxu0 %v10746_v59  ;;  %8893 = vmatprep.subr.bf16.mxu1 %v10748_v60  ;;  %v11087_v58 = vld [vmem:[%s15137_s3 + $0x20] sm:$0xff]   ;;  %v11089_v60 = vld [vmem:[%s15137_s3 + $0x68] sm:$0xff]  }
 0x49c   :  { %v11088_v59 = vld [vmem:[%s15137_s3 + $0xa0] sm:$0xff]  }
 0x49e   :  { %8679 = vmatpush1.bf16.msra.mxu0 %v10745_v1  ;;  %8894 = vmatpush1.bf16.msra.mxu1 %v10747_v2  ;;  %v11094_v1 = vld [vmem:[%s15137_s3 + $0xf0] sm:$0xff]  }
 0x49f   :  { %8680 = vmatprep.subr.bf16.mxu0 %v10762_v3  ;;  %8895 = vmatprep.subr.bf16.mxu1 %v10764_v4  ;;  %v11095_v2 = vld [vmem:[%s15137_s3 + $0x30] sm:$0xff]   ;;  %v11097_v4 = vld [vmem:[%s15137_s3 + $0x78] sm:$0xff]  }
 0x4a0   :  { %v11096_v3 = vld [vmem:[%s15137_s3 + $0xb0] sm:$0xff]  }
 0x4a2   :  { %8681 = vmatpush1.bf16.msra.mxu0 %v10761_v5  ;;  %8896 = vmatpush1.bf16.msra.mxu1 %v10763_v6  ;;  %v11098_v5 = vld [vmem:[%s15137_s3 + $0xf8] sm:$0xff]  }
 0x4a3   :  { %10824 = vmatprep.subr.bf16.mxu0 %v11069_v7  ;;  %10846 = vmatprep.subr.bf16.mxu1 %v11070_v9  ;;  %v11099_v6 = vld [vmem:[%s15137_s3 + $0x38] sm:$0xff]   ;;  %v11101_v9 = vld [vmem:[%s15138_s5] sm:$0xff]  }
 0x4a4   :  { %v11100_v7 = vld [vmem:[%s15137_s3 + $0xb8] sm:$0xff]  }
 0x4a5   :  { %8695 = vmatmul.mubr.bf16.vlgmr.msra.gmra.mrb[12].mxu0 %v11146_v39  ;;  %8910 = vmatmul.mubr.bf16.vlgmr.msra.gmra.mrb[12].mxu1 %v11146_v39 }
 0x4a6   :  { %10825 = vmatpush3.bf16.msra.mxu0 %v11071_v10  ;;  %10847 = vmatpush3.bf16.msra.mxu1 %v11072_v15  ;;  %v8946_v10 = vlaneseq }
 0x4a7   :  { %10826 = vmatprep.subr.bf16.mxu0 %v11073_v16  ;;  %10848 = vmatprep.subr.bf16.mxu1 %v11074_v21  ;;  %v8944_v21 = vld [vmem:[%s15139_s2] sm:$0xf] }
 0x4a8   :  { %v8947_v15 = vshrl.u32 %v8946_v10, 7  ;;  %v11115_v10 = vld [vmem:[%s15140_s7 + $0x30] sm:$0xff]  }
 0x4aa   :  { %10827 = vmatpush3.bf16.msra.mxu0 %v11075_v40  ;;  %10849 = vmatpush3.bf16.msra.mxu1 %v11076_v44  ;;  %v8948_v16 = vsub.s32 0, %v8947_v15  ;;  %v8956_v39 = vsub.s32 2, %v8947_v15  ;;  %v8952_v40 = vsub.s32 1, %v8947_v15  ;;  %v8960_v44 = vsub.s32 3, %v8947_v15 }
 0x4ab   :  { %10828 = vmatprep.subr.bf16.mxu0 %v11077_v47  ;;  %10850 = vmatprep.subr.bf16.mxu1 %v11078_v48 }
 0x4ae   :  { %10829 = vmatpush3.bf16.msra.mxu0 %v11079_v50  ;;  %10851 = vmatpush3.bf16.msra.mxu1 %v11080_v51  ;;  %v8949_v50 = vrot.slane %v8944_v21, %v8948_v16 }
 0x4af   :  { %10830 = vmatprep.subr.bf16.mxu0 %v11081_v52  ;;  %10852 = vmatprep.subr.bf16.mxu1 %v11082_v53 }
 0x4b2   :  { %10831 = vmatpush3.bf16.msra.mxu0 %v11083_v54  ;;  %10853 = vmatpush3.bf16.msra.mxu1 %v11084_v55  ;;  %v8957_v54 = vrot.slane %v8944_v21, %v8956_v39 }
 0x4b3   :  { %10832 = vmatprep.subr.bf16.mxu0 %v11085_v56  ;;  %10854 = vmatprep.subr.bf16.mxu1 %v11086_v57 }
 0x4b6   :  { %10833 = vmatpush3.bf16.msra.mxu0 %v11087_v58  ;;  %10855 = vmatpush3.bf16.msra.mxu1 %v11088_v59  ;;  %v8953_v58 = vrot.slane %v8944_v21, %v8952_v40 }
 0x4b7   :  { %10834 = vmatprep.subr.bf16.mxu0 %v11089_v60  ;;  %10856 = vmatprep.subr.bf16.mxu1 %v11090_v61 }
 0x4ba   :  { %10835 = vmatpush3.bf16.msra.mxu0 %v11091_v62  ;;  %10857 = vmatpush3.bf16.msra.mxu1 %v11092_v63  ;;  %v8961_v63 = vrot.slane %v8944_v21, %v8960_v44  ;;  %v10773_v21 = vld [vmem:[%s15141_s4] ss:$0 sm:$0xff] }
 0x4bb   :  { %10836 = vmatprep.subr.bf16.mxu0 %v11093_v0  ;;  %10858 = vmatprep.subr.bf16.mxu1 %v11094_v1  ;;  %v11107_v1 = vld [vmem:[%s15138_s5 + $0x30] sm:$0xff]  }
 0x4be   :  { %10837 = vmatpush3.bf16.msra.mxu0 %v11095_v2  ;;  %10859 = vmatpush3.bf16.msra.mxu1 %v11096_v3  ;;  %v11108_v2 = vld [vmem:[%s15138_s5 + $0x38] sm:$0xff]   ;;  %v11109_v3 = vld [vmem:[%s15140_s7] sm:$0xff]  }
 0x4bf   :  { %10838 = vmatprep.subr.bf16.mxu0 %v11097_v4  ;;  %10860 = vmatprep.subr.bf16.mxu1 %v11098_v5  ;;  %v11110_v4 = vld [vmem:[%s15140_s7 + $0x8] sm:$0xff]   ;;  %v11111_v5 = vld [vmem:[%s15140_s7 + $0x10] sm:$0xff]  }
 0x4c2   :  { %10839 = vmatpush3.bf16.msra.mxu0 %v11099_v6  ;;  %10861 = vmatpush3.bf16.msra.mxu1 %v11100_v7  ;;  %v11112_v6 = vld [vmem:[%s15140_s7 + $0x18] sm:$0xff]   ;;  %v11113_v7 = vld [vmem:[%s15140_s7 + $0x20] sm:$0xff]  }
 0x4c3   :  { %10888 = vmatprep.subr.bf16.mxu0 %v11101_v9  ;;  %10907 = vmatprep.subr.bf16.mxu1 %v11109_v3 }
 0x578   :  { %v8696_v47 = vpop.f32.mrb[12].mxu0  ;;  %v8911_v51 = vpop.f32.mrb[12].mxu1 }
 0x579   :  { %v8928_v48 = vmax.f32 %v14686_v11, %v8696_v47  ;;  %v8698_v52 = vpop.f32.mrb[13].mxu0  ;;  %v8930_v53 = vmax.f32 %v14694_v23, %v8911_v51  ;;  %v8913_v56 = vpop.f32.mrb[13].mxu1 }
 0x57a   :  { %v8929_v55 = vmax.f32 %v14696_v32, %v8698_v52  ;;  %v8700_v57 = vpop.f32.mrb[14].mxu0  ;;  %v8931_v60 = vmax.f32 %v14704_v41, %v8913_v56  ;;  %v8915_v11 = vpop.f32.mrb[14].mxu1 }
 0x57b   :  { %v8936_v59 = vmax.f32 %v8920_v12, %v8928_v48  ;;  %v8932_v61 = vmax.f32 %v14706_v43, %v8700_v57  ;;  %v8702_v62 = vpop.f32.mrb[15].mxu0  ;;  %v8938_v23 = vmax.f32 %v8922_v17, %v8930_v53  ;;  %v8934_v0 = vmax.f32 %v14708_v45, %v8915_v11  ;;  %v8917_v8 = vpop.f32.mrb[15].mxu1  ;;  %v10806_v11 = vld [vmem:[%s15142_s6] ss:$0 sm:$0xff] }
 0x57c   :  { %v8937_v32 = vmax.f32 %v8921_v18, %v8929_v55  ;;  %v8933_v22 = vmax.f32 %v14710_v46, %v8702_v62  ;;  %v8939_v41 = vmax.f32 %v8923_v24, %v8931_v60  ;;  %v8935_v26 = vmax.f32 %v14712_v49, %v8917_v8  ;;  %v11106_v49 = vld [vmem:[%s15138_s5 + $0x28] sm:$0xff]   ;;  %v10815_v8 = vld [vmem:[%s15143_s8] ss:$0 sm:$0xff] }
 0x57d   :  { %v8966_v12 = vadd.f32 %v8949_v50, %v8936_v59  ;;  %v8940_v43 = vmax.f32 %v8924_v25, %v8932_v61  ;;  %v8968_v13 = vadd.f32 %v8957_v54, %v8938_v23  ;;  %v8942_v27 = vmax.f32 %v8926_v35, %v8934_v0  ;;  %v11116_v61 = vld [vmem:[%s15140_s7 + $0x38] sm:$0xff]  }
 0x57e   :  { %v8941_v14 = vmax.f32 %v8925_v36, %v8933_v22  ;;  %v8967_v17 = vadd.f32 %v8953_v58, %v8937_v32  ;;  %v8943_v30 = vmax.f32 %v8927_v42, %v8935_v26  ;;  %v8969_v18 = vadd.f32 %v8961_v63, %v8939_v41  ;;  %v11103_v36 = vld [vmem:[%s15138_s5 + $0x10] sm:$0xff]   ;;  %v11105_v42 = vld [vmem:[%s15138_s5 + $0x20] sm:$0xff]  }
 0x57f   :  { %v8974_v20 = vmax.f32 %v8966_v12, 0.0  ;;  %v8970_v45 = vadd.f32 %v8949_v50, %v8940_v43  ;;  %v8976_v46 = vmax.f32 %v8968_v13, 0.0  ;;  %v8972_v28 = vadd.f32 %v8957_v54, %v8942_v27 }
 0x580   :  { %v8975_v19 = vmax.f32 %v8967_v17, 0.0  ;;  %v8971_v31 = vadd.f32 %v8953_v58, %v8941_v14  ;;  %v8977_v24 = vmax.f32 %v8969_v18, 0.0  ;;  %v8973_v25 = vadd.f32 %v8961_v63, %v8943_v30 }
 0x581   :  { %v8978_v37 = vmax.f32 %v8970_v45, 0.0  ;;  %v8980_v35 = vmax.f32 %v8972_v28, 0.0 }
 0x582   :  { %9277 = vmatprep.mubr.f32.mxu0 %v8975_v19  ;;  %v8979_v33 = vmax.f32 %v8971_v31, 0.0  ;;  %9320 = vmatprep.mubr.f32.mxu1 %v8977_v24  ;;  %v8981_v29 = vmax.f32 %v8973_v25, 0.0 }
 0x583   :  { %9278 = vmatmul.mubr.f32.vlgmr.msra.gmra.mrb[16].mxu0 %v8974_v20  ;;  %9321 = vmatmul.mubr.f32.vlgmr.msra.gmra.mrb[16].mxu1 %v8976_v46 }
 0x584   :  { %9282 = vmatprep.mubr.f32.mxu0 %v8979_v33  ;;  %9325 = vmatprep.mubr.f32.mxu1 %v8981_v29 }
 0x585   :  { %10889 = vmatpush3.bf16.msra.mxu0 %v11101_v9  ;;  %10908 = vmatpush3.bf16.msra.mxu1 %v11109_v3  ;;  %v11114_v9 = vld [vmem:[%s15140_s7 + $0x28] sm:$0xff]  }
 0x586   :  { %10890 = vmatprep.subr.bf16.mxu0 %v11102_v34  ;;  %10909 = vmatprep.subr.bf16.mxu1 %v11110_v4 }
 0x587   :  { %9283 = vmatmul.mubr.f32.gmra.mrb[18].mxu0 %v8978_v37  ;;  %9326 = vmatmul.mubr.f32.gmra.mrb[18].mxu1 %v8980_v35 }
 0x589   :  { %10891 = vmatpush3.bf16.msra.mxu0 %v11102_v34  ;;  %10910 = vmatpush3.bf16.msra.mxu1 %v11110_v4 }
 0x58a   :  { %10892 = vmatprep.subr.bf16.mxu0 %v11103_v36  ;;  %10911 = vmatprep.subr.bf16.mxu1 %v11111_v5 }
 0x58d   :  { %10893 = vmatpush3.bf16.msra.mxu0 %v11103_v36  ;;  %10912 = vmatpush3.bf16.msra.mxu1 %v11111_v5 }
 0x58e   :  { %10894 = vmatprep.subr.bf16.mxu0 %v11104_v38  ;;  %10913 = vmatprep.subr.bf16.mxu1 %v11112_v6 }
 0x591   :  { %10895 = vmatpush3.bf16.msra.mxu0 %v11104_v38  ;;  %10914 = vmatpush3.bf16.msra.mxu1 %v11112_v6 }
 0x592   :  { %10896 = vmatprep.subr.bf16.mxu0 %v11105_v42  ;;  %10915 = vmatprep.subr.bf16.mxu1 %v11113_v7 }
 0x595   :  { %10897 = vmatpush3.bf16.msra.mxu0 %v11105_v42  ;;  %10916 = vmatpush3.bf16.msra.mxu1 %v11113_v7 }
 0x596   :  { %10898 = vmatprep.subr.bf16.mxu0 %v11106_v49  ;;  %10917 = vmatprep.subr.bf16.mxu1 %v11114_v9 }
 0x599   :  { %10899 = vmatpush3.bf16.msra.mxu0 %v11106_v49  ;;  %10918 = vmatpush3.bf16.msra.mxu1 %v11114_v9 }
 0x59a   :  { %10900 = vmatprep.subr.bf16.mxu0 %v11107_v1  ;;  %10919 = vmatprep.subr.bf16.mxu1 %v11115_v10 }
 0x59d   :  { %10901 = vmatpush3.bf16.msra.mxu0 %v11107_v1  ;;  %10920 = vmatpush3.bf16.msra.mxu1 %v11115_v10 }
 0x59e   :  { %10902 = vmatprep.subr.bf16.mxu0 %v11108_v2  ;;  %10921 = vmatprep.subr.bf16.mxu1 %v11116_v61 }
 0x5a1   :  { %10903 = vmatpush3.bf16.msra.mxu0 %v11108_v2  ;;  %10922 = vmatpush3.bf16.msra.mxu1 %v11116_v61 }
 0x656   :  { %v10840_v15 = vpop.f32.mrb[16].mxu0  ;;  %v10862_v16 = vpop.f32.mrb[16].mxu1 }
 0x657   :  { %v10841_v39 = vpop.f32.mrb[17].mxu0  ;;  %v10863_v44 = vpop.f32.mrb[17].mxu1 }
 0x658   :  { %v10842_v40 = vadd.f32 %v10841_v39, %v10840_v15  ;;  %v10864_v47 = vadd.f32 %v10863_v44, %v10862_v16 }
 0x65a   :  { %v9280_v48 = vadd.f32 %v10842_v40, %v10773_v21  ;;  %v10843_v50 = vpop.f32.mrb[18].mxu0  ;;  %v10865_v51 = vpop.f32.mrb[18].mxu1 }
 0x65b   :  { %v10844_v52 = vpop.f32.mrb[19].mxu0  ;;  %v10866_v55 = vpop.f32.mrb[19].mxu1 }
 0x65c   :  { %v9323_v53 = vadd.f32 %v10864_v47, %v9280_v48  ;;  %v10845_v54 = vadd.f32 %v10844_v52, %v10843_v50  ;;  %v10867_v56 = vadd.f32 %v10866_v55, %v10865_v51 }
 0x65e   :  { %v9331_v57 = vmax.f32 %v9323_v53, 0.0  ;;  %v9285_v58 = vadd.f32 %v10845_v54, %v10773_v21 }
 0x660   :  { %v9328_v59 = vadd.f32 %v10867_v56, %v9285_v58  ;;  %10904 = vmatprep.mubr.f32.mxu0 %v9331_v57 }
 0x662   :  { %v9332_v60 = vmax.f32 %v9328_v59, 0.0 }
 0x664   :  { %10905 = vmatmul.mubr.f32.vlgmr.msra.gmra.mrb[20].mxu0 %v9332_v60 }
 0x737   :  { %v10906_v62 = vpop.f32.mrb[20].mxu0 }
 0x738   :  { %v9444_v63 = vadd.f32 %v10906_v62, %v10806_v11  ;;  %v9438_v23 = vpop.f32.mrb[21].mxu0 }
 0x739   :  { %v9439_v32 = vadd.f32 %v10806_v11, %v9438_v23 }
 0x73a   :  { %v9448_v22 = vmax.f32 %v9444_v63, 0.0 }
 0x73b   :  { %v9447_v0 = vmax.f32 %v9439_v32, 0.0 }
 0x73d   :  { %10923 = vmatprep.mubr.f32.mxu1 %v9447_v0 }
 0x73e   :  { %10924 = vmatmul.mubr.f32.vlgmr.msra.gmra.mrb[20].mxu1 %v9448_v22 }
 0x811   :  { %v10925_v12 = vpop.f32.mrb[20].mxu1 }
 0x812   :  { %v9560_v41 = vadd.f32 %v10925_v12, %v10815_v8  ;;  %v9554_v43 = vpop.f32.mrb[21].mxu1 }
 0x813   :  { %v9555_v26 = vadd.f32 %v10815_v8, %v9554_v43 }
 0x814   :  { %v9564_v13 = vmax.f32 %v9560_v41, 0.0 }
 0x815   :  { %v9563_v27 = vmax.f32 %v9555_v26, 0.0 }
 0x816   :  { %9566 = vst [vmem:[%s15144_s9 + $0x8] sm:$0xff] %v9564_v13 }
 0x817   :  { %9565 = vst [vmem:[%s15144_s9] sm:$0xff] %v9563_v27 }

</bundles_post_ra>
